<compile_context>
chip_gen: v7x
topology: tpu7x:2x2x1
jax: 0.10.0
libtpu: 0.0.40
codegen_flags: <defaults>
</compile_context>

<pallas_src>
import jax
import jax.numpy as jnp
from jax import lax
from jax.experimental import pallas as pl
from jax.experimental.pallas import tpu as pltpu

NUM_CLASSES = 22

CONV1_TN = 2048   # spatial-column tile for the conv1 GEMM (13 steps at N=2)
CONV1_K = 128     # padded contraction dim (C*KH*KW = 75 -> 128, zeros)
LIN1_TK = 2048    # K tile for streaming wl1 in the fused linear stack


def _round_up(x, m):
    return (x + m - 1) // m * m


# ----------------------------------------------------------------------------
# conv1 kernel: out = relu(W @ P + b), single K step -> no accumulator scratch.
# W: (20, 128) bf16 resident, P block: (128, TN) bf16 streamed, out (20, TN) f32
# (lane-dense stores along the spatial axis).
# ----------------------------------------------------------------------------
def _conv1_kernel(w_ref, b_ref, p_ref, o_ref):
    acc = jnp.dot(w_ref[...], p_ref[...], preferred_element_type=jnp.float32)
    o_ref[...] = jnp.maximum(acc + b_ref[...], 0.0).astype(o_ref.dtype)


def conv1_gemm(w_mat, b_col, patches):
    OC, K = w_mat.shape
    _, S = patches.shape
    tn = CONV1_TN
    return pl.pallas_call(
        _conv1_kernel,
        out_shape=jax.ShapeDtypeStruct((OC, S), jnp.float32),
        grid_spec=pltpu.PrefetchScalarGridSpec(
            num_scalar_prefetch=0,
            grid=(S // tn,),
            in_specs=[
                pl.BlockSpec((OC, K), lambda j: (0, 0)),   # weights, resident
                pl.BlockSpec((OC, 1), lambda j: (0, 0)),   # bias, resident
                pl.BlockSpec((K, tn), lambda j: (0, j)),   # patches, streamed
            ],
            out_specs=pl.BlockSpec((OC, tn), lambda j: (0, j)),
        ),
        compiler_params=pltpu.CompilerParams(
            dimension_semantics=("parallel",)),
    )(w_mat, b_col, patches)


# ----------------------------------------------------------------------------
# conv2 kernel (Conv2d(20, 1, 5, 1)): direct shift-and-accumulate on the VPU.
# y1 block (20, 1, 111, 111) f32 fully resident in VMEM, weights in SMEM.
# out[n, oh, ow] = relu(b2 + sum_{c,ky,kx} w2[c,ky,kx] * y1[c, n, oh+ky, ow+kx])
# ----------------------------------------------------------------------------
def _conv2_kernel(y1_ref, w_ref, b_ref, o_ref):
    C = y1_ref.shape[0]       # 20
    OH = o_ref.shape[1]       # 107
    OW = o_ref.shape[2]       # 107

    def chan_body(c, acc):
        plane = y1_ref[c, 0]                       # (111, 111), dynamic channel
        base = c * 25
        for ky in range(5):
            rows = plane[ky:ky + OH, :]            # (107, 111) sublane shift
            for kx in range(5):
                w = w_ref[base + ky * 5 + kx]      # scalar from SMEM
                acc = acc + w * rows[:, kx:kx + OW]
        return acc

    acc = lax.fori_loop(0, C, chan_body, jnp.zeros((OH, OW), jnp.float32))
    o_ref[0] = jnp.maximum(acc + b_ref[0], 0.0).astype(o_ref.dtype)


def conv2_direct(y1, w2_vec, b2):
    C, N, H, W = y1.shape
    OH, OW = H - 4, W - 4
    return pl.pallas_call(
        _conv2_kernel,
        out_shape=jax.ShapeDtypeStruct((N, OH, OW), jnp.float32),
        grid_spec=pltpu.PrefetchScalarGridSpec(
            num_scalar_prefetch=0,
            grid=(N,),
            in_specs=[
                pl.BlockSpec((C, 1, H, W), lambda n: (0, n, 0, 0)),
                pl.BlockSpec(memory_space=pltpu.MemorySpace.SMEM),   # w2 (500,)
                pl.BlockSpec(memory_space=pltpu.MemorySpace.SMEM),   # b2 (1,)
            ],
            out_specs=pl.BlockSpec((1, OH, OW), lambda n: (n, 0, 0)),
        ),
        compiler_params=pltpu.CompilerParams(
            dimension_semantics=("parallel",)),
    )(y1, w2_vec, b2)


# ----------------------------------------------------------------------------
# Fused linear stack: 11449 -> 128 -> 512 -> 22 in a single pallas_call.
# wl1 streamed over K (accumulated into a VMEM scratch h1); wl2/wl3/biases stay
# resident; h2 and the logits are computed on the final K step.
# ----------------------------------------------------------------------------
def _linear_stack_kernel(x_ref, w1_ref, b1_ref, w2_ref, b2_ref, w3_ref, b3_ref,
                         o_ref, h1_acc):
    k = pl.program_id(0)

    @pl.when(k == 0)
    def _():
        h1_acc[...] = jnp.zeros_like(h1_acc)

    h1_acc[...] += jnp.dot(x_ref[...], w1_ref[...],
                           preferred_element_type=jnp.float32)

    @pl.when(k == pl.num_programs(0) - 1)
    def _():
        h1 = jnp.maximum(h1_acc[...] + b1_ref[...], 0.0)
        h2 = jnp.maximum(
            jnp.dot(h1, w2_ref[...], preferred_element_type=jnp.float32)
            + b2_ref[...], 0.0)
        logits = jnp.dot(h2, w3_ref[...], preferred_element_type=jnp.float32)
        o_ref[...] = (logits + b3_ref[...]).astype(o_ref.dtype)


def linear_stack(flat, wl1_t, bl1, wl2_t, bl2, wl3_t, bl3):
    Nb, K = flat.shape
    Kp, H1 = wl1_t.shape
    H2 = wl2_t.shape[1]
    NC = wl3_t.shape[1]
    tk = LIN1_TK
    flat_p = jnp.pad(flat, ((0, 0), (0, Kp - K))).astype(jnp.bfloat16)
    return pl.pallas_call(
        _linear_stack_kernel,
        out_shape=jax.ShapeDtypeStruct((Nb, NC), jnp.float32),
        grid_spec=pltpu.PrefetchScalarGridSpec(
            num_scalar_prefetch=0,
            grid=(Kp // tk,),
            in_specs=[
                pl.BlockSpec((Nb, tk), lambda k: (0, k)),    # activations
                pl.BlockSpec((tk, H1), lambda k: (k, 0)),    # wl1 streamed over K
                pl.BlockSpec((1, H1), lambda k: (0, 0)),     # bl1 resident
                pl.BlockSpec((H1, H2), lambda k: (0, 0)),    # wl2 resident
                pl.BlockSpec((1, H2), lambda k: (0, 0)),     # bl2 resident
                pl.BlockSpec((H2, NC), lambda k: (0, 0)),    # wl3 resident
                pl.BlockSpec((1, NC), lambda k: (0, 0)),     # bl3 resident
            ],
            out_specs=pl.BlockSpec((Nb, NC), lambda k: (0, 0)),
            scratch_shapes=[pltpu.VMEM((Nb, H1), jnp.float32)],
        ),
        compiler_params=pltpu.CompilerParams(
            dimension_semantics=("arbitrary",)),
    )(flat_p, wl1_t, bl1, wl2_t, bl2, wl3_t, bl3)
    # TODO(synk): on v7x the K-streaming axis is sequential; exposing a parallel
    # axis here needs a cross-core reduction of h1 and is skipped (batch=2 work).


# ----------------------------------------------------------------------------
# One-time (outside jit) conversion of PyTorch-layout params to kernel layout:
# pre-transposed / pre-padded / bf16 where streamed, so no per-forward wl1.T etc.
# ----------------------------------------------------------------------------
def pack_params(params):
    w1, b1, w2, b2, wl1, bl1, wl2, bl2, wl3, bl3 = params
    OC1 = w1.shape[0]
    k1 = w1.shape[1] * w1.shape[2] * w1.shape[3]            # 75
    w1_mat = jnp.zeros((OC1, CONV1_K), jnp.bfloat16)
    w1_mat = w1_mat.at[:, :k1].set(w1.reshape(OC1, k1).astype(jnp.bfloat16))

    kin = wl1.shape[1]                                       # 11449
    kp = _round_up(kin, LIN1_TK)                             # 12288
    wl1_t = jnp.zeros((kp, wl1.shape[0]), jnp.bfloat16)
    wl1_t = wl1_t.at[:kin, :].set(wl1.T.astype(jnp.bfloat16))

    return dict(
        w1_mat=w1_mat,                                   # (20, 128) bf16
        b1_col=b1.astype(jnp.float32).reshape(-1, 1),    # (20, 1)
        w2_vec=w2.astype(jnp.float32).reshape(-1),       # (500,) (c, ky, kx) order
        b2=b2.astype(jnp.float32).reshape(-1),           # (1,)
        wl1_t=wl1_t,                                     # (12288, 128) bf16
        bl1=bl1.astype(jnp.float32).reshape(1, -1),      # (1, 128)
        wl2_t=wl2.T.astype(jnp.float32),                 # (128, 512)
        bl2=bl2.astype(jnp.float32).reshape(1, -1),      # (1, 512)
        wl3_t=wl3.T.astype(jnp.float32),                 # (512, 22)
        bl3=bl3.astype(jnp.float32).reshape(1, -1),      # (1, 22)
    )


# ----------------------------------------------------------------------------
# BersonNetwork forward
# ----------------------------------------------------------------------------
def berson_forward(x, packed):
    """x: (N, 3, 225, 225) f32 NCHW — the Linear(11449, .) forces 225x225."""
    N, C, H, W = x.shape
    OH1 = (H - 5) // 2 + 1            # 111
    OW1 = (W - 5) // 2 + 1            # 111
    OH2, OW2 = OH1 - 4, OW1 - 4       # 107, 107

    # conv1: transposed im2col so the GEMM output (20, spatial) is lane-dense and
    # already channel-major for the conv2 kernel (no NHWC<->NCHW round trip).
    xb = x.astype(jnp.bfloat16)
    taps = [xb[:, c, ky:ky + 2 * OH1 - 1:2, kx:kx + 2 * OW1 - 1:2]
            for c in range(C) for ky in range(5) for kx in range(5)]
    S1 = N * OH1 * OW1
    S1p = _round_up(S1, CONV1_TN)
    p = jnp.stack(taps, axis=0).reshape(C * 25, S1)            # (75, S1) bf16
    p = jnp.pad(p, ((0, CONV1_K - C * 25), (0, S1p - S1)))     # K/col pad, bf16
    y1 = conv1_gemm(packed["w1_mat"], packed["b1_col"], p)     # (20, S1p) f32
    y1 = y1[:, :S1].reshape(20, N, OH1, OW1)                   # channel-major

    # conv2 (OC == 1): direct fused kernel, output is the flattened feature map.
    y2 = conv2_direct(y1, packed["w2_vec"], packed["b2"])      # (N, 107, 107)
    flat = y2.reshape(N, OH2 * OW2)                            # (N, 11449)

    # fused linear stack 11449 -> 128 -> 512 -> 22
    return linear_stack(flat, packed["wl1_t"], packed["bl1"],
                        packed["wl2_t"], packed["bl2"],
                        packed["wl3_t"], packed["bl3"])


# Pure-JAX reference (for sanity checking the Pallas implementation).
def berson_forward_ref(x, params):
    w1, b1, w2, b2, wl1, bl1, wl2, bl2, wl3, bl3 = params
    hp = jax.lax.Precision.HIGHEST
    dn = ('NCHW', 'OIHW', 'NCHW')
    y = jax.lax.conv_general_dilated(x, w1, (2, 2), 'VALID',
                                     dimension_numbers=dn, precision=hp)
    y = jnp.maximum(y + b1[None, :, None, None], 0.0)
    y = jax.lax.conv_general_dilated(y, w2, (1, 1), 'VALID',
                                     dimension_numbers=dn, precision=hp)
    y = jnp.maximum(y + b2[None, :, None, None], 0.0)
    y = y.reshape(y.shape[0], -1)
    y = jnp.maximum(jnp.dot(y, wl1.T, precision=hp) + bl1, 0.0)
    y = jnp.maximum(jnp.dot(y, wl2.T, precision=hp) + bl2, 0.0)
    return jnp.dot(y, wl3.T, precision=hp) + bl3


def init_params(key):
    ks = jax.random.split(key, 10)
    s = 0.05
    w1 = s * jax.random.normal(ks[0], (20, 3, 5, 5), jnp.float32)
    b1 = s * jax.random.normal(ks[1], (20,), jnp.float32)
    w2 = s * jax.random.normal(ks[2], (1, 20, 5, 5), jnp.float32)
    b2 = s * jax.random.normal(ks[3], (1,), jnp.float32)
    wl1 = s * jax.random.normal(ks[4], (128, 11449), jnp.float32)
    bl1 = s * jax.random.normal(ks[5], (128,), jnp.float32)
    wl2 = s * jax.random.normal(ks[6], (512, 128), jnp.float32)
    bl2 = s * jax.random.normal(ks[7], (512,), jnp.float32)
    wl3 = s * jax.random.normal(ks[8], (NUM_CLASSES, 512), jnp.float32)
    bl3 = s * jax.random.normal(ks[9], (NUM_CLASSES,), jnp.float32)
    return (w1, b1, w2, b2, wl1, bl1, wl2, bl2, wl3, bl3)


if __name__ == "__main__":
    key = jax.random.PRNGKey(0)
    pkey, xkey = jax.random.split(key)
    params = init_params(pkey)
    packed = pack_params(params)          # weight layout prep, once, outside jit
    x = jax.random.normal(xkey, (2, 3, 225, 225), jnp.float32)

    fwd = jax.jit(berson_forward)
    logits = jax.block_until_ready(fwd(x, packed))
    assert logits.shape == (2, NUM_CLASSES)

    ref = jax.block_until_ready(berson_forward_ref(x, params))
    # bf16 streaming operands (conv1 patches / w1 / flat / wl1) with f32 accumulation.
    assert jnp.allclose(logits, ref, atol=2e-2, rtol=2e-2), (
        float(jnp.max(jnp.abs(logits - ref))))

    print("KERNEL_OK")
</pallas_src>

<mosaic_0001>
module attributes {stable_mosaic.version = 11 : i64} {
  func.func @_conv1_kernel(%arg0: i32, %arg1: memref<20x128xbf16, #tpu.memory_space<vmem>>, %arg2: memref<20x1xf32, #tpu.memory_space<vmem>>, %arg3: memref<128x2048xbf16, #tpu.memory_space<vmem>>, %arg4: memref<20x2048xf32, #tpu.memory_space<vmem>>) attributes {dimension_semantics = [#tpu.dimension_semantics<parallel>], iteration_bounds = array<i64: 13>, scalar_prefetch = 0 : i64, scratch_operands = 0 : i64, tpu.core_type = #tpu.core_type<tc>, window_params = [{pipeline_mode = #tpu.pipeline_mode<synchronous>, transform_indices = @transform_0, window_bounds = array<i64: 20, 128>}, {pipeline_mode = #tpu.pipeline_mode<synchronous>, transform_indices = @transform_1, window_bounds = array<i64: 20, 1>}, {transform_indices = @transform_2, window_bounds = array<i64: 128, 2048>}, {transform_indices = @transform_3, window_bounds = array<i64: 20, 2048>}]} {
    %c0 = arith.constant 0 : index
    %c0_0 = arith.constant 0 : index
    %0 = vector.load %arg1[%c0, %c0_0] : memref<20x128xbf16, #tpu.memory_space<vmem>>, vector<20x128xbf16>
    %c0_1 = arith.constant 0 : index
    %c0_2 = arith.constant 0 : index
    %1 = vector.load %arg3[%c0_1, %c0_2] : memref<128x2048xbf16, #tpu.memory_space<vmem>>, vector<128x2048xbf16>
    %cst = arith.constant dense<0.000000e+00> : vector<20x2048xf32>
    %2 = tpu.matmul %0, %1, %cst {dimension_numbers = #tpu.dot_dimension_numbers<[1], [0], [0], [1], [0, 0, 1, 1], [], []>} : vector<20x128xbf16>, vector<128x2048xbf16>, vector<20x2048xf32> -> vector<20x2048xf32>
    %c0_3 = arith.constant 0 : index
    %c0_4 = arith.constant 0 : index
    %3 = vector.load %arg2[%c0_3, %c0_4] : memref<20x1xf32, #tpu.memory_space<vmem>>, vector<20x1xf32>
    %4 = vector.broadcast %3 : vector<20x1xf32> to vector<20x2048xf32>
    %5 = arith.addf %2, %4 : vector<20x2048xf32>
    %cst_5 = arith.constant 0.000000e+00 : f32
    %6 = vector.broadcast %cst_5 : f32 to vector<20x2048xf32>
    %7 = arith.maximumf %5, %6 : vector<20x2048xf32>
    %c0_6 = arith.constant 0 : index
    %c0_7 = arith.constant 0 : index
    %8 = vector.load %arg4[%c0_6, %c0_7] : memref<20x2048xf32, #tpu.memory_space<vmem>>, vector<20x2048xf32>
    tpu.vector_store %arg4[%c0_6, %c0_7], %7 {strides = array<i32>} : memref<20x2048xf32, #tpu.memory_space<vmem>>, vector<20x2048xf32>,
    return
  }
  func.func @transform_0(%arg0: i32) -> (i32, i32) {
    %c0_i32 = arith.constant 0 : i32
    %c0_i32_0 = arith.constant 0 : i32
    %c0_i32_1 = arith.constant 0 : i32
    return %c0_i32, %c0_i32_0 : i32, i32
  }
  func.func @transform_1(%arg0: i32) -> (i32, i32) {
    %c0_i32 = arith.constant 0 : i32
    %c0_i32_0 = arith.constant 0 : i32
    %c0_i32_1 = arith.constant 0 : i32
    return %c0_i32, %c0_i32_0 : i32, i32
  }
  func.func @transform_2(%arg0: i32) -> (i32, i32) {
    %c0_i32 = arith.constant 0 : i32
    %c0_i32_0 = arith.constant 0 : i32
    return %c0_i32, %arg0 : i32, i32
  }
  func.func @transform_3(%arg0: i32) -> (i32, i32) {
    %c0_i32 = arith.constant 0 : i32
    %c0_i32_0 = arith.constant 0 : i32
    return %c0_i32, %arg0 : i32, i32
  }
}

module attributes {stable_mosaic.version = 11 : i64} {
  func.func @_conv2_kernel(%arg0: i32, %arg1: memref<20x1x111x111xf32, #tpu.memory_space<vmem>>, %arg2: memref<500xf32, #tpu.memory_space<smem>>, %arg3: memref<1xf32, #tpu.memory_space<smem>>, %arg4: memref<1x107x107xf32, #tpu.memory_space<vmem>>) attributes {dimension_semantics = [#tpu.dimension_semantics<parallel>], iteration_bounds = array<i64: 2>, scalar_prefetch = 0 : i64, scratch_operands = 0 : i64, tpu.core_type = #tpu.core_type<tc>, window_params = [{transform_indices = @transform_0, window_bounds = array<i64: 20, 1, 111, 111>}, {transform_indices = @transform_1, window_bounds = array<i64: 500>}, {transform_indices = @transform_2, window_bounds = array<i64: 1>}, {transform_indices = @transform_3, window_bounds = array<i64: 1, 107, 107>}]} {
    %cst = arith.constant 0.000000e+00 : f32
    %0 = vector.broadcast %cst : f32 to vector<107x107xf32>
    %c0_i32 = arith.constant 0 : i32
    %c20_i32 = arith.constant 20 : i32
    %1 = arith.addi %c0_i32, %c20_i32 : i32
    %c1_i32 = arith.constant 1 : i32
    %2 = scf.for %arg5 = %c0_i32 to %1 step %c1_i32 iter_args(%arg6 = %0) -> (vector<107x107xf32>)  : i32 {
      %11 = arith.index_cast %arg5 : i32 to index
      %c0_5 = arith.constant 0 : index
      %c0_6 = arith.constant 0 : index
      %c0_7 = arith.constant 0 : index
      %12 = vector.load %arg1[%11, %c0_5, %c0_6, %c0_7] : memref<20x1x111x111xf32, #tpu.memory_space<vmem>>, vector<1x1x111x111xf32>
      %13 = vector.shape_cast %12 : vector<1x1x111x111xf32> to vector<111x111xf32>
      %c25_i32 = arith.constant 25 : i32
      %14 = arith.muli %arg5, %c25_i32 : i32
      %15 = vector.extract_strided_slice %13 {offsets = [0, 0], sizes = [107, 111], strides = [1, 1]} : vector<111x111xf32> to vector<107x111xf32>
      %c0_i32_8 = arith.constant 0 : i32
      %16 = arith.addi %14, %c0_i32_8 : i32
      %c0_i32_9 = arith.constant 0 : i32
      %17 = arith.addi %16, %c0_i32_9 : i32
      %18 = arith.index_cast %17 : i32 to index
      %19 = memref.load %arg2[%18] : memref<500xf32, #tpu.memory_space<smem>>
      %20 = vector.extract_strided_slice %15 {offsets = [0, 0], sizes = [107, 107], strides = [1, 1]} : vector<107x111xf32> to vector<107x107xf32>
      %21 = vector.broadcast %19 : f32 to vector<107x107xf32>
      %22 = arith.mulf %21, %20 : vector<107x107xf32>
      %23 = arith.addf %arg6, %22 : vector<107x107xf32>
      %c0_i32_10 = arith.constant 0 : i32
      %24 = arith.addi %14, %c0_i32_10 : i32
      %c1_i32_11 = arith.constant 1 : i32
      %25 = arith.addi %24, %c1_i32_11 : i32
      %26 = arith.index_cast %25 : i32 to index
      %27 = memref.load %arg2[%26] : memref<500xf32, #tpu.memory_space<smem>>
      %28 = vector.extract_strided_slice %15 {offsets = [0, 1], sizes = [107, 107], strides = [1, 1]} : vector<107x111xf32> to vector<107x107xf32>
      %29 = vector.broadcast %27 : f32 to vector<107x107xf32>
      %30 = arith.mulf %29, %28 : vector<107x107xf32>
      %31 = arith.addf %23, %30 : vector<107x107xf32>
      %c0_i32_12 = arith.constant 0 : i32
      %32 = arith.addi %14, %c0_i32_12 : i32
      %c2_i32 = arith.constant 2 : i32
      %33 = arith.addi %32, %c2_i32 : i32
      %34 = arith.index_cast %33 : i32 to index
      %35 = memref.load %arg2[%34] : memref<500xf32, #tpu.memory_space<smem>>
      %36 = vector.extract_strided_slice %15 {offsets = [0, 2], sizes = [107, 107], strides = [1, 1]} : vector<107x111xf32> to vector<107x107xf32>
      %37 = vector.broadcast %35 : f32 to vector<107x107xf32>
      %38 = arith.mulf %37, %36 : vector<107x107xf32>
      %39 = arith.addf %31, %38 : vector<107x107xf32>
      %c0_i32_13 = arith.constant 0 : i32
      %40 = arith.addi %14, %c0_i32_13 : i32
      %c3_i32 = arith.constant 3 : i32
      %41 = arith.addi %40, %c3_i32 : i32
      %42 = arith.index_cast %41 : i32 to index
      %43 = memref.load %arg2[%42] : memref<500xf32, #tpu.memory_space<smem>>
      %44 = vector.extract_strided_slice %15 {offsets = [0, 3], sizes = [107, 107], strides = [1, 1]} : vector<107x111xf32> to vector<107x107xf32>
      %45 = vector.broadcast %43 : f32 to vector<107x107xf32>
      %46 = arith.mulf %45, %44 : vector<107x107xf32>
      %47 = arith.addf %39, %46 : vector<107x107xf32>
      %c0_i32_14 = arith.constant 0 : i32
      %48 = arith.addi %14, %c0_i32_14 : i32
      %c4_i32 = arith.constant 4 : i32
      %49 = arith.addi %48, %c4_i32 : i32
      %50 = arith.index_cast %49 : i32 to index
      %51 = memref.load %arg2[%50] : memref<500xf32, #tpu.memory_space<smem>>
      %52 = vector.extract_strided_slice %15 {offsets = [0, 4], sizes = [107, 107], strides = [1, 1]} : vector<107x111xf32> to vector<107x107xf32>
      %53 = vector.broadcast %51 : f32 to vector<107x107xf32>
      %54 = arith.mulf %53, %52 : vector<107x107xf32>
      %55 = arith.addf %47, %54 : vector<107x107xf32>
      %56 = vector.extract_strided_slice %13 {offsets = [1, 0], sizes = [107, 111], strides = [1, 1]} : vector<111x111xf32> to vector<107x111xf32>
      %c5_i32 = arith.constant 5 : i32
      %57 = arith.addi %14, %c5_i32 : i32
      %c0_i32_15 = arith.constant 0 : i32
      %58 = arith.addi %57, %c0_i32_15 : i32
      %59 = arith.index_cast %58 : i32 to index
      %60 = memref.load %arg2[%59] : memref<500xf32, #tpu.memory_space<smem>>
      %61 = vector.extract_strided_slice %56 {offsets = [0, 0], sizes = [107, 107], strides = [1, 1]} : vector<107x111xf32> to vector<107x107xf32>
      %62 = vector.broadcast %60 : f32 to vector<107x107xf32>
      %63 = arith.mulf %62, %61 : vector<107x107xf32>
      %64 = arith.addf %55, %63 : vector<107x107xf32>
      %c5_i32_16 = arith.constant 5 : i32
      %65 = arith.addi %14, %c5_i32_16 : i32
      %c1_i32_17 = arith.constant 1 : i32
      %66 = arith.addi %65, %c1_i32_17 : i32
      %67 = arith.index_cast %66 : i32 to index
      %68 = memref.load %arg2[%67] : memref<500xf32, #tpu.memory_space<smem>>
      %69 = vector.extract_strided_slice %56 {offsets = [0, 1], sizes = [107, 107], strides = [1, 1]} : vector<107x111xf32> to vector<107x107xf32>
      %70 = vector.broadcast %68 : f32 to vector<107x107xf32>
      %71 = arith.mulf %70, %69 : vector<107x107xf32>
      %72 = arith.addf %64, %71 : vector<107x107xf32>
      %c5_i32_18 = arith.constant 5 : i32
      %73 = arith.addi %14, %c5_i32_18 : i32
      %c2_i32_19 = arith.constant 2 : i32
      %74 = arith.addi %73, %c2_i32_19 : i32
      %75 = arith.index_cast %74 : i32 to index
      %76 = memref.load %arg2[%75] : memref<500xf32, #tpu.memory_space<smem>>
      %77 = vector.extract_strided_slice %56 {offsets = [0, 2], sizes = [107, 107], strides = [1, 1]} : vector<107x111xf32> to vector<107x107xf32>
      %78 = vector.broadcast %76 : f32 to vector<107x107xf32>
      %79 = arith.mulf %78, %77 : vector<107x107xf32>
      %80 = arith.addf %72, %79 : vector<107x107xf32>
      %c5_i32_20 = arith.constant 5 : i32
      %81 = arith.addi %14, %c5_i32_20 : i32
      %c3_i32_21 = arith.constant 3 : i32
      %82 = arith.addi %81, %c3_i32_21 : i32
      %83 = arith.index_cast %82 : i32 to index
      %84 = memref.load %arg2[%83] : memref<500xf32, #tpu.memory_space<smem>>
      %85 = vector.extract_strided_slice %56 {offsets = [0, 3], sizes = [107, 107], strides = [1, 1]} : vector<107x111xf32> to vector<107x107xf32>
      %86 = vector.broadcast %84 : f32 to vector<107x107xf32>
      %87 = arith.mulf %86, %85 : vector<107x107xf32>
      %88 = arith.addf %80, %87 : vector<107x107xf32>
      %c5_i32_22 = arith.constant 5 : i32
      %89 = arith.addi %14, %c5_i32_22 : i32
      %c4_i32_23 = arith.constant 4 : i32
      %90 = arith.addi %89, %c4_i32_23 : i32
      %91 = arith.index_cast %90 : i32 to index
      %92 = memref.load %arg2[%91] : memref<500xf32, #tpu.memory_space<smem>>
      %93 = vector.extract_strided_slice %56 {offsets = [0, 4], sizes = [107, 107], strides = [1, 1]} : vector<107x111xf32> to vector<107x107xf32>
      %94 = vector.broadcast %92 : f32 to vector<107x107xf32>
      %95 = arith.mulf %94, %93 : vector<107x107xf32>
      %96 = arith.addf %88, %95 : vector<107x107xf32>
      %97 = vector.extract_strided_slice %13 {offsets = [2, 0], sizes = [107, 111], strides = [1, 1]} : vector<111x111xf32> to vector<107x111xf32>
      %c10_i32 = arith.constant 10 : i32
      %98 = arith.addi %14, %c10_i32 : i32
      %c0_i32_24 = arith.constant 0 : i32
      %99 = arith.addi %98, %c0_i32_24 : i32
      %100 = arith.index_cast %99 : i32 to index
      %101 = memref.load %arg2[%100] : memref<500xf32, #tpu.memory_space<smem>>
      %102 = vector.extract_strided_slice %97 {offsets = [0, 0], sizes = [107, 107], strides = [1, 1]} : vector<107x111xf32> to vector<107x107xf32>
      %103 = vector.broadcast %101 : f32 to vector<107x107xf32>
      %104 = arith.mulf %103, %102 : vector<107x107xf32>
      %105 = arith.addf %96, %104 : vector<107x107xf32>
      %c10_i32_25 = arith.constant 10 : i32
      %106 = arith.addi %14, %c10_i32_25 : i32
      %c1_i32_26 = arith.constant 1 : i32
      %107 = arith.addi %106, %c1_i32_26 : i32
      %108 = arith.index_cast %107 : i32 to index
      %109 = memref.load %arg2[%108] : memref<500xf32, #tpu.memory_space<smem>>
      %110 = vector.extract_strided_slice %97 {offsets = [0, 1], sizes = [107, 107], strides = [1, 1]} : vector<107x111xf32> to vector<107x107xf32>
      %111 = vector.broadcast %109 : f32 to vector<107x107xf32>
      %112 = arith.mulf %111, %110 : vector<107x107xf32>
      %113 = arith.addf %105, %112 : vector<107x107xf32>
      %c10_i32_27 = arith.constant 10 : i32
      %114 = arith.addi %14, %c10_i32_27 : i32
      %c2_i32_28 = arith.constant 2 : i32
      %115 = arith.addi %114, %c2_i32_28 : i32
      %116 = arith.index_cast %115 : i32 to index
      %117 = memref.load %arg2[%116] : memref<500xf32, #tpu.memory_space<smem>>
      %118 = vector.extract_strided_slice %97 {offsets = [0, 2], sizes = [107, 107], strides = [1, 1]} : vector<107x111xf32> to vector<107x107xf32>
      %119 = vector.broadcast %117 : f32 to vector<107x107xf32>
      %120 = arith.mulf %119, %118 : vector<107x107xf32>
      %121 = arith.addf %113, %120 : vector<107x107xf32>
      %c10_i32_29 = arith.constant 10 : i32
      %122 = arith.addi %14, %c10_i32_29 : i32
      %c3_i32_30 = arith.constant 3 : i32
      %123 = arith.addi %122, %c3_i32_30 : i32
      %124 = arith.index_cast %123 : i32 to index
      %125 = memref.load %arg2[%124] : memref<500xf32, #tpu.memory_space<smem>>
      %126 = vector.extract_strided_slice %97 {offsets = [0, 3], sizes = [107, 107], strides = [1, 1]} : vector<107x111xf32> to vector<107x107xf32>
      %127 = vector.broadcast %125 : f32 to vector<107x107xf32>
      %128 = arith.mulf %127, %126 : vector<107x107xf32>
      %129 = arith.addf %121, %128 : vector<107x107xf32>
      %c10_i32_31 = arith.constant 10 : i32
      %130 = arith.addi %14, %c10_i32_31 : i32
      %c4_i32_32 = arith.constant 4 : i32
      %131 = arith.addi %130, %c4_i32_32 : i32
      %132 = arith.index_cast %131 : i32 to index
      %133 = memref.load %arg2[%132] : memref<500xf32, #tpu.memory_space<smem>>
      %134 = vector.extract_strided_slice %97 {offsets = [0, 4], sizes = [107, 107], strides = [1, 1]} : vector<107x111xf32> to vector<107x107xf32>
      %135 = vector.broadcast %133 : f32 to vector<107x107xf32>
      %136 = arith.mulf %135, %134 : vector<107x107xf32>
      %137 = arith.addf %129, %136 : vector<107x107xf32>
      %138 = vector.extract_strided_slice %13 {offsets = [3, 0], sizes = [107, 111], strides = [1, 1]} : vector<111x111xf32> to vector<107x111xf32>
      %c15_i32 = arith.constant 15 : i32
      %139 = arith.addi %14, %c15_i32 : i32
      %c0_i32_33 = arith.constant 0 : i32
      %140 = arith.addi %139, %c0_i32_33 : i32
      %141 = arith.index_cast %140 : i32 to index
      %142 = memref.load %arg2[%141] : memref<500xf32, #tpu.memory_space<smem>>
      %143 = vector.extract_strided_slice %138 {offsets = [0, 0], sizes = [107, 107], strides = [1, 1]} : vector<107x111xf32> to vector<107x107xf32>
      %144 = vector.broadcast %142 : f32 to vector<107x107xf32>
      %145 = arith.mulf %144, %143 : vector<107x107xf32>
      %146 = arith.addf %137, %145 : vector<107x107xf32>
      %c15_i32_34 = arith.constant 15 : i32
      %147 = arith.addi %14, %c15_i32_34 : i32
      %c1_i32_35 = arith.constant 1 : i32
      %148 = arith.addi %147, %c1_i32_35 : i32
      %149 = arith.index_cast %148 : i32 to index
      %150 = memref.load %arg2[%149] : memref<500xf32, #tpu.memory_space<smem>>
      %151 = vector.extract_strided_slice %138 {offsets = [0, 1], sizes = [107, 107], strides = [1, 1]} : vector<107x111xf32> to vector<107x107xf32>
      %152 = vector.broadcast %150 : f32 to vector<107x107xf32>
      %153 = arith.mulf %152, %151 : vector<107x107xf32>
      %154 = arith.addf %146, %153 : vector<107x107xf32>
      %c15_i32_36 = arith.constant 15 : i32
      %155 = arith.addi %14, %c15_i32_36 : i32
      %c2_i32_37 = arith.constant 2 : i32
      %156 = arith.addi %155, %c2_i32_37 : i32
      %157 = arith.index_cast %156 : i32 to index
      %158 = memref.load %arg2[%157] : memref<500xf32, #tpu.memory_space<smem>>
      %159 = vector.extract_strided_slice %138 {offsets = [0, 2], sizes = [107, 107], strides = [1, 1]} : vector<107x111xf32> to vector<107x107xf32>
      %160 = vector.broadcast %158 : f32 to vector<107x107xf32>
      %161 = arith.mulf %160, %159 : vector<107x107xf32>
      %162 = arith.addf %154, %161 : vector<107x107xf32>
      %c15_i32_38 = arith.constant 15 : i32
      %163 = arith.addi %14, %c15_i32_38 : i32
      %c3_i32_39 = arith.constant 3 : i32
      %164 = arith.addi %163, %c3_i32_39 : i32
      %165 = arith.index_cast %164 : i32 to index
      %166 = memref.load %arg2[%165] : memref<500xf32, #tpu.memory_space<smem>>
      %167 = vector.extract_strided_slice %138 {offsets = [0, 3], sizes = [107, 107], strides = [1, 1]} : vector<107x111xf32> to vector<107x107xf32>
      %168 = vector.broadcast %166 : f32 to vector<107x107xf32>
      %169 = arith.mulf %168, %167 : vector<107x107xf32>
      %170 = arith.addf %162, %169 : vector<107x107xf32>
      %c15_i32_40 = arith.constant 15 : i32
      %171 = arith.addi %14, %c15_i32_40 : i32
      %c4_i32_41 = arith.constant 4 : i32
      %172 = arith.addi %171, %c4_i32_41 : i32
      %173 = arith.index_cast %172 : i32 to index
      %174 = memref.load %arg2[%173] : memref<500xf32, #tpu.memory_space<smem>>
      %175 = vector.extract_strided_slice %138 {offsets = [0, 4], sizes = [107, 107], strides = [1, 1]} : vector<107x111xf32> to vector<107x107xf32>
      %176 = vector.broadcast %174 : f32 to vector<107x107xf32>
      %177 = arith.mulf %176, %175 : vector<107x107xf32>
      %178 = arith.addf %170, %177 : vector<107x107xf32>
      %179 = vector.extract_strided_slice %13 {offsets = [4, 0], sizes = [107, 111], strides = [1, 1]} : vector<111x111xf32> to vector<107x111xf32>
      %c20_i32_42 = arith.constant 20 : i32
      %180 = arith.addi %14, %c20_i32_42 : i32
      %c0_i32_43 = arith.constant 0 : i32
      %181 = arith.addi %180, %c0_i32_43 : i32
      %182 = arith.index_cast %181 : i32 to index
      %183 = memref.load %arg2[%182] : memref<500xf32, #tpu.memory_space<smem>>
      %184 = vector.extract_strided_slice %179 {offsets = [0, 0], sizes = [107, 107], strides = [1, 1]} : vector<107x111xf32> to vector<107x107xf32>
      %185 = vector.broadcast %183 : f32 to vector<107x107xf32>
      %186 = arith.mulf %185, %184 : vector<107x107xf32>
      %187 = arith.addf %178, %186 : vector<107x107xf32>
      %c20_i32_44 = arith.constant 20 : i32
      %188 = arith.addi %14, %c20_i32_44 : i32
      %c1_i32_45 = arith.constant 1 : i32
      %189 = arith.addi %188, %c1_i32_45 : i32
      %190 = arith.index_cast %189 : i32 to index
      %191 = memref.load %arg2[%190] : memref<500xf32, #tpu.memory_space<smem>>
      %192 = vector.extract_strided_slice %179 {offsets = [0, 1], sizes = [107, 107], strides = [1, 1]} : vector<107x111xf32> to vector<107x107xf32>
      %193 = vector.broadcast %191 : f32 to vector<107x107xf32>
      %194 = arith.mulf %193, %192 : vector<107x107xf32>
      %195 = arith.addf %187, %194 : vector<107x107xf32>
      %c20_i32_46 = arith.constant 20 : i32
      %196 = arith.addi %14, %c20_i32_46 : i32
      %c2_i32_47 = arith.constant 2 : i32
      %197 = arith.addi %196, %c2_i32_47 : i32
      %198 = arith.index_cast %197 : i32 to index
      %199 = memref.load %arg2[%198] : memref<500xf32, #tpu.memory_space<smem>>
      %200 = vector.extract_strided_slice %179 {offsets = [0, 2], sizes = [107, 107], strides = [1, 1]} : vector<107x111xf32> to vector<107x107xf32>
      %201 = vector.broadcast %199 : f32 to vector<107x107xf32>
      %202 = arith.mulf %201, %200 : vector<107x107xf32>
      %203 = arith.addf %195, %202 : vector<107x107xf32>
      %c20_i32_48 = arith.constant 20 : i32
      %204 = arith.addi %14, %c20_i32_48 : i32
      %c3_i32_49 = arith.constant 3 : i32
      %205 = arith.addi %204, %c3_i32_49 : i32
      %206 = arith.index_cast %205 : i32 to index
      %207 = memref.load %arg2[%206] : memref<500xf32, #tpu.memory_space<smem>>
      %208 = vector.extract_strided_slice %179 {offsets = [0, 3], sizes = [107, 107], strides = [1, 1]} : vector<107x111xf32> to vector<107x107xf32>
      %209 = vector.broadcast %207 : f32 to vector<107x107xf32>
      %210 = arith.mulf %209, %208 : vector<107x107xf32>
      %211 = arith.addf %203, %210 : vector<107x107xf32>
      %c20_i32_50 = arith.constant 20 : i32
      %212 = arith.addi %14, %c20_i32_50 : i32
      %c4_i32_51 = arith.constant 4 : i32
      %213 = arith.addi %212, %c4_i32_51 : i32
      %214 = arith.index_cast %213 : i32 to index
      %215 = memref.load %arg2[%214] : memref<500xf32, #tpu.memory_space<smem>>
      %216 = vector.extract_strided_slice %179 {offsets = [0, 4], sizes = [107, 107], strides = [1, 1]} : vector<107x111xf32> to vector<107x107xf32>
      %217 = vector.broadcast %215 : f32 to vector<107x107xf32>
      %218 = arith.mulf %217, %216 : vector<107x107xf32>
      %219 = arith.addf %211, %218 : vector<107x107xf32>
      scf.yield %219 : vector<107x107xf32>
    }
    %c20_i32_0 = arith.constant 20 : i32
    %c0 = arith.constant 0 : index
    %3 = memref.load %arg3[%c0] : memref<1xf32, #tpu.memory_space<smem>>
    %4 = vector.broadcast %3 : f32 to vector<107x107xf32>
    %5 = arith.addf %2, %4 : vector<107x107xf32>
    %cst_1 = arith.constant 0.000000e+00 : f32
    %6 = vector.broadcast %cst_1 : f32 to vector<107x107xf32>
    %7 = arith.maximumf %5, %6 : vector<107x107xf32>
    %c0_2 = arith.constant 0 : index
    %c0_3 = arith.constant 0 : index
    %c0_4 = arith.constant 0 : index
    %8 = vector.load %arg4[%c0_2, %c0_3, %c0_4] : memref<1x107x107xf32, #tpu.memory_space<vmem>>, vector<1x107x107xf32>
    %9 = vector.shape_cast %8 : vector<1x107x107xf32> to vector<107x107xf32>
    %10 = vector.shape_cast %7 : vector<107x107xf32> to vector<1x107x107xf32>
    tpu.vector_store %arg4[%c0_2, %c0_3, %c0_4], %10 {strides = array<i32>} : memref<1x107x107xf32, #tpu.memory_space<vmem>>, vector<1x107x107xf32>,
    return
  }
  func.func @transform_0(%arg0: i32) -> (i32, i32, i32, i32) {
    %c0_i32 = arith.constant 0 : i32
    %c0_i32_0 = arith.constant 0 : i32
    %c0_i32_1 = arith.constant 0 : i32
    %c0_i32_2 = arith.constant 0 : i32
    return %c0_i32, %arg0, %c0_i32_0, %c0_i32_1 : i32, i32, i32, i32
  }
  func.func @transform_1(%arg0: i32) -> i32 {
    %c0_i32 = arith.constant 0 : i32
    %c0_i32_0 = arith.constant 0 : i32
    return %c0_i32 : i32
  }
  func.func @transform_2(%arg0: i32) -> i32 {
    %c0_i32 = arith.constant 0 : i32
    %c0_i32_0 = arith.constant 0 : i32
    return %c0_i32 : i32
  }
  func.func @transform_3(%arg0: i32) -> (i32, i32, i32) {
    %c0_i32 = arith.constant 0 : i32
    %c0_i32_0 = arith.constant 0 : i32
    %c0_i32_1 = arith.constant 0 : i32
    return %arg0, %c0_i32, %c0_i32_0 : i32, i32, i32
  }
}

module attributes {stable_mosaic.version = 11 : i64} {
  func.func @_linear_stack_kernel(%arg0: i32, %arg1: memref<2x2048xbf16, #tpu.memory_space<vmem>>, %arg2: memref<2048x128xbf16, #tpu.memory_space<vmem>>, %arg3: memref<1x128xf32, #tpu.memory_space<vmem>>, %arg4: memref<128x512xf32, #tpu.memory_space<vmem>>, %arg5: memref<1x512xf32, #tpu.memory_space<vmem>>, %arg6: memref<512x22xf32, #tpu.memory_space<vmem>>, %arg7: memref<1x22xf32, #tpu.memory_space<vmem>>, %arg8: memref<2x22xf32, #tpu.memory_space<vmem>>, %arg9: memref<2x128xf32, #tpu.memory_space<vmem>>) attributes {dimension_semantics = [#tpu.dimension_semantics<arbitrary>], iteration_bounds = array<i64: 6>, scalar_prefetch = 0 : i64, scratch_operands = 1 : i64, tpu.core_type = #tpu.core_type<tc>, window_params = [{transform_indices = @transform_0, window_bounds = array<i64: 2, 2048>}, {transform_indices = @transform_1, window_bounds = array<i64: 2048, 128>}, {pipeline_mode = #tpu.pipeline_mode<synchronous>, transform_indices = @transform_2, window_bounds = array<i64: 1, 128>}, {pipeline_mode = #tpu.pipeline_mode<synchronous>, transform_indices = @transform_3, window_bounds = array<i64: 128, 512>}, {pipeline_mode = #tpu.pipeline_mode<synchronous>, transform_indices = @transform_4, window_bounds = array<i64: 1, 512>}, {pipeline_mode = #tpu.pipeline_mode<synchronous>, transform_indices = @transform_5, window_bounds = array<i64: 512, 22>}, {pipeline_mode = #tpu.pipeline_mode<synchronous>, transform_indices = @transform_6, window_bounds = array<i64: 1, 22>}, {pipeline_mode = #tpu.pipeline_mode<synchronous>, transform_indices = @transform_7, window_bounds = array<i64: 2, 22>}]} {
    %c0_i32 = arith.constant 0 : i32
    %0 = arith.cmpi eq, %arg0, %c0_i32 : i32
    %1 = arith.extui %0 : i1 to i32
    %c0_i32_0 = arith.constant 0 : i32
    %2 = arith.cmpi ne, %1, %c0_i32_0 : i32
    scf.if %2 {
      %cst_9 = arith.constant 0.000000e+00 : f32
      %12 = vector.broadcast %cst_9 : f32 to vector<2x128xf32>
      %c0_10 = arith.constant 0 : index
      %c0_11 = arith.constant 0 : index
      %13 = vector.load %arg9[%c0_10, %c0_11] : memref<2x128xf32, #tpu.memory_space<vmem>>, vector<2x128xf32>
      tpu.vector_store %arg9[%c0_10, %c0_11], %12 {strides = array<i32>} : memref<2x128xf32, #tpu.memory_space<vmem>>, vector<2x128xf32>,
    } else {
    }
    %c0 = arith.constant 0 : index
    %c0_1 = arith.constant 0 : index
    %3 = vector.load %arg9[%c0, %c0_1] : memref<2x128xf32, #tpu.memory_space<vmem>>, vector<2x128xf32>
    %c0_2 = arith.constant 0 : index
    %c0_3 = arith.constant 0 : index
    %4 = vector.load %arg1[%c0_2, %c0_3] : memref<2x2048xbf16, #tpu.memory_space<vmem>>, vector<2x2048xbf16>
    %c0_4 = arith.constant 0 : index
    %c0_5 = arith.constant 0 : index
    %5 = vector.load %arg2[%c0_4, %c0_5] : memref<2048x128xbf16, #tpu.memory_space<vmem>>, vector<2048x128xbf16>
    %cst = arith.constant dense<0.000000e+00> : vector<2x128xf32>
    %6 = tpu.matmul %4, %5, %cst {dimension_numbers = #tpu.dot_dimension_numbers<[1], [0], [0], [1], [0, 0, 1, 1], [], []>} : vector<2x2048xbf16>, vector<2048x128xbf16>, vector<2x128xf32> -> vector<2x128xf32>
    %7 = arith.addf %3, %6 : vector<2x128xf32>
    %c0_6 = arith.constant 0 : index
    %c0_7 = arith.constant 0 : index
    %8 = vector.load %arg9[%c0_6, %c0_7] : memref<2x128xf32, #tpu.memory_space<vmem>>, vector<2x128xf32>
    tpu.vector_store %arg9[%c0_6, %c0_7], %7 {strides = array<i32>} : memref<2x128xf32, #tpu.memory_space<vmem>>, vector<2x128xf32>,
    %c5_i32 = arith.constant 5 : i32
    %9 = arith.cmpi eq, %arg0, %c5_i32 : i32
    %10 = arith.extui %9 : i1 to i32
    %c0_i32_8 = arith.constant 0 : i32
    %11 = arith.cmpi ne, %10, %c0_i32_8 : i32
    scf.if %11 {
      %c0_9 = arith.constant 0 : index
      %c0_10 = arith.constant 0 : index
      %12 = vector.load %arg9[%c0_9, %c0_10] : memref<2x128xf32, #tpu.memory_space<vmem>>, vector<2x128xf32>
      %c0_11 = arith.constant 0 : index
      %c0_12 = arith.constant 0 : index
      %13 = vector.load %arg3[%c0_11, %c0_12] : memref<1x128xf32, #tpu.memory_space<vmem>>, vector<1x128xf32>
      %14 = vector.broadcast %13 : vector<1x128xf32> to vector<2x128xf32>
      %15 = arith.addf %12, %14 : vector<2x128xf32>
      %cst_13 = arith.constant 0.000000e+00 : f32
      %16 = vector.broadcast %cst_13 : f32 to vector<2x128xf32>
      %17 = arith.maximumf %15, %16 : vector<2x128xf32>
      %c0_14 = arith.constant 0 : index
      %c0_15 = arith.constant 0 : index
      %18 = vector.load %arg4[%c0_14, %c0_15] : memref<128x512xf32, #tpu.memory_space<vmem>>, vector<128x512xf32>
      %cst_16 = arith.constant dense<0.000000e+00> : vector<2x512xf32>
      %19 = tpu.matmul %17, %18, %cst_16 {dimension_numbers = #tpu.dot_dimension_numbers<[1], [0], [0], [1], [0, 0, 1, 1], [], []>} : vector<2x128xf32>, vector<128x512xf32>, vector<2x512xf32> -> vector<2x512xf32>
      %c0_17 = arith.constant 0 : index
      %c0_18 = arith.constant 0 : index
      %20 = vector.load %arg5[%c0_17, %c0_18] : memref<1x512xf32, #tpu.memory_space<vmem>>, vector<1x512xf32>
      %21 = vector.broadcast %20 : vector<1x512xf32> to vector<2x512xf32>
      %22 = arith.addf %19, %21 : vector<2x512xf32>
      %cst_19 = arith.constant 0.000000e+00 : f32
      %23 = vector.broadcast %cst_19 : f32 to vector<2x512xf32>
      %24 = arith.maximumf %22, %23 : vector<2x512xf32>
      %c0_20 = arith.constant 0 : index
      %c0_21 = arith.constant 0 : index
      %25 = vector.load %arg6[%c0_20, %c0_21] : memref<512x22xf32, #tpu.memory_space<vmem>>, vector<512x22xf32>
      %cst_22 = arith.constant dense<0.000000e+00> : vector<2x22xf32>
      %26 = tpu.matmul %24, %25, %cst_22 {dimension_numbers = #tpu.dot_dimension_numbers<[1], [0], [0], [1], [0, 0, 1, 1], [], []>} : vector<2x512xf32>, vector<512x22xf32>, vector<2x22xf32> -> vector<2x22xf32>
      %c0_23 = arith.constant 0 : index
      %c0_24 = arith.constant 0 : index
      %27 = vector.load %arg7[%c0_23, %c0_24] : memref<1x22xf32, #tpu.memory_space<vmem>>, vector<1x22xf32>
      %28 = vector.broadcast %27 : vector<1x22xf32> to vector<2x22xf32>
      %29 = arith.addf %26, %28 : vector<2x22xf32>
      %c0_25 = arith.constant 0 : index
      %c0_26 = arith.constant 0 : index
      %30 = vector.load %arg8[%c0_25, %c0_26] : memref<2x22xf32, #tpu.memory_space<vmem>>, vector<2x22xf32>
      tpu.vector_store %arg8[%c0_25, %c0_26], %29 {strides = array<i32>} : memref<2x22xf32, #tpu.memory_space<vmem>>, vector<2x22xf32>,
    } else {
    }
    return
  }
  func.func @transform_0(%arg0: i32) -> (i32, i32) {
    %c0_i32 = arith.constant 0 : i32
    %c0_i32_0 = arith.constant 0 : i32
    return %c0_i32, %arg0 : i32, i32
  }
  func.func @transform_1(%arg0: i32) -> (i32, i32) {
    %c0_i32 = arith.constant 0 : i32
    %c0_i32_0 = arith.constant 0 : i32
    return %arg0, %c0_i32 : i32, i32
  }
  func.func @transform_2(%arg0: i32) -> (i32, i32) {
    %c0_i32 = arith.constant 0 : i32
    %c0_i32_0 = arith.constant 0 : i32
    %c0_i32_1 = arith.constant 0 : i32
    return %c0_i32, %c0_i32_0 : i32, i32
  }
  func.func @transform_3(%arg0: i32) -> (i32, i32) {
    %c0_i32 = arith.constant 0 : i32
    %c0_i32_0 = arith.constant 0 : i32
    %c0_i32_1 = arith.constant 0 : i32
    return %c0_i32, %c0_i32_0 : i32, i32
  }
  func.func @transform_4(%arg0: i32) -> (i32, i32) {
    %c0_i32 = arith.constant 0 : i32
    %c0_i32_0 = arith.constant 0 : i32
    %c0_i32_1 = arith.constant 0 : i32
    return %c0_i32, %c0_i32_0 : i32, i32
  }
  func.func @transform_5(%arg0: i32) -> (i32, i32) {
    %c0_i32 = arith.constant 0 : i32
    %c0_i32_0 = arith.constant 0 : i32
    %c0_i32_1 = arith.constant 0 : i32
    return %c0_i32, %c0_i32_0 : i32, i32
  }
  func.func @transform_6(%arg0: i32) -> (i32, i32) {
    %c0_i32 = arith.constant 0 : i32
    %c0_i32_0 = arith.constant 0 : i32
    %c0_i32_1 = arith.constant 0 : i32
    return %c0_i32, %c0_i32_0 : i32, i32
  }
  func.func @transform_7(%arg0: i32) -> (i32, i32) {
    %c0_i32 = arith.constant 0 : i32
    %c0_i32_0 = arith.constant 0 : i32
    %c0_i32_1 = arith.constant 0 : i32
    return %c0_i32, %c0_i32_0 : i32, i32
  }
}

</mosaic_0001>

<bundles_post_ra>
// kernel: berson_forward.3
= control target key start
LH: loop header
LB: loop body
LE: loop exit
PB: predicated region body
PF: predicated region fallthrough
CT: control target
= control target key end

     0   :  { %s2142_s12 = smov 0   ;;  %s2144_s13 = smov 0   ;;  %s2851_s0 = inlined_call_operand.vmem [shape: bf16[20,128], index: 0, kind: input, shape index: {}]   ;;  %s2852_s1 = inlined_call_operand.vmem [shape: f32[20,1], index: 1, kind: input, shape index: {}]   ;;  %s2853_s2 = inlined_call_operand.vmem [shape: bf16[128,26624], index: 2, kind: input, shape index: {}]   ;;  %s2854_s3 = inlined_call_operand.vmem [shape: f32[20,26624], index: 3, kind: output, shape index: {}]  }
   0x1   :  { %s2146_s14 = smov 0  }
   0x2 LB: > { %s1922_s15 = sadd.s32 4294967295, %s2119_s14   ;;  %s2159_s16 = sadd.s32 1, %s2119_s14   ;;  %s2119_s14 = sphi %s2146_s14, %s2858_s14   ;;  %s2115_s13 = sphi %s2144_s13, %s2857_s13   ;;  %s2111_s12 = sphi %s2142_s12, %s2856_s12  }
   0x3   : > { %s59_s17 = ssub.s32 %s2119_s14, %s2159_s16  ;;  %s62_s18 = sadd.s32 1, %s2115_s13 }
   0x4   : > { %p60_p0 = scmp.eq.s32.totalorder %s59_s17, 0  ;;  %p69_p1 = scmp.ne.s32.totalorder %s2115_s13, %s2111_s12 }
   0x5   : > { %p70_p2 = scmp.eq.s32.totalorder %s2119_s14, 0  ;;  %p99_p3 = scmp.eq.s32.totalorder %s1922_s15, 12 }
   0x6   : > { %s2170_s19 = scalar_select %p60_p0, %s2115_s13, %s62_s18  }
   0x7   : > { %p71_p4 = por %p70_p2, %p69_p1  ;;  %p2172_p5 = por %p99_p3, %p69_p1 }
   0x8   : > { %p1925_p6 = scmp.ge.s32.totalorder %s2119_s14, 13 }
   0xa   : > { %127 = sbr.rel (%p1925_p6) target bundleno = 85 (0x55), region = 24 }
  0x11   : > { %130 = sbr.rel (!%p71_p4) target bundleno = 85 (0x55), region = 28  ;;  %s132_s21 = sand.u32 (%p71_p4), 1, %s2115_s13  }
  0x12   : > { %s2065_s22 = sshll.u32 (%p71_p4), %s2119_s14, 6  ;;  %s1926_s23 = sshll.u32 (%p71_p4), %s132_s21, 10 }
  0x13   : > { %s2182_s26 = scalar_lea.vmem (%p71_p4), %s2853_s2, %s2065_s22  ;;  %s2187_s27 = scalar_lea.vmem (%p71_p4), [#allocation2], %s1926_s23 }
  0x14   : > { %v150_v0 = vld [vmem:[%s2182_s26] sm:$0xff] (%p71_p4)  ;;  %v152_v1 = vld [vmem:[%s2182_s26 + $0x8] sm:$0xff] (%p71_p4)  ;;  %v154_v2 = vld [vmem:[%s2182_s26 + $0x10] sm:$0xff] (%p71_p4) }
  0x15   : > { %151 = vst [vmem:[%s2187_s27] sm:$0xff] (%p71_p4), %v150_v0  ;;  %153 = vst [vmem:[%s2187_s27 + $0x8] sm:$0xff] (%p71_p4), %v152_v1  ;;  %v156_v3 = vld [vmem:[%s2182_s26 + $0x18] sm:$0xff] (%p71_p4)  ;;  %v158_v4 = vld [vmem:[%s2182_s26 + $0x20] sm:$0xff] (%p71_p4) }
  0x16   : > { %155 = vst [vmem:[%s2187_s27 + $0x10] sm:$0xff] (%p71_p4), %v154_v2  ;;  %v160_v5 = vld [vmem:[%s2182_s26 + $0x28] sm:$0xff] (%p71_p4)  ;;  %157 = vst [vmem:[%s2187_s27 + $0x18] sm:$0xff] (%p71_p4), %v156_v3  ;;  %v162_v6 = vld [vmem:[%s2182_s26 + $0x30] sm:$0xff] (%p71_p4) }
  0x17   : > { %159 = vst [vmem:[%s2187_s27 + $0x20] sm:$0xff] (%p71_p4), %v158_v4  ;;  %161 = vst [vmem:[%s2187_s27 + $0x28] sm:$0xff] (%p71_p4), %v160_v5  ;;  %v164_v7 = vld [vmem:[%s2182_s26 + $0x38] sm:$0xff] (%p71_p4)  ;;  %v166_v8 = vld [vmem:[%s2182_s26 + $0x340] sm:$0xff] (%p71_p4) }
  0x18   : > { %163 = vst [vmem:[%s2187_s27 + $0x30] sm:$0xff] %v162_v6  ;;  %165 = vst [vmem:[%s2187_s27 + $0x38] sm:$0xff] %v164_v7  ;;  %v168_v9 = vld [vmem:[%s2182_s26 + $0x348] sm:$0xff]  ;;  %v170_v10 = vld [vmem:[%s2182_s26 + $0x350] sm:$0xff] }
  0x19   : > { %167 = vst [vmem:[%s2187_s27 + $0x40] sm:$0xff] %v166_v8  ;;  %v172_v11 = vld [vmem:[%s2182_s26 + $0x358] sm:$0xff]  ;;  %169 = vst [vmem:[%s2187_s27 + $0x48] sm:$0xff] %v168_v9  ;;  %v174_v12 = vld [vmem:[%s2182_s26 + $0x360] sm:$0xff] }
  0x1a   : > { %171 = vst [vmem:[%s2187_s27 + $0x50] sm:$0xff] %v170_v10  ;;  %173 = vst [vmem:[%s2187_s27 + $0x58] sm:$0xff] %v172_v11  ;;  %v176_v13 = vld [vmem:[%s2182_s26 + $0x368] sm:$0xff]  ;;  %v178_v14 = vld [vmem:[%s2182_s26 + $0x370] sm:$0xff] }
  0x1b   : > { %175 = vst [vmem:[%s2187_s27 + $0x60] sm:$0xff] %v174_v12  ;;  %177 = vst [vmem:[%s2187_s27 + $0x68] sm:$0xff] %v176_v13  ;;  %v180_v15 = vld [vmem:[%s2182_s26 + $0x378] sm:$0xff]  ;;  %v182_v16 = vld [vmem:[%s2182_s26 + $0x680] sm:$0xff] }
  0x1c   : > { %179 = vst [vmem:[%s2187_s27 + $0x70] sm:$0xff] %v178_v14  ;;  %v184_v17 = vld [vmem:[%s2182_s26 + $0x688] sm:$0xff]  ;;  %181 = vst [vmem:[%s2187_s27 + $0x78] sm:$0xff] %v180_v15  ;;  %v186_v18 = vld [vmem:[%s2182_s26 + $0x690] sm:$0xff] }
  0x1d   : > { %183 = vst [vmem:[%s2187_s27 + $0x80] sm:$0xff] %v182_v16  ;;  %185 = vst [vmem:[%s2187_s27 + $0x88] sm:$0xff] %v184_v17  ;;  %v188_v19 = vld [vmem:[%s2182_s26 + $0x698] sm:$0xff]  ;;  %v190_v20 = vld [vmem:[%s2182_s26 + $0x6a0] sm:$0xff] }
  0x1e   : > { %187 = vst [vmem:[%s2187_s27 + $0x90] sm:$0xff] %v186_v18  ;;  %189 = vst [vmem:[%s2187_s27 + $0x98] sm:$0xff] %v188_v19  ;;  %v192_v21 = vld [vmem:[%s2182_s26 + $0x6a8] sm:$0xff]  ;;  %v194_v22 = vld [vmem:[%s2182_s26 + $0x6b0] sm:$0xff] }
  0x1f   : > { %191 = vst [vmem:[%s2187_s27 + $0xa0] sm:$0xff] %v190_v20  ;;  %v196_v23 = vld [vmem:[%s2182_s26 + $0x6b8] sm:$0xff]  ;;  %193 = vst [vmem:[%s2187_s27 + $0xa8] sm:$0xff] %v192_v21  ;;  %v198_v24 = vld [vmem:[%s2182_s26 + $0x9c0] sm:$0xff] }
  0x20   : > { %195 = vst [vmem:[%s2187_s27 + $0xb0] sm:$0xff] %v194_v22  ;;  %197 = vst [vmem:[%s2187_s27 + $0xb8] sm:$0xff] %v196_v23  ;;  %v200_v25 = vld [vmem:[%s2182_s26 + $0x9c8] sm:$0xff]  ;;  %v202_v26 = vld [vmem:[%s2182_s26 + $0x9d0] sm:$0xff] }
  0x21   : > { %199 = vst [vmem:[%s2187_s27 + $0xc0] sm:$0xff] %v198_v24  ;;  %201 = vst [vmem:[%s2187_s27 + $0xc8] sm:$0xff] %v200_v25  ;;  %v204_v27 = vld [vmem:[%s2182_s26 + $0x9d8] sm:$0xff]  ;;  %v206_v28 = vld [vmem:[%s2182_s26 + $0x9e0] sm:$0xff] }
  0x22   : > { %203 = vst [vmem:[%s2187_s27 + $0xd0] sm:$0xff] %v202_v26  ;;  %v208_v29 = vld [vmem:[%s2182_s26 + $0x9e8] sm:$0xff]  ;;  %205 = vst [vmem:[%s2187_s27 + $0xd8] sm:$0xff] %v204_v27  ;;  %v210_v30 = vld [vmem:[%s2182_s26 + $0x9f0] sm:$0xff] }
  0x23   : > { %207 = vst [vmem:[%s2187_s27 + $0xe0] sm:$0xff] %v206_v28  ;;  %209 = vst [vmem:[%s2187_s27 + $0xe8] sm:$0xff] %v208_v29  ;;  %v212_v31 = vld [vmem:[%s2182_s26 + $0x9f8] sm:$0xff]  ;;  %v214_v32 = vld [vmem:[%s2182_s26 + $0xd00] sm:$0xff] }
  0x24   : > { %211 = vst [vmem:[%s2187_s27 + $0xf0] sm:$0xff] %v210_v30  ;;  %213 = vst [vmem:[%s2187_s27 + $0xf8] sm:$0xff] %v212_v31  ;;  %v216_v33 = vld [vmem:[%s2182_s26 + $0xd08] sm:$0xff]  ;;  %v218_v34 = vld [vmem:[%s2182_s26 + $0xd10] sm:$0xff] }
  0x25   : > { %215 = vst [vmem:[%s2187_s27 + $0x100] sm:$0xff] %v214_v32  ;;  %v220_v35 = vld [vmem:[%s2182_s26 + $0xd18] sm:$0xff]  ;;  %217 = vst [vmem:[%s2187_s27 + $0x108] sm:$0xff] %v216_v33  ;;  %v222_v36 = vld [vmem:[%s2182_s26 + $0xd20] sm:$0xff] }
  0x26   : > { %219 = vst [vmem:[%s2187_s27 + $0x110] sm:$0xff] %v218_v34  ;;  %221 = vst [vmem:[%s2187_s27 + $0x118] sm:$0xff] %v220_v35  ;;  %v224_v37 = vld [vmem:[%s2182_s26 + $0xd28] sm:$0xff]  ;;  %v226_v38 = vld [vmem:[%s2182_s26 + $0xd30] sm:$0xff] }
  0x27   : > { %223 = vst [vmem:[%s2187_s27 + $0x120] sm:$0xff] %v222_v36  ;;  %225 = vst [vmem:[%s2187_s27 + $0x128] sm:$0xff] %v224_v37  ;;  %v228_v39 = vld [vmem:[%s2182_s26 + $0xd38] sm:$0xff]  ;;  %v230_v40 = vld [vmem:[%s2182_s26 + $0x1040] sm:$0xff] }
  0x28   : > { %227 = vst [vmem:[%s2187_s27 + $0x130] sm:$0xff] %v226_v38  ;;  %v232_v41 = vld [vmem:[%s2182_s26 + $0x1048] sm:$0xff]  ;;  %229 = vst [vmem:[%s2187_s27 + $0x138] sm:$0xff] %v228_v39  ;;  %v234_v42 = vld [vmem:[%s2182_s26 + $0x1050] sm:$0xff] }
  0x29   : > { %231 = vst [vmem:[%s2187_s27 + $0x140] sm:$0xff] %v230_v40  ;;  %233 = vst [vmem:[%s2187_s27 + $0x148] sm:$0xff] %v232_v41  ;;  %v236_v43 = vld [vmem:[%s2182_s26 + $0x1058] sm:$0xff]  ;;  %v238_v44 = vld [vmem:[%s2182_s26 + $0x1060] sm:$0xff] }
  0x2a   : > { %235 = vst [vmem:[%s2187_s27 + $0x150] sm:$0xff] %v234_v42  ;;  %237 = vst [vmem:[%s2187_s27 + $0x158] sm:$0xff] %v236_v43  ;;  %v240_v45 = vld [vmem:[%s2182_s26 + $0x1068] sm:$0xff]  ;;  %v242_v46 = vld [vmem:[%s2182_s26 + $0x1070] sm:$0xff] }
  0x2b   : > { %239 = vst [vmem:[%s2187_s27 + $0x160] sm:$0xff] %v238_v44  ;;  %v244_v47 = vld [vmem:[%s2182_s26 + $0x1078] sm:$0xff]  ;;  %241 = vst [vmem:[%s2187_s27 + $0x168] sm:$0xff] %v240_v45  ;;  %v246_v48 = vld [vmem:[%s2182_s26 + $0x1380] sm:$0xff] }
  0x2c   : > { %243 = vst [vmem:[%s2187_s27 + $0x170] sm:$0xff] %v242_v46  ;;  %245 = vst [vmem:[%s2187_s27 + $0x178] sm:$0xff] %v244_v47  ;;  %v248_v49 = vld [vmem:[%s2182_s26 + $0x1388] sm:$0xff]  ;;  %v250_v50 = vld [vmem:[%s2182_s26 + $0x1390] sm:$0xff] }
  0x2d   : > { %247 = vst [vmem:[%s2187_s27 + $0x180] sm:$0xff] %v246_v48  ;;  %249 = vst [vmem:[%s2187_s27 + $0x188] sm:$0xff] %v248_v49  ;;  %v252_v51 = vld [vmem:[%s2182_s26 + $0x1398] sm:$0xff]  ;;  %v254_v52 = vld [vmem:[%s2182_s26 + $0x13a0] sm:$0xff] }
  0x2e   : > { %251 = vst [vmem:[%s2187_s27 + $0x190] sm:$0xff] %v250_v50  ;;  %v256_v53 = vld [vmem:[%s2182_s26 + $0x13a8] sm:$0xff]  ;;  %253 = vst [vmem:[%s2187_s27 + $0x198] sm:$0xff] %v252_v51  ;;  %v258_v54 = vld [vmem:[%s2182_s26 + $0x13b0] sm:$0xff] }
  0x2f   : > { %255 = vst [vmem:[%s2187_s27 + $0x1a0] sm:$0xff] %v254_v52  ;;  %257 = vst [vmem:[%s2187_s27 + $0x1a8] sm:$0xff] %v256_v53  ;;  %v260_v55 = vld [vmem:[%s2182_s26 + $0x13b8] sm:$0xff]  ;;  %v262_v56 = vld [vmem:[%s2182_s26 + $0x16c0] sm:$0xff] }
  0x30   : > { %259 = vst [vmem:[%s2187_s27 + $0x1b0] sm:$0xff] %v258_v54  ;;  %261 = vst [vmem:[%s2187_s27 + $0x1b8] sm:$0xff] %v260_v55  ;;  %v264_v57 = vld [vmem:[%s2182_s26 + $0x16c8] sm:$0xff]  ;;  %v266_v58 = vld [vmem:[%s2182_s26 + $0x16d0] sm:$0xff] }
  0x31   : > { %263 = vst [vmem:[%s2187_s27 + $0x1c0] sm:$0xff] %v262_v56  ;;  %v268_v59 = vld [vmem:[%s2182_s26 + $0x16d8] sm:$0xff]  ;;  %265 = vst [vmem:[%s2187_s27 + $0x1c8] sm:$0xff] %v264_v57  ;;  %v270_v60 = vld [vmem:[%s2182_s26 + $0x16e0] sm:$0xff] }
  0x32   : > { %267 = vst [vmem:[%s2187_s27 + $0x1d0] sm:$0xff] %v266_v58  ;;  %269 = vst [vmem:[%s2187_s27 + $0x1d8] sm:$0xff] %v268_v59  ;;  %v272_v61 = vld [vmem:[%s2182_s26 + $0x16e8] sm:$0xff]  ;;  %v274_v62 = vld [vmem:[%s2182_s26 + $0x16f0] sm:$0xff] }
  0x33   : > { %271 = vst [vmem:[%s2187_s27 + $0x1e0] sm:$0xff] %v270_v60  ;;  %273 = vst [vmem:[%s2187_s27 + $0x1e8] sm:$0xff] %v272_v61  ;;  %v276_v63 = vld [vmem:[%s2182_s26 + $0x16f8] sm:$0xff]  ;;  %v278_v0 = vld [vmem:[%s2182_s26 + $0x1a00] sm:$0xff] }
  0x34   : > { %275 = vst [vmem:[%s2187_s27 + $0x1f0] sm:$0xff] %v274_v62  ;;  %v280_v1 = vld [vmem:[%s2182_s26 + $0x1a08] sm:$0xff]  ;;  %277 = vst [vmem:[%s2187_s27 + $0x1f8] sm:$0xff] %v276_v63  ;;  %v282_v2 = vld [vmem:[%s2182_s26 + $0x1a10] sm:$0xff] }
  0x35   : > { %279 = vst [vmem:[%s2187_s27 + $0x200] sm:$0xff] %v278_v0  ;;  %281 = vst [vmem:[%s2187_s27 + $0x208] sm:$0xff] %v280_v1  ;;  %v284_v3 = vld [vmem:[%s2182_s26 + $0x1a18] sm:$0xff]  ;;  %v286_v4 = vld [vmem:[%s2182_s26 + $0x1a20] sm:$0xff] }
  0x36   : > { %283 = vst [vmem:[%s2187_s27 + $0x210] sm:$0xff] %v282_v2  ;;  %285 = vst [vmem:[%s2187_s27 + $0x218] sm:$0xff] %v284_v3  ;;  %v288_v5 = vld [vmem:[%s2182_s26 + $0x1a28] sm:$0xff]  ;;  %v290_v6 = vld [vmem:[%s2182_s26 + $0x1a30] sm:$0xff] }
  0x37   : > { %287 = vst [vmem:[%s2187_s27 + $0x220] sm:$0xff] %v286_v4  ;;  %v292_v7 = vld [vmem:[%s2182_s26 + $0x1a38] sm:$0xff]  ;;  %289 = vst [vmem:[%s2187_s27 + $0x228] sm:$0xff] %v288_v5  ;;  %v294_v8 = vld [vmem:[%s2182_s26 + $0x1d40] sm:$0xff] }
  0x38   : > { %291 = vst [vmem:[%s2187_s27 + $0x230] sm:$0xff] %v290_v6  ;;  %293 = vst [vmem:[%s2187_s27 + $0x238] sm:$0xff] %v292_v7  ;;  %v296_v9 = vld [vmem:[%s2182_s26 + $0x1d48] sm:$0xff]  ;;  %v298_v10 = vld [vmem:[%s2182_s26 + $0x1d50] sm:$0xff] }
  0x39   : > { %295 = vst [vmem:[%s2187_s27 + $0x240] sm:$0xff] %v294_v8  ;;  %297 = vst [vmem:[%s2187_s27 + $0x248] sm:$0xff] %v296_v9  ;;  %v300_v11 = vld [vmem:[%s2182_s26 + $0x1d58] sm:$0xff]  ;;  %v302_v12 = vld [vmem:[%s2182_s26 + $0x1d60] sm:$0xff] }
  0x3a   : > { %299 = vst [vmem:[%s2187_s27 + $0x250] sm:$0xff] %v298_v10  ;;  %v304_v13 = vld [vmem:[%s2182_s26 + $0x1d68] sm:$0xff]  ;;  %301 = vst [vmem:[%s2187_s27 + $0x258] sm:$0xff] %v300_v11  ;;  %v306_v14 = vld [vmem:[%s2182_s26 + $0x1d70] sm:$0xff] }
  0x3b   : > { %303 = vst [vmem:[%s2187_s27 + $0x260] sm:$0xff] %v302_v12  ;;  %305 = vst [vmem:[%s2187_s27 + $0x268] sm:$0xff] %v304_v13  ;;  %v308_v15 = vld [vmem:[%s2182_s26 + $0x1d78] sm:$0xff]  ;;  %v310_v16 = vld [vmem:[%s2182_s26 + $0x2080] sm:$0xff] }
  0x3c   : > { %307 = vst [vmem:[%s2187_s27 + $0x270] sm:$0xff] %v306_v14  ;;  %309 = vst [vmem:[%s2187_s27 + $0x278] sm:$0xff] %v308_v15  ;;  %v312_v17 = vld [vmem:[%s2182_s26 + $0x2088] sm:$0xff]  ;;  %v314_v18 = vld [vmem:[%s2182_s26 + $0x2090] sm:$0xff] }
  0x3d   : > { %311 = vst [vmem:[%s2187_s27 + $0x280] sm:$0xff] %v310_v16  ;;  %v316_v19 = vld [vmem:[%s2182_s26 + $0x2098] sm:$0xff]  ;;  %313 = vst [vmem:[%s2187_s27 + $0x288] sm:$0xff] %v312_v17  ;;  %v318_v20 = vld [vmem:[%s2182_s26 + $0x20a0] sm:$0xff] }
  0x3e   : > { %315 = vst [vmem:[%s2187_s27 + $0x290] sm:$0xff] %v314_v18  ;;  %317 = vst [vmem:[%s2187_s27 + $0x298] sm:$0xff] %v316_v19  ;;  %v320_v21 = vld [vmem:[%s2182_s26 + $0x20a8] sm:$0xff]  ;;  %v322_v22 = vld [vmem:[%s2182_s26 + $0x20b0] sm:$0xff] }
  0x3f   : > { %319 = vst [vmem:[%s2187_s27 + $0x2a0] sm:$0xff] %v318_v20  ;;  %321 = vst [vmem:[%s2187_s27 + $0x2a8] sm:$0xff] %v320_v21  ;;  %v324_v23 = vld [vmem:[%s2182_s26 + $0x20b8] sm:$0xff]  ;;  %v326_v24 = vld [vmem:[%s2182_s26 + $0x23c0] sm:$0xff] }
  0x40   : > { %323 = vst [vmem:[%s2187_s27 + $0x2b0] sm:$0xff] %v322_v22  ;;  %v328_v25 = vld [vmem:[%s2182_s26 + $0x23c8] sm:$0xff]  ;;  %325 = vst [vmem:[%s2187_s27 + $0x2b8] sm:$0xff] %v324_v23  ;;  %v330_v26 = vld [vmem:[%s2182_s26 + $0x23d0] sm:$0xff] }
  0x41   : > { %327 = vst [vmem:[%s2187_s27 + $0x2c0] sm:$0xff] %v326_v24  ;;  %329 = vst [vmem:[%s2187_s27 + $0x2c8] sm:$0xff] %v328_v25  ;;  %v332_v27 = vld [vmem:[%s2182_s26 + $0x23d8] sm:$0xff]  ;;  %v334_v28 = vld [vmem:[%s2182_s26 + $0x23e0] sm:$0xff] }
  0x42   : > { %331 = vst [vmem:[%s2187_s27 + $0x2d0] sm:$0xff] %v330_v26  ;;  %333 = vst [vmem:[%s2187_s27 + $0x2d8] sm:$0xff] %v332_v27  ;;  %v336_v29 = vld [vmem:[%s2182_s26 + $0x23e8] sm:$0xff]  ;;  %v338_v30 = vld [vmem:[%s2182_s26 + $0x23f0] sm:$0xff] }
  0x43   : > { %335 = vst [vmem:[%s2187_s27 + $0x2e0] sm:$0xff] %v334_v28  ;;  %v340_v31 = vld [vmem:[%s2182_s26 + $0x23f8] sm:$0xff]  ;;  %337 = vst [vmem:[%s2187_s27 + $0x2e8] sm:$0xff] %v336_v29  ;;  %v342_v32 = vld [vmem:[%s2182_s26 + $0x2700] sm:$0xff] }
  0x44   : > { %339 = vst [vmem:[%s2187_s27 + $0x2f0] sm:$0xff] %v338_v30  ;;  %341 = vst [vmem:[%s2187_s27 + $0x2f8] sm:$0xff] %v340_v31  ;;  %v344_v33 = vld [vmem:[%s2182_s26 + $0x2708] sm:$0xff]  ;;  %v346_v34 = vld [vmem:[%s2182_s26 + $0x2710] sm:$0xff] }
  0x45   : > { %343 = vst [vmem:[%s2187_s27 + $0x300] sm:$0xff] %v342_v32  ;;  %345 = vst [vmem:[%s2187_s27 + $0x308] sm:$0xff] %v344_v33  ;;  %v348_v35 = vld [vmem:[%s2182_s26 + $0x2718] sm:$0xff]  ;;  %v350_v36 = vld [vmem:[%s2182_s26 + $0x2720] sm:$0xff] }
  0x46   : > { %347 = vst [vmem:[%s2187_s27 + $0x310] sm:$0xff] %v346_v34  ;;  %v352_v37 = vld [vmem:[%s2182_s26 + $0x2728] sm:$0xff]  ;;  %349 = vst [vmem:[%s2187_s27 + $0x318] sm:$0xff] %v348_v35  ;;  %v354_v38 = vld [vmem:[%s2182_s26 + $0x2730] sm:$0xff] }
  0x47   : > { %351 = vst [vmem:[%s2187_s27 + $0x320] sm:$0xff] %v350_v36  ;;  %353 = vst [vmem:[%s2187_s27 + $0x328] sm:$0xff] %v352_v37  ;;  %v356_v39 = vld [vmem:[%s2182_s26 + $0x2738] sm:$0xff]  ;;  %v358_v40 = vld [vmem:[%s2182_s26 + $0x2a40] sm:$0xff] }
  0x48   : > { %355 = vst [vmem:[%s2187_s27 + $0x330] sm:$0xff] %v354_v38  ;;  %357 = vst [vmem:[%s2187_s27 + $0x338] sm:$0xff] %v356_v39  ;;  %v360_v41 = vld [vmem:[%s2182_s26 + $0x2a48] sm:$0xff]  ;;  %v362_v42 = vld [vmem:[%s2182_s26 + $0x2a50] sm:$0xff] }
  0x49   : > { %359 = vst [vmem:[%s2187_s27 + $0x340] sm:$0xff] %v358_v40  ;;  %v364_v43 = vld [vmem:[%s2182_s26 + $0x2a58] sm:$0xff]  ;;  %361 = vst [vmem:[%s2187_s27 + $0x348] sm:$0xff] %v360_v41  ;;  %v366_v44 = vld [vmem:[%s2182_s26 + $0x2a60] sm:$0xff] }
  0x4a   : > { %363 = vst [vmem:[%s2187_s27 + $0x350] sm:$0xff] %v362_v42  ;;  %365 = vst [vmem:[%s2187_s27 + $0x358] sm:$0xff] %v364_v43  ;;  %v368_v45 = vld [vmem:[%s2182_s26 + $0x2a68] sm:$0xff]  ;;  %v370_v46 = vld [vmem:[%s2182_s26 + $0x2a70] sm:$0xff] }
  0x4b   : > { %367 = vst [vmem:[%s2187_s27 + $0x360] sm:$0xff] %v366_v44  ;;  %369 = vst [vmem:[%s2187_s27 + $0x368] sm:$0xff] %v368_v45  ;;  %v372_v47 = vld [vmem:[%s2182_s26 + $0x2a78] sm:$0xff]  ;;  %v374_v48 = vld [vmem:[%s2182_s26 + $0x2d80] sm:$0xff] }
  0x4c   : > { %371 = vst [vmem:[%s2187_s27 + $0x370] sm:$0xff] %v370_v46  ;;  %v376_v49 = vld [vmem:[%s2182_s26 + $0x2d88] sm:$0xff]  ;;  %373 = vst [vmem:[%s2187_s27 + $0x378] sm:$0xff] %v372_v47  ;;  %v378_v50 = vld [vmem:[%s2182_s26 + $0x2d90] sm:$0xff] }
  0x4d   : > { %375 = vst [vmem:[%s2187_s27 + $0x380] sm:$0xff] %v374_v48  ;;  %377 = vst [vmem:[%s2187_s27 + $0x388] sm:$0xff] %v376_v49  ;;  %v380_v51 = vld [vmem:[%s2182_s26 + $0x2d98] sm:$0xff]  ;;  %v382_v52 = vld [vmem:[%s2182_s26 + $0x2da0] sm:$0xff] }
  0x4e   : > { %379 = vst [vmem:[%s2187_s27 + $0x390] sm:$0xff] %v378_v50  ;;  %381 = vst [vmem:[%s2187_s27 + $0x398] sm:$0xff] %v380_v51  ;;  %v384_v53 = vld [vmem:[%s2182_s26 + $0x2da8] sm:$0xff]  ;;  %v386_v54 = vld [vmem:[%s2182_s26 + $0x2db0] sm:$0xff] }
  0x4f   : > { %383 = vst [vmem:[%s2187_s27 + $0x3a0] sm:$0xff] %v382_v52  ;;  %v388_v55 = vld [vmem:[%s2182_s26 + $0x2db8] sm:$0xff]  ;;  %385 = vst [vmem:[%s2187_s27 + $0x3a8] sm:$0xff] %v384_v53  ;;  %v390_v56 = vld [vmem:[%s2182_s26 + $0x30c0] sm:$0xff] }
  0x50   : > { %387 = vst [vmem:[%s2187_s27 + $0x3b0] sm:$0xff] %v386_v54  ;;  %389 = vst [vmem:[%s2187_s27 + $0x3b8] sm:$0xff] %v388_v55  ;;  %v392_v57 = vld [vmem:[%s2182_s26 + $0x30c8] sm:$0xff]  ;;  %v394_v58 = vld [vmem:[%s2182_s26 + $0x30d0] sm:$0xff] }
  0x51   : > { %391 = vst [vmem:[%s2187_s27 + $0x3c0] sm:$0xff] %v390_v56  ;;  %393 = vst [vmem:[%s2187_s27 + $0x3c8] sm:$0xff] %v392_v57  ;;  %v396_v59 = vld [vmem:[%s2182_s26 + $0x30d8] sm:$0xff]  ;;  %v398_v60 = vld [vmem:[%s2182_s26 + $0x30e0] sm:$0xff] }
  0x52   : > { %395 = vst [vmem:[%s2187_s27 + $0x3d0] sm:$0xff] %v394_v58  ;;  %v400_v61 = vld [vmem:[%s2182_s26 + $0x30e8] sm:$0xff]  ;;  %397 = vst [vmem:[%s2187_s27 + $0x3d8] sm:$0xff] %v396_v59  ;;  %v402_v62 = vld [vmem:[%s2182_s26 + $0x30f0] sm:$0xff] }
  0x53   : > { %399 = vst [vmem:[%s2187_s27 + $0x3e0] sm:$0xff] %v398_v60  ;;  %401 = vst [vmem:[%s2187_s27 + $0x3e8] sm:$0xff] %v400_v61  ;;  %v404_v63 = vld [vmem:[%s2182_s26 + $0x30f8] sm:$0xff] }
  0x54   : > { %403 = vst [vmem:[%s2187_s27 + $0x3f0] sm:$0xff] %v402_v62  ;;  %405 = vst [vmem:[%s2187_s27 + $0x3f8] sm:$0xff] %v404_v63 }
  0x55 PF: > { %p1929_p7 = scmp.ge.s32.totalorder %s2119_s14, 1  ;;  %p410_p8 = scmp.lt.s32.totalorder %s2119_s14, 14 }
  0x57   : > { %p411_p9 = pnand %p1929_p7, %p410_p8 }
  0x58   : > { %s417_s28 = sand.u32 (!%p411_p9), 1, %s2111_s12   ;;  %v2121_v0 = vmov (!%p411_p9), 0   ;;  %v573_v1 = vld [vmem:[%s2852_s1] sm:$0xff] (!%p411_p9)  ;;  %v574_v21 = vld [vmem:[%s2852_s1 + $0x8] sm:$0xff] (!%p411_p9) }
  0x59   : > { %414 = sbr.rel (%p411_p9) target bundleno = 458 (0x1ca), region = 51  ;;  %s1930_s29 = sshll.u32 (!%p411_p9), %s417_s28, 10  ;;  %1273 = vmatprep.mubr.bf16.mxu0 (!%p411_p9), %v2121_v0  ;;  %1324 = vmatprep.mubr.bf16.mxu1 (!%p411_p9), %v2121_v0 }
  0x5a   : > { %2093 = vset.pattern.permute.xlu0 (!%p411_p9), %v2121_v0  ;;  %2094 = vset.pattern.permute.xlu1 (!%p411_p9), %v2121_v0  ;;  %s2454_s5 = scalar_lea.vmem (!%p411_p9), [#allocation2], %s1930_s29  ;;  %s2067_s21 = smul.u32 (!%p411_p9), 384, %s417_s28 }
  0x5b   : > { %v445_v2 = vld [vmem:[%s2454_s5] sm:$0xff] (!%p411_p9)  ;;  %v446_v4 = vld [vmem:[%s2454_s5 + $0x8] sm:$0xff] (!%p411_p9)  ;;  %578 = vperm.xlu0 (!%p411_p9), %2093, %v573_v1  }
  0x5c   : > { %v453_v3 = vld [vmem:[%s2454_s5 + $0x40] sm:$0xff] (!%p411_p9)  ;;  %v454_v6 = vld [vmem:[%s2454_s5 + $0x48] sm:$0xff] (!%p411_p9)  ;;  %s2643_s12 = scalar_lea.vmem (!%p411_p9), [#allocation3], %s2067_s21 }
  0x5d   : > { %v1934_v5 = vcombine.high (!%p411_p9), %v445_v2, %v453_v3  ;;  %v1933_v7 = vcombine.low (!%p411_p9), %v445_v2, %v453_v3  ;;  %v461_v8 = vld [vmem:[%s2454_s5 + $0x80] sm:$0xff] (!%p411_p9)  ;;  %v1936_v10 = vcombine.high (!%p411_p9), %v446_v4, %v454_v6  ;;  %v1935_v11 = vcombine.low (!%p411_p9), %v446_v4, %v454_v6  ;;  %v462_v13 = vld [vmem:[%s2454_s5 + $0x88] sm:$0xff] (!%p411_p9)  ;;  %v447_v2 = vld [vmem:[%s2454_s5 + $0x10] sm:$0xff] (!%p411_p9) }
  0x5e   : > { %v469_v9 = vld [vmem:[%s2454_s5 + $0xc0] sm:$0xff] (!%p411_p9)  ;;  %v470_v14 = vld [vmem:[%s2454_s5 + $0xc8] sm:$0xff] (!%p411_p9)  ;;  %v455_v3 = vld [vmem:[%s2454_s5 + $0x50] sm:$0xff] (!%p411_p9) }
  0x5f   : > { %v1950_v12 = vcombine.high (!%p411_p9), %v461_v8, %v469_v9  ;;  %v477_v15 = vld [vmem:[%s2454_s5 + $0x100] sm:$0xff] (!%p411_p9)  ;;  %1241 = vmatprep.subr.bf16.mxu0 (!%p411_p9), %v1934_v5  ;;  %v1952_v16 = vcombine.high (!%p411_p9), %v462_v13, %v470_v14  ;;  %v478_v18 = vld [vmem:[%s2454_s5 + $0x108] sm:$0xff] (!%p411_p9)  ;;  %1292 = vmatprep.subr.bf16.mxu1 (!%p411_p9), %v1936_v10  ;;  %v1949_v20 = vcombine.low (!%p411_p9), %v461_v8, %v469_v9  ;;  %v448_v4 = vld [vmem:[%s2454_s5 + $0x18] sm:$0xff] (!%p411_p9) }
  0x60   : > { %v485_v17 = vld [vmem:[%s2454_s5 + $0x140] sm:$0xff]  ;;  %v486_v19 = vld [vmem:[%s2454_s5 + $0x148] sm:$0xff]  ;;  %1242 = vmatpush1.bf16.msra.mxu0 %v1933_v7  ;;  %1293 = vmatpush1.bf16.msra.mxu1 %v1935_v11  ;;  %v1951_v22 = vcombine.low %v462_v13, %v470_v14  ;;  %v456_v5 = vld [vmem:[%s2454_s5 + $0x58] sm:$0xff]  ;;  %v1938_v8 = vcombine.high %v447_v2, %v455_v3  ;;  %s2066_s22 = sshll.u32 (%p2172_p5), %s1922_s15, 7 }
  0x61   : > { %1243 = vmatprep.subr.bf16.mxu0 %v1950_v12  ;;  %v1966_v23 = vcombine.high %v477_v15, %v485_v17  ;;  %1294 = vmatprep.subr.bf16.mxu1 %v1952_v16  ;;  %v1968_v24 = vcombine.high %v478_v18, %v486_v19  ;;  %v493_v25 = vld [vmem:[%s2454_s5 + $0x180] sm:$0xff]  ;;  %v494_v27 = vld [vmem:[%s2454_s5 + $0x188] sm:$0xff]  ;;  %v1965_v29 = vcombine.low %v477_v15, %v485_v17  ;;  %v463_v10 = vld [vmem:[%s2454_s5 + $0x90] sm:$0xff]  ;;  %s2746_s20 = scalar_lea.vmem (%p2172_p5), %s2854_s3, %s2066_s22 }
  0x62   : > { %v501_v26 = vld [vmem:[%s2454_s5 + $0x1c0] sm:$0xff]  ;;  %v502_v28 = vld [vmem:[%s2454_s5 + $0x1c8] sm:$0xff]  ;;  %583 = vperm.xlu0 %2093, %v574_v21   ;;  %v1967_v30 = vcombine.low %v478_v18, %v486_v19  ;;  %v1940_v9 = vcombine.high %v448_v4, %v456_v5  ;;  %v471_v11 = vld [vmem:[%s2454_s5 + $0xd0] sm:$0xff]  ;;  %v1937_v15 = vcombine.low %v447_v2, %v455_v3  ;;  %v1939_v16 = vcombine.low %v448_v4, %v456_v5 }
  0x63   : > { %v1982_v31 = vcombine.high %v493_v25, %v501_v26  ;;  %v1984_v32 = vcombine.high %v494_v27, %v502_v28  ;;  %v509_v33 = vld [vmem:[%s2454_s5 + $0x200] sm:$0xff]  ;;  %v510_v35 = vld [vmem:[%s2454_s5 + $0x208] sm:$0xff]  ;;  %v1981_v37 = vcombine.low %v493_v25, %v501_v26  ;;  %v1983_v38 = vcombine.low %v494_v27, %v502_v28  ;;  %v464_v13 = vld [vmem:[%s2454_s5 + $0x98] sm:$0xff] }
  0x64   : > { %1244 = vmatpush1.bf16.msra.mxu0 %v1949_v20  ;;  %1295 = vmatpush1.bf16.msra.mxu1 %v1951_v22  ;;  %v517_v34 = vld [vmem:[%s2454_s5 + $0x240] sm:$0xff]  ;;  %v518_v36 = vld [vmem:[%s2454_s5 + $0x248] sm:$0xff]  ;;  %v472_v14 = vld [vmem:[%s2454_s5 + $0xd8] sm:$0xff]  ;;  %v1954_v17 = vcombine.high %v463_v10, %v471_v11 }
  0x65   : > { %1245 = vmatprep.subr.bf16.mxu0 %v1966_v23  ;;  %1296 = vmatprep.subr.bf16.mxu1 %v1968_v24  ;;  %v1998_v39 = vcombine.high %v509_v33, %v517_v34  ;;  %v2000_v40 = vcombine.high %v510_v35, %v518_v36  ;;  %v525_v41 = vld [vmem:[%s2454_s5 + $0x280] sm:$0xff]  ;;  %v526_v43 = vld [vmem:[%s2454_s5 + $0x288] sm:$0xff]  ;;  %v1997_v45 = vcombine.low %v509_v33, %v517_v34  ;;  %v479_v19 = vld [vmem:[%s2454_s5 + $0x110] sm:$0xff] }
  0x66   : > { %v533_v42 = vld [vmem:[%s2454_s5 + $0x2c0] sm:$0xff]  ;;  %v534_v44 = vld [vmem:[%s2454_s5 + $0x2c8] sm:$0xff]  ;;  %v1999_v46 = vcombine.low %v510_v35, %v518_v36  ;;  %v1956_v18 = vcombine.high %v464_v13, %v472_v14  ;;  %v487_v20 = vld [vmem:[%s2454_s5 + $0x150] sm:$0xff]  ;;  %v1953_v23 = vcombine.low %v463_v10, %v471_v11  ;;  %v1955_v24 = vcombine.low %v464_v13, %v472_v14 }
  0x67   : > { %v2014_v47 = vcombine.high %v525_v41, %v533_v42  ;;  %v2016_v48 = vcombine.high %v526_v43, %v534_v44  ;;  %v541_v49 = vld [vmem:[%s2454_s5 + $0x300] sm:$0xff]  ;;  %v542_v51 = vld [vmem:[%s2454_s5 + $0x308] sm:$0xff]  ;;  %v2013_v53 = vcombine.low %v525_v41, %v533_v42  ;;  %v2015_v54 = vcombine.low %v526_v43, %v534_v44  ;;  %v480_v21 = vld [vmem:[%s2454_s5 + $0x118] sm:$0xff] }
  0x68   : > { %1246 = vmatpush1.bf16.msra.mxu0 %v1965_v29  ;;  %1297 = vmatpush1.bf16.msra.mxu1 %v1967_v30  ;;  %v549_v50 = vld [vmem:[%s2454_s5 + $0x340] sm:$0xff]  ;;  %v550_v52 = vld [vmem:[%s2454_s5 + $0x348] sm:$0xff]  ;;  %v488_v22 = vld [vmem:[%s2454_s5 + $0x158] sm:$0xff]  ;;  %v1970_v25 = vcombine.high %v479_v19, %v487_v20 }
  0x69   : > { %1247 = vmatprep.subr.bf16.mxu0 %v1982_v31  ;;  %1298 = vmatprep.subr.bf16.mxu1 %v1984_v32  ;;  %v2030_v55 = vcombine.high %v541_v49, %v549_v50  ;;  %v2032_v56 = vcombine.high %v542_v51, %v550_v52  ;;  %v557_v57 = vld [vmem:[%s2454_s5 + $0x380] sm:$0xff]  ;;  %v558_v59 = vld [vmem:[%s2454_s5 + $0x388] sm:$0xff]  ;;  %v2029_v61 = vcombine.low %v541_v49, %v549_v50  ;;  %v495_v27 = vld [vmem:[%s2454_s5 + $0x190] sm:$0xff] }
  0x6a   : > { %v565_v58 = vld [vmem:[%s2454_s5 + $0x3c0] sm:$0xff]  ;;  %v566_v60 = vld [vmem:[%s2454_s5 + $0x3c8] sm:$0xff]  ;;  %v2031_v62 = vcombine.low %v542_v51, %v550_v52  ;;  %v1972_v26 = vcombine.high %v480_v21, %v488_v22  ;;  %v503_v28 = vld [vmem:[%s2454_s5 + $0x1d0] sm:$0xff]  ;;  %v1969_v32 = vcombine.low %v479_v19, %v487_v20  ;;  %v1971_v33 = vcombine.low %v480_v21, %v488_v22 }
  0x6b   : > { %v2046_v63 = vcombine.high %v557_v57, %v565_v58  ;;  %v2048_v1 = vcombine.high %v558_v59, %v566_v60  ;;  %v2045_v6 = vcombine.low %v557_v57, %v565_v58  ;;  %v2047_v7 = vcombine.low %v558_v59, %v566_v60  ;;  %v2500_v12 = vld [vmem:[%s2851_s0] sm:$0xff]   ;;  %v496_v29 = vld [vmem:[%s2454_s5 + $0x198] sm:$0xff]  ;;  %v2519_v31 = vld [vmem:[%s2851_s0 + $0x8] ss:$0 sps:$4 sm:$0x33]  }
  0x6c   : > { %1248 = vmatpush1.bf16.msra.mxu0 %v1981_v37  ;;  %1299 = vmatpush1.bf16.msra.mxu1 %v1983_v38  ;;  %v504_v30 = vld [vmem:[%s2454_s5 + $0x1d8] sm:$0xff]  ;;  %v1986_v34 = vcombine.high %v495_v27, %v503_v28  ;;  %v511_v36 = vld [vmem:[%s2454_s5 + $0x210] sm:$0xff]  ;;  %v1985_v41 = vcombine.low %v495_v27, %v503_v28 }
  0x6d   : > { %1249 = vmatprep.subr.bf16.mxu0 %v1998_v39  ;;  %1300 = vmatprep.subr.bf16.mxu1 %v2000_v40  ;;  %v1988_v35 = vcombine.high %v496_v29, %v504_v30  ;;  %v519_v37 = vld [vmem:[%s2454_s5 + $0x250] sm:$0xff]  ;;  %v512_v39 = vld [vmem:[%s2454_s5 + $0x218] sm:$0xff]  ;;  %v1987_v42 = vcombine.low %v496_v29, %v504_v30 }
  0x6e   : > { %v575_v38 = vld [vmem:[%s2852_s1 + $0x10] sm:$0xf]  ;;  %v520_v40 = vld [vmem:[%s2454_s5 + $0x258] sm:$0xff]  ;;  %v2002_v43 = vcombine.high %v511_v36, %v519_v37  ;;  %v2001_v49 = vcombine.low %v511_v36, %v519_v37 }
  0x6f   : > { %588 = vperm.xlu1 %2094, %v575_v38   ;;  %v2004_v44 = vcombine.high %v512_v39, %v520_v40  ;;  %v2003_v50 = vcombine.low %v512_v39, %v520_v40  ;;  %v513_v40 = vld [vmem:[%s2454_s5 + $0x220] sm:$0xff] }
  0x70   : > { %1250 = vmatpush1.bf16.msra.mxu0 %v1997_v45  ;;  %1301 = vmatpush1.bf16.msra.mxu1 %v1999_v46  ;;  %v527_v45 = vld [vmem:[%s2454_s5 + $0x290] sm:$0xff] }
  0x71   : > { %1251 = vmatprep.subr.bf16.mxu0 %v2014_v47  ;;  %1302 = vmatprep.subr.bf16.mxu1 %v2016_v48  ;;  %v535_v46 = vld [vmem:[%s2454_s5 + $0x2d0] sm:$0xff]  ;;  %v528_v47 = vld [vmem:[%s2454_s5 + $0x298] sm:$0xff] }
  0x72   : > { %v536_v48 = vld [vmem:[%s2454_s5 + $0x2d8] sm:$0xff]  ;;  %v2018_v51 = vcombine.high %v527_v45, %v535_v46  ;;  %v2017_v57 = vcombine.low %v527_v45, %v535_v46 }
  0x73   : > { %v2020_v52 = vcombine.high %v528_v47, %v536_v48  ;;  %v2019_v58 = vcombine.low %v528_v47, %v536_v48  ;;  %v529_v48 = vld [vmem:[%s2454_s5 + $0x2a0] sm:$0xff] }
  0x74   : > { %1252 = vmatpush1.bf16.msra.mxu0 %v2013_v53  ;;  %1303 = vmatpush1.bf16.msra.mxu1 %v2015_v54  ;;  %v543_v53 = vld [vmem:[%s2454_s5 + $0x310] sm:$0xff] }
  0x75   : > { %1253 = vmatprep.subr.bf16.mxu0 %v2030_v55  ;;  %1304 = vmatprep.subr.bf16.mxu1 %v2032_v56  ;;  %v551_v54 = vld [vmem:[%s2454_s5 + $0x350] sm:$0xff]  ;;  %v544_v55 = vld [vmem:[%s2454_s5 + $0x318] sm:$0xff] }
  0x76   : > { %v552_v56 = vld [vmem:[%s2454_s5 + $0x358] sm:$0xff]  ;;  %v2034_v59 = vcombine.high %v543_v53, %v551_v54  ;;  %v2033_v2 = vcombine.low %v543_v53, %v551_v54 }
  0x77   : > { %v2036_v60 = vcombine.high %v544_v55, %v552_v56  ;;  %v2035_v3 = vcombine.low %v544_v55, %v552_v56  ;;  %v545_v56 = vld [vmem:[%s2454_s5 + $0x320] sm:$0xff] }
  0x78   : > { %1254 = vmatpush1.bf16.msra.mxu0 %v2029_v61  ;;  %1305 = vmatpush1.bf16.msra.mxu1 %v2031_v62  ;;  %v559_v61 = vld [vmem:[%s2454_s5 + $0x390] sm:$0xff] }
  0x79   : > { %1255 = vmatprep.subr.bf16.mxu0 %v2046_v63  ;;  %1306 = vmatprep.subr.bf16.mxu1 %v2048_v1  ;;  %v567_v62 = vld [vmem:[%s2454_s5 + $0x3d0] sm:$0xff]  ;;  %v560_v63 = vld [vmem:[%s2454_s5 + $0x398] sm:$0xff] }
  0x7a   : > { %v568_v1 = vld [vmem:[%s2454_s5 + $0x3d8] sm:$0xff]  ;;  %v2050_v4 = vcombine.high %v559_v61, %v567_v62  ;;  %v2049_v10 = vcombine.low %v559_v61, %v567_v62 }
  0x7b   : > { %v2052_v5 = vcombine.high %v560_v63, %v568_v1  ;;  %v2051_v11 = vcombine.low %v560_v63, %v568_v1  ;;  %v561_v1 = vld [vmem:[%s2454_s5 + $0x3a0] sm:$0xff] }
  0x7c   : > { %1256 = vmatpush1.bf16.msra.mxu0 %v2045_v6  ;;  %1307 = vmatpush1.bf16.msra.mxu1 %v2047_v7  ;;  %v449_v6 = vld [vmem:[%s2454_s5 + $0x20] sm:$0xff] }
  0x7d   : > { %1343 = vmatprep.subr.bf16.mxu0 %v1938_v8  ;;  %1394 = vmatprep.subr.bf16.mxu1 %v1940_v9  ;;  %v457_v7 = vld [vmem:[%s2454_s5 + $0x60] sm:$0xff]  ;;  %v450_v8 = vld [vmem:[%s2454_s5 + $0x28] sm:$0xff] }
  0x7e   : > { %v458_v9 = vld [vmem:[%s2454_s5 + $0x68] sm:$0xff]  ;;  %v1942_v13 = vcombine.high %v449_v6, %v457_v7  ;;  %v1941_v19 = vcombine.low %v449_v6, %v457_v7 }
  0x7f   : > { %1274 = vmatmul.mubr.bf16.vlgmr.msra.gmra.mrb[0].mxu0 %v2500_v12  ;;  %1325 = vmatmul.mubr.bf16.vlgmr.msra.gmra.mrb[0].mxu1 %v2500_v12  ;;  %v1944_v14 = vcombine.high %v450_v8, %v458_v9  ;;  %v1943_v20 = vcombine.low %v450_v8, %v458_v9  ;;  %v451_v9 = vld [vmem:[%s2454_s5 + $0x30] sm:$0xff] }
  0x80   : > { %1344 = vmatpush1.bf16.msra.mxu0 %v1937_v15  ;;  %1395 = vmatpush1.bf16.msra.mxu1 %v1939_v16  ;;  %v465_v15 = vld [vmem:[%s2454_s5 + $0xa0] sm:$0xff] }
  0x81   : > { %1345 = vmatprep.subr.bf16.mxu0 %v1954_v17  ;;  %1396 = vmatprep.subr.bf16.mxu1 %v1956_v18  ;;  %v473_v16 = vld [vmem:[%s2454_s5 + $0xe0] sm:$0xff]  ;;  %v466_v17 = vld [vmem:[%s2454_s5 + $0xa8] sm:$0xff] }
  0x82   : > { %1283 = vmatprep.mubr.bf16.mxu0 %v2121_v0  ;;  %1334 = vmatprep.mubr.bf16.mxu1 %v2121_v0  ;;  %v474_v18 = vld [vmem:[%s2454_s5 + $0xe8] sm:$0xff]  ;;  %v1958_v21 = vcombine.high %v465_v15, %v473_v16  ;;  %v1957_v27 = vcombine.low %v465_v15, %v473_v16 }
  0x83   : > { %v1960_v22 = vcombine.high %v466_v17, %v474_v18  ;;  %v1959_v28 = vcombine.low %v466_v17, %v474_v18  ;;  %v467_v18 = vld [vmem:[%s2454_s5 + $0xb0] sm:$0xff] }
  0x84   : > { %1346 = vmatpush1.bf16.msra.mxu0 %v1953_v23  ;;  %1397 = vmatpush1.bf16.msra.mxu1 %v1955_v24  ;;  %v481_v23 = vld [vmem:[%s2454_s5 + $0x120] sm:$0xff] }
  0x85   : > { %1347 = vmatprep.subr.bf16.mxu0 %v1970_v25  ;;  %1398 = vmatprep.subr.bf16.mxu1 %v1972_v26  ;;  %v489_v24 = vld [vmem:[%s2454_s5 + $0x160] sm:$0xff]  ;;  %v482_v25 = vld [vmem:[%s2454_s5 + $0x128] sm:$0xff] }
  0x86   : > { %v490_v26 = vld [vmem:[%s2454_s5 + $0x168] sm:$0xff]  ;;  %v1974_v29 = vcombine.high %v481_v23, %v489_v24  ;;  %v1973_v36 = vcombine.low %v481_v23, %v489_v24 }
  0x87   : > { %1284 = vmatmul.mubr.bf16.gmra.mrb[4].mxu0 %v2519_v31  ;;  %1335 = vmatmul.mubr.bf16.gmra.mrb[4].mxu1 %v2519_v31  ;;  %v1976_v30 = vcombine.high %v482_v25, %v490_v26  ;;  %v1975_v37 = vcombine.low %v482_v25, %v490_v26  ;;  %v483_v26 = vld [vmem:[%s2454_s5 + $0x130] sm:$0xff] }
  0x88   : > { %1348 = vmatpush1.bf16.msra.mxu0 %v1969_v32  ;;  %1399 = vmatpush1.bf16.msra.mxu1 %v1971_v33  ;;  %v497_v32 = vld [vmem:[%s2454_s5 + $0x1a0] sm:$0xff] }
  0x89   : > { %1349 = vmatprep.subr.bf16.mxu0 %v1986_v34  ;;  %1400 = vmatprep.subr.bf16.mxu1 %v1988_v35  ;;  %v505_v33 = vld [vmem:[%s2454_s5 + $0x1e0] sm:$0xff]  ;;  %v498_v34 = vld [vmem:[%s2454_s5 + $0x1a8] sm:$0xff] }
  0x8a   : > { %1375 = vmatprep.mubr.bf16.mxu0 %v2121_v0  ;;  %1426 = vmatprep.mubr.bf16.mxu1 %v2121_v0  ;;  %v506_v35 = vld [vmem:[%s2454_s5 + $0x1e8] sm:$0xff]  ;;  %v1990_v38 = vcombine.high %v497_v32, %v505_v33 }
  0x8b   : > { %v1992_v39 = vcombine.high %v498_v34, %v506_v35  ;;  %v1991_v45 = vcombine.low %v498_v34, %v506_v35  ;;  %v499_v35 = vld [vmem:[%s2454_s5 + $0x1b0] sm:$0xff] }
  0x8c   : > { %1350 = vmatpush1.bf16.msra.mxu0 %v1985_v41  ;;  %1401 = vmatpush1.bf16.msra.mxu1 %v1987_v42  ;;  %v521_v41 = vld [vmem:[%s2454_s5 + $0x260] sm:$0xff]  ;;  %v514_v42 = vld [vmem:[%s2454_s5 + $0x228] sm:$0xff] }
  0x8d   : > { %1351 = vmatprep.subr.bf16.mxu0 %v2002_v43  ;;  %1402 = vmatprep.subr.bf16.mxu1 %v2004_v44  ;;  %v522_v43 = vld [vmem:[%s2454_s5 + $0x268] sm:$0xff]  ;;  %v1989_v44 = vcombine.low %v497_v32, %v505_v33  ;;  %v2006_v46 = vcombine.high %v513_v40, %v521_v41 }
  0x8e   : > { %v2008_v47 = vcombine.high %v514_v42, %v522_v43  ;;  %v2007_v53 = vcombine.low %v514_v42, %v522_v43  ;;  %v515_v43 = vld [vmem:[%s2454_s5 + $0x230] sm:$0xff] }
  0x90   : > { %1352 = vmatpush1.bf16.msra.mxu0 %v2001_v49  ;;  %1403 = vmatpush1.bf16.msra.mxu1 %v2003_v50  ;;  %v537_v49 = vld [vmem:[%s2454_s5 + $0x2e0] sm:$0xff]  ;;  %v530_v50 = vld [vmem:[%s2454_s5 + $0x2a8] sm:$0xff] }
  0x91   : > { %1353 = vmatprep.subr.bf16.mxu0 %v2018_v51  ;;  %1404 = vmatprep.subr.bf16.mxu1 %v2020_v52  ;;  %v538_v51 = vld [vmem:[%s2454_s5 + $0x2e8] sm:$0xff]  ;;  %v2005_v52 = vcombine.low %v513_v40, %v521_v41  ;;  %v2022_v54 = vcombine.high %v529_v48, %v537_v49 }
  0x92   : > { %v2024_v55 = vcombine.high %v530_v50, %v538_v51  ;;  %v2023_v61 = vcombine.low %v530_v50, %v538_v51  ;;  %v531_v51 = vld [vmem:[%s2454_s5 + $0x2b0] sm:$0xff] }
  0x94   : > { %1354 = vmatpush1.bf16.msra.mxu0 %v2017_v57  ;;  %1405 = vmatpush1.bf16.msra.mxu1 %v2019_v58  ;;  %v553_v57 = vld [vmem:[%s2454_s5 + $0x360] sm:$0xff]  ;;  %v546_v58 = vld [vmem:[%s2454_s5 + $0x328] sm:$0xff] }
  0x95   : > { %1355 = vmatprep.subr.bf16.mxu0 %v2034_v59  ;;  %1406 = vmatprep.subr.bf16.mxu1 %v2036_v60  ;;  %v554_v59 = vld [vmem:[%s2454_s5 + $0x368] sm:$0xff]  ;;  %v2021_v60 = vcombine.low %v529_v48, %v537_v49  ;;  %v2038_v62 = vcombine.high %v545_v56, %v553_v57 }
  0x96   : > { %v2040_v63 = vcombine.high %v546_v58, %v554_v59  ;;  %v2039_v6 = vcombine.low %v546_v58, %v554_v59  ;;  %v547_v59 = vld [vmem:[%s2454_s5 + $0x330] sm:$0xff] }
  0x98   : > { %1356 = vmatpush1.bf16.msra.mxu0 %v2033_v2  ;;  %1407 = vmatpush1.bf16.msra.mxu1 %v2035_v3  ;;  %v569_v2 = vld [vmem:[%s2454_s5 + $0x3e0] sm:$0xff]  ;;  %v562_v3 = vld [vmem:[%s2454_s5 + $0x3a8] sm:$0xff] }
  0x99   : > { %1357 = vmatprep.subr.bf16.mxu0 %v2050_v4  ;;  %1408 = vmatprep.subr.bf16.mxu1 %v2052_v5  ;;  %v570_v4 = vld [vmem:[%s2454_s5 + $0x3e8] sm:$0xff]  ;;  %v2037_v5 = vcombine.low %v545_v56, %v553_v57  ;;  %v2054_v7 = vcombine.high %v561_v1, %v569_v2 }
  0x9a   : > { %v2056_v8 = vcombine.high %v562_v3, %v570_v4  ;;  %v2055_v15 = vcombine.low %v562_v3, %v570_v4  ;;  %v563_v4 = vld [vmem:[%s2454_s5 + $0x3b0] sm:$0xff] }
  0x9c   : > { %1358 = vmatpush1.bf16.msra.mxu0 %v2049_v10  ;;  %1409 = vmatpush1.bf16.msra.mxu1 %v2051_v11  ;;  %v459_v10 = vld [vmem:[%s2454_s5 + $0x70] sm:$0xff]  ;;  %v452_v11 = vld [vmem:[%s2454_s5 + $0x38] sm:$0xff] }
  0x9d   : > { %1445 = vmatprep.subr.bf16.mxu0 %v1942_v13  ;;  %1496 = vmatprep.subr.bf16.mxu1 %v1944_v14  ;;  %v460_v13 = vld [vmem:[%s2454_s5 + $0x78] sm:$0xff]  ;;  %v2053_v14 = vcombine.low %v561_v1, %v569_v2  ;;  %v1946_v16 = vcombine.high %v451_v9, %v459_v10 }
  0x9e   : > { %v1948_v17 = vcombine.high %v452_v11, %v460_v13  ;;  %v1947_v23 = vcombine.low %v452_v11, %v460_v13 }
  0x9f   : > { %1376 = vmatmul.mubr.bf16.vlgmr.msra.gmra.mrb[8].mxu0 %v2500_v12  ;;  %1427 = vmatmul.mubr.bf16.vlgmr.msra.gmra.mrb[8].mxu1 %v2500_v12 }
  0xa0   : > { %1446 = vmatpush1.bf16.msra.mxu0 %v1941_v19  ;;  %1497 = vmatpush1.bf16.msra.mxu1 %v1943_v20  ;;  %v475_v19 = vld [vmem:[%s2454_s5 + $0xf0] sm:$0xff]  ;;  %v468_v20 = vld [vmem:[%s2454_s5 + $0xb8] sm:$0xff] }
  0xa1   : > { %1447 = vmatprep.subr.bf16.mxu0 %v1958_v21  ;;  %1498 = vmatprep.subr.bf16.mxu1 %v1960_v22  ;;  %v476_v21 = vld [vmem:[%s2454_s5 + $0xf8] sm:$0xff]  ;;  %v1945_v22 = vcombine.low %v451_v9, %v459_v10  ;;  %v1962_v24 = vcombine.high %v467_v18, %v475_v19 }
  0xa2   : > { %1385 = vmatprep.mubr.bf16.mxu0 %v2121_v0  ;;  %1436 = vmatprep.mubr.bf16.mxu1 %v2121_v0  ;;  %v1964_v25 = vcombine.high %v468_v20, %v476_v21  ;;  %v1963_v32 = vcombine.low %v468_v20, %v476_v21 }
  0xa4   : > { %1448 = vmatpush1.bf16.msra.mxu0 %v1957_v27  ;;  %1499 = vmatpush1.bf16.msra.mxu1 %v1959_v28  ;;  %v491_v27 = vld [vmem:[%s2454_s5 + $0x170] sm:$0xff]  ;;  %v484_v28 = vld [vmem:[%s2454_s5 + $0x138] sm:$0xff] }
  0xa5   : > { %1449 = vmatprep.subr.bf16.mxu0 %v1974_v29  ;;  %1500 = vmatprep.subr.bf16.mxu1 %v1976_v30  ;;  %v492_v29 = vld [vmem:[%s2454_s5 + $0x178] sm:$0xff]  ;;  %v1961_v30 = vcombine.low %v467_v18, %v475_v19  ;;  %v1978_v33 = vcombine.high %v483_v26, %v491_v27 }
  0xa6   : > { %v1980_v34 = vcombine.high %v484_v28, %v492_v29  ;;  %v1979_v40 = vcombine.low %v484_v28, %v492_v29 }
  0xa7   : > { %1386 = vmatmul.mubr.bf16.gmra.mrb[12].mxu0 %v2519_v31  ;;  %1437 = vmatmul.mubr.bf16.gmra.mrb[12].mxu1 %v2519_v31 }
  0xa8   : > { %1450 = vmatpush1.bf16.msra.mxu0 %v1973_v36  ;;  %1501 = vmatpush1.bf16.msra.mxu1 %v1975_v37  ;;  %v507_v36 = vld [vmem:[%s2454_s5 + $0x1f0] sm:$0xff]  ;;  %v500_v37 = vld [vmem:[%s2454_s5 + $0x1b8] sm:$0xff] }
  0xa9   : > { %1451 = vmatprep.subr.bf16.mxu0 %v1990_v38  ;;  %1502 = vmatprep.subr.bf16.mxu1 %v1992_v39  ;;  %v508_v38 = vld [vmem:[%s2454_s5 + $0x1f8] sm:$0xff]  ;;  %v1977_v39 = vcombine.low %v483_v26, %v491_v27  ;;  %v1994_v41 = vcombine.high %v499_v35, %v507_v36 }
  0xaa   : > { %1477 = vmatprep.mubr.bf16.mxu0 %v2121_v0  ;;  %1528 = vmatprep.mubr.bf16.mxu1 %v2121_v0  ;;  %v1996_v42 = vcombine.high %v500_v37, %v508_v38  ;;  %v1995_v48 = vcombine.low %v500_v37, %v508_v38 }
  0xac   : > { %1452 = vmatpush1.bf16.msra.mxu0 %v1989_v44  ;;  %1503 = vmatpush1.bf16.msra.mxu1 %v1991_v45  ;;  %v523_v44 = vld [vmem:[%s2454_s5 + $0x270] sm:$0xff]  ;;  %v516_v45 = vld [vmem:[%s2454_s5 + $0x238] sm:$0xff] }
  0xad   : > { %1453 = vmatprep.subr.bf16.mxu0 %v2006_v46  ;;  %1504 = vmatprep.subr.bf16.mxu1 %v2008_v47  ;;  %v524_v46 = vld [vmem:[%s2454_s5 + $0x278] sm:$0xff]  ;;  %v1993_v47 = vcombine.low %v499_v35, %v507_v36  ;;  %v2010_v49 = vcombine.high %v515_v43, %v523_v44 }
  0xae   : > { %v2012_v50 = vcombine.high %v516_v45, %v524_v46  ;;  %v2011_v56 = vcombine.low %v516_v45, %v524_v46 }
  0xb0   : > { %1454 = vmatpush1.bf16.msra.mxu0 %v2005_v52  ;;  %1505 = vmatpush1.bf16.msra.mxu1 %v2007_v53  ;;  %v539_v52 = vld [vmem:[%s2454_s5 + $0x2f0] sm:$0xff]  ;;  %v532_v53 = vld [vmem:[%s2454_s5 + $0x2b8] sm:$0xff] }
  0xb1   : > { %1455 = vmatprep.subr.bf16.mxu0 %v2022_v54  ;;  %1506 = vmatprep.subr.bf16.mxu1 %v2024_v55  ;;  %v540_v54 = vld [vmem:[%s2454_s5 + $0x2f8] sm:$0xff]  ;;  %v2009_v55 = vcombine.low %v515_v43, %v523_v44  ;;  %v2026_v57 = vcombine.high %v531_v51, %v539_v52 }
  0xb2   : > { %v2028_v58 = vcombine.high %v532_v53, %v540_v54  ;;  %v2027_v1 = vcombine.low %v532_v53, %v540_v54 }
  0xb4   : > { %1456 = vmatpush1.bf16.msra.mxu0 %v2021_v60  ;;  %1507 = vmatpush1.bf16.msra.mxu1 %v2023_v61  ;;  %v555_v60 = vld [vmem:[%s2454_s5 + $0x370] sm:$0xff]  ;;  %v548_v61 = vld [vmem:[%s2454_s5 + $0x338] sm:$0xff] }
  0xb5   : > { %1457 = vmatprep.subr.bf16.mxu0 %v2038_v62  ;;  %1508 = vmatprep.subr.bf16.mxu1 %v2040_v63  ;;  %v556_v62 = vld [vmem:[%s2454_s5 + $0x378] sm:$0xff]  ;;  %v2025_v63 = vcombine.low %v531_v51, %v539_v52  ;;  %v2042_v2 = vcombine.high %v547_v59, %v555_v60 }
  0xb6   : > { %v2044_v3 = vcombine.high %v548_v61, %v556_v62  ;;  %v2043_v9 = vcombine.low %v548_v61, %v556_v62 }
  0xb8   : > { %1458 = vmatpush1.bf16.msra.mxu0 %v2037_v5  ;;  %1509 = vmatpush1.bf16.msra.mxu1 %v2039_v6  ;;  %v571_v5 = vld [vmem:[%s2454_s5 + $0x3f0] sm:$0xff]  ;;  %v564_v6 = vld [vmem:[%s2454_s5 + $0x3b8] sm:$0xff] }
  0xb9   : > { %1459 = vmatprep.subr.bf16.mxu0 %v2054_v7  ;;  %1510 = vmatprep.subr.bf16.mxu1 %v2056_v8  ;;  %v572_v7 = vld [vmem:[%s2454_s5 + $0x3f8] sm:$0xff]  ;;  %v2041_v8 = vcombine.low %v547_v59, %v555_v60  ;;  %v2058_v10 = vcombine.high %v563_v4, %v571_v5  ;;  %v2057_v13 = vcombine.low %v563_v4, %v571_v5 }
  0xba   : > { %v2060_v11 = vcombine.high %v564_v6, %v572_v7 }
  0xbc   : > { %1460 = vmatpush1.bf16.msra.mxu0 %v2053_v14  ;;  %1511 = vmatpush1.bf16.msra.mxu1 %v2055_v15  ;;  %v2059_v14 = vcombine.low %v564_v6, %v572_v7 }
  0xbd   : > { %1547 = vmatprep.subr.bf16.mxu0 %v1946_v16  ;;  %1598 = vmatprep.subr.bf16.mxu1 %v1948_v17 }
  0xbf   : > { %1478 = vmatmul.mubr.bf16.vlgmr.msra.gmra.mrb[16].mxu0 %v2500_v12  ;;  %1529 = vmatmul.mubr.bf16.vlgmr.msra.gmra.mrb[16].mxu1 %v2500_v12 }
  0xc0   : > { %1548 = vmatpush1.bf16.msra.mxu0 %v1945_v22  ;;  %1599 = vmatpush1.bf16.msra.mxu1 %v1947_v23 }
  0xc1   : > { %1549 = vmatprep.subr.bf16.mxu0 %v1962_v24  ;;  %1600 = vmatprep.subr.bf16.mxu1 %v1964_v25 }
  0xc2   : > { %1487 = vmatprep.mubr.bf16.mxu0 %v2121_v0  ;;  %1538 = vmatprep.mubr.bf16.mxu1 %v2121_v0 }
  0xc4   : > { %1550 = vmatpush1.bf16.msra.mxu0 %v1961_v30  ;;  %1601 = vmatpush1.bf16.msra.mxu1 %v1963_v32 }
  0xc5   : > { %1551 = vmatprep.subr.bf16.mxu0 %v1978_v33  ;;  %1602 = vmatprep.subr.bf16.mxu1 %v1980_v34 }
  0xc7   : > { %1488 = vmatmul.mubr.bf16.gmra.mrb[20].mxu0 %v2519_v31  ;;  %1539 = vmatmul.mubr.bf16.gmra.mrb[20].mxu1 %v2519_v31 }
  0xc8   : > { %1552 = vmatpush1.bf16.msra.mxu0 %v1977_v39  ;;  %1603 = vmatpush1.bf16.msra.mxu1 %v1979_v40 }
  0xc9   : > { %1553 = vmatprep.subr.bf16.mxu0 %v1994_v41  ;;  %1604 = vmatprep.subr.bf16.mxu1 %v1996_v42 }
  0xca   : > { %1579 = vmatprep.mubr.bf16.mxu0 %v2121_v0  ;;  %1630 = vmatprep.mubr.bf16.mxu1 %v2121_v0 }
  0xcc   : > { %1554 = vmatpush1.bf16.msra.mxu0 %v1993_v47  ;;  %1605 = vmatpush1.bf16.msra.mxu1 %v1995_v48 }
  0xcd   : > { %1555 = vmatprep.subr.bf16.mxu0 %v2010_v49  ;;  %1606 = vmatprep.subr.bf16.mxu1 %v2012_v50 }
  0xd0   : > { %1556 = vmatpush1.bf16.msra.mxu0 %v2009_v55  ;;  %1607 = vmatpush1.bf16.msra.mxu1 %v2011_v56 }
  0xd1   : > { %1557 = vmatprep.subr.bf16.mxu0 %v2026_v57  ;;  %1608 = vmatprep.subr.bf16.mxu1 %v2028_v58 }
  0xd4   : > { %1558 = vmatpush1.bf16.msra.mxu0 %v2025_v63  ;;  %1609 = vmatpush1.bf16.msra.mxu1 %v2027_v1 }
  0xd5   : > { %1559 = vmatprep.subr.bf16.mxu0 %v2042_v2  ;;  %1610 = vmatprep.subr.bf16.mxu1 %v2044_v3 }
  0xd8   : > { %1560 = vmatpush1.bf16.msra.mxu0 %v2041_v8  ;;  %1611 = vmatpush1.bf16.msra.mxu1 %v2043_v9 }
  0xd9   : > { %1561 = vmatprep.subr.bf16.mxu0 %v2058_v10  ;;  %1612 = vmatprep.subr.bf16.mxu1 %v2060_v11 }
  0xda   : > { %v2630_v15 = vpop.permute.xlu0 %578 }
  0xdc   : > { %1562 = vmatpush1.bf16.msra.mxu0 %v2057_v13  ;;  %1613 = vmatpush1.bf16.msra.mxu1 %v2059_v14 }
  0xdf   : > { %1580 = vmatmul.mubr.bf16.vlgmr.msra.gmra.mrb[24].mxu0 %v2500_v12  ;;  %1631 = vmatmul.mubr.bf16.vlgmr.msra.gmra.mrb[24].mxu1 %v2500_v12 }
  0xe0   : > { %1589 = vmatprep.mubr.bf16.mxu0 %v2121_v0  ;;  %1640 = vmatprep.mubr.bf16.mxu1 %v2121_v0 }
  0xe1   : > { %v2634_v17 = vpop.permute.xlu0 %583 }
  0xe7   : > { %1590 = vmatmul.mubr.bf16.gmra.mrb[28].mxu0 %v2519_v31  ;;  %1641 = vmatmul.mubr.bf16.gmra.mrb[28].mxu1 %v2519_v31 }
  0xee   : > { %v2649_v38 = vpop.permute.xlu1 %588 }
 0x152   : > { %v1275_v16 = vpop.f32.mrb[0].mxu0  ;;  %v1326_v19 = vpop.f32.mrb[0].mxu1 }
 0x153   : > { %v1276_v18 = vadd.f32 %v1275_v16, %v2630_v15  ;;  %v1277_v20 = vpop.f32.mrb[1].mxu0  ;;  %v1327_v12 = vadd.f32 %v1326_v19, %v2630_v15  ;;  %v1328_v0 = vpop.f32.mrb[1].mxu1 }
 0x154   : > { %v1278_v21 = vadd.f32 %v1277_v20, %v2630_v15  ;;  %v1279_v22 = vpop.f32.mrb[2].mxu0  ;;  %v1329_v31 = vadd.f32 %v1328_v0, %v2630_v15  ;;  %v1330_v25 = vpop.f32.mrb[2].mxu1 }
 0x155   : > { %v1649_v23 = vmax.f32 %v1276_v18, 0.0  ;;  %v1280_v24 = vadd.f32 %v1279_v22, %v2634_v17  ;;  %v1281_v26 = vpop.f32.mrb[3].mxu0  ;;  %v1651_v27 = vmax.f32 %v1327_v12, 0.0  ;;  %v1331_v29 = vadd.f32 %v1330_v25, %v2634_v17  ;;  %v1332_v32 = vpop.f32.mrb[3].mxu1 }
 0x156   : > { %v1650_v28 = vmax.f32 %v1278_v21, 0.0  ;;  %v1282_v30 = vadd.f32 %v1281_v26, %v2634_v17  ;;  %v1652_v33 = vmax.f32 %v1329_v31, 0.0  ;;  %v1333_v35 = vadd.f32 %v1332_v32, %v2634_v17 }
 0x157   : > { %1697 = vst [vmem:[%s2643_s12] sm:$0xff] %v1649_v23  ;;  %v1665_v34 = vmax.f32 %v1280_v24, 0.0  ;;  %1699 = vst [vmem:[%s2643_s12 + $0x10] sm:$0xff] %v1651_v27  ;;  %v1667_v36 = vmax.f32 %v1331_v29, 0.0 }
 0x158   : > { %1698 = vst [vmem:[%s2643_s12 + $0x8] sm:$0xff] %v1650_v28  ;;  %v1666_v37 = vmax.f32 %v1282_v30, 0.0  ;;  %1700 = vst [vmem:[%s2643_s12 + $0x18] sm:$0xff] %v1652_v33  ;;  %v1668_v39 = vmax.f32 %v1333_v35, 0.0 }
 0x159   : > { %1713 = vst [vmem:[%s2643_s12 + $0x80] sm:$0xff] %v1665_v34  ;;  %1715 = vst [vmem:[%s2643_s12 + $0x90] sm:$0xff] %v1667_v36 }
 0x15a   : > { %1714 = vst [vmem:[%s2643_s12 + $0x88] sm:$0xff] %v1666_v37  ;;  %v1285_v40 = vpop.f32.mrb[4].mxu0  ;;  %1716 = vst [vmem:[%s2643_s12 + $0x98] sm:$0xff] %v1668_v39  ;;  %v1336_v41 = vpop.f32.mrb[4].mxu1 }
 0x15b   : > { %v1287_v42 = vpop.f32.mrb[5].mxu0  ;;  %v1286_v43 = vadd.f32 %v1285_v40, %v2649_v38  ;;  %v1338_v44 = vpop.f32.mrb[5].mxu1  ;;  %v1337_v47 = vadd.f32 %v1336_v41, %v2649_v38 }
 0x15c   : > { %v1289_v45 = vpop.f32.mrb[6].mxu0  ;;  %v1288_v46 = vadd.f32 %v1287_v42, %v2649_v38  ;;  %v1340_v48 = vpop.f32.mrb[6].mxu1  ;;  %v1339_v49 = vadd.f32 %v1338_v44, %v2649_v38 }
 0x15d   : > { %v1681_v50 = vmax.f32 %v1286_v43, 0.0  ;;  %v1290_v51 = vpop.f32.mrb[7].mxu0  ;;  %v1683_v53 = vmax.f32 %v1337_v47, 0.0  ;;  %v1341_v54 = vpop.f32.mrb[7].mxu1 }
 0x15e   : > { %v1682_v52 = vmax.f32 %v1288_v46, 0.0  ;;  %v1684_v55 = vmax.f32 %v1339_v49, 0.0 }
 0x15f   : > { %1729 = vst [vmem:[%s2643_s12 + $0x100] sm:$0xf] %v1681_v50  ;;  %1731 = vst [vmem:[%s2643_s12 + $0x110] sm:$0xf] %v1683_v53 }
 0x160   : > { %1730 = vst [vmem:[%s2643_s12 + $0x108] sm:$0xf] %v1682_v52  ;;  %1732 = vst [vmem:[%s2643_s12 + $0x118] sm:$0xf] %v1684_v55 }
 0x172   : > { %v1377_v56 = vpop.f32.mrb[8].mxu0  ;;  %v1428_v58 = vpop.f32.mrb[8].mxu1 }
 0x173   : > { %v1378_v57 = vadd.f32 %v1377_v56, %v2630_v15  ;;  %v1379_v59 = vpop.f32.mrb[9].mxu0  ;;  %v1429_v60 = vadd.f32 %v1428_v58, %v2630_v15  ;;  %v1430_v62 = vpop.f32.mrb[9].mxu1 }
 0x174   : > { %v1380_v61 = vadd.f32 %v1379_v59, %v2630_v15  ;;  %v1381_v63 = vpop.f32.mrb[10].mxu0  ;;  %v1431_v2 = vadd.f32 %v1430_v62, %v2630_v15  ;;  %v1432_v4 = vpop.f32.mrb[10].mxu1 }
 0x175   : > { %v1653_v1 = vmax.f32 %v1378_v57, 0.0  ;;  %v1382_v3 = vadd.f32 %v1381_v63, %v2634_v17  ;;  %v1383_v5 = vpop.f32.mrb[11].mxu0  ;;  %v1655_v6 = vmax.f32 %v1429_v60, 0.0  ;;  %v1433_v8 = vadd.f32 %v1432_v4, %v2634_v17  ;;  %v1434_v10 = vpop.f32.mrb[11].mxu1 }
 0x176   : > { %v1654_v7 = vmax.f32 %v1380_v61, 0.0  ;;  %v1384_v9 = vadd.f32 %v1383_v5, %v2634_v17  ;;  %v1656_v11 = vmax.f32 %v1431_v2, 0.0  ;;  %v1435_v14 = vadd.f32 %v1434_v10, %v2634_v17 }
 0x177   : > { %1701 = vst [vmem:[%s2643_s12 + $0x20] sm:$0xff] %v1653_v1  ;;  %v1669_v13 = vmax.f32 %v1382_v3, 0.0  ;;  %1703 = vst [vmem:[%s2643_s12 + $0x30] sm:$0xff] %v1655_v6  ;;  %v1671_v16 = vmax.f32 %v1433_v8, 0.0 }
 0x178   : > { %1702 = vst [vmem:[%s2643_s12 + $0x28] sm:$0xff] %v1654_v7  ;;  %v1670_v18 = vmax.f32 %v1384_v9, 0.0  ;;  %1704 = vst [vmem:[%s2643_s12 + $0x38] sm:$0xff] %v1656_v11  ;;  %v1672_v19 = vmax.f32 %v1435_v14, 0.0 }
 0x179   : > { %1717 = vst [vmem:[%s2643_s12 + $0xa0] sm:$0xff] %v1669_v13  ;;  %1719 = vst [vmem:[%s2643_s12 + $0xb0] sm:$0xff] %v1671_v16 }
 0x17a   : > { %1718 = vst [vmem:[%s2643_s12 + $0xa8] sm:$0xff] %v1670_v18  ;;  %v1387_v20 = vpop.f32.mrb[12].mxu0  ;;  %1720 = vst [vmem:[%s2643_s12 + $0xb8] sm:$0xff] %v1672_v19  ;;  %v1438_v21 = vpop.f32.mrb[12].mxu1 }
 0x17b   : > { %v1388_v12 = vadd.f32 %v1387_v20, %v2649_v38  ;;  %v1389_v0 = vpop.f32.mrb[13].mxu0  ;;  %v1439_v22 = vadd.f32 %v1438_v21, %v2649_v38  ;;  %v1440_v31 = vpop.f32.mrb[13].mxu1 }
 0x17c   : > { %v1390_v23 = vadd.f32 %v1389_v0, %v2649_v38  ;;  %v1391_v24 = vpop.f32.mrb[14].mxu0  ;;  %v1441_v26 = vadd.f32 %v1440_v31, %v2649_v38  ;;  %v1442_v27 = vpop.f32.mrb[14].mxu1 }
 0x17d   : > { %v1685_v25 = vmax.f32 %v1388_v12, 0.0  ;;  %v1392_v28 = vpop.f32.mrb[15].mxu0  ;;  %v1687_v29 = vmax.f32 %v1439_v22, 0.0  ;;  %v1443_v32 = vpop.f32.mrb[15].mxu1 }
 0x17e   : > { %v1686_v30 = vmax.f32 %v1390_v23, 0.0  ;;  %v1688_v33 = vmax.f32 %v1441_v26, 0.0 }
 0x17f   : > { %1733 = vst [vmem:[%s2643_s12 + $0x120] sm:$0xf] %v1685_v25  ;;  %1735 = vst [vmem:[%s2643_s12 + $0x130] sm:$0xf] %v1687_v29 }
 0x180   : > { %1734 = vst [vmem:[%s2643_s12 + $0x128] sm:$0xf] %v1686_v30  ;;  %1736 = vst [vmem:[%s2643_s12 + $0x138] sm:$0xf] %v1688_v33 }
 0x192   : > { %v1479_v34 = vpop.f32.mrb[16].mxu0  ;;  %v1530_v36 = vpop.f32.mrb[16].mxu1 }
 0x193   : > { %v1480_v35 = vadd.f32 %v1479_v34, %v2630_v15  ;;  %v1481_v37 = vpop.f32.mrb[17].mxu0  ;;  %v1531_v39 = vadd.f32 %v1530_v36, %v2630_v15  ;;  %v1532_v41 = vpop.f32.mrb[17].mxu1 }
 0x194   : > { %v1482_v40 = vadd.f32 %v1481_v37, %v2630_v15  ;;  %v1483_v42 = vpop.f32.mrb[18].mxu0  ;;  %v1533_v44 = vadd.f32 %v1532_v41, %v2630_v15  ;;  %v1534_v46 = vpop.f32.mrb[18].mxu1 }
 0x195   : > { %v1657_v43 = vmax.f32 %v1480_v35, 0.0  ;;  %v1484_v45 = vadd.f32 %v1483_v42, %v2634_v17  ;;  %v1485_v47 = vpop.f32.mrb[19].mxu0  ;;  %v1659_v48 = vmax.f32 %v1531_v39, 0.0  ;;  %v1535_v50 = vadd.f32 %v1534_v46, %v2634_v17  ;;  %v1536_v52 = vpop.f32.mrb[19].mxu1 }
 0x196   : > { %v1658_v49 = vmax.f32 %v1482_v40, 0.0  ;;  %v1486_v51 = vadd.f32 %v1485_v47, %v2634_v17  ;;  %v1660_v53 = vmax.f32 %v1533_v44, 0.0  ;;  %v1537_v55 = vadd.f32 %v1536_v52, %v2634_v17  ;;  %v1769_v52 = vld [vmem:[%s2643_s12 + $0x8] sm:$0xff] (%p2172_p5) }
 0x197   : > { %1705 = vst [vmem:[%s2643_s12 + $0x40] sm:$0xff] %v1657_v43  ;;  %v1673_v54 = vmax.f32 %v1484_v45, 0.0  ;;  %1707 = vst [vmem:[%s2643_s12 + $0x50] sm:$0xff] %v1659_v48  ;;  %v1675_v56 = vmax.f32 %v1535_v50, 0.0 }
 0x198   : > { %1706 = vst [vmem:[%s2643_s12 + $0x48] sm:$0xff] %v1658_v49  ;;  %v1674_v57 = vmax.f32 %v1486_v51, 0.0  ;;  %1708 = vst [vmem:[%s2643_s12 + $0x58] sm:$0xff] %v1660_v53  ;;  %v1676_v58 = vmax.f32 %v1537_v55, 0.0  ;;  %v1771_v53 = vld [vmem:[%s2643_s12 + $0x10] sm:$0xff] (%p2172_p5)  ;;  %v1775_v55 = vld [vmem:[%s2643_s12 + $0x20] sm:$0xff] (%p2172_p5) }
 0x199   : > { %1721 = vst [vmem:[%s2643_s12 + $0xc0] sm:$0xff] %v1673_v54  ;;  %1723 = vst [vmem:[%s2643_s12 + $0xd0] sm:$0xff] %v1675_v56  ;;  %v1773_v54 = vld [vmem:[%s2643_s12 + $0x18] sm:$0xff] (%p2172_p5)  ;;  %v1777_v56 = vld [vmem:[%s2643_s12 + $0x28] sm:$0xff] (%p2172_p5) }
 0x19a   : > { %1722 = vst [vmem:[%s2643_s12 + $0xc8] sm:$0xff] %v1674_v57  ;;  %v1489_v59 = vpop.f32.mrb[20].mxu0  ;;  %1724 = vst [vmem:[%s2643_s12 + $0xd8] sm:$0xff] %v1676_v58  ;;  %v1540_v61 = vpop.f32.mrb[20].mxu1  ;;  %v1779_v57 = vld [vmem:[%s2643_s12 + $0x30] sm:$0xff] (%p2172_p5)  ;;  %v1781_v58 = vld [vmem:[%s2643_s12 + $0x38] sm:$0xff] (%p2172_p5) }
 0x19b   : > { %v1490_v60 = vadd.f32 %v1489_v59, %v2649_v38  ;;  %v1491_v62 = vpop.f32.mrb[21].mxu0  ;;  %v1541_v63 = vadd.f32 %v1540_v61, %v2649_v38  ;;  %v1542_v2 = vpop.f32.mrb[21].mxu1  ;;  %1770 = vst [vmem:[%s2746_s20 + $0x8] sm:$0xff] (%p2172_p5), %v1769_v52  ;;  %1772 = vst [vmem:[%s2746_s20 + $0x10] sm:$0xff] (%p2172_p5), %v1771_v53 }
 0x19c   : > { %v1492_v1 = vadd.f32 %v1491_v62, %v2649_v38  ;;  %v1493_v3 = vpop.f32.mrb[22].mxu0  ;;  %v1543_v5 = vadd.f32 %v1542_v2, %v2649_v38  ;;  %v1544_v6 = vpop.f32.mrb[22].mxu1  ;;  %1774 = vst [vmem:[%s2746_s20 + $0x18] sm:$0xff] (%p2172_p5), %v1773_v54  ;;  %1776 = vst [vmem:[%s2746_s20 + $0x20] sm:$0xff] (%p2172_p5), %v1775_v55 }
 0x19d   : > { %v1689_v4 = vmax.f32 %v1490_v60, 0.0  ;;  %v1494_v7 = vpop.f32.mrb[23].mxu0  ;;  %v1691_v8 = vmax.f32 %v1541_v63, 0.0  ;;  %v1545_v10 = vpop.f32.mrb[23].mxu1  ;;  %1778 = vst [vmem:[%s2746_s20 + $0x28] sm:$0xff] (%p2172_p5), %v1777_v56  ;;  %1780 = vst [vmem:[%s2746_s20 + $0x30] sm:$0xff] (%p2172_p5), %v1779_v57 }
 0x19e   : > { %v1690_v9 = vmax.f32 %v1492_v1, 0.0  ;;  %v1692_v11 = vmax.f32 %v1543_v5, 0.0  ;;  %v1783_v59 = vld [vmem:[%s2643_s12 + $0x40] sm:$0xff] (%p2172_p5)  ;;  %1782 = vst [vmem:[%s2746_s20 + $0x38] sm:$0xff] (%p2172_p5), %v1781_v58  ;;  %v1787_v61 = vld [vmem:[%s2643_s12 + $0x50] sm:$0xff] (%p2172_p5)  ;;  %v1801_v5 = vld [vmem:[%s2643_s12 + $0x88] sm:$0xff] (%p2172_p5) }
 0x19f   : > { %1737 = vst [vmem:[%s2643_s12 + $0x140] sm:$0xf] %v1689_v4  ;;  %1739 = vst [vmem:[%s2643_s12 + $0x150] sm:$0xf] %v1691_v8  ;;  %v1785_v60 = vld [vmem:[%s2643_s12 + $0x48] sm:$0xff] (%p2172_p5)  ;;  %v1789_v62 = vld [vmem:[%s2643_s12 + $0x58] sm:$0xff] (%p2172_p5) }
 0x1a0   : > { %1738 = vst [vmem:[%s2643_s12 + $0x148] sm:$0xf] %v1690_v9  ;;  %1740 = vst [vmem:[%s2643_s12 + $0x158] sm:$0xf] %v1692_v11  ;;  %v1799_v4 = vld [vmem:[%s2643_s12 + $0x80] sm:$0xff] (%p2172_p5)  ;;  %v1803_v6 = vld [vmem:[%s2643_s12 + $0x90] sm:$0xff] (%p2172_p5) }
 0x1a1   : > { %1784 = vst [vmem:[%s2746_s20 + $0x40] sm:$0xff] (%p2172_p5), %v1783_v59  ;;  %1786 = vst [vmem:[%s2746_s20 + $0x48] sm:$0xff] (%p2172_p5), %v1785_v60  ;;  %v1805_v7 = vld [vmem:[%s2643_s12 + $0x98] sm:$0xff] (%p2172_p5)  ;;  %v1807_v8 = vld [vmem:[%s2643_s12 + $0xa0] sm:$0xff] (%p2172_p5) }
 0x1a2   : > { %1788 = vst [vmem:[%s2746_s20 + $0x50] sm:$0xff] (%p2172_p5), %v1787_v61  ;;  %1790 = vst [vmem:[%s2746_s20 + $0x58] sm:$0xff] (%p2172_p5), %v1789_v62  ;;  %v1809_v9 = vld [vmem:[%s2643_s12 + $0xa8] sm:$0xff] (%p2172_p5)  ;;  %v1811_v10 = vld [vmem:[%s2643_s12 + $0xb0] sm:$0xff] (%p2172_p5) }
 0x1a3   : > { %1800 = vst [vmem:[%s2746_s20 + $0x680] sm:$0xff] (%p2172_p5), %v1799_v4  ;;  %1802 = vst [vmem:[%s2746_s20 + $0x688] sm:$0xff] (%p2172_p5), %v1801_v5  ;;  %v1813_v11 = vld [vmem:[%s2643_s12 + $0xb8] sm:$0xff] (%p2172_p5) }
 0x1a4   : > { %1804 = vst [vmem:[%s2746_s20 + $0x690] sm:$0xff] (%p2172_p5), %v1803_v6  ;;  %1806 = vst [vmem:[%s2746_s20 + $0x698] sm:$0xff] (%p2172_p5), %v1805_v7 }
 0x1a5   : > { %1808 = vst [vmem:[%s2746_s20 + $0x6a0] sm:$0xff] (%p2172_p5), %v1807_v8  ;;  %1810 = vst [vmem:[%s2746_s20 + $0x6a8] sm:$0xff] (%p2172_p5), %v1809_v9 }
 0x1a6   : > { %1812 = vst [vmem:[%s2746_s20 + $0x6b0] sm:$0xff] (%p2172_p5), %v1811_v10  ;;  %1814 = vst [vmem:[%s2746_s20 + $0x6b8] sm:$0xff] (%p2172_p5), %v1813_v11 }
 0x1b2   : > { %v1581_v13 = vpop.f32.mrb[24].mxu0  ;;  %v1632_v16 = vpop.f32.mrb[24].mxu1 }
 0x1b3   : > { %v1582_v14 = vadd.f32 %v1581_v13, %v2630_v15  ;;  %v1583_v18 = vpop.f32.mrb[25].mxu0  ;;  %v1633_v19 = vadd.f32 %v1632_v16, %v2630_v15  ;;  %v1634_v12 = vpop.f32.mrb[25].mxu1  ;;  %v1815_v13 = vld [vmem:[%s2643_s12 + $0xc0] sm:$0xff] (%p2172_p5)  ;;  %v1819_v16 = vld [vmem:[%s2643_s12 + $0xd0] sm:$0xff] (%p2172_p5) }
 0x1b4   : > { %v1584_v20 = vadd.f32 %v1583_v18, %v2630_v15  ;;  %v1585_v21 = vpop.f32.mrb[26].mxu0  ;;  %v1635_v22 = vadd.f32 %v1634_v12, %v2630_v15  ;;  %v1636_v31 = vpop.f32.mrb[26].mxu1  ;;  %1816 = vst [vmem:[%s2746_s20 + $0x6c0] sm:$0xff] (%p2172_p5), %v1815_v13  ;;  %1820 = vst [vmem:[%s2746_s20 + $0x6d0] sm:$0xff] (%p2172_p5), %v1819_v16  ;;  %v1821_v18 = vld [vmem:[%s2643_s12 + $0xd8] sm:$0xff] (%p2172_p5) }
 0x1b5   : > { %v1661_v0 = vmax.f32 %v1582_v14, 0.0  ;;  %v1586_v23 = vadd.f32 %v1585_v21, %v2634_v17  ;;  %v1587_v24 = vpop.f32.mrb[27].mxu0  ;;  %v1663_v25 = vmax.f32 %v1633_v19, 0.0  ;;  %v1637_v27 = vadd.f32 %v1636_v31, %v2634_v17  ;;  %v1638_v29 = vpop.f32.mrb[27].mxu1  ;;  %v1817_v14 = vld [vmem:[%s2643_s12 + $0xc8] sm:$0xff] (%p2172_p5)  ;;  %1822 = vst [vmem:[%s2746_s20 + $0x6d8] sm:$0xff] (%p2172_p5), %v1821_v18 }
 0x1b6   : > { %v1662_v26 = vmax.f32 %v1584_v20, 0.0  ;;  %v1588_v28 = vadd.f32 %v1587_v24, %v2634_v17  ;;  %v1664_v30 = vmax.f32 %v1635_v22, 0.0  ;;  %v1639_v15 = vadd.f32 %v1638_v29, %v2634_v17  ;;  %1818 = vst [vmem:[%s2746_s20 + $0x6c8] sm:$0xff] (%p2172_p5), %v1817_v14  ;;  %v1833_v22 = vld [vmem:[%s2643_s12 + $0x108] sm:$0xff] (%p2172_p5)  ;;  %v1837_v31 = vld [vmem:[%s2643_s12 + $0x118] sm:$0xff] (%p2172_p5)  ;;  %v1839_v24 = vld [vmem:[%s2643_s12 + $0x120] sm:$0xff] (%p2172_p5) }
 0x1b7   : > { %1709 = vst [vmem:[%s2643_s12 + $0x60] sm:$0xff] %v1661_v0  ;;  %v1677_v32 = vmax.f32 %v1586_v23, 0.0  ;;  %1711 = vst [vmem:[%s2643_s12 + $0x70] sm:$0xff] %v1663_v25  ;;  %v1679_v33 = vmax.f32 %v1637_v27, 0.0  ;;  %v1831_v0 = vld [vmem:[%s2643_s12 + $0x100] sm:$0xff] (%p2172_p5)  ;;  %v1835_v23 = vld [vmem:[%s2643_s12 + $0x110] sm:$0xff] (%p2172_p5) }
 0x1b8   : > { %1710 = vst [vmem:[%s2643_s12 + $0x68] sm:$0xff] %v1662_v26  ;;  %v1678_v34 = vmax.f32 %v1588_v28, 0.0  ;;  %1712 = vst [vmem:[%s2643_s12 + $0x78] sm:$0xff] %v1664_v30  ;;  %v1680_v35 = vmax.f32 %v1639_v15, 0.0  ;;  %v1841_v25 = vld [vmem:[%s2643_s12 + $0x128] sm:$0xff] (%p2172_p5)  ;;  %v1843_v26 = vld [vmem:[%s2643_s12 + $0x130] sm:$0xff] (%p2172_p5) }
 0x1b9   : > { %1725 = vst [vmem:[%s2643_s12 + $0xe0] sm:$0xff] %v1677_v32  ;;  %1727 = vst [vmem:[%s2643_s12 + $0xf0] sm:$0xff] %v1679_v33  ;;  %v1845_v27 = vld [vmem:[%s2643_s12 + $0x138] sm:$0xff] (%p2172_p5)  ;;  %v1847_v28 = vld [vmem:[%s2643_s12 + $0x140] sm:$0xff] (%p2172_p5) }
 0x1ba   : > { %1726 = vst [vmem:[%s2643_s12 + $0xe8] sm:$0xff] %v1678_v34  ;;  %v1591_v36 = vpop.f32.mrb[28].mxu0  ;;  %1728 = vst [vmem:[%s2643_s12 + $0xf8] sm:$0xff] %v1680_v35  ;;  %v1642_v39 = vpop.f32.mrb[28].mxu1  ;;  %1751 = sbr.rel (!%p2172_p5) target bundleno = 458 (0x1ca), region = 59  ;;  %v1849_v29 = vld [vmem:[%s2643_s12 + $0x148] sm:$0xff] (%p2172_p5) }
 0x1bb   : > { %v1592_v37 = vadd.f32 %v1591_v36, %v2649_v38  ;;  %v1593_v40 = vpop.f32.mrb[29].mxu0  ;;  %v1643_v17 = vadd.f32 %v1642_v39, %v2649_v38  ;;  %v1644_v42 = vpop.f32.mrb[29].mxu1  ;;  %1832 = vst [vmem:[%s2746_s20 + $0xd00] sm:$0xff] (%p2172_p5), %v1831_v0  ;;  %1834 = vst [vmem:[%s2746_s20 + $0xd08] sm:$0xff] (%p2172_p5), %v1833_v22  ;;  %v1851_v30 = vld [vmem:[%s2643_s12 + $0x150] sm:$0xff] (%p2172_p5)  ;;  %v1853_v32 = vld [vmem:[%s2643_s12 + $0x158] sm:$0xff] (%p2172_p5) }
 0x1bc   : > { %v1594_v41 = vadd.f32 %v1593_v40, %v2649_v38  ;;  %v1595_v43 = vpop.f32.mrb[30].mxu0  ;;  %v1645_v45 = vadd.f32 %v1644_v42, %v2649_v38  ;;  %v1646_v46 = vpop.f32.mrb[30].mxu1  ;;  %v1767_v38 = vld [vmem:[%s2643_s12] sm:$0xff] (%p2172_p5)  ;;  %1836 = vst [vmem:[%s2746_s20 + $0xd10] sm:$0xff] (%p2172_p5), %v1835_v23  ;;  %1838 = vst [vmem:[%s2746_s20 + $0xd18] sm:$0xff] (%p2172_p5), %v1837_v31 }
 0x1bd   : > { %v1693_v44 = vmax.f32 %v1592_v37, 0.0  ;;  %v1596_v47 = vpop.f32.mrb[31].mxu0  ;;  %v1695_v48 = vmax.f32 %v1643_v17, 0.0  ;;  %v1647_v50 = vpop.f32.mrb[31].mxu1  ;;  %1768 = vst [vmem:[%s2746_s20] sm:$0xff] (%p2172_p5), %v1767_v38  ;;  %1840 = vst [vmem:[%s2746_s20 + $0xd20] sm:$0xff] (%p2172_p5), %v1839_v24 }
 0x1be   : > { %v1694_v49 = vmax.f32 %v1594_v41, 0.0  ;;  %v1696_v51 = vmax.f32 %v1645_v45, 0.0  ;;  %v1791_v63 = vld [vmem:[%s2643_s12 + $0x60] sm:$0xff] (%p2172_p5)  ;;  %v1795_v2 = vld [vmem:[%s2643_s12 + $0x70] sm:$0xff] (%p2172_p5)  ;;  %1842 = vst [vmem:[%s2746_s20 + $0xd28] sm:$0xff] (%p2172_p5), %v1841_v25  ;;  %1844 = vst [vmem:[%s2746_s20 + $0xd30] sm:$0xff] (%p2172_p5), %v1843_v26 }
 0x1bf   : > { %1741 = vst [vmem:[%s2643_s12 + $0x160] sm:$0xf] %v1693_v44  ;;  %1743 = vst [vmem:[%s2643_s12 + $0x170] sm:$0xf] %v1695_v48  ;;  %v1793_v1 = vld [vmem:[%s2643_s12 + $0x68] sm:$0xff] (%p2172_p5)  ;;  %v1797_v3 = vld [vmem:[%s2643_s12 + $0x78] sm:$0xff] (%p2172_p5) }
 0x1c0   : > { %1742 = vst [vmem:[%s2643_s12 + $0x168] sm:$0xf] %v1694_v49  ;;  %1744 = vst [vmem:[%s2643_s12 + $0x178] sm:$0xf] %v1696_v51  ;;  %v1823_v19 = vld [vmem:[%s2643_s12 + $0xe0] sm:$0xff] (%p2172_p5)  ;;  %v1827_v12 = vld [vmem:[%s2643_s12 + $0xf0] sm:$0xff] (%p2172_p5) }
 0x1c1   : > { %1792 = vst [vmem:[%s2746_s20 + $0x60] sm:$0xff] %v1791_v63  ;;  %1794 = vst [vmem:[%s2746_s20 + $0x68] sm:$0xff] %v1793_v1  ;;  %v1825_v20 = vld [vmem:[%s2643_s12 + $0xe8] sm:$0xff]  ;;  %v1829_v21 = vld [vmem:[%s2643_s12 + $0xf8] sm:$0xff] }
 0x1c2   : > { %1796 = vst [vmem:[%s2746_s20 + $0x70] sm:$0xff] %v1795_v2  ;;  %1798 = vst [vmem:[%s2746_s20 + $0x78] sm:$0xff] %v1797_v3 }
 0x1c3   : > { %1824 = vst [vmem:[%s2746_s20 + $0x6e0] sm:$0xff] %v1823_v19  ;;  %1826 = vst [vmem:[%s2746_s20 + $0x6e8] sm:$0xff] %v1825_v20 }
 0x1c4   : > { %1828 = vst [vmem:[%s2746_s20 + $0x6f0] sm:$0xff] %v1827_v12  ;;  %1830 = vst [vmem:[%s2746_s20 + $0x6f8] sm:$0xff] %v1829_v21 }
 0x1c5   : > { %1846 = vst [vmem:[%s2746_s20 + $0xd38] sm:$0xff] %v1845_v27  ;;  %1848 = vst [vmem:[%s2746_s20 + $0xd40] sm:$0xff] %v1847_v28 }
 0x1c6   : > { %1850 = vst [vmem:[%s2746_s20 + $0xd48] sm:$0xff] %v1849_v29  ;;  %v1855_v15 = vld [vmem:[%s2643_s12 + $0x160] sm:$0xff]  ;;  %1852 = vst [vmem:[%s2746_s20 + $0xd50] sm:$0xff] %v1851_v30  ;;  %v1859_v34 = vld [vmem:[%s2643_s12 + $0x170] sm:$0xff] }
 0x1c7   : > { %1854 = vst [vmem:[%s2746_s20 + $0xd58] sm:$0xff] %v1853_v32  ;;  %1856 = vst [vmem:[%s2746_s20 + $0xd60] sm:$0xff] %v1855_v15  ;;  %v1857_v33 = vld [vmem:[%s2643_s12 + $0x168] sm:$0xff]  ;;  %v1861_v35 = vld [vmem:[%s2643_s12 + $0x178] sm:$0xff] }
 0x1c8   : > { %1858 = vst [vmem:[%s2746_s20 + $0xd68] sm:$0xff] %v1857_v33  ;;  %1860 = vst [vmem:[%s2746_s20 + $0xd70] sm:$0xff] %v1859_v34 }
 0x1c9   : > { %1862 = vst [vmem:[%s2746_s20 + $0xd78] sm:$0xff] %v1861_v35 }
 0x1ca PF: > { %p10_p10 = scmp.ge.s32.totalorder %s2159_s16, 15   ;;  %s2856_s12 = smov %s2115_s13 }
 0x1cb   : > { %s2857_s13 = smov %s2170_s19  ;;  %s2858_s14 = smov %s2159_s16 }
 0x1cc   :  { %12 = sbr.rel (!%p10_p10) target bundleno = 2 (0x2), region = 113 }

// kernel: berson_forward.4
= control target key start
LH: loop header
LB: loop body
LE: loop exit
PB: predicated region body
PF: predicated region fallthrough
CT: control target
= control target key end

     0   :  { %s7842_s0 = inlined_call_operand.vmem [shape: f32[20,2,111,111], index: 0, kind: input, shape index: {}]   ;;  %s7843_s1 = inlined_call_operand.vmem [shape: f32[500], index: 1, kind: input, shape index: {}]   ;;  %s7844_s2 = inlined_call_operand.<no memory space> [shape: f32[1], index: 2, kind: input, shape index: {}]   ;;  %s7845_s3 = inlined_call_operand.vmem [shape: f32[2,107,107], index: 3, kind: output, shape index: {}]  }
   0x1   :  { %8 = sst [smem:[#allocation2]] %s7844_s2 }
   0x2   :  { %9 = vsyncpa [#allocation5], 0  ;;  %s4499_s14 = smov 0   ;;  %s4501_s15 = smov 0  }
   0x3   :  { %s4503_s16 = smov 0  }
   0x4 LB: > { %s4515_s2 = sadd.s32 4294967295, %s4409_s16   ;;  %s4518_s17 = sadd.s32 1, %s4409_s16   ;;  %s4409_s16 = sphi %s4503_s16, %s8258_s16   ;;  %s4405_s15 = sphi %s4501_s15, %s8257_s15   ;;  %s4401_s14 = sphi %s4499_s14, %s8256_s14  }
   0x5   : > { %s19_s18 = ssub.s32 %s4409_s16, %s4518_s17  ;;  %s22_s19 = sadd.s32 1, %s4405_s15 }
   0x6   : > { %p20_p0 = scmp.eq.s32.totalorder %s19_s18, 0  ;;  %p29_p1 = scmp.ne.s32.totalorder %s4405_s15, %s4401_s14 }
   0x7   : > { %p30_p2 = scmp.eq.s32.totalorder %s4409_s16, 0  ;;  %p4094_p3 = scmp.ge.s32.totalorder %s4409_s16, 1 }
   0x8   : > { %s4528_s20 = scalar_select %p20_p0, %s4405_s15, %s22_s19  }
   0x9   : > { %p4530_p4 = por %p30_p2, %p29_p1  ;;  %p114_p5 = scmp.lt.s32.totalorder %s4409_s16, 3 }
   0xa   : > { %p4115_p6 = scmp.eq.s32.totalorder %s4515_s2, 0  ;;  %s127_s25 = sshll.u32 %s7843_s1, 4  ;;  %s128_s25 = int_to_ptr.vmem [resolvable:$true] %s127_s25 }
   0xb   : > { %p4536_p7 = pnand %p4094_p3, %p114_p5  ;;  %s4308_s26 = scalar_lea.vmem %s128_s25, 64 }
   0xc   : > { %p4309_p10 = scmp.ne.s32.totalorder %s128_s25, %s4308_s26  ;;  %p4316_p0 = scmp.lt.s32.totalorder %s128_s25, %s128_s25 }
   0xd   : > { %p4111_p8 = pneg %p4536_p7  ;;  %p4317_p1 = scmp.lt.s32.totalorder %s4308_s26, %s4308_s26 }
   0xf   : > { %p4112_p9 = pnand %p4115_p6, %p4111_p8  ;;  %p4318_p2 = por %p4317_p1, %p4316_p0 }
  0x11   : > { %p4310_p11 = pneg %p4112_p9 }
  0x13   : > { %p4311_p12 = pnand %p4310_p11, %p4309_p10 }
  0x15   : > { %p4312_p13 = pneg %p4311_p12 }
  0x17   : > { %p4319_p3 = pnand %p4318_p2, %p4312_p13 }
  0x19   : > { %4322 = shalt.err (!%p4319_p3)
}
  0x1a   : > { %s4471_s27 = smov [#allocation4]   ;;  %p4096_p5 = scmp.ge.s32.totalorder %s4409_s16, 2 }
  0x1b   : > { %4114 = dma.vmem_to_smem (!%p4112_p9), %s128_s25, 64, %s4471_s27, [#allocation5]  }
  0x1c   : > { %137 = sbr.rel (%p4096_p5) target bundleno = 180 (0xb4), region = 24 }
  0x23   : > { %140 = sbr.rel (!%p4530_p4) target bundleno = 180 (0xb4), region = 28  ;;  %s142_s28 = sand.u32 (%p4530_p4), 1, %s4405_s15  }
  0x24   : > { %s4104_s29 = smul.u32 (%p4530_p4), 112, %s4409_s16 }
  0x25   : > { %s4103_s30 = smul.u32 (%p4530_p4), 2240, %s142_s28 }
  0x26   : > { %s4555_s6 = scalar_lea.vmem (%p4530_p4), %s7842_s0, %s4104_s29 }
  0x27   : > { %v733_v0 = vld [vmem:[%s4555_s6] sm:$0xff] (%p4530_p4)  ;;  %v735_v1 = vld [vmem:[%s4555_s6 + $0x8] sm:$0xff] (%p4530_p4)  ;;  %v737_v2 = vld [vmem:[%s4555_s6 + $0x10] sm:$0xff] (%p4530_p4)  ;;  %s4560_s7 = scalar_lea.vmem (%p4530_p4), [#allocation3], %s4103_s30 }
  0x28   : > { %734 = vst [vmem:[%s4560_s7] sm:$0xff] (%p4530_p4), %v733_v0  ;;  %736 = vst [vmem:[%s4560_s7 + $0x8] sm:$0xff] (%p4530_p4), %v735_v1  ;;  %v739_v3 = vld [vmem:[%s4555_s6 + $0x18] sm:$0xff] (%p4530_p4)  ;;  %v741_v4 = vld [vmem:[%s4555_s6 + $0x20] sm:$0xff] (%p4530_p4) }
  0x29   : > { %738 = vst [vmem:[%s4560_s7 + $0x10] sm:$0xff] (%p4530_p4), %v737_v2  ;;  %v743_v5 = vld [vmem:[%s4555_s6 + $0x28] sm:$0xff] (%p4530_p4)  ;;  %740 = vst [vmem:[%s4560_s7 + $0x18] sm:$0xff] (%p4530_p4), %v739_v3  ;;  %v745_v6 = vld [vmem:[%s4555_s6 + $0x30] sm:$0xff] (%p4530_p4) }
  0x2a   : > { %742 = vst [vmem:[%s4560_s7 + $0x20] sm:$0xff] %v741_v4  ;;  %744 = vst [vmem:[%s4560_s7 + $0x28] sm:$0xff] %v743_v5  ;;  %v747_v7 = vld [vmem:[%s4555_s6 + $0x38] sm:$0xff]  ;;  %v749_v8 = vld [vmem:[%s4555_s6 + $0x40] sm:$0xff] }
  0x2b   : > { %746 = vst [vmem:[%s4560_s7 + $0x30] sm:$0xff] %v745_v6  ;;  %748 = vst [vmem:[%s4560_s7 + $0x38] sm:$0xff] %v747_v7  ;;  %v751_v9 = vld [vmem:[%s4555_s6 + $0x48] sm:$0xff]  ;;  %v753_v10 = vld [vmem:[%s4555_s6 + $0x50] sm:$0xff] }
  0x2c   : > { %750 = vst [vmem:[%s4560_s7 + $0x40] sm:$0xff] %v749_v8  ;;  %v755_v11 = vld [vmem:[%s4555_s6 + $0x58] sm:$0xff]  ;;  %752 = vst [vmem:[%s4560_s7 + $0x48] sm:$0xff] %v751_v9  ;;  %v757_v12 = vld [vmem:[%s4555_s6 + $0x60] sm:$0xff] }
  0x2d   : > { %754 = vst [vmem:[%s4560_s7 + $0x50] sm:$0xff] %v753_v10  ;;  %756 = vst [vmem:[%s4560_s7 + $0x58] sm:$0xff] %v755_v11  ;;  %v759_v13 = vld [vmem:[%s4555_s6 + $0x68] sm:$0xff]  ;;  %v761_v14 = vld [vmem:[%s4555_s6 + $0xe0] sm:$0xff] }
  0x2e   : > { %758 = vst [vmem:[%s4560_s7 + $0x60] sm:$0xff] %v757_v12  ;;  %760 = vst [vmem:[%s4560_s7 + $0x68] sm:$0xff] %v759_v13  ;;  %v763_v15 = vld [vmem:[%s4555_s6 + $0xe8] sm:$0xff]  ;;  %v765_v16 = vld [vmem:[%s4555_s6 + $0xf0] sm:$0xff] }
  0x2f   : > { %762 = vst [vmem:[%s4560_s7 + $0x70] sm:$0xff] %v761_v14  ;;  %v767_v17 = vld [vmem:[%s4555_s6 + $0xf8] sm:$0xff]  ;;  %764 = vst [vmem:[%s4560_s7 + $0x78] sm:$0xff] %v763_v15  ;;  %v769_v18 = vld [vmem:[%s4555_s6 + $0x100] sm:$0xff] }
  0x30   : > { %766 = vst [vmem:[%s4560_s7 + $0x80] sm:$0xff] %v765_v16  ;;  %768 = vst [vmem:[%s4560_s7 + $0x88] sm:$0xff] %v767_v17  ;;  %v771_v19 = vld [vmem:[%s4555_s6 + $0x108] sm:$0xff]  ;;  %v773_v20 = vld [vmem:[%s4555_s6 + $0x110] sm:$0xff] }
  0x31   : > { %770 = vst [vmem:[%s4560_s7 + $0x90] sm:$0xff] %v769_v18  ;;  %772 = vst [vmem:[%s4560_s7 + $0x98] sm:$0xff] %v771_v19  ;;  %v775_v21 = vld [vmem:[%s4555_s6 + $0x118] sm:$0xff]  ;;  %v777_v22 = vld [vmem:[%s4555_s6 + $0x120] sm:$0xff] }
  0x32   : > { %774 = vst [vmem:[%s4560_s7 + $0xa0] sm:$0xff] %v773_v20  ;;  %v779_v23 = vld [vmem:[%s4555_s6 + $0x128] sm:$0xff]  ;;  %776 = vst [vmem:[%s4560_s7 + $0xa8] sm:$0xff] %v775_v21  ;;  %v781_v24 = vld [vmem:[%s4555_s6 + $0x130] sm:$0xff] }
  0x33   : > { %778 = vst [vmem:[%s4560_s7 + $0xb0] sm:$0xff] %v777_v22  ;;  %780 = vst [vmem:[%s4560_s7 + $0xb8] sm:$0xff] %v779_v23  ;;  %v783_v25 = vld [vmem:[%s4555_s6 + $0x138] sm:$0xff]  ;;  %v785_v26 = vld [vmem:[%s4555_s6 + $0x140] sm:$0xff] }
  0x34   : > { %782 = vst [vmem:[%s4560_s7 + $0xc0] sm:$0xff] %v781_v24  ;;  %784 = vst [vmem:[%s4560_s7 + $0xc8] sm:$0xff] %v783_v25  ;;  %v787_v27 = vld [vmem:[%s4555_s6 + $0x148] sm:$0xff]  ;;  %v789_v28 = vld [vmem:[%s4555_s6 + $0x1c0] sm:$0xff] }
  0x35   : > { %786 = vst [vmem:[%s4560_s7 + $0xd0] sm:$0xff] %v785_v26  ;;  %v791_v29 = vld [vmem:[%s4555_s6 + $0x1c8] sm:$0xff]  ;;  %788 = vst [vmem:[%s4560_s7 + $0xd8] sm:$0xff] %v787_v27  ;;  %v793_v30 = vld [vmem:[%s4555_s6 + $0x1d0] sm:$0xff] }
  0x36   : > { %790 = vst [vmem:[%s4560_s7 + $0xe0] sm:$0xff] %v789_v28  ;;  %792 = vst [vmem:[%s4560_s7 + $0xe8] sm:$0xff] %v791_v29  ;;  %v795_v31 = vld [vmem:[%s4555_s6 + $0x1d8] sm:$0xff]  ;;  %v797_v32 = vld [vmem:[%s4555_s6 + $0x1e0] sm:$0xff] }
  0x37   : > { %794 = vst [vmem:[%s4560_s7 + $0xf0] sm:$0xff] %v793_v30  ;;  %796 = vst [vmem:[%s4560_s7 + $0xf8] sm:$0xff] %v795_v31  ;;  %v799_v33 = vld [vmem:[%s4555_s6 + $0x1e8] sm:$0xff]  ;;  %v801_v34 = vld [vmem:[%s4555_s6 + $0x1f0] sm:$0xff] }
  0x38   : > { %798 = vst [vmem:[%s4560_s7 + $0x100] sm:$0xff] %v797_v32  ;;  %v803_v35 = vld [vmem:[%s4555_s6 + $0x1f8] sm:$0xff]  ;;  %800 = vst [vmem:[%s4560_s7 + $0x108] sm:$0xff] %v799_v33  ;;  %v805_v36 = vld [vmem:[%s4555_s6 + $0x200] sm:$0xff] }
  0x39   : > { %802 = vst [vmem:[%s4560_s7 + $0x110] sm:$0xff] %v801_v34  ;;  %804 = vst [vmem:[%s4560_s7 + $0x118] sm:$0xff] %v803_v35  ;;  %v807_v37 = vld [vmem:[%s4555_s6 + $0x208] sm:$0xff]  ;;  %v809_v38 = vld [vmem:[%s4555_s6 + $0x210] sm:$0xff] }
  0x3a   : > { %806 = vst [vmem:[%s4560_s7 + $0x120] sm:$0xff] %v805_v36  ;;  %808 = vst [vmem:[%s4560_s7 + $0x128] sm:$0xff] %v807_v37  ;;  %v811_v39 = vld [vmem:[%s4555_s6 + $0x218] sm:$0xff]  ;;  %v813_v40 = vld [vmem:[%s4555_s6 + $0x220] sm:$0xff] }
  0x3b   : > { %810 = vst [vmem:[%s4560_s7 + $0x130] sm:$0xff] %v809_v38  ;;  %v815_v41 = vld [vmem:[%s4555_s6 + $0x228] sm:$0xff]  ;;  %812 = vst [vmem:[%s4560_s7 + $0x138] sm:$0xff] %v811_v39  ;;  %v817_v42 = vld [vmem:[%s4555_s6 + $0x2a0] sm:$0xff] }
  0x3c   : > { %814 = vst [vmem:[%s4560_s7 + $0x140] sm:$0xff] %v813_v40  ;;  %816 = vst [vmem:[%s4560_s7 + $0x148] sm:$0xff] %v815_v41  ;;  %v819_v43 = vld [vmem:[%s4555_s6 + $0x2a8] sm:$0xff]  ;;  %v821_v44 = vld [vmem:[%s4555_s6 + $0x2b0] sm:$0xff] }
  0x3d   : > { %818 = vst [vmem:[%s4560_s7 + $0x150] sm:$0xff] %v817_v42  ;;  %820 = vst [vmem:[%s4560_s7 + $0x158] sm:$0xff] %v819_v43  ;;  %v823_v45 = vld [vmem:[%s4555_s6 + $0x2b8] sm:$0xff]  ;;  %v825_v46 = vld [vmem:[%s4555_s6 + $0x2c0] sm:$0xff] }
  0x3e   : > { %822 = vst [vmem:[%s4560_s7 + $0x160] sm:$0xff] %v821_v44  ;;  %v827_v47 = vld [vmem:[%s4555_s6 + $0x2c8] sm:$0xff]  ;;  %824 = vst [vmem:[%s4560_s7 + $0x168] sm:$0xff] %v823_v45  ;;  %v829_v48 = vld [vmem:[%s4555_s6 + $0x2d0] sm:$0xff] }
  0x3f   : > { %826 = vst [vmem:[%s4560_s7 + $0x170] sm:$0xff] %v825_v46  ;;  %828 = vst [vmem:[%s4560_s7 + $0x178] sm:$0xff] %v827_v47  ;;  %v831_v49 = vld [vmem:[%s4555_s6 + $0x2d8] sm:$0xff]  ;;  %v833_v50 = vld [vmem:[%s4555_s6 + $0x2e0] sm:$0xff] }
  0x40   : > { %830 = vst [vmem:[%s4560_s7 + $0x180] sm:$0xff] %v829_v48  ;;  %832 = vst [vmem:[%s4560_s7 + $0x188] sm:$0xff] %v831_v49  ;;  %v835_v51 = vld [vmem:[%s4555_s6 + $0x2e8] sm:$0xff]  ;;  %v837_v52 = vld [vmem:[%s4555_s6 + $0x2f0] sm:$0xff] }
  0x41   : > { %834 = vst [vmem:[%s4560_s7 + $0x190] sm:$0xff] %v833_v50  ;;  %v839_v53 = vld [vmem:[%s4555_s6 + $0x2f8] sm:$0xff]  ;;  %836 = vst [vmem:[%s4560_s7 + $0x198] sm:$0xff] %v835_v51  ;;  %v841_v54 = vld [vmem:[%s4555_s6 + $0x300] sm:$0xff] }
  0x42   : > { %838 = vst [vmem:[%s4560_s7 + $0x1a0] sm:$0xff] %v837_v52  ;;  %840 = vst [vmem:[%s4560_s7 + $0x1a8] sm:$0xff] %v839_v53  ;;  %v843_v55 = vld [vmem:[%s4555_s6 + $0x308] sm:$0xff]  ;;  %v845_v56 = vld [vmem:[%s4555_s6 + $0x380] sm:$0xff] }
  0x43   : > { %842 = vst [vmem:[%s4560_s7 + $0x1b0] sm:$0xff] %v841_v54  ;;  %844 = vst [vmem:[%s4560_s7 + $0x1b8] sm:$0xff] %v843_v55  ;;  %v847_v57 = vld [vmem:[%s4555_s6 + $0x388] sm:$0xff]  ;;  %v849_v58 = vld [vmem:[%s4555_s6 + $0x390] sm:$0xff] }
  0x44   : > { %846 = vst [vmem:[%s4560_s7 + $0x1c0] sm:$0xff] %v845_v56  ;;  %v851_v59 = vld [vmem:[%s4555_s6 + $0x398] sm:$0xff]  ;;  %848 = vst [vmem:[%s4560_s7 + $0x1c8] sm:$0xff] %v847_v57  ;;  %v853_v60 = vld [vmem:[%s4555_s6 + $0x3a0] sm:$0xff] }
  0x45   : > { %850 = vst [vmem:[%s4560_s7 + $0x1d0] sm:$0xff] %v849_v58  ;;  %852 = vst [vmem:[%s4560_s7 + $0x1d8] sm:$0xff] %v851_v59  ;;  %v855_v61 = vld [vmem:[%s4555_s6 + $0x3a8] sm:$0xff]  ;;  %v857_v62 = vld [vmem:[%s4555_s6 + $0x3b0] sm:$0xff] }
  0x46   : > { %854 = vst [vmem:[%s4560_s7 + $0x1e0] sm:$0xff] %v853_v60  ;;  %856 = vst [vmem:[%s4560_s7 + $0x1e8] sm:$0xff] %v855_v61  ;;  %v859_v63 = vld [vmem:[%s4555_s6 + $0x3b8] sm:$0xff]  ;;  %v861_v0 = vld [vmem:[%s4555_s6 + $0x3c0] sm:$0xff] }
  0x47   : > { %858 = vst [vmem:[%s4560_s7 + $0x1f0] sm:$0xff] %v857_v62  ;;  %v863_v1 = vld [vmem:[%s4555_s6 + $0x3c8] sm:$0xff]  ;;  %860 = vst [vmem:[%s4560_s7 + $0x1f8] sm:$0xff] %v859_v63  ;;  %v865_v2 = vld [vmem:[%s4555_s6 + $0x3d0] sm:$0xff] }
  0x48   : > { %862 = vst [vmem:[%s4560_s7 + $0x200] sm:$0xff] %v861_v0  ;;  %864 = vst [vmem:[%s4560_s7 + $0x208] sm:$0xff] %v863_v1  ;;  %v867_v3 = vld [vmem:[%s4555_s6 + $0x3d8] sm:$0xff]  ;;  %v869_v4 = vld [vmem:[%s4555_s6 + $0x3e0] sm:$0xff] }
  0x49   : > { %866 = vst [vmem:[%s4560_s7 + $0x210] sm:$0xff] %v865_v2  ;;  %868 = vst [vmem:[%s4560_s7 + $0x218] sm:$0xff] %v867_v3  ;;  %v871_v5 = vld [vmem:[%s4555_s6 + $0x3e8] sm:$0xff]  ;;  %v873_v6 = vld [vmem:[%s4555_s6 + $0x460] sm:$0xff] }
  0x4a   : > { %870 = vst [vmem:[%s4560_s7 + $0x220] sm:$0xff] %v869_v4  ;;  %v875_v7 = vld [vmem:[%s4555_s6 + $0x468] sm:$0xff]  ;;  %872 = vst [vmem:[%s4560_s7 + $0x228] sm:$0xff] %v871_v5  ;;  %v877_v8 = vld [vmem:[%s4555_s6 + $0x470] sm:$0xff] }
  0x4b   : > { %874 = vst [vmem:[%s4560_s7 + $0x230] sm:$0xff] %v873_v6  ;;  %876 = vst [vmem:[%s4560_s7 + $0x238] sm:$0xff] %v875_v7  ;;  %v879_v9 = vld [vmem:[%s4555_s6 + $0x478] sm:$0xff]  ;;  %v881_v10 = vld [vmem:[%s4555_s6 + $0x480] sm:$0xff] }
  0x4c   : > { %878 = vst [vmem:[%s4560_s7 + $0x240] sm:$0xff] %v877_v8  ;;  %880 = vst [vmem:[%s4560_s7 + $0x248] sm:$0xff] %v879_v9  ;;  %v883_v11 = vld [vmem:[%s4555_s6 + $0x488] sm:$0xff]  ;;  %v885_v12 = vld [vmem:[%s4555_s6 + $0x490] sm:$0xff] }
  0x4d   : > { %882 = vst [vmem:[%s4560_s7 + $0x250] sm:$0xff] %v881_v10  ;;  %v887_v13 = vld [vmem:[%s4555_s6 + $0x498] sm:$0xff]  ;;  %884 = vst [vmem:[%s4560_s7 + $0x258] sm:$0xff] %v883_v11  ;;  %v889_v14 = vld [vmem:[%s4555_s6 + $0x4a0] sm:$0xff] }
  0x4e   : > { %886 = vst [vmem:[%s4560_s7 + $0x260] sm:$0xff] %v885_v12  ;;  %888 = vst [vmem:[%s4560_s7 + $0x268] sm:$0xff] %v887_v13  ;;  %v891_v15 = vld [vmem:[%s4555_s6 + $0x4a8] sm:$0xff]  ;;  %v893_v16 = vld [vmem:[%s4555_s6 + $0x4b0] sm:$0xff] }
  0x4f   : > { %890 = vst [vmem:[%s4560_s7 + $0x270] sm:$0xff] %v889_v14  ;;  %892 = vst [vmem:[%s4560_s7 + $0x278] sm:$0xff] %v891_v15  ;;  %v895_v17 = vld [vmem:[%s4555_s6 + $0x4b8] sm:$0xff]  ;;  %v897_v18 = vld [vmem:[%s4555_s6 + $0x4c0] sm:$0xff] }
  0x50   : > { %894 = vst [vmem:[%s4560_s7 + $0x280] sm:$0xff] %v893_v16  ;;  %v899_v19 = vld [vmem:[%s4555_s6 + $0x4c8] sm:$0xff]  ;;  %896 = vst [vmem:[%s4560_s7 + $0x288] sm:$0xff] %v895_v17  ;;  %v901_v20 = vld [vmem:[%s4555_s6 + $0x540] sm:$0xff] }
  0x51   : > { %898 = vst [vmem:[%s4560_s7 + $0x290] sm:$0xff] %v897_v18  ;;  %900 = vst [vmem:[%s4560_s7 + $0x298] sm:$0xff] %v899_v19  ;;  %v903_v21 = vld [vmem:[%s4555_s6 + $0x548] sm:$0xff]  ;;  %v905_v22 = vld [vmem:[%s4555_s6 + $0x550] sm:$0xff] }
  0x52   : > { %902 = vst [vmem:[%s4560_s7 + $0x2a0] sm:$0xff] %v901_v20  ;;  %904 = vst [vmem:[%s4560_s7 + $0x2a8] sm:$0xff] %v903_v21  ;;  %v907_v23 = vld [vmem:[%s4555_s6 + $0x558] sm:$0xff]  ;;  %v909_v24 = vld [vmem:[%s4555_s6 + $0x560] sm:$0xff] }
  0x53   : > { %906 = vst [vmem:[%s4560_s7 + $0x2b0] sm:$0xff] %v905_v22  ;;  %v911_v25 = vld [vmem:[%s4555_s6 + $0x568] sm:$0xff]  ;;  %908 = vst [vmem:[%s4560_s7 + $0x2b8] sm:$0xff] %v907_v23  ;;  %v913_v26 = vld [vmem:[%s4555_s6 + $0x570] sm:$0xff] }
  0x54   : > { %910 = vst [vmem:[%s4560_s7 + $0x2c0] sm:$0xff] %v909_v24  ;;  %912 = vst [vmem:[%s4560_s7 + $0x2c8] sm:$0xff] %v911_v25  ;;  %v915_v27 = vld [vmem:[%s4555_s6 + $0x578] sm:$0xff]  ;;  %v917_v28 = vld [vmem:[%s4555_s6 + $0x580] sm:$0xff] }
  0x55   : > { %914 = vst [vmem:[%s4560_s7 + $0x2d0] sm:$0xff] %v913_v26  ;;  %916 = vst [vmem:[%s4560_s7 + $0x2d8] sm:$0xff] %v915_v27  ;;  %v919_v29 = vld [vmem:[%s4555_s6 + $0x588] sm:$0xff]  ;;  %v921_v30 = vld [vmem:[%s4555_s6 + $0x590] sm:$0xff] }
  0x56   : > { %918 = vst [vmem:[%s4560_s7 + $0x2e0] sm:$0xff] %v917_v28  ;;  %v923_v31 = vld [vmem:[%s4555_s6 + $0x598] sm:$0xff]  ;;  %920 = vst [vmem:[%s4560_s7 + $0x2e8] sm:$0xff] %v919_v29  ;;  %v925_v32 = vld [vmem:[%s4555_s6 + $0x5a0] sm:$0xff] }
  0x57   : > { %922 = vst [vmem:[%s4560_s7 + $0x2f0] sm:$0xff] %v921_v30  ;;  %924 = vst [vmem:[%s4560_s7 + $0x2f8] sm:$0xff] %v923_v31  ;;  %v927_v33 = vld [vmem:[%s4555_s6 + $0x5a8] sm:$0xff]  ;;  %v929_v34 = vld [vmem:[%s4555_s6 + $0x620] sm:$0xff] }
  0x58   : > { %926 = vst [vmem:[%s4560_s7 + $0x300] sm:$0xff] %v925_v32  ;;  %928 = vst [vmem:[%s4560_s7 + $0x308] sm:$0xff] %v927_v33  ;;  %v931_v35 = vld [vmem:[%s4555_s6 + $0x628] sm:$0xff]  ;;  %v933_v36 = vld [vmem:[%s4555_s6 + $0x630] sm:$0xff] }
  0x59   : > { %930 = vst [vmem:[%s4560_s7 + $0x310] sm:$0xff] %v929_v34  ;;  %v935_v37 = vld [vmem:[%s4555_s6 + $0x638] sm:$0xff]  ;;  %932 = vst [vmem:[%s4560_s7 + $0x318] sm:$0xff] %v931_v35  ;;  %v937_v38 = vld [vmem:[%s4555_s6 + $0x640] sm:$0xff] }
  0x5a   : > { %934 = vst [vmem:[%s4560_s7 + $0x320] sm:$0xff] %v933_v36  ;;  %936 = vst [vmem:[%s4560_s7 + $0x328] sm:$0xff] %v935_v37  ;;  %v939_v39 = vld [vmem:[%s4555_s6 + $0x648] sm:$0xff]  ;;  %v941_v40 = vld [vmem:[%s4555_s6 + $0x650] sm:$0xff] }
  0x5b   : > { %938 = vst [vmem:[%s4560_s7 + $0x330] sm:$0xff] %v937_v38  ;;  %940 = vst [vmem:[%s4560_s7 + $0x338] sm:$0xff] %v939_v39  ;;  %v943_v41 = vld [vmem:[%s4555_s6 + $0x658] sm:$0xff]  ;;  %v945_v42 = vld [vmem:[%s4555_s6 + $0x660] sm:$0xff] }
  0x5c   : > { %942 = vst [vmem:[%s4560_s7 + $0x340] sm:$0xff] %v941_v40  ;;  %v947_v43 = vld [vmem:[%s4555_s6 + $0x668] sm:$0xff]  ;;  %944 = vst [vmem:[%s4560_s7 + $0x348] sm:$0xff] %v943_v41  ;;  %v949_v44 = vld [vmem:[%s4555_s6 + $0x670] sm:$0xff] }
  0x5d   : > { %946 = vst [vmem:[%s4560_s7 + $0x350] sm:$0xff] %v945_v42  ;;  %948 = vst [vmem:[%s4560_s7 + $0x358] sm:$0xff] %v947_v43  ;;  %v951_v45 = vld [vmem:[%s4555_s6 + $0x678] sm:$0xff]  ;;  %v953_v46 = vld [vmem:[%s4555_s6 + $0x680] sm:$0xff] }
  0x5e   : > { %950 = vst [vmem:[%s4560_s7 + $0x360] sm:$0xff] %v949_v44  ;;  %952 = vst [vmem:[%s4560_s7 + $0x368] sm:$0xff] %v951_v45  ;;  %v955_v47 = vld [vmem:[%s4555_s6 + $0x688] sm:$0xff]  ;;  %v957_v48 = vld [vmem:[%s4555_s6 + $0x700] sm:$0xff] }
  0x5f   : > { %954 = vst [vmem:[%s4560_s7 + $0x370] sm:$0xff] %v953_v46  ;;  %v959_v49 = vld [vmem:[%s4555_s6 + $0x708] sm:$0xff]  ;;  %956 = vst [vmem:[%s4560_s7 + $0x378] sm:$0xff] %v955_v47  ;;  %v961_v50 = vld [vmem:[%s4555_s6 + $0x710] sm:$0xff] }
  0x60   : > { %958 = vst [vmem:[%s4560_s7 + $0x380] sm:$0xff] %v957_v48  ;;  %960 = vst [vmem:[%s4560_s7 + $0x388] sm:$0xff] %v959_v49  ;;  %v963_v51 = vld [vmem:[%s4555_s6 + $0x718] sm:$0xff]  ;;  %v965_v52 = vld [vmem:[%s4555_s6 + $0x720] sm:$0xff] }
  0x61   : > { %962 = vst [vmem:[%s4560_s7 + $0x390] sm:$0xff] %v961_v50  ;;  %964 = vst [vmem:[%s4560_s7 + $0x398] sm:$0xff] %v963_v51  ;;  %v967_v53 = vld [vmem:[%s4555_s6 + $0x728] sm:$0xff]  ;;  %v969_v54 = vld [vmem:[%s4555_s6 + $0x730] sm:$0xff] }
  0x62   : > { %966 = vst [vmem:[%s4560_s7 + $0x3a0] sm:$0xff] %v965_v52  ;;  %v971_v55 = vld [vmem:[%s4555_s6 + $0x738] sm:$0xff]  ;;  %968 = vst [vmem:[%s4560_s7 + $0x3a8] sm:$0xff] %v967_v53  ;;  %v973_v56 = vld [vmem:[%s4555_s6 + $0x740] sm:$0xff] }
  0x63   : > { %970 = vst [vmem:[%s4560_s7 + $0x3b0] sm:$0xff] %v969_v54  ;;  %972 = vst [vmem:[%s4560_s7 + $0x3b8] sm:$0xff] %v971_v55  ;;  %v975_v57 = vld [vmem:[%s4555_s6 + $0x748] sm:$0xff]  ;;  %v977_v58 = vld [vmem:[%s4555_s6 + $0x750] sm:$0xff] }
  0x64   : > { %974 = vst [vmem:[%s4560_s7 + $0x3c0] sm:$0xff] %v973_v56  ;;  %976 = vst [vmem:[%s4560_s7 + $0x3c8] sm:$0xff] %v975_v57  ;;  %v979_v59 = vld [vmem:[%s4555_s6 + $0x758] sm:$0xff]  ;;  %v981_v60 = vld [vmem:[%s4555_s6 + $0x760] sm:$0xff] }
  0x65   : > { %978 = vst [vmem:[%s4560_s7 + $0x3d0] sm:$0xff] %v977_v58  ;;  %v983_v61 = vld [vmem:[%s4555_s6 + $0x768] sm:$0xff]  ;;  %980 = vst [vmem:[%s4560_s7 + $0x3d8] sm:$0xff] %v979_v59  ;;  %v985_v62 = vld [vmem:[%s4555_s6 + $0x7e0] sm:$0xff] }
  0x66   : > { %982 = vst [vmem:[%s4560_s7 + $0x3e0] sm:$0xff] %v981_v60  ;;  %984 = vst [vmem:[%s4560_s7 + $0x3e8] sm:$0xff] %v983_v61  ;;  %v987_v63 = vld [vmem:[%s4555_s6 + $0x7e8] sm:$0xff]  ;;  %v989_v0 = vld [vmem:[%s4555_s6 + $0x7f0] sm:$0xff] }
  0x67   : > { %986 = vst [vmem:[%s4560_s7 + $0x3f0] sm:$0xff] %v985_v62  ;;  %988 = vst [vmem:[%s4560_s7 + $0x3f8] sm:$0xff] %v987_v63  ;;  %v991_v1 = vld [vmem:[%s4555_s6 + $0x7f8] sm:$0xff]  ;;  %v993_v2 = vld [vmem:[%s4555_s6 + $0x800] sm:$0xff] }
  0x68   : > { %990 = vst [vmem:[%s4560_s7 + $0x400] sm:$0xff] %v989_v0  ;;  %v995_v3 = vld [vmem:[%s4555_s6 + $0x808] sm:$0xff]  ;;  %992 = vst [vmem:[%s4560_s7 + $0x408] sm:$0xff] %v991_v1  ;;  %v997_v4 = vld [vmem:[%s4555_s6 + $0x810] sm:$0xff] }
  0x69   : > { %994 = vst [vmem:[%s4560_s7 + $0x410] sm:$0xff] %v993_v2  ;;  %996 = vst [vmem:[%s4560_s7 + $0x418] sm:$0xff] %v995_v3  ;;  %v999_v5 = vld [vmem:[%s4555_s6 + $0x818] sm:$0xff]  ;;  %v1001_v6 = vld [vmem:[%s4555_s6 + $0x820] sm:$0xff] }
  0x6a   : > { %998 = vst [vmem:[%s4560_s7 + $0x420] sm:$0xff] %v997_v4  ;;  %1000 = vst [vmem:[%s4560_s7 + $0x428] sm:$0xff] %v999_v5  ;;  %v1003_v7 = vld [vmem:[%s4555_s6 + $0x828] sm:$0xff]  ;;  %v1005_v8 = vld [vmem:[%s4555_s6 + $0x830] sm:$0xff] }
  0x6b   : > { %1002 = vst [vmem:[%s4560_s7 + $0x430] sm:$0xff] %v1001_v6  ;;  %v1007_v9 = vld [vmem:[%s4555_s6 + $0x838] sm:$0xff]  ;;  %1004 = vst [vmem:[%s4560_s7 + $0x438] sm:$0xff] %v1003_v7  ;;  %v1009_v10 = vld [vmem:[%s4555_s6 + $0x840] sm:$0xff] }
  0x6c   : > { %1006 = vst [vmem:[%s4560_s7 + $0x440] sm:$0xff] %v1005_v8  ;;  %1008 = vst [vmem:[%s4560_s7 + $0x448] sm:$0xff] %v1007_v9  ;;  %v1011_v11 = vld [vmem:[%s4555_s6 + $0x848] sm:$0xff]  ;;  %v1013_v12 = vld [vmem:[%s4555_s6 + $0x8c0] sm:$0xff] }
  0x6d   : > { %1010 = vst [vmem:[%s4560_s7 + $0x450] sm:$0xff] %v1009_v10  ;;  %1012 = vst [vmem:[%s4560_s7 + $0x458] sm:$0xff] %v1011_v11  ;;  %v1015_v13 = vld [vmem:[%s4555_s6 + $0x8c8] sm:$0xff]  ;;  %v1017_v14 = vld [vmem:[%s4555_s6 + $0x8d0] sm:$0xff] }
  0x6e   : > { %1014 = vst [vmem:[%s4560_s7 + $0x460] sm:$0xff] %v1013_v12  ;;  %v1019_v15 = vld [vmem:[%s4555_s6 + $0x8d8] sm:$0xff]  ;;  %1016 = vst [vmem:[%s4560_s7 + $0x468] sm:$0xff] %v1015_v13  ;;  %v1021_v16 = vld [vmem:[%s4555_s6 + $0x8e0] sm:$0xff] }
  0x6f   : > { %1018 = vst [vmem:[%s4560_s7 + $0x470] sm:$0xff] %v1017_v14  ;;  %1020 = vst [vmem:[%s4560_s7 + $0x478] sm:$0xff] %v1019_v15  ;;  %v1023_v17 = vld [vmem:[%s4555_s6 + $0x8e8] sm:$0xff]  ;;  %v1025_v18 = vld [vmem:[%s4555_s6 + $0x8f0] sm:$0xff] }
  0x70   : > { %1022 = vst [vmem:[%s4560_s7 + $0x480] sm:$0xff] %v1021_v16  ;;  %1024 = vst [vmem:[%s4560_s7 + $0x488] sm:$0xff] %v1023_v17  ;;  %v1027_v19 = vld [vmem:[%s4555_s6 + $0x8f8] sm:$0xff]  ;;  %v1029_v20 = vld [vmem:[%s4555_s6 + $0x900] sm:$0xff] }
  0x71   : > { %1026 = vst [vmem:[%s4560_s7 + $0x490] sm:$0xff] %v1025_v18  ;;  %v1031_v21 = vld [vmem:[%s4555_s6 + $0x908] sm:$0xff]  ;;  %1028 = vst [vmem:[%s4560_s7 + $0x498] sm:$0xff] %v1027_v19  ;;  %v1033_v22 = vld [vmem:[%s4555_s6 + $0x910] sm:$0xff] }
  0x72   : > { %1030 = vst [vmem:[%s4560_s7 + $0x4a0] sm:$0xff] %v1029_v20  ;;  %1032 = vst [vmem:[%s4560_s7 + $0x4a8] sm:$0xff] %v1031_v21  ;;  %v1035_v23 = vld [vmem:[%s4555_s6 + $0x918] sm:$0xff]  ;;  %v1037_v24 = vld [vmem:[%s4555_s6 + $0x920] sm:$0xff] }
  0x73   : > { %1034 = vst [vmem:[%s4560_s7 + $0x4b0] sm:$0xff] %v1033_v22  ;;  %1036 = vst [vmem:[%s4560_s7 + $0x4b8] sm:$0xff] %v1035_v23  ;;  %v1039_v25 = vld [vmem:[%s4555_s6 + $0x928] sm:$0xff]  ;;  %v1041_v26 = vld [vmem:[%s4555_s6 + $0x9a0] sm:$0xff] }
  0x74   : > { %1038 = vst [vmem:[%s4560_s7 + $0x4c0] sm:$0xff] %v1037_v24  ;;  %v1043_v27 = vld [vmem:[%s4555_s6 + $0x9a8] sm:$0xff]  ;;  %1040 = vst [vmem:[%s4560_s7 + $0x4c8] sm:$0xff] %v1039_v25  ;;  %v1045_v28 = vld [vmem:[%s4555_s6 + $0x9b0] sm:$0xff] }
  0x75   : > { %1042 = vst [vmem:[%s4560_s7 + $0x4d0] sm:$0xff] %v1041_v26  ;;  %1044 = vst [vmem:[%s4560_s7 + $0x4d8] sm:$0xff] %v1043_v27  ;;  %v1047_v29 = vld [vmem:[%s4555_s6 + $0x9b8] sm:$0xff]  ;;  %v1049_v30 = vld [vmem:[%s4555_s6 + $0x9c0] sm:$0xff] }
  0x76   : > { %1046 = vst [vmem:[%s4560_s7 + $0x4e0] sm:$0xff] %v1045_v28  ;;  %1048 = vst [vmem:[%s4560_s7 + $0x4e8] sm:$0xff] %v1047_v29  ;;  %v1051_v31 = vld [vmem:[%s4555_s6 + $0x9c8] sm:$0xff]  ;;  %v1053_v32 = vld [vmem:[%s4555_s6 + $0x9d0] sm:$0xff] }
  0x77   : > { %1050 = vst [vmem:[%s4560_s7 + $0x4f0] sm:$0xff] %v1049_v30  ;;  %v1055_v33 = vld [vmem:[%s4555_s6 + $0x9d8] sm:$0xff]  ;;  %1052 = vst [vmem:[%s4560_s7 + $0x4f8] sm:$0xff] %v1051_v31  ;;  %v1057_v34 = vld [vmem:[%s4555_s6 + $0x9e0] sm:$0xff] }
  0x78   : > { %1054 = vst [vmem:[%s4560_s7 + $0x500] sm:$0xff] %v1053_v32  ;;  %1056 = vst [vmem:[%s4560_s7 + $0x508] sm:$0xff] %v1055_v33  ;;  %v1059_v35 = vld [vmem:[%s4555_s6 + $0x9e8] sm:$0xff]  ;;  %v1061_v36 = vld [vmem:[%s4555_s6 + $0x9f0] sm:$0xff] }
  0x79   : > { %1058 = vst [vmem:[%s4560_s7 + $0x510] sm:$0xff] %v1057_v34  ;;  %1060 = vst [vmem:[%s4560_s7 + $0x518] sm:$0xff] %v1059_v35  ;;  %v1063_v37 = vld [vmem:[%s4555_s6 + $0x9f8] sm:$0xff]  ;;  %v1065_v38 = vld [vmem:[%s4555_s6 + $0xa00] sm:$0xff] }
  0x7a   : > { %1062 = vst [vmem:[%s4560_s7 + $0x520] sm:$0xff] %v1061_v36  ;;  %v1067_v39 = vld [vmem:[%s4555_s6 + $0xa08] sm:$0xff]  ;;  %1064 = vst [vmem:[%s4560_s7 + $0x528] sm:$0xff] %v1063_v37  ;;  %v1069_v40 = vld [vmem:[%s4555_s6 + $0xa80] sm:$0xff] }
  0x7b   : > { %1066 = vst [vmem:[%s4560_s7 + $0x530] sm:$0xff] %v1065_v38  ;;  %1068 = vst [vmem:[%s4560_s7 + $0x538] sm:$0xff] %v1067_v39  ;;  %v1071_v41 = vld [vmem:[%s4555_s6 + $0xa88] sm:$0xff]  ;;  %v1073_v42 = vld [vmem:[%s4555_s6 + $0xa90] sm:$0xff] }
  0x7c   : > { %1070 = vst [vmem:[%s4560_s7 + $0x540] sm:$0xff] %v1069_v40  ;;  %1072 = vst [vmem:[%s4560_s7 + $0x548] sm:$0xff] %v1071_v41  ;;  %v1075_v43 = vld [vmem:[%s4555_s6 + $0xa98] sm:$0xff]  ;;  %v1077_v44 = vld [vmem:[%s4555_s6 + $0xaa0] sm:$0xff] }
  0x7d   : > { %1074 = vst [vmem:[%s4560_s7 + $0x550] sm:$0xff] %v1073_v42  ;;  %v1079_v45 = vld [vmem:[%s4555_s6 + $0xaa8] sm:$0xff]  ;;  %1076 = vst [vmem:[%s4560_s7 + $0x558] sm:$0xff] %v1075_v43  ;;  %v1081_v46 = vld [vmem:[%s4555_s6 + $0xab0] sm:$0xff] }
  0x7e   : > { %1078 = vst [vmem:[%s4560_s7 + $0x560] sm:$0xff] %v1077_v44  ;;  %1080 = vst [vmem:[%s4560_s7 + $0x568] sm:$0xff] %v1079_v45  ;;  %v1083_v47 = vld [vmem:[%s4555_s6 + $0xab8] sm:$0xff]  ;;  %v1085_v48 = vld [vmem:[%s4555_s6 + $0xac0] sm:$0xff] }
  0x7f   : > { %1082 = vst [vmem:[%s4560_s7 + $0x570] sm:$0xff] %v1081_v46  ;;  %1084 = vst [vmem:[%s4560_s7 + $0x578] sm:$0xff] %v1083_v47  ;;  %v1087_v49 = vld [vmem:[%s4555_s6 + $0xac8] sm:$0xff]  ;;  %v1089_v50 = vld [vmem:[%s4555_s6 + $0xad0] sm:$0xff] }
  0x80   : > { %1086 = vst [vmem:[%s4560_s7 + $0x580] sm:$0xff] %v1085_v48  ;;  %v1091_v51 = vld [vmem:[%s4555_s6 + $0xad8] sm:$0xff]  ;;  %1088 = vst [vmem:[%s4560_s7 + $0x588] sm:$0xff] %v1087_v49  ;;  %v1093_v52 = vld [vmem:[%s4555_s6 + $0xae0] sm:$0xff] }
  0x81   : > { %1090 = vst [vmem:[%s4560_s7 + $0x590] sm:$0xff] %v1089_v50  ;;  %1092 = vst [vmem:[%s4560_s7 + $0x598] sm:$0xff] %v1091_v51  ;;  %v1095_v53 = vld [vmem:[%s4555_s6 + $0xae8] sm:$0xff]  ;;  %v1097_v54 = vld [vmem:[%s4555_s6 + $0xb60] sm:$0xff] }
  0x82   : > { %1094 = vst [vmem:[%s4560_s7 + $0x5a0] sm:$0xff] %v1093_v52  ;;  %1096 = vst [vmem:[%s4560_s7 + $0x5a8] sm:$0xff] %v1095_v53  ;;  %v1099_v55 = vld [vmem:[%s4555_s6 + $0xb68] sm:$0xff]  ;;  %v1101_v56 = vld [vmem:[%s4555_s6 + $0xb70] sm:$0xff] }
  0x83   : > { %1098 = vst [vmem:[%s4560_s7 + $0x5b0] sm:$0xff] %v1097_v54  ;;  %v1103_v57 = vld [vmem:[%s4555_s6 + $0xb78] sm:$0xff]  ;;  %1100 = vst [vmem:[%s4560_s7 + $0x5b8] sm:$0xff] %v1099_v55  ;;  %v1105_v58 = vld [vmem:[%s4555_s6 + $0xb80] sm:$0xff] }
  0x84   : > { %1102 = vst [vmem:[%s4560_s7 + $0x5c0] sm:$0xff] %v1101_v56  ;;  %1104 = vst [vmem:[%s4560_s7 + $0x5c8] sm:$0xff] %v1103_v57  ;;  %v1107_v59 = vld [vmem:[%s4555_s6 + $0xb88] sm:$0xff]  ;;  %v1109_v60 = vld [vmem:[%s4555_s6 + $0xb90] sm:$0xff] }
  0x85   : > { %1106 = vst [vmem:[%s4560_s7 + $0x5d0] sm:$0xff] %v1105_v58  ;;  %1108 = vst [vmem:[%s4560_s7 + $0x5d8] sm:$0xff] %v1107_v59  ;;  %v1111_v61 = vld [vmem:[%s4555_s6 + $0xb98] sm:$0xff]  ;;  %v1113_v62 = vld [vmem:[%s4555_s6 + $0xba0] sm:$0xff] }
  0x86   : > { %1110 = vst [vmem:[%s4560_s7 + $0x5e0] sm:$0xff] %v1109_v60  ;;  %v1115_v63 = vld [vmem:[%s4555_s6 + $0xba8] sm:$0xff]  ;;  %1112 = vst [vmem:[%s4560_s7 + $0x5e8] sm:$0xff] %v1111_v61  ;;  %v1117_v0 = vld [vmem:[%s4555_s6 + $0xbb0] sm:$0xff] }
  0x87   : > { %1114 = vst [vmem:[%s4560_s7 + $0x5f0] sm:$0xff] %v1113_v62  ;;  %1116 = vst [vmem:[%s4560_s7 + $0x5f8] sm:$0xff] %v1115_v63  ;;  %v1119_v1 = vld [vmem:[%s4555_s6 + $0xbb8] sm:$0xff]  ;;  %v1121_v2 = vld [vmem:[%s4555_s6 + $0xbc0] sm:$0xff] }
  0x88   : > { %1118 = vst [vmem:[%s4560_s7 + $0x600] sm:$0xff] %v1117_v0  ;;  %1120 = vst [vmem:[%s4560_s7 + $0x608] sm:$0xff] %v1119_v1  ;;  %v1123_v3 = vld [vmem:[%s4555_s6 + $0xbc8] sm:$0xff]  ;;  %v1125_v4 = vld [vmem:[%s4555_s6 + $0xc40] sm:$0xff] }
  0x89   : > { %1122 = vst [vmem:[%s4560_s7 + $0x610] sm:$0xff] %v1121_v2  ;;  %v1127_v5 = vld [vmem:[%s4555_s6 + $0xc48] sm:$0xff]  ;;  %1124 = vst [vmem:[%s4560_s7 + $0x618] sm:$0xff] %v1123_v3  ;;  %v1129_v6 = vld [vmem:[%s4555_s6 + $0xc50] sm:$0xff] }
  0x8a   : > { %1126 = vst [vmem:[%s4560_s7 + $0x620] sm:$0xff] %v1125_v4  ;;  %1128 = vst [vmem:[%s4560_s7 + $0x628] sm:$0xff] %v1127_v5  ;;  %v1131_v7 = vld [vmem:[%s4555_s6 + $0xc58] sm:$0xff]  ;;  %v1133_v8 = vld [vmem:[%s4555_s6 + $0xc60] sm:$0xff] }
  0x8b   : > { %1130 = vst [vmem:[%s4560_s7 + $0x630] sm:$0xff] %v1129_v6  ;;  %1132 = vst [vmem:[%s4560_s7 + $0x638] sm:$0xff] %v1131_v7  ;;  %v1135_v9 = vld [vmem:[%s4555_s6 + $0xc68] sm:$0xff]  ;;  %v1137_v10 = vld [vmem:[%s4555_s6 + $0xc70] sm:$0xff] }
  0x8c   : > { %1134 = vst [vmem:[%s4560_s7 + $0x640] sm:$0xff] %v1133_v8  ;;  %v1139_v11 = vld [vmem:[%s4555_s6 + $0xc78] sm:$0xff]  ;;  %1136 = vst [vmem:[%s4560_s7 + $0x648] sm:$0xff] %v1135_v9  ;;  %v1141_v12 = vld [vmem:[%s4555_s6 + $0xc80] sm:$0xff] }
  0x8d   : > { %1138 = vst [vmem:[%s4560_s7 + $0x650] sm:$0xff] %v1137_v10  ;;  %1140 = vst [vmem:[%s4560_s7 + $0x658] sm:$0xff] %v1139_v11  ;;  %v1143_v13 = vld [vmem:[%s4555_s6 + $0xc88] sm:$0xff]  ;;  %v1145_v14 = vld [vmem:[%s4555_s6 + $0xc90] sm:$0xff] }
  0x8e   : > { %1142 = vst [vmem:[%s4560_s7 + $0x660] sm:$0xff] %v1141_v12  ;;  %1144 = vst [vmem:[%s4560_s7 + $0x668] sm:$0xff] %v1143_v13  ;;  %v1147_v15 = vld [vmem:[%s4555_s6 + $0xc98] sm:$0xff]  ;;  %v1149_v16 = vld [vmem:[%s4555_s6 + $0xca0] sm:$0xff] }
  0x8f   : > { %1146 = vst [vmem:[%s4560_s7 + $0x670] sm:$0xff] %v1145_v14  ;;  %v1151_v17 = vld [vmem:[%s4555_s6 + $0xca8] sm:$0xff]  ;;  %1148 = vst [vmem:[%s4560_s7 + $0x678] sm:$0xff] %v1147_v15  ;;  %v1153_v18 = vld [vmem:[%s4555_s6 + $0xd20] sm:$0xff] }
  0x90   : > { %1150 = vst [vmem:[%s4560_s7 + $0x680] sm:$0xff] %v1149_v16  ;;  %1152 = vst [vmem:[%s4560_s7 + $0x688] sm:$0xff] %v1151_v17  ;;  %v1155_v19 = vld [vmem:[%s4555_s6 + $0xd28] sm:$0xff]  ;;  %v1157_v20 = vld [vmem:[%s4555_s6 + $0xd30] sm:$0xff] }
  0x91   : > { %1154 = vst [vmem:[%s4560_s7 + $0x690] sm:$0xff] %v1153_v18  ;;  %1156 = vst [vmem:[%s4560_s7 + $0x698] sm:$0xff] %v1155_v19  ;;  %v1159_v21 = vld [vmem:[%s4555_s6 + $0xd38] sm:$0xff]  ;;  %v1161_v22 = vld [vmem:[%s4555_s6 + $0xd40] sm:$0xff] }
  0x92   : > { %1158 = vst [vmem:[%s4560_s7 + $0x6a0] sm:$0xff] %v1157_v20  ;;  %v1163_v23 = vld [vmem:[%s4555_s6 + $0xd48] sm:$0xff]  ;;  %1160 = vst [vmem:[%s4560_s7 + $0x6a8] sm:$0xff] %v1159_v21  ;;  %v1165_v24 = vld [vmem:[%s4555_s6 + $0xd50] sm:$0xff] }
  0x93   : > { %1162 = vst [vmem:[%s4560_s7 + $0x6b0] sm:$0xff] %v1161_v22  ;;  %1164 = vst [vmem:[%s4560_s7 + $0x6b8] sm:$0xff] %v1163_v23  ;;  %v1167_v25 = vld [vmem:[%s4555_s6 + $0xd58] sm:$0xff]  ;;  %v1169_v26 = vld [vmem:[%s4555_s6 + $0xd60] sm:$0xff] }
  0x94   : > { %1166 = vst [vmem:[%s4560_s7 + $0x6c0] sm:$0xff] %v1165_v24  ;;  %1168 = vst [vmem:[%s4560_s7 + $0x6c8] sm:$0xff] %v1167_v25  ;;  %v1171_v27 = vld [vmem:[%s4555_s6 + $0xd68] sm:$0xff]  ;;  %v1173_v28 = vld [vmem:[%s4555_s6 + $0xd70] sm:$0xff] }
  0x95   : > { %1170 = vst [vmem:[%s4560_s7 + $0x6d0] sm:$0xff] %v1169_v26  ;;  %v1175_v29 = vld [vmem:[%s4555_s6 + $0xd78] sm:$0xff]  ;;  %1172 = vst [vmem:[%s4560_s7 + $0x6d8] sm:$0xff] %v1171_v27  ;;  %v1177_v30 = vld [vmem:[%s4555_s6 + $0xd80] sm:$0xff] }
  0x96   : > { %1174 = vst [vmem:[%s4560_s7 + $0x6e0] sm:$0xff] %v1173_v28  ;;  %1176 = vst [vmem:[%s4560_s7 + $0x6e8] sm:$0xff] %v1175_v29  ;;  %v1179_v31 = vld [vmem:[%s4555_s6 + $0xd88] sm:$0xff]  ;;  %v1181_v32 = vld [vmem:[%s4555_s6 + $0xe00] sm:$0xff] }
  0x97   : > { %1178 = vst [vmem:[%s4560_s7 + $0x6f0] sm:$0xff] %v1177_v30  ;;  %1180 = vst [vmem:[%s4560_s7 + $0x6f8] sm:$0xff] %v1179_v31  ;;  %v1183_v33 = vld [vmem:[%s4555_s6 + $0xe08] sm:$0xff]  ;;  %v1185_v34 = vld [vmem:[%s4555_s6 + $0xe10] sm:$0xff] }
  0x98   : > { %1182 = vst [vmem:[%s4560_s7 + $0x700] sm:$0xff] %v1181_v32  ;;  %v1187_v35 = vld [vmem:[%s4555_s6 + $0xe18] sm:$0xff]  ;;  %1184 = vst [vmem:[%s4560_s7 + $0x708] sm:$0xff] %v1183_v33  ;;  %v1189_v36 = vld [vmem:[%s4555_s6 + $0xe20] sm:$0xff] }
  0x99   : > { %1186 = vst [vmem:[%s4560_s7 + $0x710] sm:$0xff] %v1185_v34  ;;  %1188 = vst [vmem:[%s4560_s7 + $0x718] sm:$0xff] %v1187_v35  ;;  %v1191_v37 = vld [vmem:[%s4555_s6 + $0xe28] sm:$0xff]  ;;  %v1193_v38 = vld [vmem:[%s4555_s6 + $0xe30] sm:$0xff] }
  0x9a   : > { %1190 = vst [vmem:[%s4560_s7 + $0x720] sm:$0xff] %v1189_v36  ;;  %1192 = vst [vmem:[%s4560_s7 + $0x728] sm:$0xff] %v1191_v37  ;;  %v1195_v39 = vld [vmem:[%s4555_s6 + $0xe38] sm:$0xff]  ;;  %v1197_v40 = vld [vmem:[%s4555_s6 + $0xe40] sm:$0xff] }
  0x9b   : > { %1194 = vst [vmem:[%s4560_s7 + $0x730] sm:$0xff] %v1193_v38  ;;  %v1199_v41 = vld [vmem:[%s4555_s6 + $0xe48] sm:$0xff]  ;;  %1196 = vst [vmem:[%s4560_s7 + $0x738] sm:$0xff] %v1195_v39  ;;  %v1201_v42 = vld [vmem:[%s4555_s6 + $0xe50] sm:$0xff] }
  0x9c   : > { %1198 = vst [vmem:[%s4560_s7 + $0x740] sm:$0xff] %v1197_v40  ;;  %1200 = vst [vmem:[%s4560_s7 + $0x748] sm:$0xff] %v1199_v41  ;;  %v1203_v43 = vld [vmem:[%s4555_s6 + $0xe58] sm:$0xff]  ;;  %v1205_v44 = vld [vmem:[%s4555_s6 + $0xe60] sm:$0xff] }
  0x9d   : > { %1202 = vst [vmem:[%s4560_s7 + $0x750] sm:$0xff] %v1201_v42  ;;  %1204 = vst [vmem:[%s4560_s7 + $0x758] sm:$0xff] %v1203_v43  ;;  %v1207_v45 = vld [vmem:[%s4555_s6 + $0xe68] sm:$0xff]  ;;  %v1209_v46 = vld [vmem:[%s4555_s6 + $0xee0] sm:$0xff] }
  0x9e   : > { %1206 = vst [vmem:[%s4560_s7 + $0x760] sm:$0xff] %v1205_v44  ;;  %v1211_v47 = vld [vmem:[%s4555_s6 + $0xee8] sm:$0xff]  ;;  %1208 = vst [vmem:[%s4560_s7 + $0x768] sm:$0xff] %v1207_v45  ;;  %v1213_v48 = vld [vmem:[%s4555_s6 + $0xef0] sm:$0xff] }
  0x9f   : > { %1210 = vst [vmem:[%s4560_s7 + $0x770] sm:$0xff] %v1209_v46  ;;  %1212 = vst [vmem:[%s4560_s7 + $0x778] sm:$0xff] %v1211_v47  ;;  %v1215_v49 = vld [vmem:[%s4555_s6 + $0xef8] sm:$0xff]  ;;  %v1217_v50 = vld [vmem:[%s4555_s6 + $0xf00] sm:$0xff] }
  0xa0   : > { %1214 = vst [vmem:[%s4560_s7 + $0x780] sm:$0xff] %v1213_v48  ;;  %1216 = vst [vmem:[%s4560_s7 + $0x788] sm:$0xff] %v1215_v49  ;;  %v1219_v51 = vld [vmem:[%s4555_s6 + $0xf08] sm:$0xff]  ;;  %v1221_v52 = vld [vmem:[%s4555_s6 + $0xf10] sm:$0xff] }
  0xa1   : > { %1218 = vst [vmem:[%s4560_s7 + $0x790] sm:$0xff] %v1217_v50  ;;  %v1223_v53 = vld [vmem:[%s4555_s6 + $0xf18] sm:$0xff]  ;;  %1220 = vst [vmem:[%s4560_s7 + $0x798] sm:$0xff] %v1219_v51  ;;  %v1225_v54 = vld [vmem:[%s4555_s6 + $0xf20] sm:$0xff] }
  0xa2   : > { %1222 = vst [vmem:[%s4560_s7 + $0x7a0] sm:$0xff] %v1221_v52  ;;  %1224 = vst [vmem:[%s4560_s7 + $0x7a8] sm:$0xff] %v1223_v53  ;;  %v1227_v55 = vld [vmem:[%s4555_s6 + $0xf28] sm:$0xff]  ;;  %v1229_v56 = vld [vmem:[%s4555_s6 + $0xf30] sm:$0xff] }
  0xa3   : > { %1226 = vst [vmem:[%s4560_s7 + $0x7b0] sm:$0xff] %v1225_v54  ;;  %1228 = vst [vmem:[%s4560_s7 + $0x7b8] sm:$0xff] %v1227_v55  ;;  %v1231_v57 = vld [vmem:[%s4555_s6 + $0xf38] sm:$0xff]  ;;  %v1233_v58 = vld [vmem:[%s4555_s6 + $0xf40] sm:$0xff] }
  0xa4   : > { %1230 = vst [vmem:[%s4560_s7 + $0x7c0] sm:$0xff] %v1229_v56  ;;  %v1235_v59 = vld [vmem:[%s4555_s6 + $0xf48] sm:$0xff]  ;;  %1232 = vst [vmem:[%s4560_s7 + $0x7c8] sm:$0xff] %v1231_v57  ;;  %v1237_v60 = vld [vmem:[%s4555_s6 + $0xfc0] sm:$0xff] }
  0xa5   : > { %1234 = vst [vmem:[%s4560_s7 + $0x7d0] sm:$0xff] %v1233_v58  ;;  %1236 = vst [vmem:[%s4560_s7 + $0x7d8] sm:$0xff] %v1235_v59  ;;  %v1239_v61 = vld [vmem:[%s4555_s6 + $0xfc8] sm:$0xff]  ;;  %v1241_v62 = vld [vmem:[%s4555_s6 + $0xfd0] sm:$0xff] }
  0xa6   : > { %1238 = vst [vmem:[%s4560_s7 + $0x7e0] sm:$0xff] %v1237_v60  ;;  %1240 = vst [vmem:[%s4560_s7 + $0x7e8] sm:$0xff] %v1239_v61  ;;  %v1243_v63 = vld [vmem:[%s4555_s6 + $0xfd8] sm:$0xff]  ;;  %v1245_v0 = vld [vmem:[%s4555_s6 + $0xfe0] sm:$0xff] }
  0xa7   : > { %1242 = vst [vmem:[%s4560_s7 + $0x7f0] sm:$0xff] %v1241_v62  ;;  %v1247_v1 = vld [vmem:[%s4555_s6 + $0xfe8] sm:$0xff]  ;;  %1244 = vst [vmem:[%s4560_s7 + $0x7f8] sm:$0xff] %v1243_v63  ;;  %v1249_v2 = vld [vmem:[%s4555_s6 + $0xff0] sm:$0xff] }
  0xa8   : > { %1246 = vst [vmem:[%s4560_s7 + $0x800] sm:$0xff] %v1245_v0  ;;  %1248 = vst [vmem:[%s4560_s7 + $0x808] sm:$0xff] %v1247_v1  ;;  %v1251_v3 = vld [vmem:[%s4555_s6 + $0xff8] sm:$0xff]  ;;  %v1253_v4 = vld [vmem:[%s4555_s6 + $0x1000] sm:$0xff] }
  0xa9   : > { %1250 = vst [vmem:[%s4560_s7 + $0x810] sm:$0xff] %v1249_v2  ;;  %1252 = vst [vmem:[%s4560_s7 + $0x818] sm:$0xff] %v1251_v3  ;;  %v1255_v5 = vld [vmem:[%s4555_s6 + $0x1008] sm:$0xff]  ;;  %v1257_v6 = vld [vmem:[%s4555_s6 + $0x1010] sm:$0xff] }
  0xaa   : > { %1254 = vst [vmem:[%s4560_s7 + $0x820] sm:$0xff] %v1253_v4  ;;  %v1259_v7 = vld [vmem:[%s4555_s6 + $0x1018] sm:$0xff]  ;;  %1256 = vst [vmem:[%s4560_s7 + $0x828] sm:$0xff] %v1255_v5  ;;  %v1261_v8 = vld [vmem:[%s4555_s6 + $0x1020] sm:$0xff] }
  0xab   : > { %1258 = vst [vmem:[%s4560_s7 + $0x830] sm:$0xff] %v1257_v6  ;;  %1260 = vst [vmem:[%s4560_s7 + $0x838] sm:$0xff] %v1259_v7  ;;  %v1263_v9 = vld [vmem:[%s4555_s6 + $0x1028] sm:$0xff]  ;;  %v1265_v10 = vld [vmem:[%s4555_s6 + $0x10a0] sm:$0xff] }
  0xac   : > { %1262 = vst [vmem:[%s4560_s7 + $0x840] sm:$0xff] %v1261_v8  ;;  %1264 = vst [vmem:[%s4560_s7 + $0x848] sm:$0xff] %v1263_v9  ;;  %v1267_v11 = vld [vmem:[%s4555_s6 + $0x10a8] sm:$0xff]  ;;  %v1269_v12 = vld [vmem:[%s4555_s6 + $0x10b0] sm:$0xff] }
  0xad   : > { %1266 = vst [vmem:[%s4560_s7 + $0x850] sm:$0xff] %v1265_v10  ;;  %v1271_v13 = vld [vmem:[%s4555_s6 + $0x10b8] sm:$0xff]  ;;  %1268 = vst [vmem:[%s4560_s7 + $0x858] sm:$0xff] %v1267_v11  ;;  %v1273_v14 = vld [vmem:[%s4555_s6 + $0x10c0] sm:$0xff] }
  0xae   : > { %1270 = vst [vmem:[%s4560_s7 + $0x860] sm:$0xff] %v1269_v12  ;;  %1272 = vst [vmem:[%s4560_s7 + $0x868] sm:$0xff] %v1271_v13  ;;  %v1275_v15 = vld [vmem:[%s4555_s6 + $0x10c8] sm:$0xff]  ;;  %v1277_v16 = vld [vmem:[%s4555_s6 + $0x10d0] sm:$0xff] }
  0xaf   : > { %1274 = vst [vmem:[%s4560_s7 + $0x870] sm:$0xff] %v1273_v14  ;;  %1276 = vst [vmem:[%s4560_s7 + $0x878] sm:$0xff] %v1275_v15  ;;  %v1279_v17 = vld [vmem:[%s4555_s6 + $0x10d8] sm:$0xff]  ;;  %v1281_v18 = vld [vmem:[%s4555_s6 + $0x10e0] sm:$0xff] }
  0xb0   : > { %1278 = vst [vmem:[%s4560_s7 + $0x880] sm:$0xff] %v1277_v16  ;;  %v1283_v19 = vld [vmem:[%s4555_s6 + $0x10e8] sm:$0xff]  ;;  %1280 = vst [vmem:[%s4560_s7 + $0x888] sm:$0xff] %v1279_v17  ;;  %v1285_v20 = vld [vmem:[%s4555_s6 + $0x10f0] sm:$0xff] }
  0xb1   : > { %1282 = vst [vmem:[%s4560_s7 + $0x890] sm:$0xff] %v1281_v18  ;;  %1284 = vst [vmem:[%s4560_s7 + $0x898] sm:$0xff] %v1283_v19  ;;  %v1287_v21 = vld [vmem:[%s4555_s6 + $0x10f8] sm:$0xff]  ;;  %v1289_v22 = vld [vmem:[%s4555_s6 + $0x1100] sm:$0xff] }
  0xb2   : > { %1286 = vst [vmem:[%s4560_s7 + $0x8a0] sm:$0xff] %v1285_v20  ;;  %1288 = vst [vmem:[%s4560_s7 + $0x8a8] sm:$0xff] %v1287_v21  ;;  %v1291_v23 = vld [vmem:[%s4555_s6 + $0x1108] sm:$0xff] }
  0xb3   : > { %1290 = vst [vmem:[%s4560_s7 + $0x8b0] sm:$0xff] %v1289_v22  ;;  %1292 = vst [vmem:[%s4560_s7 + $0x8b8] sm:$0xff] %v1291_v23 }
  0xb4 PF: > { %1301 = sbr.rel (%p4536_p7) target bundleno = 889 (0x379), region = 66  ;;  %s1304_s8 = sand.u32 (!%p4536_p7), 1, %s4401_s14  }
  0xb5   : > { %s5122_s9 = smul.u32 (!%p4536_p7), 2240, %s1304_s8 }
  0xb7   : > { %s1306_s10 = scalar_lea.vmem (!%p4536_p7), [#allocation3], %s5122_s9 }
  0xbb   : > { %4396 = dma.done.wait (%p4115_p6), [#allocation5], 64  }
  0xbc   : > { %4398 = vsyncadd (%p4115_p6), [#allocation5], 4294967232 }
  0xbd   : > { %1314 = sfence }
  0xbe   : > { %p1332_p4 = scmp.lt.s32.totalorder %s4515_s2, 1  ;;  %v5136_v24 = vmov 0.0   ;;  %v5138_v25 = vmov 0.0   ;;  %v5140_v26 = vmov 0.0   ;;  %v5142_v27 = vmov 0.0   ;;  %s5164_s14 = smov 0  }
  0xbf   : > { %v5144_v28 = vmov 0.0   ;;  %v5146_v29 = vmov 0.0   ;;  %v5148_v30 = vmov 0.0   ;;  %v5150_v31 = vmov 0.0  }
  0xc0   : > { %s8260_s2 = smov (!%p1332_p4, %s4515_s2), 1  ;;  %v5152_v32 = vmov 0.0   ;;  %v5154_v33 = vmov 0.0   ;;  %v5156_v34 = vmov 0.0   ;;  %v5158_v35 = vmov 0.0  }
  0xc1   : > { %s4106_s11 = smul.u32 112, %s8260_s2  ;;  %v5160_v36 = vmov 0.0   ;;  %v5162_v37 = vmov 0.0  }
  0xc3   : > { %s5134_s16 = scalar_lea.vmem %s7845_s3, %s4106_s11 }
  0xc4 LB: >> { %s1357_s2 = smul.u32 112, %s4469_s14  ;;  %s4472_s23 = smov 127   ;;  %vm1783_vm0 = vcmask 1046528   ;;  %vm2326_vm1 = vcmask 1045504   ;;  %vm2869_vm2 = vcmask 1044480   ;;  %vm3412_vm3 = vcmask 1043456   ;;  %s4469_s14 = sphi %s5164_s14, %s1342_s14   ;;  %v4465_v37 = vphi %v5162_v37, %v8255_v37   ;;  %v4461_v36 = vphi %v5160_v36, %v8254_v36   ;;  %v4457_v35 = vphi %v5158_v35, %v8253_v35   ;;  %v4453_v34 = vphi %v5156_v34, %v8252_v34   ;;  %v4449_v33 = vphi %v5154_v33, %v8251_v33   ;;  %v4445_v32 = vphi %v5152_v32, %v8250_v32   ;;  %v4441_v31 = vphi %v5150_v31, %v8249_v31   ;;  %v4437_v30 = vphi %v5148_v30, %v8248_v30   ;;  %v4433_v29 = vphi %v5146_v29, %v8247_v29   ;;  %v4429_v28 = vphi %v5144_v28, %v8246_v28   ;;  %v4425_v27 = vphi %v5142_v27, %v8245_v27   ;;  %v4421_v26 = vphi %v5140_v26, %v8244_v26   ;;  %v4417_v25 = vphi %v5138_v25, %v8243_v25   ;;  %v4413_v24 = vphi %v5136_v24, %v8242_v24  }
  0xc5   : >> { %s5213_s18 = smul.u32 25, %s4469_s14  ;;  %s4473_s26 = smov 126  }
  0xc6   : >> { %s5218_s22 = scalar_lea.vmem %s1306_s10, %s1357_s2 [#allocation3]  ;;  %s4474_s29 = smov 125  }
  0xc7   : >> { %s1404_s19 = sadd.s32 1, %s5213_s18  ;;  %v5221_v38 = vld [vmem:[%s5218_s22 + $0x10] sm:$0xff]  ;;  %v5224_v39 = vld [vmem:[%s5218_s22] sm:$0xff]  ;;  %v5227_v41 = vld [vmem:[%s5218_s22 + $0x18] sm:$0xff]  ;;  %s1491_s24 = sadd.s32 2, %s5213_s18 }
  0xc8   : >> { %s1405_s21 = sld [smem:[#allocation4 + %s1404_s19]]  ;;  %v5230_v42 = vld [vmem:[%s5218_s22 + $0x8] sm:$0xff]  ;;  %v5242_v48 = vld [vmem:[%s5218_s22 + $0x20] sm:$0xff]  ;;  %v5249_v51 = vld [vmem:[%s5218_s22 + $0x38] sm:$0xff]  ;;  %s1578_s27 = sadd.s32 3, %s5213_s18 }
  0xc9   : >> { %v5239_v47 = vld [vmem:[%s5218_s22 + $0x28] sm:$0xff]  ;;  %v5252_v52 = vld [vmem:[%s5218_s22 + $0x30] sm:$0xff]  ;;  %v5262_v56 = vld [vmem:[%s5218_s22 + $0x40] sm:$0xff]  ;;  %s1492_s25 = sld [smem:[#allocation4 + %s1491_s24]]  ;;  %s1665_s30 = sadd.s32 4, %s5213_s18 }
  0xca   : >> { %v5259_v55 = vld [vmem:[%s5218_s22 + $0x48] sm:$0xff]  ;;  %v5270_v59 = vld [vmem:[%s5218_s22 + $0x58] sm:$0xff]  ;;  %v5273_v60 = vld [vmem:[%s5218_s22 + $0x50] sm:$0xff]  ;;  %s1579_s28 = sld [smem:[#allocation4 + %s1578_s27]]  ;;  %s4475_s5 = smov 124  }
  0xcb   : >> { %v5280_v63 = vld [vmem:[%s5218_s22 + $0x68] sm:$0x7f]  ;;  %v5283_v0 = vld [vmem:[%s5218_s22 + $0x60] sm:$0xff]  ;;  %s1666_s4 = sld [smem:[#allocation4 + %s1665_s30]]  ;;  %s1839_s6 = sadd.s32 6, %s5213_s18 }
  0xcc   : >> { %s1840_s7 = sld [smem:[#allocation4 + %s1839_s6]]  ;;  %s1953_s8 = sadd.s32 7, %s5213_s18 }
  0xcd   : >> { %s1954_s11 = sld [smem:[#allocation4 + %s1953_s8]]  ;;  %s2067_s12 = sadd.s32 8, %s5213_s18 }
  0xce   : >> { %v1406_v40 = vstv %s1405_s21  ;;  %s2068_s13 = sld [smem:[#allocation4 + %s2067_s12]]  ;;  %s2181_s2 = sadd.s32 9, %s5213_s18 }
  0xcf   : >> { %v1409_v43 = vmul.f32 %v1406_v40, %v5221_v38  ;;  %v1407_v44 = vmul.f32 %v1406_v40, %v5224_v39  ;;  %v1410_v45 = vmul.f32 %v1406_v40, %v5227_v41  ;;  %v1408_v46 = vmul.f32 %v1406_v40, %v5230_v42  ;;  %s2182_s19 = sld [smem:[#allocation4 + %s2181_s2]]  ;;  %s2382_s21 = sadd.s32 11, %s5213_s18 }
  0xd0   : >> { %v1412_v49 = vmul.f32 %v1406_v40, %v5239_v47  ;;  %v1411_v50 = vmul.f32 %v1406_v40, %v5242_v48  ;;  %v1414_v53 = vmul.f32 %v1406_v40, %v5249_v51  ;;  %v1413_v54 = vmul.f32 %v1406_v40, %v5252_v52  ;;  %s2383_s24 = sld [smem:[#allocation4 + %s2382_s21]]  ;;  %s1752_s2 = sadd.s32 5, %s5213_s18 }
  0xd1   : >> { %1439 = vrot.lane.b32.xlu1 %v1409_v43, %s4472_s23  ;;  %1435 = vrot.lane.b32.xlu0 %v1407_v44, %s4472_s23  ;;  %v1416_v57 = vmul.f32 %v1406_v40, %v5259_v55  ;;  %v1415_v58 = vmul.f32 %v1406_v40, %v5262_v56  ;;  %v1418_v61 = vmul.f32 %v1406_v40, %v5270_v59  ;;  %v1493_v3 = vstv %s1492_s25  ;;  %s2496_s25 = sadd.s32 12, %s5213_s18  ;;  %s1374_s12 = sld [smem:[#allocation4 + %s5213_s18]] }
  0xd2   : >> { %v1417_v62 = vmul.f32 %v1406_v40, %v5273_v60  ;;  %v1420_v1 = vmul.f32 %v1406_v40, %v5280_v63  ;;  %v1419_v2 = vmul.f32 %v1406_v40, %v5283_v0  ;;  %v1495_v4 = vmul.f32 %v1493_v3, %v5230_v42  ;;  %s2497_s27 = sld [smem:[#allocation4 + %s2496_s25]]  ;;  %s3153_s21 = sadd.s32 18, %s5213_s18 }
  0xd3   : >> { %v1494_v5 = vmul.f32 %v1493_v3, %v5224_v39  ;;  %v1497_v6 = vmul.f32 %v1493_v3, %v5227_v41  ;;  %v1496_v7 = vmul.f32 %v1493_v3, %v5221_v38  ;;  %v1499_v8 = vmul.f32 %v1493_v3, %v5239_v47  ;;  %s2295_s25 = sadd.s32 10, %s5213_s18  ;;  %s1342_s14 = sadd.s32 1, %s4469_s14  }
  0xd4   : >> { %v1498_v9 = vmul.f32 %v1493_v3, %v5242_v48  ;;  %v1501_v10 = vmul.f32 %v1493_v3, %v5249_v51  ;;  %v1500_v11 = vmul.f32 %v1493_v3, %v5252_v52  ;;  %v1503_v12 = vmul.f32 %v1493_v3, %v5259_v55  ;;  %p7765_p6 = scmp.ge.s32.totalorder %s1342_s14, 20  }
  0xd5   : >> { %1441 = vrot.lane.b32.xlu1 %v1410_v45, %s4472_s23  ;;  %1437 = vrot.lane.b32.xlu0 %v1408_v46, %s4472_s23  ;;  %v1502_v13 = vmul.f32 %v1493_v3, %v5262_v56  ;;  %v1505_v14 = vmul.f32 %v1493_v3, %v5270_v59  ;;  %v1504_v15 = vmul.f32 %v1493_v3, %v5273_v60  ;;  %v1580_v18 = vstv %s1579_s28  ;;  %s2610_s28 = sadd.s32 13, %s5213_s18 }
  0xd6   : >> { %v1507_v16 = vmul.f32 %v1493_v3, %v5280_v63  ;;  %v1506_v17 = vmul.f32 %v1493_v3, %v5283_v0  ;;  %v1582_v19 = vmul.f32 %v1580_v18, %v5230_v42  ;;  %v1581_v20 = vmul.f32 %v1580_v18, %v5224_v39  ;;  %s2611_s30 = sld [smem:[#allocation4 + %s2610_s28]]  ;;  %s3267_s28 = sadd.s32 19, %s5213_s18 }
  0xd7   : >> { %v1584_v21 = vmul.f32 %v1580_v18, %v5227_v41  ;;  %v1583_v22 = vmul.f32 %v1580_v18, %v5221_v38  ;;  %v1586_v23 = vmul.f32 %v1580_v18, %v5239_v47  ;;  %v1585_v40 = vmul.f32 %v1580_v18, %v5242_v48 }
  0xd8   : >> { %v1588_v43 = vmul.f32 %v1580_v18, %v5249_v51  ;;  %v1587_v44 = vmul.f32 %v1580_v18, %v5252_v52  ;;  %v1590_v45 = vmul.f32 %v1580_v18, %v5259_v55  ;;  %v1589_v46 = vmul.f32 %v1580_v18, %v5262_v56 }
  0xd9   : >> { %1445 = vrot.lane.b32.xlu1 %v1412_v49, %s4472_s23  ;;  %1443 = vrot.lane.b32.xlu0 %v1411_v50, %s4472_s23  ;;  %v1592_v49 = vmul.f32 %v1580_v18, %v5270_v59  ;;  %v1591_v50 = vmul.f32 %v1580_v18, %v5273_v60  ;;  %vm3954_vm4 = vcmask (%p7765_p6), 875520   ;;  %vm3968_vm5 = vcmask (%p7765_p6), 870400  }
  0xdd   : >> { %1449 = vrot.lane.b32.xlu1 %v1414_v53, %s4472_s23  ;;  %1447 = vrot.lane.b32.xlu0 %v1413_v54, %s4472_s23  ;;  %v1594_v53 = vmul.f32 %v1580_v18, %v5280_v63  ;;  %v1593_v54 = vmul.f32 %v1580_v18, %v5283_v0 }
  0xe1   : >> { %1453 = vrot.lane.b32.xlu1 %v1416_v57, %s4472_s23  ;;  %1451 = vrot.lane.b32.xlu0 %v1415_v58, %s4472_s23  ;;  %v1667_v57 = vstv %s1666_s4  ;;  %s2724_s4 = sadd.s32 14, %s5213_s18 }
  0xe2   : >> { %v1669_v58 = vmul.f32 %v1667_v57, %v5230_v42  ;;  %v1672_v3 = vmul.f32 %v1667_v57, %v5242_v48  ;;  %s2725_s6 = sld [smem:[#allocation4 + %s2724_s4]]  ;;  %s3468_s4 = sadd.s32 21, %s5213_s18 }
  0xe5   : >> { %1457 = vrot.lane.b32.xlu1 %v1418_v61, %s4472_s23  ;;  %1455 = vrot.lane.b32.xlu0 %v1417_v62, %s4472_s23  ;;  %v1668_v61 = vmul.f32 %v1667_v57, %v5224_v39  ;;  %v1671_v62 = vmul.f32 %v1667_v57, %v5227_v41 }
  0xe9   : >> { %1461 = vrot.lane.b32.xlu1 %v1420_v1, %s4472_s23  ;;  %1459 = vrot.lane.b32.xlu0 %v1419_v2, %s4472_s23  ;;  %v1670_v1 = vmul.f32 %v1667_v57, %v5221_v38  ;;  %v1673_v2 = vmul.f32 %v1667_v57, %v5239_v47 }
  0xed   : >> { %1524 = vrot.lane.b32.xlu1 %v1495_v4, %s4473_s26  ;;  %1522 = vrot.lane.b32.xlu0 %v1494_v5, %s4473_s26  ;;  %v1675_v4 = vmul.f32 %v1667_v57, %v5249_v51  ;;  %v1674_v5 = vmul.f32 %v1667_v57, %v5252_v52 }
  0xf1   : >> { %1528 = vrot.lane.b32.xlu1 %v1497_v6, %s4473_s26  ;;  %1526 = vrot.lane.b32.xlu0 %v1496_v7, %s4473_s26  ;;  %v1677_v6 = vmul.f32 %v1667_v57, %v5259_v55  ;;  %v1676_v7 = vmul.f32 %v1667_v57, %v5262_v56 }
  0xf5   : >> { %1532 = vrot.lane.b32.xlu1 %v1499_v8, %s4473_s26  ;;  %1530 = vrot.lane.b32.xlu0 %v1498_v9, %s4473_s26  ;;  %v1841_v8 = vstv %s1840_s7  ;;  %v1679_v9 = vmul.f32 %v1667_v57, %v5270_v59  ;;  %s2925_s7 = sadd.s32 16, %s5213_s18 }
  0xf6   : >> { %s2926_s8 = sld [smem:[#allocation4 + %s2925_s7]]  ;;  %s2838_s7 = sadd.s32 15, %s5213_s18 }
  0xf9   : >> { %1536 = vrot.lane.b32.xlu1 %v1501_v10, %s4473_s26  ;;  %1534 = vrot.lane.b32.xlu0 %v1500_v11, %s4473_s26  ;;  %v1678_v10 = vmul.f32 %v1667_v57, %v5273_v60  ;;  %v1843_v11 = vmul.f32 %v1841_v8, %v5230_v42 }
  0xfd   : >> { %1540 = vrot.lane.b32.xlu1 %v1503_v12, %s4473_s26  ;;  %1538 = vrot.lane.b32.xlu0 %v1502_v13, %s4473_s26  ;;  %v1844_v12 = vmul.f32 %v1841_v8, %v5221_v38  ;;  %v1842_v13 = vmul.f32 %v1841_v8, %v5224_v39 }
  0xff   : >> { %v1873_v18 = vrot.slane %v1844_v12, 1 }
 0x101   : >> { %1544 = vrot.lane.b32.xlu1 %v1505_v14, %s4473_s26  ;;  %1542 = vrot.lane.b32.xlu0 %v1504_v15, %s4473_s26  ;;  %v1681_v14 = vmul.f32 %v1667_v57, %v5280_v63  ;;  %v1680_v15 = vmul.f32 %v1667_v57, %v5283_v0 }
 0x105   : >> { %1548 = vrot.lane.b32.xlu1 %v1507_v16, %s4473_s26  ;;  %1546 = vrot.lane.b32.xlu0 %v1506_v17, %s4473_s26  ;;  %v1845_v16 = vmul.f32 %v1841_v8, %v5227_v41  ;;  %v1871_v17 = vrot.slane %v1843_v11, 1 }
 0x109   : >> { %1611 = vrot.lane.b32.xlu1 %v1582_v19, %s4474_s29  ;;  %1609 = vrot.lane.b32.xlu0 %v1581_v20, %s4474_s29  ;;  %v1870_v19 = vrot.slane %v1842_v13, 1  ;;  %v1846_v20 = vmul.f32 %v1841_v8, %v5242_v48  ;;  %v1854_v13 = vmul.f32 %v1841_v8, %v5283_v0 }
 0x10d   : >> { %1615 = vrot.lane.b32.xlu1 %v1584_v21, %s4474_s29  ;;  %1613 = vrot.lane.b32.xlu0 %v1583_v22, %s4474_s29  ;;  %v1875_v21 = vrot.slane %v1845_v16, 1  ;;  %v1847_v22 = vmul.f32 %v1841_v8, %v5239_v47 }
 0x111   : >> { %1619 = vrot.lane.b32.xlu1 %v1586_v23, %s4474_s29  ;;  %1617 = vrot.lane.b32.xlu0 %v1585_v40, %s4474_s29  ;;  %v1874_v23 = vsel %vm1783_vm0, %v1871_v17, %v1873_v18  ;;  %v1872_v40 = vsel %vm1783_vm0, %v1870_v19, %v1871_v17  ;;  %v1855_v17 = vmul.f32 %v1841_v8, %v5280_v63 }
 0x115   : >> { %1623 = vrot.lane.b32.xlu1 %v1588_v43, %s4474_s29  ;;  %1621 = vrot.lane.b32.xlu0 %v1587_v44, %s4474_s29  ;;  %v1877_v43 = vrot.slane %v1846_v20, 1  ;;  %v1848_v44 = vmul.f32 %v1841_v8, %v5252_v52  ;;  %v1893_v20 = vrot.slane %v1854_v13, 1 }
 0x119   : >> { %1627 = vrot.lane.b32.xlu1 %v1590_v45, %s4474_s29  ;;  %1625 = vrot.lane.b32.xlu0 %v1589_v46, %s4474_s29  ;;  %v1879_v45 = vrot.slane %v1847_v22, 1  ;;  %v1849_v46 = vmul.f32 %v1841_v8, %v5249_v51 }
 0x11d   : >> { %1631 = vrot.lane.b32.xlu1 %v1592_v49, %s4474_s29  ;;  %1629 = vrot.lane.b32.xlu0 %v1591_v50, %s4474_s29  ;;  %v1878_v49 = vsel %vm1783_vm0, %v1875_v21, %v1877_v43  ;;  %v1876_v50 = vsel %vm1783_vm0, %v1873_v18, %v1875_v21 }
 0x121   : >> { %1635 = vrot.lane.b32.xlu1 %v1594_v53, %s4474_s29  ;;  %1633 = vrot.lane.b32.xlu0 %v1593_v54, %s4474_s29  ;;  %v1881_v53 = vrot.slane %v1848_v44, 1  ;;  %v1850_v54 = vmul.f32 %v1841_v8, %v5262_v56 }
 0x125   : >> { %1698 = vrot.lane.b32.xlu1 %v1669_v58, %s4475_s5  ;;  %1696 = vrot.lane.b32.xlu0 %v1668_v61, %s4475_s5  ;;  %v1880_v61 = vsel %vm1783_vm0, %v1877_v43, %v1879_v45  ;;  %v1895_v43 = vrot.slane %v1855_v17, 1 }
 0x129   : >> { %1702 = vrot.lane.b32.xlu1 %v1671_v62, %s4475_s5  ;;  %1700 = vrot.lane.b32.xlu0 %v1670_v1, %s4475_s5  ;;  %v1883_v62 = vrot.slane %v1849_v46, 1  ;;  %v1882_v1 = vsel %vm1783_vm0, %v1879_v45, %v1881_v53 }
 0x12d   : >> { %1706 = vrot.lane.b32.xlu1 %v1673_v2, %s4475_s5  ;;  %1704 = vrot.lane.b32.xlu0 %v1672_v3, %s4475_s5  ;;  %v1885_v2 = vrot.slane %v1850_v54, 1  ;;  %v1851_v3 = vmul.f32 %v1841_v8, %v5259_v55 }
 0x12f   : >> { %v1887_v11 = vrot.slane %v1851_v3, 1 }
 0x131   : >> { %1710 = vrot.lane.b32.xlu1 %v1675_v4, %s4475_s5  ;;  %1708 = vrot.lane.b32.xlu0 %v1674_v5, %s4475_s5  ;;  %v1852_v4 = vmul.f32 %v1841_v8, %v5273_v60  ;;  %v1888_v19 = vsel %vm1783_vm0, %v1885_v2, %v1887_v11 }
 0x133   : >> { %v1889_v12 = vrot.slane %v1852_v4, 1 }
 0x135   : >> { %1714 = vrot.lane.b32.xlu1 %v1677_v6, %s4475_s5  ;;  %1712 = vrot.lane.b32.xlu0 %v1676_v7, %s4475_s5  ;;  %v1884_v7 = vsel %vm1783_vm0, %v1881_v53, %v1883_v62  ;;  %v1890_v18 = vsel %vm1783_vm0, %v1887_v11, %v1889_v12  ;;  %v1896_v53 = vsel %vm1783_vm0, %v1893_v20, %v1895_v43 }
 0x139   : >> { %1718 = vrot.lane.b32.xlu1 %v1679_v9, %s4475_s5  ;;  %1716 = vrot.lane.b32.xlu0 %v1678_v10, %s4475_s5  ;;  %v1853_v9 = vmul.f32 %v1841_v8, %v5270_v59  ;;  %v1886_v10 = vsel %vm1783_vm0, %v1883_v62, %v1885_v2 }
 0x13b   : >> { %v1891_v16 = vrot.slane %v1853_v9, 1 }
 0x13d   : >> { %1722 = vrot.lane.b32.xlu1 %v1681_v14, %s4475_s5  ;;  %1720 = vrot.lane.b32.xlu0 %v1680_v15, %s4475_s5  ;;  %v1894_v8 = vsel %vm1783_vm0, %v1891_v16, %v1893_v20 }
 0x141   : >> { %1899 = vrot.lane.b32.xlu1 %v1874_v23, %s4472_s23  ;;  %1897 = vrot.lane.b32.xlu0 %v1872_v40, %s4472_s23  ;;  %v5427_v23 = vstv %s1954_s11  ;;  %v1892_v40 = vsel %vm1783_vm0, %v1889_v12, %v1891_v16  ;;  %s3039_s11 = sadd.s32 17, %s5213_s18 }
 0x142   : >> { %v1957_v44 = vmul.f32 %v5427_v23, %v5230_v42  ;;  %v1958_v45 = vmul.f32 %v5427_v23, %v5221_v38  ;;  %v1956_v46 = vmul.f32 %v5427_v23, %v5224_v39  ;;  %v1959_v54 = vmul.f32 %v5427_v23, %v5227_v41 }
 0x143   : >> { %v5393_v57 = vpop.permute.xlu1 %1439  ;;  %v5395_v58 = vpop.permute.xlu0 %1435  ;;  %v1960_v2 = vmul.f32 %v5427_v23, %v5242_v48  ;;  %v1962_v9 = vmul.f32 %v5427_v23, %v5252_v52  ;;  %v1963_v20 = vmul.f32 %v5427_v23, %v5249_v51 }
 0x144   : >> { %v1987_v62 = vrot.slane %v1958_v45, 1  ;;  %v1989_v12 = vrot.slane %v1959_v54, 1 }
 0x145   : >> { %1903 = vrot.lane.b32.xlu1 %v1878_v49, %s4472_s23  ;;  %1901 = vrot.lane.b32.xlu0 %v1876_v50, %s4472_s23  ;;  %v1991_v13 = vrot.slane %v1960_v2, 1 }
 0x147   : >> { %v5404_v5 = vpop.permute.xlu1 %1441  ;;  %v5406_v6 = vpop.permute.xlu0 %1437 }
 0x149   : >> { %1907 = vrot.lane.b32.xlu1 %v1882_v1, %s4472_s23  ;;  %1905 = vrot.lane.b32.xlu0 %v1880_v61, %s4472_s23  ;;  %v1985_v61 = vrot.slane %v1957_v44, 1  ;;  %v1984_v1 = vrot.slane %v1956_v46, 1 }
 0x14b   : >> { %v5414_v14 = vpop.permute.xlu1 %1445  ;;  %v5416_v15 = vpop.permute.xlu0 %1443  ;;  %v1986_v11 = vsel %vm1783_vm0, %v1984_v1, %v1985_v61  ;;  %v1966_v1 = vmul.f32 %v5427_v23, %v5273_v60 }
 0x14d   : >> { %1911 = vrot.lane.b32.xlu1 %v1886_v10, %s4472_s23  ;;  %1909 = vrot.lane.b32.xlu0 %v1884_v7, %s4472_s23  ;;  %v1961_v7 = vmul.f32 %v5427_v23, %v5239_v47  ;;  %v1988_v10 = vsel %vm1783_vm0, %v1985_v61, %v1987_v62 }
 0x14f   : >> { %v5423_v21 = vpop.permute.xlu1 %1449  ;;  %v5425_v22 = vpop.permute.xlu0 %1447 }
 0x151   : >> { %1915 = vrot.lane.b32.xlu1 %v1890_v18, %s4472_s23  ;;  %1913 = vrot.lane.b32.xlu0 %v1888_v19, %s4472_s23  ;;  %v1993_v18 = vrot.slane %v1961_v7, 1  ;;  %v1995_v19 = vrot.slane %v1962_v9, 1 }
 0x153   : >> { %v5439_v49 = vpop.permute.xlu1 %1453  ;;  %v5441_v50 = vpop.permute.xlu0 %1451  ;;  %v1996_v46 = vsel %vm1783_vm0, %v1993_v18, %v1995_v19  ;;  %v1994_v54 = vsel %vm1783_vm0, %v1991_v13, %v1993_v18  ;;  %v1968_v18 = vmul.f32 %v5427_v23, %v5283_v0 }
 0x155   : >> { %1919 = vrot.lane.b32.xlu1 %v1894_v8, %s4472_s23  ;;  %1917 = vrot.lane.b32.xlu0 %v1892_v40, %s4472_s23  ;;  %v1992_v40 = vsel %vm1783_vm0, %v1989_v12, %v1991_v13  ;;  %v1964_v8 = vmul.f32 %v5427_v23, %v5262_v56  ;;  %v2003_v13 = vrot.slane %v1966_v1, 1 }
 0x157   : >> { %v5450_v3 = vpop.permute.xlu1 %1457  ;;  %v5452_v4 = vpop.permute.xlu0 %1455  ;;  %v1999_v61 = vrot.slane %v1964_v8, 1 }
 0x158   : >> { %7851 = vst [vmem:[#allocation7_spill] sm:$0xff] %v5450_v3  ;;  %7852 = vst [vmem:[#allocation8_spill] sm:$0xff] %v5452_v4 }
 0x159   : >> { %1923 = vrot.lane.b32.xlu1 %v1895_v43, %s4472_s23  ;;  %1921 = vrot.lane.b32.xlu0 %v1896_v53, %s4472_s23  ;;  %v1990_v43 = vsel %vm1783_vm0, %v1987_v62, %v1989_v12  ;;  %v1997_v53 = vrot.slane %v1963_v20, 1  ;;  %v1965_v62 = vmul.f32 %v5427_v23, %v5259_v55 }
 0x15b   : >> { %v5462_v16 = vpop.permute.xlu1 %1461  ;;  %v5464_v17 = vpop.permute.xlu0 %1459  ;;  %v1998_v9 = vsel %vm1783_vm0, %v1995_v19, %v1997_v53  ;;  %v2001_v12 = vrot.slane %v1965_v62, 1  ;;  %v1969_v19 = vmul.f32 %v5427_v23, %v5280_v63 }
 0x15c   : >> { %7853 = vst [vmem:[#allocation9_spill] sm:$0xff] %v5462_v16  ;;  %7854 = vst [vmem:[#allocation10_spill] sm:$0xff] %v5464_v17 }
 0x15d   : >> { %2013 = vrot.lane.b32.xlu1 %v1988_v10, %s4473_s26  ;;  %2011 = vrot.lane.b32.xlu0 %v1986_v11, %s4473_s26  ;;  %v1967_v10 = vmul.f32 %v5427_v23, %v5270_v59  ;;  %v2000_v11 = vsel %vm1783_vm0, %v1997_v53, %v1999_v61  ;;  %v2004_v8 = vsel %vm1783_vm0, %v2001_v12, %v2003_v13 }
 0x15f   : >> { %v5475_v44 = vpop.permute.xlu1 %1524  ;;  %v5477_v45 = vpop.permute.xlu0 %1522  ;;  %v2005_v53 = vrot.slane %v1967_v10, 1  ;;  %v2009_v10 = vrot.slane %v1969_v19, 1 }
 0x160   : >> { %7855 = vst [vmem:[#allocation11_spill] sm:$0xff] %v5475_v44  ;;  %7856 = vst [vmem:[#allocation12_spill] sm:$0xff] %v5477_v45 }
 0x161   : >> { %2017 = vrot.lane.b32.xlu1 %v1992_v40, %s4473_s26  ;;  %2015 = vrot.lane.b32.xlu0 %v1990_v43, %s4473_s26  ;;  %v5507_v43 = vstv %s2068_s13  ;;  %s3040_s13 = sld [smem:[#allocation4 + %s3039_s11]]  ;;  %s3582_s11 = sadd.s32 22, %s5213_s18 }
 0x162   : >> { %v2072_v23 = vmul.f32 %v5507_v43, %v5221_v38  ;;  %v2074_v19 = vmul.f32 %v5507_v43, %v5242_v48 }
 0x163   : >> { %v5487_v2 = vpop.permute.xlu1 %1528  ;;  %v5489_v7 = vpop.permute.xlu0 %1526 }
 0x164   : >> { %7857 = vst [vmem:[#allocation13_spill] sm:$0xff] %v5487_v2  ;;  %7858 = vst [vmem:[#allocation14_spill] sm:$0xff] %v5489_v7 }
 0x165   : >> { %2021 = vrot.lane.b32.xlu1 %v1996_v46, %s4473_s26  ;;  %2019 = vrot.lane.b32.xlu0 %v1994_v54, %s4473_s26  ;;  %v2002_v46 = vsel %vm1783_vm0, %v1999_v61, %v2001_v12  ;;  %v2007_v54 = vrot.slane %v1968_v18, 1  ;;  %v2006_v61 = vsel %vm1783_vm0, %v2003_v13, %v2005_v53  ;;  %v2070_v12 = vmul.f32 %v5507_v43, %v5224_v39 }
 0x166   : >> { %v2073_v13 = vmul.f32 %v5507_v43, %v5227_v41 }
 0x167   : >> { %v5499_v20 = vpop.permute.xlu1 %1532  ;;  %v5501_v40 = vpop.permute.xlu0 %1530 }
 0x168   : >> { %7859 = vst [vmem:[#allocation15_spill] sm:$0xff] %v5499_v20  ;;  %7860 = vst [vmem:[#allocation16_spill] sm:$0xff] %v5501_v40  ;;  %v2098_v40 = vrot.slane %v2070_v12, 1  ;;  %v2076_v12 = vmul.f32 %v5507_v43, %v5252_v52 }
 0x169   : >> { %2025 = vrot.lane.b32.xlu1 %v2000_v11, %s4473_s26  ;;  %2023 = vrot.lane.b32.xlu0 %v1998_v9, %s4473_s26  ;;  %v2071_v9 = vmul.f32 %v5507_v43, %v5230_v42  ;;  %v2008_v11 = vsel %vm1783_vm0, %v2005_v53, %v2007_v54 }
 0x16b   : >> { %v5511_v62 = vpop.permute.xlu1 %1536  ;;  %v5513_v1 = vpop.permute.xlu0 %1534 }
 0x16c   : >> { %7861 = vst [vmem:[#allocation17_spill] sm:$0xff] %v5511_v62  ;;  %7862 = vst [vmem:[#allocation18_spill] sm:$0xff] %v5513_v1  ;;  %v2010_v62 = vsel %vm1783_vm0, %v2007_v54, %v2009_v10  ;;  %v2075_v54 = vmul.f32 %v5507_v43, %v5239_v47 }
 0x16d   : >> { %2029 = vrot.lane.b32.xlu1 %v2004_v8, %s4473_s26  ;;  %2027 = vrot.lane.b32.xlu0 %v2002_v46, %s4473_s26  ;;  %v2099_v8 = vrot.slane %v2071_v9, 1  ;;  %v2101_v46 = vrot.slane %v2072_v23, 1 }
 0x16f   : >> { %v5525_v18 = vpop.permute.xlu1 %1540  ;;  %v5527_v1 = vpop.permute.xlu0 %1538  ;;  %v2102_v9 = vsel %vm1783_vm0, %v2099_v8, %v2101_v46  ;;  %v2100_v23 = vsel %vm1783_vm0, %v2098_v40, %v2099_v8  ;;  %v2078_v40 = vmul.f32 %v5507_v43, %v5262_v56 }
 0x170   : >> { %7863 = vst [vmem:[#allocation19_spill] sm:$0xff] %v5525_v18  ;;  %7864 = vst [vmem:[#allocation20_spill] sm:$0xff] %v5527_v1 }
 0x171   : >> { %2033 = vrot.lane.b32.xlu1 %v2008_v11, %s4473_s26  ;;  %2031 = vrot.lane.b32.xlu0 %v2006_v61, %s4473_s26  ;;  %v2103_v11 = vrot.slane %v2073_v13, 1  ;;  %v2105_v61 = vrot.slane %v2074_v19, 1  ;;  %v2107_v13 = vrot.slane %v2075_v54, 1  ;;  %v2109_v19 = vrot.slane %v2076_v12, 1 }
 0x173   : >> { %v5536_v53 = vpop.permute.xlu1 %1544  ;;  %v5538_v18 = vpop.permute.xlu0 %1542  ;;  %v2104_v8 = vsel %vm1783_vm0, %v2101_v46, %v2103_v11  ;;  %v2108_v46 = vsel %vm1783_vm0, %v2105_v61, %v2107_v13 }
 0x174   : >> { %7865 = vst [vmem:[#allocation21_spill] sm:$0xff] %v5536_v53  ;;  %7866 = vst [vmem:[#allocation22_spill] sm:$0xff] %v5538_v18 }
 0x175   : >> { %2037 = vrot.lane.b32.xlu1 %v2009_v10, %s4473_s26  ;;  %2035 = vrot.lane.b32.xlu0 %v2010_v62, %s4473_s26  ;;  %v2077_v62 = vmul.f32 %v5507_v43, %v5249_v51  ;;  %v2106_v10 = vsel %vm1783_vm0, %v2103_v11, %v2105_v61  ;;  %v2113_v11 = vrot.slane %v2078_v40, 1  ;;  %v2081_v61 = vmul.f32 %v5507_v43, %v5270_v59 }
 0x177   : >> { %v5548_v53 = vpop.permute.xlu1 %1548  ;;  %v5550_v18 = vpop.permute.xlu0 %1546  ;;  %v2111_v54 = vrot.slane %v2077_v62, 1  ;;  %v2082_v62 = vmul.f32 %v5507_v43, %v5283_v0 }
 0x178   : >> { %7867 = vst [vmem:[#allocation23_spill] sm:$0xff] %v5548_v53  ;;  %7868 = vst [vmem:[#allocation24_spill] sm:$0xff] %v5550_v18  ;;  %v2110_v18 = vsel %vm1783_vm0, %v2107_v13, %v2109_v19 }
 0x179   : >> { %2127 = vrot.lane.b32.xlu1 %v2102_v9, %s4474_s29  ;;  %2125 = vrot.lane.b32.xlu0 %v2100_v23, %s4474_s29  ;;  %v2079_v9 = vmul.f32 %v5507_v43, %v5259_v55  ;;  %v2080_v23 = vmul.f32 %v5507_v43, %v5273_v60  ;;  %v2112_v20 = vsel %vm1783_vm0, %v2109_v19, %v2111_v54 }
 0x17b   : >> { %v5560_v1 = vpop.permute.xlu1 %1611  ;;  %v5562_v53 = vpop.permute.xlu0 %1609 }
 0x17c   : >> { %7869 = vst [vmem:[#allocation25_spill] sm:$0xff] %v5560_v1  ;;  %7870 = vst [vmem:[#allocation26_spill] sm:$0xff] %v5562_v53  ;;  %v2114_v1 = vsel %vm1783_vm0, %v2111_v54, %v2113_v11  ;;  %v5595_v54 = vstv %s2182_s19  ;;  %s6198_s19 = sld [smem:[#allocation4 + %s1752_s2]] }
 0x17d   : >> { %2131 = vrot.lane.b32.xlu1 %v2106_v10, %s4474_s29  ;;  %2129 = vrot.lane.b32.xlu0 %v2104_v8, %s4474_s29  ;;  %v2115_v10 = vrot.slane %v2079_v9, 1  ;;  %v2117_v8 = vrot.slane %v2080_v23, 1  ;;  %v2083_v9 = vmul.f32 %v5507_v43, %v5280_v63  ;;  %v2119_v23 = vrot.slane %v2081_v61, 1 }
 0x17e   : >> { %v2184_v61 = vmul.f32 %v5595_v54, %v5224_v39  ;;  %v2191_v7 = vmul.f32 %v5595_v54, %v5249_v51 }
 0x17f   : >> { %v5573_v12 = vpop.permute.xlu1 %1615  ;;  %v5575_v53 = vpop.permute.xlu0 %1613  ;;  %v2116_v19 = vsel %vm1783_vm0, %v2113_v11, %v2115_v10  ;;  %v2120_v11 = vsel %vm1783_vm0, %v2117_v8, %v2119_v23 }
 0x180   : >> { %7871 = vst [vmem:[#allocation27_spill] sm:$0xff] %v5573_v12  ;;  %7872 = vst [vmem:[#allocation28_spill] sm:$0xff] %v5575_v53 }
 0x181   : >> { %2135 = vrot.lane.b32.xlu1 %v2110_v18, %s4474_s29  ;;  %2133 = vrot.lane.b32.xlu0 %v2108_v46, %s4474_s29  ;;  %v2118_v18 = vsel %vm1783_vm0, %v2115_v10, %v2117_v8  ;;  %v2121_v46 = vrot.slane %v2082_v62, 1  ;;  %v2186_v10 = vmul.f32 %v5595_v54, %v5221_v38  ;;  %v2187_v8 = vmul.f32 %v5595_v54, %v5227_v41 }
 0x183   : >> { %v5585_v40 = vpop.permute.xlu1 %1619  ;;  %v5587_v13 = vpop.permute.xlu0 %1617  ;;  %v2122_v43 = vsel %vm1783_vm0, %v2119_v23, %v2121_v46  ;;  %v2188_v23 = vmul.f32 %v5595_v54, %v5242_v48 }
 0x184   : >> { %7873 = vst [vmem:[#allocation29_spill] sm:$0xff] %v5585_v40  ;;  %7874 = vst [vmem:[#allocation30_spill] sm:$0xff] %v5587_v13 }
 0x185   : >> { %2139 = vrot.lane.b32.xlu1 %v2114_v1, %s4474_s29  ;;  %2137 = vrot.lane.b32.xlu0 %v2112_v20, %s4474_s29  ;;  %v2123_v20 = vrot.slane %v2083_v9, 1  ;;  %v2185_v1 = vmul.f32 %v5595_v54, %v5230_v42 }
 0x187   : >> { %v5597_v53 = vpop.permute.xlu1 %1623  ;;  %v5599_v40 = vpop.permute.xlu0 %1621  ;;  %v2213_v9 = vrot.slane %v2185_v1, 1  ;;  %v2190_v1 = vmul.f32 %v5595_v54, %v5252_v52 }
 0x188   : >> { %7875 = vst [vmem:[#allocation31_spill] sm:$0xff] %v5597_v53  ;;  %7876 = vst [vmem:[#allocation32_spill] sm:$0xff] %v5599_v40  ;;  %v2212_v53 = vrot.slane %v2184_v61, 1  ;;  %v2219_v61 = vrot.slane %v2188_v23, 1 }
 0x189   : >> { %2143 = vrot.lane.b32.xlu1 %v2118_v18, %s4474_s29  ;;  %2141 = vrot.lane.b32.xlu0 %v2116_v19, %s4474_s29  ;;  %v2124_v18 = vsel %vm1783_vm0, %v2121_v46, %v2123_v20  ;;  %v2215_v19 = vrot.slane %v2186_v10, 1  ;;  %v2189_v46 = vmul.f32 %v5595_v54, %v5239_v47  ;;  %v2217_v10 = vrot.slane %v2187_v8, 1 }
 0x18b   : >> { %v5611_v62 = vpop.permute.xlu1 %1627  ;;  %v5613_v40 = vpop.permute.xlu0 %1625  ;;  %v2218_v12 = vsel %vm1783_vm0, %v2215_v19, %v2217_v10 }
 0x18c   : >> { %7877 = vst [vmem:[#allocation33_spill] sm:$0xff] %v5611_v62  ;;  %7878 = vst [vmem:[#allocation34_spill] sm:$0xff] %v5613_v40  ;;  %v2220_v40 = vsel %vm1783_vm0, %v2217_v10, %v2219_v61 }
 0x18d   : >> { %2147 = vrot.lane.b32.xlu1 %v2122_v43, %s4474_s29  ;;  %2145 = vrot.lane.b32.xlu0 %v2120_v11, %s4474_s29  ;;  %v2216_v43 = vsel %vm1783_vm0, %v2213_v9, %v2215_v19  ;;  %v2214_v11 = vsel %vm1783_vm0, %v2212_v53, %v2213_v9  ;;  %v2192_v53 = vmul.f32 %v5595_v54, %v5262_v56  ;;  %v2225_v19 = vrot.slane %v2191_v7, 1 }
 0x18e   : >> { %v2196_v7 = vmul.f32 %v5595_v54, %v5283_v0 }
 0x18f   : >> { %v5622_v13 = vpop.permute.xlu1 %1631  ;;  %v5624_v62 = vpop.permute.xlu0 %1629 }
 0x190   : >> { %7879 = vst [vmem:[#allocation35_spill] sm:$0xff] %v5622_v13  ;;  %7880 = vst [vmem:[#allocation36_spill] sm:$0xff] %v5624_v62 }
 0x191   : >> { %2151 = vrot.lane.b32.xlu1 %v2123_v20, %s4474_s29  ;;  %2149 = vrot.lane.b32.xlu0 %v2124_v18, %s4474_s29  ;;  %v2221_v20 = vrot.slane %v2189_v46, 1  ;;  %v2223_v18 = vrot.slane %v2190_v1, 1  ;;  %v2227_v1 = vrot.slane %v2192_v53, 1 }
 0x193   : >> { %v5634_v13 = vpop.permute.xlu1 %1635  ;;  %v5636_v62 = vpop.permute.xlu0 %1633  ;;  %v2224_v23 = vsel %vm1783_vm0, %v2221_v20, %v2223_v18  ;;  %v2222_v46 = vsel %vm1783_vm0, %v2219_v61, %v2221_v20  ;;  %v2226_v61 = vsel %vm1783_vm0, %v2223_v18, %v2225_v19 }
 0x194   : >> { %7881 = vst [vmem:[#allocation37_spill] sm:$0xff] %v5634_v13  ;;  %7882 = vst [vmem:[#allocation38_spill] sm:$0xff] %v5636_v62  ;;  %v2197_v13 = vmul.f32 %v5595_v54, %v5280_v63 }
 0x195   : >> { %2241 = vrot.lane.b32.xlu1 %v2216_v43, %s4475_s5  ;;  %2239 = vrot.lane.b32.xlu0 %v2214_v11, %s4475_s5  ;;  %v2193_v43 = vmul.f32 %v5595_v54, %v5259_v55  ;;  %v2194_v11 = vmul.f32 %v5595_v54, %v5273_v60 }
 0x197   : >> { %v5646_v9 = vpop.permute.xlu1 %1698  ;;  %v5648_v8 = vpop.permute.xlu0 %1696  ;;  %v2229_v20 = vrot.slane %v2193_v43, 1  ;;  %v2231_v53 = vrot.slane %v2194_v11, 1  ;;  %v5685_v43 = vstv %s2383_s24  ;;  %s6303_s24 = sld [smem:[#allocation4 + %s3153_s21]] }
 0x198   : >> { %7883 = vst [vmem:[#allocation39_spill] sm:$0xff] %v5646_v9  ;;  %7884 = vst [vmem:[#allocation40_spill] sm:$0xff] %v5648_v8 }
 0x199   : >> { %2245 = vrot.lane.b32.xlu1 %v2220_v40, %s4475_s5  ;;  %2243 = vrot.lane.b32.xlu0 %v2218_v12, %s4475_s5  ;;  %v2195_v12 = vmul.f32 %v5595_v54, %v5270_v59  ;;  %v2228_v40 = vsel %vm1783_vm0, %v2225_v19, %v2227_v1  ;;  %v2232_v9 = vsel %vm1783_vm0, %v2229_v20, %v2231_v53 }
 0x19a   : >> { %v2230_v62 = vsel %vm1783_vm0, %v2227_v1, %v2229_v20  ;;  %v2386_v1 = vmul.f32 %v5685_v43, %v5230_v42  ;;  %v2387_v54 = vmul.f32 %v5685_v43, %v5221_v38 }
 0x19b   : >> { %v5659_v10 = vpop.permute.xlu1 %1702  ;;  %v5661_v8 = vpop.permute.xlu0 %1700 }
 0x19c   : >> { %7885 = vst [vmem:[#allocation41_spill] sm:$0xff] %v5659_v10  ;;  %7886 = vst [vmem:[#allocation42_spill] sm:$0xff] %v5661_v8 }
 0x19d   : >> { %2249 = vrot.lane.b32.xlu1 %v2224_v23, %s4475_s5  ;;  %2247 = vrot.lane.b32.xlu0 %v2222_v46, %s4475_s5  ;;  %v2233_v23 = vrot.slane %v2195_v12, 1  ;;  %v2235_v46 = vrot.slane %v2196_v7, 1  ;;  %v2237_v7 = vrot.slane %v2197_v13, 1  ;;  %v2388_v13 = vmul.f32 %v5685_v43, %v5227_v41 }
 0x19f   : >> { %v5671_v10 = vpop.permute.xlu1 %1706  ;;  %v5673_v8 = vpop.permute.xlu0 %1704  ;;  %v2236_v11 = vsel %vm1783_vm0, %v2233_v23, %v2235_v46  ;;  %v2234_v12 = vsel %vm1783_vm0, %v2231_v53, %v2233_v23  ;;  %v2414_v53 = vrot.slane %v2386_v1, 2  ;;  %v2416_v23 = vrot.slane %v2387_v54, 2 }
 0x1a0   : >> { %7887 = vst [vmem:[#allocation43_spill] sm:$0xff] %v5671_v10  ;;  %7888 = vst [vmem:[#allocation44_spill] sm:$0xff] %v5673_v8  ;;  %v2391_v1 = vmul.f32 %v5685_v43, %v5252_v52 }
 0x1a1   : >> { %2253 = vrot.lane.b32.xlu1 %v2228_v40, %s4475_s5  ;;  %2251 = vrot.lane.b32.xlu0 %v2226_v61, %s4475_s5  ;;  %v2385_v40 = vmul.f32 %v5685_v43, %v5224_v39 }
 0x1a3   : >> { %v5681_v18 = vpop.permute.xlu1 %1710  ;;  %v5683_v19 = vpop.permute.xlu0 %1708 }
 0x1a4   : >> { %7889 = vst [vmem:[#allocation45_spill] sm:$0xff] %v5681_v18  ;;  %7890 = vst [vmem:[#allocation46_spill] sm:$0xff] %v5683_v19  ;;  %v2413_v19 = vrot.slane %v2385_v40, 2 }
 0x1a5   : >> { %2257 = vrot.lane.b32.xlu1 %v2232_v9, %s4475_s5  ;;  %2255 = vrot.lane.b32.xlu0 %v2230_v62, %s4475_s5  ;;  %v2389_v62 = vmul.f32 %v5685_v43, %v5242_v48  ;;  %v2238_v9 = vsel %vm1783_vm0, %v2235_v46, %v2237_v7  ;;  %v2390_v46 = vmul.f32 %v5685_v43, %v5239_v47 }
 0x1a6   : >> { %v2415_v8 = vsel %vm2326_vm1, %v2413_v19, %v2414_v53  ;;  %v2424_v19 = vrot.slane %v2391_v1, 2 }
 0x1a7   : >> { %v5697_v61 = vpop.permute.xlu1 %1714  ;;  %v5699_v20 = vpop.permute.xlu0 %1712 }
 0x1a8   : >> { %7891 = vst [vmem:[#allocation47_spill] sm:$0xff] %v5697_v61  ;;  %7892 = vst [vmem:[#allocation48_spill] sm:$0xff] %v5699_v20  ;;  %v2417_v20 = vsel %vm2326_vm1, %v2414_v53, %v2416_v23  ;;  %v2393_v53 = vmul.f32 %v5685_v43, %v5262_v56 }
 0x1a9   : >> { %2261 = vrot.lane.b32.xlu1 %v2236_v11, %s4475_s5  ;;  %2259 = vrot.lane.b32.xlu0 %v2234_v12, %s4475_s5  ;;  %v2418_v11 = vrot.slane %v2388_v13, 2  ;;  %v2420_v12 = vrot.slane %v2389_v62, 2  ;;  %v2422_v62 = vrot.slane %v2390_v46, 2 }
 0x1aa   : >> { %v2428_v1 = vrot.slane %v2393_v53, 2 }
 0x1ab   : >> { %v5708_v18 = vpop.permute.xlu1 %1718  ;;  %v5710_v61 = vpop.permute.xlu0 %1716  ;;  %v2419_v13 = vsel %vm2326_vm1, %v2416_v23, %v2418_v11  ;;  %v2425_v23 = vsel %vm2326_vm1, %v2422_v62, %v2424_v19 }
 0x1ac   : >> { %7893 = vst [vmem:[#allocation49_spill] sm:$0xff] %v5708_v18  ;;  %7894 = vst [vmem:[#allocation50_spill] sm:$0xff] %v5710_v61 }
 0x1ad   : >> { %2265 = vrot.lane.b32.xlu1 %v2237_v7, %s4475_s5  ;;  %2263 = vrot.lane.b32.xlu0 %v2238_v9, %s4475_s5  ;;  %v2421_v7 = vsel %vm2326_vm1, %v2418_v11, %v2420_v12  ;;  %v2392_v9 = vmul.f32 %v5685_v43, %v5249_v51  ;;  %v2423_v11 = vsel %vm2326_vm1, %v2420_v12, %v2422_v62 }
 0x1ae   : >> { %v2396_v12 = vmul.f32 %v5685_v43, %v5270_v59  ;;  %v2397_v62 = vmul.f32 %v5685_v43, %v5283_v0 }
 0x1af   : >> { %v5720_v54 = vpop.permute.xlu1 %1722  ;;  %v5722_v40 = vpop.permute.xlu0 %1720  ;;  %v2426_v46 = vrot.slane %v2392_v9, 2 }
 0x1b0   : >> { %7895 = vst [vmem:[#allocation51_spill] sm:$0xff] %v5720_v54  ;;  %7896 = vst [vmem:[#allocation52_spill] sm:$0xff] %v5722_v40  ;;  %v2436_v59 = vrot.slane %v2397_v62, 2 }
 0x1b1   : >> { %2442 = vrot.lane.b32.xlu1 %v2417_v20, %s4472_s23  ;;  %2440 = vrot.lane.b32.xlu0 %v2415_v8, %s4472_s23  ;;  %v2394_v8 = vmul.f32 %v5685_v43, %v5259_v55  ;;  %v2395_v20 = vmul.f32 %v5685_v43, %v5273_v60  ;;  %v2427_v40 = vsel %vm2326_vm1, %v2424_v19, %v2426_v46 }
 0x1b3   : >> { %v5732_v61 = vpop.permute.xlu1 %1899  ;;  %v5734_v54 = vpop.permute.xlu0 %1897  ;;  %v2432_v55 = vrot.slane %v2395_v20, 2  ;;  %v2398_v20 = vmul.f32 %v5685_v43, %v5280_v63 }
 0x1b4   : >> { %7897 = vst [vmem:[#allocation53_spill] sm:$0xff] %v5732_v61  ;;  %7898 = vst [vmem:[#allocation54_spill] sm:$0xff] %v5734_v54 }
 0x1b5   : >> { %2446 = vrot.lane.b32.xlu1 %v2421_v7, %s4472_s23  ;;  %2444 = vrot.lane.b32.xlu0 %v2419_v13, %s4472_s23  ;;  %v2430_v7 = vrot.slane %v2394_v8, 2  ;;  %v2429_v13 = vsel %vm2326_vm1, %v2426_v46, %v2428_v1 }
 0x1b7   : >> { %v5745_v61 = vpop.permute.xlu1 %1903  ;;  %v5747_v54 = vpop.permute.xlu0 %1901  ;;  %v2433_v8 = vsel %vm2326_vm1, %v2430_v7, %v2432_v55  ;;  %v2431_v19 = vsel %vm2326_vm1, %v2428_v1, %v2430_v7 }
 0x1b8   : >> { %7899 = vst [vmem:[#allocation55_spill] sm:$0xff] %v5745_v61  ;;  %7900 = vst [vmem:[#allocation56_spill] sm:$0xff] %v5747_v54 }
 0x1b9   : >> { %2450 = vrot.lane.b32.xlu1 %v2425_v23, %s4472_s23  ;;  %2448 = vrot.lane.b32.xlu0 %v2423_v11, %s4472_s23  ;;  %v2434_v23 = vrot.slane %v2396_v12, 2  ;;  %v5767_v11 = vstv %s2497_s27  ;;  %s6440_s27 = sld [smem:[#allocation4 + %s2295_s25]] }
 0x1ba   : >> { %v2501_v1 = vmul.f32 %v5767_v11, %v5221_v38  ;;  %v2499_v7 = vmul.f32 %v5767_v11, %v5224_v39  ;;  %v2503_v38 = vmul.f32 %v5767_v11, %v5242_v48 }
 0x1bb   : >> { %v5757_v9 = vpop.permute.xlu1 %1907  ;;  %v5759_v53 = vpop.permute.xlu0 %1905  ;;  %v2437_v63 = vsel %vm2326_vm1, %v2434_v23, %v2436_v59  ;;  %v2435_v43 = vsel %vm2326_vm1, %v2432_v55, %v2434_v23  ;;  %v2502_v55 = vmul.f32 %v5767_v11, %v5227_v41 }
 0x1bc   : >> { %7901 = vst [vmem:[#allocation57_spill] sm:$0xff] %v5757_v9  ;;  %7902 = vst [vmem:[#allocation58_spill] sm:$0xff] %v5759_v53 }
 0x1bd   : >> { %2454 = vrot.lane.b32.xlu1 %v2429_v13, %s4472_s23  ;;  %2452 = vrot.lane.b32.xlu0 %v2427_v40, %s4472_s23  ;;  %v2438_v40 = vrot.slane %v2398_v20, 2  ;;  %v2500_v13 = vmul.f32 %v5767_v11, %v5230_v42  ;;  %v2530_v20 = vrot.slane %v2501_v1, 2  ;;  %v2532_v48 = vrot.slane %v2502_v55, 2 }
 0x1bf   : >> { %v5769_v46 = vpop.permute.xlu1 %1911  ;;  %v5771_v9 = vpop.permute.xlu0 %1909  ;;  %v2439_v42 = vsel %vm2326_vm1, %v2436_v59, %v2438_v40  ;;  %v2504_v59 = vmul.f32 %v5767_v11, %v5239_v47 }
 0x1c0   : >> { %7903 = vst [vmem:[#allocation59_spill] sm:$0xff] %v5769_v46  ;;  %7904 = vst [vmem:[#allocation60_spill] sm:$0xff] %v5771_v9  ;;  %v5936_v9 = vld [vmem:[%s5218_s22 + $0x40] sm:$0xff] }
 0x1c1   : >> { %2458 = vrot.lane.b32.xlu1 %v2433_v8, %s4472_s23  ;;  %2456 = vrot.lane.b32.xlu0 %v2431_v19, %s4472_s23  ;;  %v2528_v8 = vrot.slane %v2500_v13, 2  ;;  %v2527_v19 = vrot.slane %v2499_v7, 2  ;;  %v2505_v13 = vmul.f32 %v5767_v11, %v5252_v52  ;;  %v2536_v47 = vrot.slane %v2504_v59, 2 }
 0x1c3   : >> { %v5783_v12 = vpop.permute.xlu1 %1915  ;;  %v5785_v62 = vpop.permute.xlu0 %1913  ;;  %v2529_v41 = vsel %vm2326_vm1, %v2527_v19, %v2528_v8  ;;  %v2507_v19 = vmul.f32 %v5767_v11, %v5262_v56 }
 0x1c4   : >> { %7905 = vst [vmem:[#allocation61_spill] sm:$0xff] %v5783_v12  ;;  %7906 = vst [vmem:[#allocation62_spill] sm:$0xff] %v5785_v62 }
 0x1c5   : >> { %2462 = vrot.lane.b32.xlu1 %v2437_v63, %s4472_s23  ;;  %2460 = vrot.lane.b32.xlu0 %v2435_v43, %s4472_s23  ;;  %v2531_v63 = vsel %vm2326_vm1, %v2528_v8, %v2530_v20  ;;  %v2534_v43 = vrot.slane %v2503_v38, 2  ;;  %v2506_v8 = vmul.f32 %v5767_v11, %v5249_v51  ;;  %v5828_v51 = vld [vmem:[%s5218_s22 + $0x48] sm:$0xff] }
 0x1c6   : >> { %v2508_v56 = vmul.f32 %v5828_v51, %v5767_v11 }
 0x1c7   : >> { %v5794_v39 = vpop.permute.xlu1 %1919  ;;  %v5796_v23 = vpop.permute.xlu0 %1917  ;;  %v2535_v52 = vsel %vm2326_vm1, %v2532_v48, %v2534_v43 }
 0x1c8   : >> { %7907 = vst [vmem:[#allocation63_spill] sm:$0xff] %v5794_v39  ;;  %7908 = vst [vmem:[#allocation64_spill] sm:$0xff] %v5796_v23 }
 0x1c9   : >> { %2466 = vrot.lane.b32.xlu1 %v2438_v40, %s4472_s23  ;;  %2464 = vrot.lane.b32.xlu0 %v2439_v42, %s4472_s23  ;;  %v2538_v40 = vrot.slane %v2505_v13, 2  ;;  %v2533_v42 = vsel %vm2326_vm1, %v2530_v20, %v2532_v48  ;;  %v2537_v20 = vsel %vm2326_vm1, %v2534_v43, %v2536_v47  ;;  %v2540_v13 = vrot.slane %v2506_v8, 2  ;;  %v5841_v43 = vld [vmem:[%s5218_s22 + $0x58] sm:$0xff] }
 0x1ca   : >> { %v2544_v8 = vrot.slane %v2508_v56, 2 }
 0x1cb   : >> { %v5806_v1 = vpop.permute.xlu1 %1923  ;;  %v5808_v7 = vpop.permute.xlu0 %1921  ;;  %v2539_v59 = vsel %vm2326_vm1, %v2536_v47, %v2538_v40  ;;  %v2510_v47 = vmul.f32 %v5841_v43, %v5767_v11 }
 0x1cc   : >> { %7909 = vst [vmem:[#allocation65_spill] sm:$0xff] %v5806_v1  ;;  %7910 = vst [vmem:[#allocation66_spill] sm:$0xff] %v5808_v7 }
 0x1cd   : >> { %2556 = vrot.lane.b32.xlu1 %v2531_v63, %s4473_s26  ;;  %2554 = vrot.lane.b32.xlu0 %v2529_v41, %s4473_s26  ;;  %v2542_v63 = vrot.slane %v2507_v19, 2  ;;  %v2509_v41 = vmul.f32 %v5767_v11, %v5273_v60 }
 0x1cf   : >> { %v5818_v55 = vpop.permute.xlu1 %2013  ;;  %v5820_v38 = vpop.permute.xlu0 %2011  ;;  %v2543_v60 = vsel %vm2326_vm1, %v2540_v13, %v2542_v63  ;;  %v2546_v19 = vrot.slane %v2509_v41, 2 }
 0x1d0   : >> { %7911 = vst [vmem:[#allocation67_spill] sm:$0xff] %v5818_v55  ;;  %7912 = vst [vmem:[#allocation68_spill] sm:$0xff] %v5820_v38  ;;  %v2545_v55 = vsel %vm2326_vm1, %v2542_v63, %v2544_v8 }
 0x1d1   : >> { %2560 = vrot.lane.b32.xlu1 %v2535_v52, %s4473_s26  ;;  %2558 = vrot.lane.b32.xlu0 %v2533_v42, %s4473_s26  ;;  %v2511_v52 = vmul.f32 %v5767_v11, %v5283_v0  ;;  %v2541_v42 = vsel %vm2326_vm1, %v2538_v40, %v2540_v13  ;;  %v2547_v0 = vsel %vm2326_vm1, %v2544_v8, %v2546_v19  ;;  %v5858_v40 = vld [vmem:[%s5218_s22 + $0x68] sm:$0x7f]  ;;  %v5878_v8 = vld [vmem:[%s5218_s22 + $0x10] sm:$0xff] }
 0x1d2   : >> { %7917 = vst [vmem:[#allocation73_spill] sm:$0xff] %v5858_v40  ;;  %v2512_v13 = vmul.f32 %v5858_v40, %v5767_v11 }
 0x1d3   : >> { %v5834_v48 = vpop.permute.xlu1 %2017  ;;  %v5836_v38 = vpop.permute.xlu0 %2015 }
 0x1d4   : >> { %7913 = vst [vmem:[#allocation69_spill] sm:$0xff] %v5834_v48  ;;  %7914 = vst [vmem:[#allocation70_spill] sm:$0xff] %v5836_v38  ;;  %v2550_v48 = vrot.slane %v2511_v52, 2  ;;  %v2552_v52 = vrot.slane %v2512_v13, 2  ;;  %v5899_v13 = vld [vmem:[%s5218_s22 + $0x20] sm:$0xff] }
 0x1d5   : >> { %2564 = vrot.lane.b32.xlu1 %v2539_v59, %s4473_s26  ;;  %2562 = vrot.lane.b32.xlu0 %v2537_v20, %s4473_s26  ;;  %v2548_v20 = vrot.slane %v2510_v47, 2 }
 0x1d7   : >> { %v5849_v38 = vpop.permute.xlu1 %2021  ;;  %v5851_v59 = vpop.permute.xlu0 %2019  ;;  %v2551_v47 = vsel %vm2326_vm1, %v2548_v20, %v2550_v48  ;;  %v2549_v63 = vsel %vm2326_vm1, %v2546_v19, %v2548_v20  ;;  %v5894_v19 = vld [vmem:[%s5218_s22 + $0x18] sm:$0xff] }
 0x1d8   : >> { %7915 = vst [vmem:[#allocation71_spill] sm:$0xff] %v5849_v38  ;;  %7916 = vst [vmem:[#allocation72_spill] sm:$0xff] %v5851_v59 }
 0x1d9   : >> { %2568 = vrot.lane.b32.xlu1 %v2543_v60, %s4473_s26  ;;  %2566 = vrot.lane.b32.xlu0 %v2541_v42, %s4473_s26  ;;  %v5866_v60 = vstv %s2611_s30  ;;  %v5873_v42 = vld [vmem:[%s5218_s22 + $0x8] sm:$0xff]  ;;  %s6509_s30 = sld [smem:[#allocation4 + %s3267_s28]] }
 0x1da   : >> { %v2614_v11 = vmul.f32 %v5873_v42, %v5866_v60  ;;  %v2616_v20 = vmul.f32 %v5894_v19, %v5866_v60  ;;  %v2617_v38 = vmul.f32 %v5899_v13, %v5866_v60 }
 0x1db   : >> { %v5862_v56 = vpop.permute.xlu1 %2025  ;;  %v5864_v41 = vpop.permute.xlu0 %2023 }
 0x1dc   : >> { %7918 = vst [vmem:[#allocation74_spill] sm:$0xff] %v5862_v56  ;;  %7919 = vst [vmem:[#allocation75_spill] sm:$0xff] %v5864_v41  ;;  %v2615_v41 = vmul.f32 %v5878_v8, %v5866_v60  ;;  %v5883_v56 = vld [vmem:[%s5218_s22] sm:$0xff]  ;;  %v2642_v7 = vrot.slane %v2614_v11, 2  ;;  %v2646_v23 = vrot.slane %v2616_v20, 2  ;;  %v2648_v39 = vrot.slane %v2617_v38, 2 }
 0x1dd   : >> { %2572 = vrot.lane.b32.xlu1 %v2547_v0, %s4473_s26  ;;  %2570 = vrot.lane.b32.xlu0 %v2545_v55, %s4473_s26  ;;  %v2613_v55 = vmul.f32 %v5883_v56, %v5866_v60  ;;  %v5918_v11 = vld [vmem:[%s5218_s22 + $0x30] sm:$0xff] }
 0x1df   : >> { %v5887_v0 = vpop.permute.xlu1 %2029  ;;  %v5889_v59 = vpop.permute.xlu0 %2027  ;;  %v2641_v1 = vrot.slane %v2613_v55, 2 }
 0x1e0   : >> { %7920 = vst [vmem:[#allocation76_spill] sm:$0xff] %v5887_v0  ;;  %7921 = vst [vmem:[#allocation77_spill] sm:$0xff] %v5889_v59  ;;  %v2553_v0 = vsel %vm2326_vm1, %v2550_v48, %v2552_v52  ;;  %v2644_v59 = vrot.slane %v2615_v41, 2  ;;  %v5913_v48 = vld [vmem:[%s5218_s22 + $0x28] sm:$0xff] }
 0x1e1   : >> { %2576 = vrot.lane.b32.xlu1 %v2551_v47, %s4473_s26  ;;  %2574 = vrot.lane.b32.xlu0 %v2549_v63, %s4473_s26  ;;  %v2643_v12 = vsel %vm2326_vm1, %v2641_v1, %v2642_v7  ;;  %v2618_v41 = vmul.f32 %v5913_v48, %v5866_v60  ;;  %v2649_v1 = vsel %vm2326_vm1, %v2646_v23, %v2648_v39 }
 0x1e2   : >> { %v2645_v62 = vsel %vm2326_vm1, %v2642_v7, %v2644_v59  ;;  %v2647_v7 = vsel %vm2326_vm1, %v2644_v59, %v2646_v23  ;;  %v5950_v23 = vld [vmem:[%s5218_s22 + $0x50] sm:$0xff] }
 0x1e3   : >> { %v5904_v47 = vpop.permute.xlu1 %2033  ;;  %v5906_v63 = vpop.permute.xlu0 %2031  ;;  %v2650_v38 = vrot.slane %v2618_v41, 2  ;;  %v2623_v59 = vmul.f32 %v5950_v23, %v5866_v60 }
 0x1e4   : >> { %7922 = vst [vmem:[#allocation78_spill] sm:$0xff] %v5904_v47  ;;  %7923 = vst [vmem:[#allocation79_spill] sm:$0xff] %v5906_v63  ;;  %v5931_v63 = vld [vmem:[%s5218_s22 + $0x38] sm:$0xff] }
 0x1e5   : >> { %2580 = vrot.lane.b32.xlu1 %v2552_v52, %s4473_s26  ;;  %2578 = vrot.lane.b32.xlu0 %v2553_v0, %s4473_s26  ;;  %v2619_v52 = vmul.f32 %v5918_v11, %v5866_v60  ;;  %v2620_v47 = vmul.f32 %v5931_v63, %v5866_v60  ;;  %v2660_v53 = vrot.slane %v2623_v59, 2 }
 0x1e7   : >> { %v5922_v55 = vpop.permute.xlu1 %2037  ;;  %v5924_v0 = vpop.permute.xlu0 %2035  ;;  %v2652_v20 = vrot.slane %v2619_v52, 2  ;;  %v2651_v52 = vsel %vm2326_vm1, %v2648_v39, %v2650_v38  ;;  %v2624_v39 = vmul.f32 %v5841_v43, %v5866_v60 }
 0x1e8   : >> { %7924 = vst [vmem:[#allocation80_spill] sm:$0xff] %v5922_v55  ;;  %7925 = vst [vmem:[#allocation81_spill] sm:$0xff] %v5924_v0  ;;  %v2621_v0 = vmul.f32 %v5936_v9, %v5866_v60 }
 0x1e9   : >> { %2670 = vrot.lane.b32.xlu1 %v2645_v62, %s4474_s29  ;;  %2668 = vrot.lane.b32.xlu0 %v2643_v12, %s4474_s29  ;;  %v2622_v12 = vmul.f32 %v5828_v51, %v5866_v60  ;;  %v2653_v41 = vsel %vm2326_vm1, %v2650_v38, %v2652_v20  ;;  %v2662_v59 = vrot.slane %v2624_v39, 2 }
 0x1eb   : >> { %v5940_v62 = vpop.permute.xlu1 %2127  ;;  %v5942_v55 = vpop.permute.xlu0 %2125 }
 0x1ec   : >> { %7926 = vst [vmem:[#allocation82_spill] sm:$0xff] %v5940_v62  ;;  %7927 = vst [vmem:[#allocation83_spill] sm:$0xff] %v5942_v55  ;;  %v2654_v62 = vrot.slane %v2620_v47, 2  ;;  %v2656_v55 = vrot.slane %v2621_v0, 2  ;;  %v5967_v47 = vld [vmem:[%s5218_s22 + $0x60] sm:$0xff] }
 0x1ed   : >> { %2674 = vrot.lane.b32.xlu1 %v2649_v1, %s4474_s29  ;;  %2672 = vrot.lane.b32.xlu0 %v2647_v7, %s4474_s29  ;;  %v2658_v7 = vrot.slane %v2622_v12, 2  ;;  %v2625_v0 = vmul.f32 %v5967_v47, %v5866_v60 }
 0x1ee   : >> { %v2657_v54 = vsel %vm2326_vm1, %v2654_v62, %v2656_v55  ;;  %v2655_v61 = vsel %vm2326_vm1, %v2652_v20, %v2654_v62  ;;  %v2626_v20 = vmul.f32 %v5858_v40, %v5866_v60 }
 0x1ef   : >> { %v5956_v46 = vpop.permute.xlu1 %2131  ;;  %v5958_v1 = vpop.permute.xlu0 %2129  ;;  %v2661_v12 = vsel %vm2326_vm1, %v2658_v7, %v2660_v53  ;;  %v2659_v62 = vsel %vm2326_vm1, %v2656_v55, %v2658_v7  ;;  %v2663_v55 = vsel %vm2326_vm1, %v2660_v53, %v2662_v59 }
 0x1f0   : >> { %7928 = vst [vmem:[#allocation84_spill] sm:$0xff] %v5956_v46  ;;  %7929 = vst [vmem:[#allocation85_spill] sm:$0xff] %v5958_v1 }
 0x1f1   : >> { %2678 = vrot.lane.b32.xlu1 %v2653_v41, %s4474_s29  ;;  %2676 = vrot.lane.b32.xlu0 %v2651_v52, %s4474_s29  ;;  %v2664_v41 = vrot.slane %v2625_v0, 2  ;;  %v5981_v52 = vstv %s2725_s6  ;;  %s6821_s6 = sld [smem:[#allocation4 + %s3468_s4]] }
 0x1f2   : >> { %v2729_v7 = vmul.f32 %v5878_v8, %v5981_v52  ;;  %v2727_v39 = vmul.f32 %v5883_v56, %v5981_v52  ;;  %v2730_v53 = vmul.f32 %v5894_v19, %v5981_v52  ;;  %v2734_v10 = vmul.f32 %v5931_v63, %v5981_v52 }
 0x1f3   : >> { %v5971_v38 = vpop.permute.xlu1 %2135  ;;  %v5973_v1 = vpop.permute.xlu0 %2133  ;;  %v2665_v60 = vsel %vm2326_vm1, %v2662_v59, %v2664_v41  ;;  %v2731_v59 = vmul.f32 %v5899_v13, %v5981_v52 }
 0x1f4   : >> { %7930 = vst [vmem:[#allocation86_spill] sm:$0xff] %v5971_v38  ;;  %7931 = vst [vmem:[#allocation87_spill] sm:$0xff] %v5973_v1 }
 0x1f5   : >> { %2682 = vrot.lane.b32.xlu1 %v2657_v54, %s4474_s29  ;;  %2680 = vrot.lane.b32.xlu0 %v2655_v61, %s4474_s29  ;;  %v2666_v61 = vrot.slane %v2626_v20, 2  ;;  %v2728_v54 = vmul.f32 %v5873_v42, %v5981_v52 }
 0x1f7   : >> { %v5983_v46 = vpop.permute.xlu1 %2139  ;;  %v5985_v38 = vpop.permute.xlu0 %2137  ;;  %v2756_v20 = vrot.slane %v2728_v54, 2  ;;  %v2733_v54 = vmul.f32 %v5918_v11, %v5981_v52 }
 0x1f8   : >> { %7932 = vst [vmem:[#allocation88_spill] sm:$0xff] %v5983_v46  ;;  %7933 = vst [vmem:[#allocation89_spill] sm:$0xff] %v5985_v38  ;;  %v2755_v46 = vrot.slane %v2727_v39, 2  ;;  %v2762_v39 = vrot.slane %v2731_v59, 2 }
 0x1f9   : >> { %2686 = vrot.lane.b32.xlu1 %v2661_v12, %s4474_s29  ;;  %2684 = vrot.lane.b32.xlu0 %v2659_v62, %s4474_s29  ;;  %v2667_v12 = vsel %vm2326_vm1, %v2664_v41, %v2666_v61  ;;  %v2758_v62 = vrot.slane %v2729_v7, 2  ;;  %v2732_v41 = vmul.f32 %v5913_v48, %v5981_v52  ;;  %v2760_v7 = vrot.slane %v2730_v53, 2 }
 0x1fb   : >> { %v5997_v0 = vpop.permute.xlu1 %2143  ;;  %v5999_v38 = vpop.permute.xlu0 %2141  ;;  %v2761_v18 = vsel %vm2326_vm1, %v2758_v62, %v2760_v7 }
 0x1fc   : >> { %7934 = vst [vmem:[#allocation90_spill] sm:$0xff] %v5997_v0  ;;  %7935 = vst [vmem:[#allocation91_spill] sm:$0xff] %v5999_v38  ;;  %v2763_v38 = vsel %vm2326_vm1, %v2760_v7, %v2762_v39 }
 0x1fd   : >> { %2690 = vrot.lane.b32.xlu1 %v2665_v60, %s4474_s29  ;;  %2688 = vrot.lane.b32.xlu0 %v2663_v55, %s4474_s29  ;;  %v2759_v60 = vsel %vm2326_vm1, %v2756_v20, %v2758_v62  ;;  %v2757_v55 = vsel %vm2326_vm1, %v2755_v46, %v2756_v20  ;;  %v2735_v46 = vmul.f32 %v5936_v9, %v5981_v52  ;;  %v2768_v62 = vrot.slane %v2734_v10, 2 }
 0x1fe   : >> { %v2739_v10 = vmul.f32 %v5967_v47, %v5981_v52 }
 0x1ff   : >> { %v6008_v1 = vpop.permute.xlu1 %2147  ;;  %v6010_v0 = vpop.permute.xlu0 %2145 }
 0x200   : >> { %7936 = vst [vmem:[#allocation92_spill] sm:$0xff] %v6008_v1  ;;  %7937 = vst [vmem:[#allocation93_spill] sm:$0xff] %v6010_v0 }
 0x201   : >> { %2694 = vrot.lane.b32.xlu1 %v2666_v61, %s4474_s29  ;;  %2692 = vrot.lane.b32.xlu0 %v2667_v12, %s4474_s29  ;;  %v2764_v61 = vrot.slane %v2732_v41, 2  ;;  %v2766_v12 = vrot.slane %v2733_v54, 2  ;;  %v2770_v54 = vrot.slane %v2735_v46, 2 }
 0x203   : >> { %v6020_v1 = vpop.permute.xlu1 %2151  ;;  %v6022_v0 = vpop.permute.xlu0 %2149  ;;  %v2767_v59 = vsel %vm2326_vm1, %v2764_v61, %v2766_v12  ;;  %v2765_v41 = vsel %vm2326_vm1, %v2762_v39, %v2764_v61  ;;  %v2769_v39 = vsel %vm2326_vm1, %v2766_v12, %v2768_v62 }
 0x204   : >> { %7938 = vst [vmem:[#allocation94_spill] sm:$0xff] %v6020_v1  ;;  %7939 = vst [vmem:[#allocation95_spill] sm:$0xff] %v6022_v0  ;;  %v2740_v1 = vmul.f32 %v5858_v40, %v5981_v52 }
 0x205   : >> { %2784 = vrot.lane.b32.xlu1 %v2759_v60, %s4475_s5  ;;  %2782 = vrot.lane.b32.xlu0 %v2757_v55, %s4475_s5  ;;  %v2736_v60 = vmul.f32 %v5828_v51, %v5981_v52  ;;  %v2737_v55 = vmul.f32 %v5950_v23, %v5981_v52 }
 0x207   : >> { %v6032_v20 = vpop.permute.xlu1 %2241  ;;  %v6034_v53 = vpop.permute.xlu0 %2239  ;;  %v2772_v61 = vrot.slane %v2736_v60, 2  ;;  %v2774_v46 = vrot.slane %v2737_v55, 2  ;;  %v6071_v60 = vstv %s2926_s8  ;;  %s6890_s8 = sld [smem:[#allocation4 + %s2838_s7]] }
 0x208   : >> { %7940 = vst [vmem:[#allocation96_spill] sm:$0xff] %v6032_v20  ;;  %7941 = vst [vmem:[#allocation97_spill] sm:$0xff] %v6034_v53 }
 0x209   : >> { %2788 = vrot.lane.b32.xlu1 %v2763_v38, %s4475_s5  ;;  %2786 = vrot.lane.b32.xlu0 %v2761_v18, %s4475_s5  ;;  %v2738_v18 = vmul.f32 %v5841_v43, %v5981_v52  ;;  %v2771_v38 = vsel %vm2326_vm1, %v2768_v62, %v2770_v54  ;;  %v2775_v20 = vsel %vm2326_vm1, %v2772_v61, %v2774_v46 }
 0x20a   : >> { %v2773_v0 = vsel %vm2326_vm1, %v2770_v54, %v2772_v61  ;;  %v2929_v54 = vmul.f32 %v5873_v42, %v6071_v60  ;;  %v2930_v52 = vmul.f32 %v5878_v8, %v6071_v60 }
 0x20b   : >> { %v6045_v7 = vpop.permute.xlu1 %2245  ;;  %v6047_v53 = vpop.permute.xlu0 %2243 }
 0x20c   : >> { %7942 = vst [vmem:[#allocation98_spill] sm:$0xff] %v6045_v7  ;;  %7943 = vst [vmem:[#allocation99_spill] sm:$0xff] %v6047_v53 }
 0x20d   : >> { %2792 = vrot.lane.b32.xlu1 %v2767_v59, %s4475_s5  ;;  %2790 = vrot.lane.b32.xlu0 %v2765_v41, %s4475_s5  ;;  %v2776_v59 = vrot.slane %v2738_v18, 2  ;;  %v2778_v41 = vrot.slane %v2739_v10, 2  ;;  %v2780_v10 = vrot.slane %v2740_v1, 2  ;;  %v2931_v1 = vmul.f32 %v5894_v19, %v6071_v60 }
 0x20f   : >> { %v6057_v7 = vpop.permute.xlu1 %2249  ;;  %v6059_v53 = vpop.permute.xlu0 %2247  ;;  %v2779_v55 = vsel %vm2326_vm1, %v2776_v59, %v2778_v41  ;;  %v2777_v18 = vsel %vm2326_vm1, %v2774_v46, %v2776_v59  ;;  %v2957_v46 = vrot.slane %v2929_v54, 3  ;;  %v2959_v59 = vrot.slane %v2930_v52, 3 }
 0x210   : >> { %7944 = vst [vmem:[#allocation100_spill] sm:$0xff] %v6057_v7  ;;  %7945 = vst [vmem:[#allocation101_spill] sm:$0xff] %v6059_v53  ;;  %v2934_v54 = vmul.f32 %v5918_v11, %v6071_v60 }
 0x211   : >> { %2796 = vrot.lane.b32.xlu1 %v2771_v38, %s4475_s5  ;;  %2794 = vrot.lane.b32.xlu0 %v2769_v39, %s4475_s5  ;;  %v2928_v38 = vmul.f32 %v5883_v56, %v6071_v60 }
 0x213   : >> { %v6067_v12 = vpop.permute.xlu1 %2253  ;;  %v6069_v62 = vpop.permute.xlu0 %2251 }
 0x214   : >> { %7946 = vst [vmem:[#allocation102_spill] sm:$0xff] %v6067_v12  ;;  %7947 = vst [vmem:[#allocation103_spill] sm:$0xff] %v6069_v62  ;;  %v2956_v62 = vrot.slane %v2928_v38, 3 }
 0x215   : >> { %2800 = vrot.lane.b32.xlu1 %v2775_v20, %s4475_s5  ;;  %2798 = vrot.lane.b32.xlu0 %v2773_v0, %s4475_s5  ;;  %v2932_v0 = vmul.f32 %v5899_v13, %v6071_v60  ;;  %v2781_v20 = vsel %vm2326_vm1, %v2778_v41, %v2780_v10  ;;  %v2933_v41 = vmul.f32 %v5913_v48, %v6071_v60 }
 0x216   : >> { %v2958_v53 = vsel %vm2869_vm2, %v2956_v62, %v2957_v46 }
 0x217   : >> { %v6083_v39 = vpop.permute.xlu1 %2257  ;;  %v6085_v61 = vpop.permute.xlu0 %2255  ;;  %v2965_v62 = vrot.slane %v2933_v41, 3 }
 0x218   : >> { %7948 = vst [vmem:[#allocation104_spill] sm:$0xff] %v6083_v39  ;;  %7949 = vst [vmem:[#allocation105_spill] sm:$0xff] %v6085_v61  ;;  %v2960_v61 = vsel %vm2869_vm2, %v2957_v46, %v2959_v59  ;;  %v2936_v46 = vmul.f32 %v5936_v9, %v6071_v60 }
 0x219   : >> { %2804 = vrot.lane.b32.xlu1 %v2779_v55, %s4475_s5  ;;  %2802 = vrot.lane.b32.xlu0 %v2777_v18, %s4475_s5  ;;  %v2961_v55 = vrot.slane %v2931_v1, 3  ;;  %v2963_v18 = vrot.slane %v2932_v0, 3  ;;  %v2967_v0 = vrot.slane %v2934_v54, 3 }
 0x21a   : >> { %v2971_v54 = vrot.slane %v2936_v46, 3 }
 0x21b   : >> { %v6094_v12 = vpop.permute.xlu1 %2261  ;;  %v6096_v39 = vpop.permute.xlu0 %2259  ;;  %v2962_v1 = vsel %vm2869_vm2, %v2959_v59, %v2961_v55  ;;  %v2968_v59 = vsel %vm2869_vm2, %v2965_v62, %v2967_v0 }
 0x21c   : >> { %7950 = vst [vmem:[#allocation106_spill] sm:$0xff] %v6094_v12  ;;  %7951 = vst [vmem:[#allocation107_spill] sm:$0xff] %v6096_v39 }
 0x21d   : >> { %2808 = vrot.lane.b32.xlu1 %v2780_v10, %s4475_s5  ;;  %2806 = vrot.lane.b32.xlu0 %v2781_v20, %s4475_s5  ;;  %v2964_v10 = vsel %vm2869_vm2, %v2961_v55, %v2963_v18  ;;  %v2935_v20 = vmul.f32 %v5931_v63, %v6071_v60  ;;  %v2966_v55 = vsel %vm2869_vm2, %v2963_v18, %v2965_v62 }
 0x21e   : >> { %v2939_v18 = vmul.f32 %v5841_v43, %v6071_v60  ;;  %v2940_v62 = vmul.f32 %v5967_v47, %v6071_v60 }
 0x21f   : >> { %v6106_v52 = vpop.permute.xlu1 %2265  ;;  %v6108_v38 = vpop.permute.xlu0 %2263  ;;  %v2969_v41 = vrot.slane %v2935_v20, 3 }
 0x220   : >> { %7952 = vst [vmem:[#allocation108_spill] sm:$0xff] %v6106_v52  ;;  %7953 = vst [vmem:[#allocation109_spill] sm:$0xff] %v6108_v38 }
 0x221   : >> { %2985 = vrot.lane.b32.xlu1 %v2960_v61, %s4472_s23  ;;  %2983 = vrot.lane.b32.xlu0 %v2958_v53, %s4472_s23  ;;  %v2937_v53 = vmul.f32 %v5828_v51, %v6071_v60  ;;  %v2938_v61 = vmul.f32 %v5950_v23, %v6071_v60  ;;  %v2972_v38 = vsel %vm2869_vm2, %v2969_v41, %v2971_v54 }
 0x222   : >> { %v2970_v12 = vsel %vm2869_vm2, %v2967_v0, %v2969_v41  ;;  %v2941_v0 = vmul.f32 %v5858_v40, %v6071_v60  ;;  %v2979_v41 = vrot.slane %v2940_v62, 3 }
 0x223   : >> { %v6118_v39 = vpop.permute.xlu1 %2442  ;;  %v6120_v52 = vpop.permute.xlu0 %2440 }
 0x224   : >> { %7954 = vst [vmem:[#allocation110_spill] sm:$0xff] %v6118_v39  ;;  %7955 = vst [vmem:[#allocation111_spill] sm:$0xff] %v6120_v52  ;;  %v2981_v60 = vrot.slane %v2941_v0, 3 }
 0x225   : >> { %2989 = vrot.lane.b32.xlu1 %v2964_v10, %s4472_s23  ;;  %2987 = vrot.lane.b32.xlu0 %v2962_v1, %s4472_s23  ;;  %v2973_v10 = vrot.slane %v2937_v53, 3  ;;  %v2975_v1 = vrot.slane %v2938_v61, 3 }
 0x227   : >> { %v6132_v52 = vpop.permute.xlu1 %2446  ;;  %v6134_v39 = vpop.permute.xlu0 %2444  ;;  %v2976_v53 = vsel %vm2869_vm2, %v2973_v10, %v2975_v1  ;;  %v2974_v61 = vsel %vm2869_vm2, %v2971_v54, %v2973_v10 }
 0x228   : >> { %7956 = vst [vmem:[#allocation112_spill] sm:$0xff] %v6132_v52  ;;  %7957 = vst [vmem:[#allocation113_spill] sm:$0xff] %v6134_v39  ;;  %v6156_v39 = vstv %s3040_s13  ;;  %s3696_s13 = sadd.s32 23, %s5213_s18 }
 0x229   : >> { %2993 = vrot.lane.b32.xlu1 %v2968_v59, %s4472_s23  ;;  %2991 = vrot.lane.b32.xlu0 %v2966_v55, %s4472_s23  ;;  %v6148_v59 = vstv %s1374_s12  ;;  %v2977_v55 = vrot.slane %v2939_v18, 3  ;;  %v3043_v54 = vmul.f32 %v5873_v42, %v6156_v39  ;;  %v3044_v62 = vmul.f32 %v5878_v8, %v6156_v39  ;;  %s7017_s12 = sld [smem:[#allocation4 + %s3582_s11]] }
 0x22a   : >> { %v1379_v52 = vmul.f32 %v5894_v19, %v6148_v59  ;;  %v1382_v2 = vmul.f32 %v5918_v11, %v6148_v59  ;;  %v3047_v44 = vmul.f32 %v5913_v48, %v6156_v39 }
 0x22b   : >> { %v6144_v20 = vpop.permute.xlu1 %2450  ;;  %v6146_v46 = vpop.permute.xlu0 %2448  ;;  %v2980_v10 = vsel %vm2869_vm2, %v2977_v55, %v2979_v41  ;;  %v2978_v18 = vsel %vm2869_vm2, %v2975_v1, %v2977_v55  ;;  %v1377_v1 = vmul.f32 %v5873_v42, %v6148_v59  ;;  %v1381_v55 = vmul.f32 %v5913_v48, %v6148_v59 }
 0x22c   : >> { %7958 = vst [vmem:[#allocation114_spill] sm:$0xff] %v6144_v20  ;;  %7959 = vst [vmem:[#allocation115_spill] sm:$0xff] %v6146_v46  ;;  %v1378_v46 = vmul.f32 %v5878_v8, %v6148_v59  ;;  %v1376_v20 = vmul.f32 %v5883_v56, %v6148_v59  ;;  %v6190_v7 = vadd.f32 %v4453_v34, %v1379_v52  ;;  %v3073_v34 = vrot.slane %v3044_v62, 3 }
 0x22d   : >> { %2997 = vrot.lane.b32.xlu1 %v2972_v38, %s4472_s23  ;;  %2995 = vrot.lane.b32.xlu0 %v2970_v12, %s4472_s23  ;;  %v6223_v62 = vadd.f32 %v4445_v32, %v1381_v55 }
 0x22f   : >> { %v6162_v38 = vpop.permute.xlu1 %2454  ;;  %v6164_v12 = vpop.permute.xlu0 %2452 }
 0x230   : >> { %7960 = vst [vmem:[#allocation116_spill] sm:$0xff] %v6162_v38  ;;  %7961 = vst [vmem:[#allocation117_spill] sm:$0xff] %v6164_v12  ;;  %v3042_v12 = vmul.f32 %v5883_v56, %v6156_v39  ;;  %v6180_v38 = vadd.f32 %v4457_v35, %v1378_v46  ;;  %v1380_v35 = vmul.f32 %v5899_v13, %v6148_v59 }
 0x231   : >> { %3001 = vrot.lane.b32.xlu1 %v2976_v53, %s4472_s23  ;;  %2999 = vrot.lane.b32.xlu0 %v2974_v61, %s4472_s23  ;;  %v6183_v53 = vadd.f32 %v4465_v37, %v1376_v20  ;;  %v2982_v37 = vsel %vm2869_vm2, %v2979_v41, %v2981_v60  ;;  %v3071_v20 = vrot.slane %v3043_v54, 3  ;;  %v3045_v46 = vmul.f32 %v5894_v19, %v6156_v39 }
 0x232   : >> { %v3070_v52 = vrot.slane %v3042_v12, 3  ;;  %v1384_v41 = vmul.f32 %v5936_v9, %v6148_v59  ;;  %v6226_v45 = vadd.f32 %v4449_v33, %v1380_v35 }
 0x233   : >> { %v6185_v0 = vpop.permute.xlu1 %2458  ;;  %v6187_v61 = vpop.permute.xlu0 %2456  ;;  %v3075_v32 = vrot.slane %v3045_v46, 3 }
 0x234   : >> { %7962 = vst [vmem:[#allocation118_spill] sm:$0xff] %v6185_v0  ;;  %7963 = vst [vmem:[#allocation119_spill] sm:$0xff] %v6187_v61  ;;  %v3046_v61 = vmul.f32 %v5899_v13, %v6156_v39  ;;  %v1383_v0 = vmul.f32 %v5931_v63, %v6148_v59 }
 0x235   : >> { %3005 = vrot.lane.b32.xlu1 %v2980_v10, %s4472_s23  ;;  %3003 = vrot.lane.b32.xlu0 %v2978_v18, %s4472_s23  ;;  %v1385_v10 = vmul.f32 %v5828_v51, %v6148_v59  ;;  %v6220_v18 = vadd.f32 %v4461_v36, %v1377_v1  ;;  %v3074_v36 = vsel %vm2869_vm2, %v3071_v20, %v3073_v34 }
 0x236   : >> { %v3072_v1 = vsel %vm2869_vm2, %v3070_v52, %v3071_v20  ;;  %v3077_v55 = vrot.slane %v3046_v61, 3  ;;  %v6237_v33 = vadd.f32 %v4437_v30, %v1383_v0  ;;  %v1387_v20 = vmul.f32 %v5841_v43, %v6148_v59 }
 0x237   : >> { %v6215_v54 = vpop.permute.xlu1 %2462  ;;  %v6217_v12 = vpop.permute.xlu0 %2460  ;;  %v6243_v35 = vadd.f32 %v4429_v28, %v1385_v10  ;;  %v1386_v30 = vmul.f32 %v5950_v23, %v6148_v59  ;;  %v6257_v0 = vstv %s6198_s19  ;;  %v3079_v28 = vrot.slane %v3047_v44, 3 }
 0x238   : >> { %7964 = vst [vmem:[#allocation120_spill] sm:$0xff] %v6215_v54  ;;  %7965 = vst [vmem:[#allocation121_spill] sm:$0xff] %v6217_v12  ;;  %v3048_v12 = vmul.f32 %v5918_v11, %v6156_v39  ;;  %v3049_v61 = vmul.f32 %v5931_v63, %v6156_v39  ;;  %v3050_v52 = vmul.f32 %v5936_v9, %v6156_v39 }
 0x239   : >> { %3009 = vrot.lane.b32.xlu1 %v2981_v60, %s4472_s23  ;;  %3007 = vrot.lane.b32.xlu0 %v2982_v37, %s4472_s23  ;;  %v6240_v60 = vadd.f32 %v4441_v31, %v1382_v2  ;;  %v6246_v37 = vadd.f32 %v4433_v29, %v1384_v41  ;;  %v3078_v31 = vsel %vm2869_vm2, %v3075_v32, %v3077_v55 }
 0x23a   : >> { %v3081_v29 = vrot.slane %v3048_v12, 3  ;;  %v3076_v2 = vsel %vm2869_vm2, %v3073_v34, %v3075_v32  ;;  %v1756_v46 = vmul.f32 %v5873_v42, %v6257_v0  ;;  %v1757_v10 = vmul.f32 %v5878_v8, %v6257_v0 }
 0x23b   : >> { %v6248_v54 = vpop.permute.xlu1 %2466  ;;  %v6250_v17 = vpop.permute.xlu0 %2464  ;;  %v1755_v44 = vmul.f32 %v5883_v56, %v6257_v0  ;;  %v6278_v34 = vadd.f32 %v4421_v26, %v1387_v20  ;;  %v1758_v32 = vmul.f32 %v5894_v19, %v6257_v0  ;;  %v3083_v26 = vrot.slane %v3049_v61, 3 }
 0x23c   : >> { %7966 = vst [vmem:[#allocation122_spill] sm:$0xff] %v6248_v54  ;;  %7967 = vst [vmem:[#allocation123_spill] sm:$0xff] %v6250_v17  ;;  %v3085_v20 = vrot.slane %v3050_v52, 3  ;;  %v3051_v17 = vmul.f32 %v5828_v51, %v6156_v39  ;;  %v1785_v54 = vrot.slane %v1756_v46, 1  ;;  %v1787_v16 = vrot.slane %v1757_v10, 1 }
 0x23d   : >> { %3099 = vrot.lane.b32.xlu1 %v3074_v36, %s4473_s26  ;;  %3097 = vrot.lane.b32.xlu0 %v3072_v1, %s4473_s26  ;;  %v1389_v36 = vmul.f32 %v5858_v40, %v6148_v59  ;;  %v1388_v1 = vmul.f32 %v5967_v47, %v6148_v59  ;;  %v3052_v59 = vmul.f32 %v5950_v23, %v6156_v39  ;;  %v1784_v4 = vrot.slane %v1755_v44, 1 }
 0x23e   : >> { %v1760_v61 = vmul.f32 %v5913_v48, %v6257_v0  ;;  %v1789_v52 = vrot.slane %v1758_v32, 1  ;;  %v1761_v46 = vmul.f32 %v5918_v11, %v6257_v0  ;;  %v3053_v10 = vmul.f32 %v5841_v43, %v6156_v39 }
 0x23f   : >> { %v6273_v41 = vpop.permute.xlu1 %2556  ;;  %v6275_v12 = vpop.permute.xlu0 %2554  ;;  %v3087_v44 = vrot.slane %v3051_v17, 3  ;;  %v6324_v32 = vadd.f32 %v4417_v25, %v1388_v1  ;;  %v1763_v17 = vmul.f32 %v5936_v9, %v6257_v0  ;;  %v1764_v25 = vmul.f32 %v5828_v51, %v6257_v0 }
 0x240   : >> { %7968 = vst [vmem:[#allocation124_spill] sm:$0xff] %v6273_v41  ;;  %7969 = vst [vmem:[#allocation125_spill] sm:$0xff] %v6275_v12  ;;  %v3082_v41 = vsel %vm2869_vm2, %v3079_v28, %v3081_v29  ;;  %v3080_v12 = vsel %vm2869_vm2, %v3077_v55, %v3079_v28  ;;  %v6306_v55 = vadd.f32 %v4425_v27, %v1386_v30 }
 0x241   : >> { %3103 = vrot.lane.b32.xlu1 %v3078_v31, %s4473_s26  ;;  %3101 = vrot.lane.b32.xlu0 %v3076_v2, %s4473_s26  ;;  %v6297_v31 = vmul.f32 %v5899_v13, %v6257_v0  ;;  %v6309_v28 = vadd.f32 %v4413_v24, %v1389_v36  ;;  %v3054_v27 = vmul.f32 %v5967_v47, %v6156_v39  ;;  %v3089_v36 = vrot.slane %v3052_v59, 3 }
 0x242   : >> { %v3086_v24 = vsel %vm2869_vm2, %v3083_v26, %v3085_v20  ;;  %v3084_v30 = vsel %vm2869_vm2, %v3081_v29, %v3083_v26  ;;  %v1762_v29 = vmul.f32 %v5931_v63, %v6257_v0  ;;  %v1765_v1 = vmul.f32 %v5950_v23, %v6257_v0 }
 0x243   : >> { %v6299_v2 = vpop.permute.xlu1 %2560  ;;  %v6301_v3 = vpop.permute.xlu0 %2558  ;;  %7972 = vst [vmem:[#allocation128_spill] sm:$0xff] %v6309_v28  ;;  %v3091_v26 = vrot.slane %v3053_v10, 3  ;;  %v3093_v59 = vrot.slane %v3054_v27, 3  ;;  %v6367_v27 = vstv %s6303_s24 }
 0x244   : >> { %7970 = vst [vmem:[#allocation126_spill] sm:$0xff] %v6299_v2  ;;  %7971 = vst [vmem:[#allocation127_spill] sm:$0xff] %v6301_v3  ;;  %v6327_v3 = vsel %vm1783_vm0, %v1785_v54, %v1787_v16 }
 0x245   : >> { %3107 = vrot.lane.b32.xlu1 %v3082_v41, %s4473_s26  ;;  %3105 = vrot.lane.b32.xlu0 %v3080_v12, %s4473_s26  ;;  %7973 = vst [vmem:[#allocation129_spill] sm:$0xff] %v6327_v3  ;;  %v6330_v41 = vsel %vm1783_vm0, %v1784_v4, %v1785_v54  ;;  %v1791_v12 = vrot.slane %v6297_v31, 1  ;;  %v6346_v4 = vsel %vm1783_vm0, %v1787_v16, %v1789_v52  ;;  %v1793_v54 = vrot.slane %v1760_v61, 1 }
 0x246   : >> { %7974 = vst [vmem:[#allocation130_spill] sm:$0xff] %v6330_v41  ;;  %7977 = vst [vmem:[#allocation133_spill] sm:$0xff] %v6346_v4  ;;  %v1795_v31 = vrot.slane %v1761_v46, 1  ;;  %v3055_v41 = vmul.f32 %v5858_v40, %v6156_v39  ;;  %v1766_v3 = vmul.f32 %v5841_v43, %v6257_v0  ;;  %v1767_v16 = vmul.f32 %v5967_v47, %v6257_v0 }
 0x247   : >> { %v6333_v2 = vpop.permute.xlu1 %2564  ;;  %v6335_v28 = vpop.permute.xlu0 %2562  ;;  %v6360_v61 = vmul.f32 %v5858_v40, %v6257_v0  ;;  %v1803_v39 = vrot.slane %v1765_v1, 1  ;;  %v3094_v0 = vsel %vm2869_vm2, %v3091_v26, %v3093_v59  ;;  %v3092_v4 = vsel %vm2869_vm2, %v3089_v36, %v3091_v26 }
 0x248   : >> { %7975 = vst [vmem:[#allocation131_spill] sm:$0xff] %v6333_v2  ;;  %7976 = vst [vmem:[#allocation132_spill] sm:$0xff] %v6335_v28  ;;  %v3090_v28 = vsel %vm2869_vm2, %v3087_v44, %v3089_v36  ;;  %v3088_v2 = vsel %vm2869_vm2, %v3085_v20, %v3087_v44  ;;  %v1797_v20 = vrot.slane %v1762_v29, 1  ;;  %v6370_v44 = vsel %vm1783_vm0, %v1789_v52, %v1791_v12 }
 0x249   : >> { %3111 = vrot.lane.b32.xlu1 %v3086_v24, %s4473_s26  ;;  %3109 = vrot.lane.b32.xlu0 %v3084_v30, %s4473_s26  ;;  %v1799_v24 = vrot.slane %v1763_v17, 1  ;;  %v1801_v30 = vrot.slane %v1764_v25, 1  ;;  %7980 = vst [vmem:[#allocation136_spill] sm:$0xff] %v6370_v44  ;;  %v3158_v29 = vmul.f32 %v5878_v8, %v6367_v27  ;;  %v3156_v52 = vmul.f32 %v5883_v56, %v6367_v27 }
 0x24a   : >> { %v6383_v17 = vsel %vm1783_vm0, %v1793_v54, %v1795_v31  ;;  %v6397_v44 = vsel %vm1783_vm0, %v1795_v31, %v1797_v20 }
 0x24b   : >> { %v6362_v10 = vpop.permute.xlu1 %2568  ;;  %v6364_v46 = vpop.permute.xlu0 %2566  ;;  %v6394_v26 = vsel %vm1783_vm0, %v1797_v20, %v1799_v24  ;;  %v6400_v40 = vsel %vm1783_vm0, %v1801_v30, %v1803_v39  ;;  %v3187_v20 = vrot.slane %v3158_v29, 3  ;;  %v3184_v25 = vrot.slane %v3156_v52, 3 }
 0x24c   : >> { %7978 = vst [vmem:[#allocation134_spill] sm:$0xff] %v6362_v10  ;;  %7979 = vst [vmem:[#allocation135_spill] sm:$0xff] %v6364_v46  ;;  %v3095_v10 = vrot.slane %v3055_v41, 3  ;;  %v3157_v46 = vmul.f32 %v5873_v42, %v6367_v27  ;;  %v6391_v41 = vsel %vm1783_vm0, %v1791_v12, %v1793_v54  ;;  %v3159_v12 = vmul.f32 %v5894_v19, %v6367_v27 }
 0x24d   : >> { %3115 = vrot.lane.b32.xlu1 %v3090_v28, %s4473_s26  ;;  %3113 = vrot.lane.b32.xlu0 %v3088_v2, %s4473_s26  ;;  %v1805_v28 = vrot.slane %v1766_v3, 1  ;;  %v1807_v2 = vrot.slane %v1767_v16, 1  ;;  %v6403_v3 = vsel %vm1783_vm0, %v1799_v24, %v1801_v30  ;;  %v6412_v54 = vmul.f32 %v5899_v13, %v6367_v27 }
 0x24e   : >> { %v3096_v31 = vsel %vm2869_vm2, %v3093_v59, %v3095_v10  ;;  %v3185_v16 = vrot.slane %v3157_v46, 3  ;;  %v1479_v24 = vadd.f32 %v5393_v57, %v6180_v38  ;;  %v1477_v46 = vadd.f32 %v5395_v58, %v6183_v53 }
 0x24f   : >> { %v6386_v1 = vpop.permute.xlu1 %2572  ;;  %v6388_v36 = vpop.permute.xlu0 %2570  ;;  %v6418_v30 = vsel %vm1783_vm0, %v1805_v28, %v1807_v2  ;;  %v1480_v57 = vadd.f32 %v5404_v5, %v6190_v7  ;;  %v1478_v38 = vadd.f32 %v5406_v6, %v6220_v18  ;;  %v1481_v29 = vadd.f32 %v5416_v15, %v6226_v45  ;;  %v7986_v18 = vld [vmem:[#allocation7_spill] sm:$0xff] }
 0x250   : >> { %7981 = vst [vmem:[#allocation137_spill] sm:$0xff] %v6386_v1  ;;  %7982 = vst [vmem:[#allocation138_spill] sm:$0xff] %v6388_v36  ;;  %v1484_v52 = vadd.f32 %v5423_v21, %v6237_v33  ;;  %v3189_v58 = vrot.slane %v3159_v12, 3  ;;  %v3191_v5 = vrot.slane %v6412_v54, 3  ;;  %v3188_v6 = vsel %vm2869_vm2, %v3185_v16, %v3187_v20  ;;  %v7991_v12 = vld [vmem:[#allocation9_spill] sm:$0xff] }
 0x251   : >> { %3119 = vrot.lane.b32.xlu1 %v3094_v0, %s4473_s26  ;;  %3117 = vrot.lane.b32.xlu0 %v3092_v4, %s4473_s26  ;;  %v6421_v4 = vsel %vm1783_vm0, %v1803_v39, %v1805_v28  ;;  %v7983_v0 = vrot.slane %v6360_v61, 1  ;;  %v1482_v39 = vadd.f32 %v5414_v14, %v6223_v62  ;;  %v3186_v7 = vsel %vm2869_vm2, %v3184_v25, %v3185_v16  ;;  %v7989_v28 = vld [vmem:[#allocation8_spill] sm:$0xff] }
 0x252   : >> { %v3161_v14 = vmul.f32 %v5913_v48, %v6367_v27  ;;  %v3162_v15 = vmul.f32 %v5918_v11, %v6367_v27  ;;  %v1483_v21 = vadd.f32 %v5425_v22, %v6240_v60  ;;  %v1486_v45 = vadd.f32 %v5439_v49, %v6243_v35  ;;  %v7990_v25 = vld [vmem:[#allocation128_spill] sm:$0xff]  ;;  %v7992_v22 = vld [vmem:[#allocation10_spill] sm:$0xff]  ;;  %v7993_v49 = vld [vmem:[#allocation11_spill] sm:$0xff] }
 0x253   : >> { %v6426_v36 = vsel %vm1783_vm0, %v1807_v2, %v7983_v0  ;;  %v6428_v1 = vpop.permute.xlu1 %2576  ;;  %v6430_v59 = vpop.permute.xlu0 %2574  ;;  %v1485_v53 = vadd.f32 %v5441_v50, %v6246_v37  ;;  %v1488_v62 = vadd.f32 %v7986_v18, %v6278_v34  ;;  %v1487_v2 = vadd.f32 %v7989_v28, %v6306_v55 }
 0x254   : >> { %7984 = vst [vmem:[#allocation139_spill] sm:$0xff] %v6428_v1  ;;  %7985 = vst [vmem:[#allocation140_spill] sm:$0xff] %v6430_v59  ;;  %v1490_v54 = vadd.f32 %v7991_v12, %v7990_v25  ;;  %v1489_v60 = vadd.f32 %v7992_v22, %v6324_v32  ;;  %v1565_v35 = vadd.f32 %v7993_v49, %v1478_v38  ;;  %v3193_v55 = vrot.slane %v3161_v14, 3  ;;  %v7995_v38 = vld [vmem:[#allocation13_spill] sm:$0xff]  ;;  %v8002_v14 = vld [vmem:[#allocation18_spill] sm:$0xff] }
 0x255   : >> { %3123 = vrot.lane.b32.xlu1 %v3095_v10, %s4473_s26  ;;  %3121 = vrot.lane.b32.xlu0 %v3096_v31, %s4473_s26  ;;  %v7994_v31 = vld [vmem:[#allocation12_spill] sm:$0xff]  ;;  %v3192_v37 = vsel %vm2869_vm2, %v3189_v58, %v3191_v5  ;;  %v3190_v34 = vsel %vm2869_vm2, %v3187_v20, %v3189_v58  ;;  %v3195_v16 = vrot.slane %v3162_v15, 3  ;;  %v3163_v0 = vmul.f32 %v5931_v63, %v6367_v27  ;;  %v8001_v20 = vld [vmem:[#allocation17_spill] sm:$0xff] }
 0x256   : >> { %v1564_v50 = vadd.f32 %v7994_v31, %v1477_v46  ;;  %v3164_v32 = vmul.f32 %v5936_v9, %v6367_v27  ;;  %v1567_v18 = vadd.f32 %v7995_v38, %v1480_v57  ;;  %v7996_v46 = vld [vmem:[#allocation14_spill] sm:$0xff]  ;;  %v1571_v58 = vadd.f32 %v8001_v20, %v1484_v52  ;;  %v8003_v31 = vld [vmem:[#allocation19_spill] sm:$0xff]  ;;  %v8004_v57 = vld [vmem:[#allocation20_spill] sm:$0xff] }
 0x257   : >> { %v6463_v33 = vpop.permute.xlu1 %2580  ;;  %v6465_v10 = vpop.permute.xlu0 %2578  ;;  %v1566_v28 = vadd.f32 %v7996_v46, %v1479_v24  ;;  %v1570_v15 = vadd.f32 %v8002_v14, %v1483_v21  ;;  %v1572_v38 = vadd.f32 %v8004_v57, %v1485_v53  ;;  %v3165_v24 = vmul.f32 %v5828_v51, %v6367_v27  ;;  %v8005_v53 = vld [vmem:[#allocation21_spill] sm:$0xff]  ;;  %v8012_v14 = vld [vmem:[#allocation26_spill] sm:$0xff] }
 0x258   : >> { %7987 = vst [vmem:[#allocation7_spill] sm:$0xff] %v6463_v33  ;;  %7988 = vst [vmem:[#allocation141_spill] sm:$0xff] %v6465_v10  ;;  %v1573_v10 = vadd.f32 %v8003_v31, %v1486_v45  ;;  %v6496_v33 = vstv %s6440_s27  ;;  %v3194_v52 = vsel %vm2869_vm2, %v3191_v5, %v3193_v55  ;;  %v3197_v21 = vrot.slane %v3163_v0, 3  ;;  %v8013_v31 = vld [vmem:[#allocation27_spill] sm:$0xff] }
 0x259   : >> { %3213 = vrot.lane.b32.xlu1 %v3188_v6, %s4474_s29  ;;  %3211 = vrot.lane.b32.xlu0 %v3186_v7, %s4474_s29  ;;  %v7997_v6 = vld [vmem:[#allocation15_spill] sm:$0xff]  ;;  %v7998_v7 = vld [vmem:[#allocation16_spill] sm:$0xff]  ;;  %v3199_v45 = vrot.slane %v3164_v32, 3  ;;  %v1575_v46 = vadd.f32 %v8005_v53, %v1488_v62  ;;  %v6517_v51 = vmul.f32 %v5873_v42, %v6496_v33  ;;  %v6537_v42 = vadd.f32 %v8012_v14, %v1564_v50 }
 0x25a   : >> { %v1569_v25 = vadd.f32 %v7997_v6, %v1482_v39  ;;  %v1568_v12 = vadd.f32 %v7998_v7, %v1481_v29  ;;  %v6505_v39 = vmul.f32 %v5950_v23, %v6367_v27  ;;  %v3196_v29 = vsel %vm2869_vm2, %v3193_v55, %v3195_v16  ;;  %v8009_v55 = vld [vmem:[#allocation23_spill] sm:$0xff]  ;;  %v8010_v32 = vld [vmem:[#allocation24_spill] sm:$0xff] }
 0x25b   : >> { %v6487_v22 = vpop.permute.xlu1 %2670  ;;  %v6489_v49 = vpop.permute.xlu0 %2668  ;;  %v6528_v0 = vadd.f32 %v8009_v55, %v1490_v54  ;;  %v6531_v62 = vadd.f32 %v8010_v32, %v1489_v60  ;;  %v6540_v57 = vadd.f32 %v8013_v31, %v1567_v18  ;;  %v3201_v54 = vrot.slane %v3165_v24, 3 }
 0x25c   : >> { %7999 = vst [vmem:[#allocation8_spill] sm:$0xff] %v6487_v22  ;;  %8000 = vst [vmem:[#allocation128_spill] sm:$0xff] %v6489_v49  ;;  %v3203_v60 = vrot.slane %v6505_v39, 3  ;;  %v3167_v50 = vmul.f32 %v5841_v43, %v6367_v27  ;;  %v3168_v18 = vmul.f32 %v5967_v47, %v6367_v27  ;;  %v2301_v24 = vmul.f32 %v5894_v19, %v6496_v33 }
 0x25d   : >> { %3217 = vrot.lane.b32.xlu1 %v3192_v37, %s4474_s29  ;;  %3215 = vrot.lane.b32.xlu0 %v3190_v34, %s4474_s29  ;;  %v8006_v37 = vld [vmem:[#allocation22_spill] sm:$0xff]  ;;  %v6521_v34 = vmul.f32 %v5878_v8, %v6496_v33  ;;  %v8014_v8 = vld [vmem:[#allocation28_spill] sm:$0xff]  ;;  %v6709_v59 = vmul.f32 %v5967_v47, %v6496_v33 }
 0x25e   : >> { %v6513_v6 = vadd.f32 %v8006_v37, %v1487_v2  ;;  %v8011_v2 = vld [vmem:[#allocation25_spill] sm:$0xff]  ;;  %v6543_v53 = vadd.f32 %v8014_v8, %v1566_v28  ;;  %v3200_v37 = vsel %vm2869_vm2, %v3197_v21, %v3199_v45  ;;  %v2328_v28 = vrot.slane %v6517_v51, 2  ;;  %v8019_v51 = vld [vmem:[#allocation31_spill] sm:$0xff] }
 0x25f   : >> { %v6523_v7 = vpop.permute.xlu1 %2674  ;;  %v6525_v5 = vpop.permute.xlu0 %2672  ;;  %v6534_v20 = vadd.f32 %v8011_v2, %v1565_v35  ;;  %v3198_v35 = vsel %vm2869_vm2, %v3195_v16, %v3197_v21  ;;  %v2330_v55 = vrot.slane %v6521_v34, 2  ;;  %v8018_v21 = vld [vmem:[#allocation30_spill] sm:$0xff]  ;;  %v6571_v2 = vadd.f32 %v8019_v51, %v1571_v58  ;;  %v8024_v51 = vld [vmem:[#allocation33_spill] sm:$0xff] }
 0x260   : >> { %8007 = vst [vmem:[#allocation9_spill] sm:$0xff] %v6523_v7  ;;  %8008 = vst [vmem:[#allocation10_spill] sm:$0xff] %v6525_v5  ;;  %v6568_v32 = vadd.f32 %v8018_v21, %v1568_v12  ;;  %v6577_v34 = vmul.f32 %v5913_v48, %v6496_v33  ;;  %v3204_v19 = vsel %vm2869_vm2, %v3201_v54, %v3203_v60  ;;  %v3205_v14 = vrot.slane %v3167_v50, 3 }
 0x261   : >> { %3221 = vrot.lane.b32.xlu1 %v3196_v29, %s4474_s29  ;;  %3219 = vrot.lane.b32.xlu0 %v3194_v52, %s4474_s29  ;;  %v2298_v29 = vmul.f32 %v5883_v56, %v6496_v33  ;;  %v8017_v52 = vld [vmem:[#allocation29_spill] sm:$0xff]  ;;  %v2302_v56 = vmul.f32 %v5899_v13, %v6496_v33  ;;  %v3202_v58 = vsel %vm2869_vm2, %v3199_v45, %v3201_v54  ;;  %v3207_v31 = vrot.slane %v3168_v18, 3  ;;  %v8021_v13 = vld [vmem:[#allocation32_spill] sm:$0xff]  ;;  %v8025_v18 = vld [vmem:[#allocation34_spill] sm:$0xff] }
 0x262   : >> { %v6565_v43 = vadd.f32 %v8017_v52, %v1569_v25  ;;  %v8020_v25 = vld [vmem:[#allocation73_spill] sm:$0xff]  ;;  %v6588_v8 = vstv %s6509_s30  ;;  %v6591_v48 = vadd.f32 %v8021_v13, %v1570_v15  ;;  %v2332_v52 = vrot.slane %v2301_v24, 2 }
 0x263   : >> { %v6560_v39 = vpop.permute.xlu1 %2678  ;;  %v6562_v16 = vpop.permute.xlu0 %2676  ;;  %v6584_v12 = vmul.f32 %v8020_v25, %v6367_v27  ;;  %v6601_v45 = vadd.f32 %v8024_v51, %v1573_v10  ;;  %v2334_v54 = vrot.slane %v2302_v56, 2  ;;  %v2304_v50 = vmul.f32 %v5918_v11, %v6496_v33  ;;  %v6615_v10 = vld [vmem:[%s5218_s22 + $0x8] sm:$0xff]  ;;  %v6622_v13 = vld [vmem:[%s5218_s22 + $0x10] sm:$0xff] }
 0x264   : >> { %8015 = vst [vmem:[#allocation11_spill] sm:$0xff] %v6560_v39  ;;  %8016 = vst [vmem:[#allocation12_spill] sm:$0xff] %v6562_v16  ;;  %v2305_v15 = vmul.f32 %v5931_v63, %v6496_v33  ;;  %v6608_v25 = vadd.f32 %v8025_v18, %v1572_v38  ;;  %v3271_v56 = vmul.f32 %v6615_v10, %v6588_v8 }
 0x265   : >> { %3225 = vrot.lane.b32.xlu1 %v3200_v37, %s4474_s29  ;;  %3223 = vrot.lane.b32.xlu0 %v3198_v35, %s4474_s29  ;;  %v6594_v37 = vsel %vm2326_vm1, %v2328_v28, %v2330_v55  ;;  %v2327_v35 = vrot.slane %v2298_v29, 2  ;;  %v2336_v29 = vrot.slane %v6577_v34, 2  ;;  %v3209_v24 = vrot.slane %v6584_v12, 3  ;;  %v6629_v34 = vld [vmem:[%s5218_s22] sm:$0xff] }
 0x266   : >> { %v3208_v11 = vsel %vm2869_vm2, %v3205_v14, %v3207_v31  ;;  %v3206_v63 = vsel %vm2869_vm2, %v3203_v60, %v3205_v14  ;;  %v6626_v38 = vmul.f32 %v6622_v13, %v6588_v8  ;;  %v8026_v12 = vld [vmem:[#allocation35_spill] sm:$0xff]  ;;  %v6640_v18 = vsel %vm2326_vm1, %v2330_v55, %v2332_v52 }
 0x267   : >> { %v6596_v21 = vpop.permute.xlu1 %2682  ;;  %v6598_v27 = vpop.permute.xlu0 %2680  ;;  %v6637_v51 = vsel %vm2326_vm1, %v2327_v35, %v2328_v28  ;;  %8027 = vst [vmem:[#allocation15_spill] sm:$0xff] %v6640_v18  ;;  %v6644_v60 = vmul.f32 %v5936_v9, %v6496_v33  ;;  %v6655_v28 = vsel %vm2326_vm1, %v2332_v52, %v2334_v54  ;;  %v2338_v35 = vrot.slane %v2304_v50, 2  ;;  %v8052_v18 = vld [vmem:[#allocation136_spill] sm:$0xff] }
 0x268   : >> { %8022 = vst [vmem:[#allocation13_spill] sm:$0xff] %v6596_v21  ;;  %8023 = vst [vmem:[#allocation14_spill] sm:$0xff] %v6598_v27  ;;  %v8030_v21 = vld [vmem:[#allocation36_spill] sm:$0xff]  ;;  %v2340_v55 = vrot.slane %v2305_v15, 2  ;;  %v6662_v9 = vsel %vm2326_vm1, %v2334_v54, %v2336_v29  ;;  %v3301_v52 = vrot.slane %v6626_v38, 3  ;;  %v6674_v15 = vld [vmem:[%s5218_s22 + $0x20] sm:$0xff] }
 0x269   : >> { %3229 = vrot.lane.b32.xlu1 %v3204_v19, %s4474_s29  ;;  %3227 = vrot.lane.b32.xlu0 %v3202_v58, %s4474_s29  ;;  %v3270_v19 = vmul.f32 %v6629_v34, %v6588_v8  ;;  %v6634_v58 = vadd.f32 %v8026_v12, %v1575_v46  ;;  %v6652_v46 = vadd.f32 %v8030_v21, %v6513_v6  ;;  %v8032_v12 = vld [vmem:[#allocation37_spill] sm:$0xff]  ;;  %v3299_v21 = vrot.slane %v3271_v56, 3 }
 0x26a   : >> { %8031 = vst [vmem:[#allocation18_spill] sm:$0xff] %v6655_v28  ;;  %v6659_v16 = vadd.f32 %v8032_v12, %v6528_v0  ;;  %8033 = vst [vmem:[#allocation19_spill] sm:$0xff] %v6662_v9  ;;  %v3210_v6 = vsel %vm2869_vm2, %v3207_v31, %v3209_v24  ;;  %v6678_v54 = vmul.f32 %v6674_v15, %v6588_v8  ;;  %v2342_v56 = vrot.slane %v6644_v60, 2  ;;  %v6703_v60 = vld [vmem:[%s5218_s22 + $0x58] sm:$0xff] }
 0x26b   : >> { %v6646_v14 = vpop.permute.xlu1 %2686  ;;  %v6648_v27 = vpop.permute.xlu0 %2684  ;;  %v3298_v50 = vrot.slane %v3270_v19, 3  ;;  %v2308_v19 = vmul.f32 %v5950_v23, %v6496_v33  ;;  %v6697_v39 = vsel %vm2326_vm1, %v2336_v29, %v2338_v35  ;;  %v8039_v23 = vld [vmem:[#allocation39_spill] sm:$0xff]  ;;  %v6716_v29 = vld [vmem:[%s5218_s22 + $0x28] sm:$0xff]  ;;  %v3302_v47 = vsel %vm2869_vm2, %v3299_v21, %v3301_v52 }
 0x26c   : >> { %8028 = vst [vmem:[#allocation16_spill] sm:$0xff] %v6646_v14  ;;  %8029 = vst [vmem:[#allocation17_spill] sm:$0xff] %v6648_v27  ;;  %v6669_v27 = vld [vmem:[%s5218_s22 + $0x18] sm:$0xff]  ;;  %v6733_v7 = vsel %vm2326_vm1, %v2340_v55, %v2342_v56 }
 0x26d   : >> { %3233 = vrot.lane.b32.xlu1 %v3208_v11, %s4474_s29  ;;  %3231 = vrot.lane.b32.xlu0 %v3206_v63, %s4474_s29  ;;  %v3273_v0 = vmul.f32 %v6669_v27, %v6588_v8  ;;  %v8034_v11 = vld [vmem:[#allocation38_spill] sm:$0xff]  ;;  %v6686_v63 = vld [vmem:[%s5218_s22 + $0x48] sm:$0xff]  ;;  %8037 = vst [vmem:[#allocation22_spill] sm:$0xff] %v6697_v39  ;;  %8041 = vst [vmem:[#allocation24_spill] sm:$0xff] %v6733_v7  ;;  %v2346_v22 = vrot.slane %v2308_v19, 2 }
 0x26e   : >> { %v6682_v31 = vadd.f32 %v8034_v11, %v6531_v62  ;;  %v2307_v38 = vmul.f32 %v6686_v63, %v6496_v33  ;;  %v6700_v62 = vsel %vm2326_vm1, %v2338_v35, %v2340_v55  ;;  %v2309_v11 = vmul.f32 %v6703_v60, %v6496_v33  ;;  %v8044_v39 = vld [vmem:[#allocation41_spill] sm:$0xff] }
 0x26f   : >> { %v6692_v12 = vpop.permute.xlu1 %2690  ;;  %v6694_v14 = vpop.permute.xlu0 %2688  ;;  %8038 = vst [vmem:[#allocation23_spill] sm:$0xff] %v6700_v62  ;;  %v3275_v35 = vmul.f32 %v6716_v29, %v6588_v8 }
 0x270   : >> { %8035 = vst [vmem:[#allocation20_spill] sm:$0xff] %v6692_v12  ;;  %8036 = vst [vmem:[#allocation21_spill] sm:$0xff] %v6694_v14  ;;  %v1739_v12 = vadd.f32 %v8039_v23, %v6534_v20  ;;  %v6721_v14 = vld [vmem:[%s5218_s22 + $0x30] sm:$0xff]  ;;  %v3300_v20 = vsel %vm2869_vm2, %v3298_v50, %v3299_v21  ;;  %v3303_v23 = vrot.slane %v3273_v0, 3  ;;  %v2344_v49 = vrot.slane %v2307_v38, 2  ;;  %v8045_v50 = vld [vmem:[#allocation42_spill] sm:$0xff] }
 0x271   : >> { %3237 = vrot.lane.b32.xlu1 %v3209_v24, %s4474_s29  ;;  %3235 = vrot.lane.b32.xlu0 %v3210_v6, %s4474_s29  ;;  %v6725_v1 = vmul.f32 %v6721_v14, %v6588_v8  ;;  %v3305_v24 = vrot.slane %v6678_v54, 3  ;;  %v8040_v6 = vld [vmem:[#allocation40_spill] sm:$0xff]  ;;  %v1741_v21 = vadd.f32 %v8044_v39, %v6540_v57  ;;  %v1740_v0 = vadd.f32 %v8045_v50, %v6543_v53  ;;  %v6765_v50 = vld [vmem:[%s5218_s22 + $0x40] sm:$0xff] }
 0x272   : >> { %v1738_v5 = vadd.f32 %v8040_v6, %v6537_v42  ;;  %v2348_v54 = vrot.slane %v2309_v11, 2  ;;  %v2350_v42 = vrot.slane %v6709_v59, 2  ;;  %v8046_v6 = vld [vmem:[#allocation129_spill] sm:$0xff]  ;;  %v6748_v38 = vld [vmem:[%s5218_s22 + $0x68] sm:$0x7f]  ;;  %v3307_v57 = vrot.slane %v3275_v35, 3 }
 0x273   : >> { %v6735_v62 = vpop.permute.xlu1 %2694  ;;  %v6737_v9 = vpop.permute.xlu0 %2692  ;;  %v6745_v55 = vadd.f32 %v8046_v6, %v1739_v12  ;;  %v6752_v19 = vmul.f32 %v6748_v38, %v6496_v33  ;;  %v3309_v39 = vrot.slane %v6725_v1, 3  ;;  %v3306_v53 = vsel %vm2869_vm2, %v3303_v23, %v3305_v24  ;;  %v6760_v12 = vld [vmem:[%s5218_s22 + $0x38] sm:$0xff]  ;;  %v8047_v35 = vld [vmem:[#allocation43_spill] sm:$0xff] }
 0x274   : >> { %8042 = vst [vmem:[#allocation25_spill] sm:$0xff] %v6735_v62  ;;  %8043 = vst [vmem:[#allocation26_spill] sm:$0xff] %v6737_v9  ;;  %v3304_v59 = vsel %vm2869_vm2, %v3301_v52, %v3303_v23  ;;  %v3277_v11 = vmul.f32 %v6760_v12, %v6588_v8  ;;  %v6769_v33 = vmul.f32 %v6765_v50, %v6588_v8  ;;  %v8048_v1 = vld [vmem:[#allocation130_spill] sm:$0xff]  ;;  %v8051_v62 = vld [vmem:[#allocation44_spill] sm:$0xff] }
 0x275   : >> { %3327 = vrot.lane.b32.xlu1 %v3302_v47, %s4475_s5  ;;  %3325 = vrot.lane.b32.xlu0 %v3300_v20, %s4475_s5  ;;  %v1743_v47 = vadd.f32 %v8047_v35, %v6565_v43  ;;  %v6774_v20 = vadd.f32 %v8048_v1, %v1738_v5  ;;  %v6777_v6 = vsel %vm2326_vm1, %v2344_v49, %v2346_v22  ;;  %v8053_v43 = vld [vmem:[#allocation133_spill] sm:$0xff] }
 0x276   : >> { %v6780_v52 = vsel %vm2326_vm1, %v2342_v56, %v2344_v49  ;;  %v1742_v7 = vadd.f32 %v8051_v62, %v6568_v32  ;;  %v1828_v28 = vadd.f32 %v8052_v18, %v1741_v21  ;;  %v1827_v35 = vadd.f32 %v8053_v43, %v1740_v0  ;;  %v6806_v0 = vld [vmem:[%s5218_s22 + $0x50] sm:$0xff] }
 0x277   : >> { %v6782_v23 = vpop.permute.xlu1 %2784  ;;  %v6784_v9 = vpop.permute.xlu0 %2782  ;;  %v6791_v5 = vsel %vm2326_vm1, %v2348_v54, %v2350_v42  ;;  %v6795_v1 = vsel %vm2326_vm1, %v2346_v22, %v2348_v54  ;;  %v3310_v56 = vsel %vm2869_vm2, %v3307_v57, %v3309_v39  ;;  %v3308_v32 = vsel %vm2869_vm2, %v3305_v24, %v3307_v57  ;;  %v8055_v54 = vld [vmem:[#allocation45_spill] sm:$0xff]  ;;  %v8057_v24 = vld [vmem:[#allocation47_spill] sm:$0xff] }
 0x278   : >> { %8049 = vst [vmem:[#allocation27_spill] sm:$0xff] %v6782_v23  ;;  %8050 = vst [vmem:[#allocation28_spill] sm:$0xff] %v6784_v9  ;;  %v3311_v18 = vrot.slane %v3277_v11, 3  ;;  %v3313_v62 = vrot.slane %v6769_v33, 3  ;;  %v3279_v21 = vmul.f32 %v6686_v63, %v6588_v8  ;;  %v3280_v22 = vmul.f32 %v6806_v0, %v6588_v8  ;;  %v8059_v9 = vld [vmem:[#allocation48_spill] sm:$0xff] }
 0x279   : >> { %8054 = vst [vmem:[#allocation29_spill] sm:$0xff] %v6795_v1  ;;  %3331 = vrot.lane.b32.xlu1 %v3306_v53, %s4475_s5  ;;  %3329 = vrot.lane.b32.xlu0 %v3304_v59, %s4475_s5  ;;  %v1745_v53 = vadd.f32 %v8055_v54, %v6571_v2  ;;  %v8056_v59 = vld [vmem:[#allocation46_spill] sm:$0xff]  ;;  %v1747_v57 = vadd.f32 %v8057_v24, %v6601_v45  ;;  %v8060_v1 = vld [vmem:[#allocation49_spill] sm:$0xff] }
 0x27a   : >> { %v1744_v43 = vadd.f32 %v8056_v59, %v6591_v48  ;;  %v1830_v11 = vadd.f32 %v6383_v17, %v1743_v47  ;;  %v1746_v23 = vadd.f32 %v8059_v9, %v6608_v25  ;;  %v1749_v2 = vadd.f32 %v8060_v1, %v6634_v58  ;;  %v8061_v54 = vld [vmem:[#allocation50_spill] sm:$0xff]  ;;  %v8062_v59 = vld [vmem:[#allocation51_spill] sm:$0xff]  ;;  %v8063_v17 = vld [vmem:[#allocation52_spill] sm:$0xff] }
 0x27b   : >> { %v6817_v33 = vpop.permute.xlu1 %2788  ;;  %v6819_v49 = vpop.permute.xlu0 %2786  ;;  %v1748_v48 = vadd.f32 %v8061_v54, %v6652_v46  ;;  %v1751_v45 = vadd.f32 %v8062_v59, %v6659_v16  ;;  %v1750_v47 = vadd.f32 %v8063_v17, %v6682_v31  ;;  %v3281_v24 = vmul.f32 %v6703_v60, %v6588_v8  ;;  %v6838_v25 = vld [vmem:[%s5218_s22 + $0x60] sm:$0xff] }
 0x27c   : >> { %8058 = vst [vmem:[#allocation30_spill] sm:$0xff] %v6819_v49  ;;  %v6842_v58 = vmul.f32 %v6838_v25, %v6588_v8  ;;  %v3314_v46 = vsel %vm2869_vm2, %v3311_v18, %v3313_v62  ;;  %v3312_v16 = vsel %vm2869_vm2, %v3309_v39, %v3311_v18  ;;  %v3315_v9 = vrot.slane %v3279_v21, 3 }
 0x27d   : >> { %3335 = vrot.lane.b32.xlu1 %v3310_v56, %s4475_s5  ;;  %3333 = vrot.lane.b32.xlu0 %v3308_v32, %s4475_s5  ;;  %v3317_v1 = vrot.slane %v3280_v22, 3  ;;  %v1829_v31 = vadd.f32 %v6391_v41, %v1742_v7  ;;  %v1832_v56 = vadd.f32 %v6394_v26, %v1745_v53  ;;  %v1831_v32 = vadd.f32 %v6397_v44, %v1744_v43  ;;  %v8070_v53 = vld [vmem:[#allocation55_spill] sm:$0xff] }
 0x27e   : >> { %v8064_v54 = vrot.slane %v6752_v19, 2  ;;  %v1834_v39 = vadd.f32 %v6400_v40, %v1747_v57  ;;  %v1833_v18 = vadd.f32 %v6403_v3, %v1746_v23  ;;  %v1836_v41 = vadd.f32 %v6418_v30, %v1749_v2  ;;  %v8068_v40 = vld [vmem:[#allocation53_spill] sm:$0xff]  ;;  %v8071_v57 = vld [vmem:[#allocation56_spill] sm:$0xff] }
 0x27f   : >> { %v6854_v17 = vpop.permute.xlu1 %2792  ;;  %v6856_v49 = vpop.permute.xlu0 %2790  ;;  %v1835_v7 = vadd.f32 %v6421_v4, %v1748_v48  ;;  %v8067_v26 = vrot.slane %v6360_v61, 1  ;;  %v1837_v21 = vadd.f32 %v6426_v36, %v1750_v47  ;;  %v3321_v22 = vrot.slane %v6842_v58, 3  ;;  %v8069_v36 = vld [vmem:[#allocation54_spill] sm:$0xff] }
 0x280   : >> { %v6852_v59 = vsel %vm2326_vm1, %v2350_v42, %v8064_v54  ;;  %8065 = vst [vmem:[#allocation31_spill] sm:$0xff] %v6854_v17  ;;  %8066 = vst [vmem:[#allocation73_spill] sm:$0xff] %v6856_v49  ;;  %v3319_v42 = vrot.slane %v3281_v24, 3  ;;  %v1940_v3 = vadd.f32 %v8068_v40, %v6745_v55  ;;  %v3318_v30 = vsel %vm2869_vm2, %v3315_v9, %v3317_v1  ;;  %v8074_v55 = vld [vmem:[#allocation57_spill] sm:$0xff]  ;;  %v8075_v58 = vld [vmem:[#allocation58_spill] sm:$0xff] }
 0x281   : >> { %v1838_v44 = vadd.f32 %v8067_v26, %v1751_v45  ;;  %3339 = vrot.lane.b32.xlu1 %v3314_v46, %s4475_s5  ;;  %3337 = vrot.lane.b32.xlu0 %v3312_v16, %s4475_s5  ;;  %v3316_v4 = vsel %vm2869_vm2, %v3313_v62, %v3315_v9  ;;  %v3283_v61 = vmul.f32 %v6748_v38, %v6588_v8  ;;  %v6884_v47 = vstv %s6821_s6  ;;  %v8076_v46 = vld [vmem:[#allocation59_spill] sm:$0xff]  ;;  %v8077_v8 = vld [vmem:[#allocation60_spill] sm:$0xff]  ;;  %v8089_v49 = vld [vmem:[#allocation70_spill] sm:$0xff] }
 0x282   : >> { %v1939_v23 = vadd.f32 %v8069_v36, %v6774_v20  ;;  %v1942_v43 = vadd.f32 %v8070_v53, %v1828_v28  ;;  %v1941_v2 = vadd.f32 %v8071_v57, %v1827_v35  ;;  %v1944_v24 = vadd.f32 %v8074_v55, %v1830_v11  ;;  %v8078_v20 = vld [vmem:[#allocation61_spill] sm:$0xff]  ;;  %v8080_v40 = vld [vmem:[#allocation63_spill] sm:$0xff]  ;;  %v8081_v36 = vld [vmem:[#allocation64_spill] sm:$0xff] }
 0x283   : >> { %v6879_v48 = vpop.permute.xlu1 %2796  ;;  %v6881_v45 = vpop.permute.xlu0 %2794  ;;  %v1943_v62 = vadd.f32 %v8075_v58, %v1829_v31  ;;  %v1946_v16 = vadd.f32 %v8076_v46, %v1832_v56  ;;  %v1945_v9 = vadd.f32 %v8077_v8, %v1831_v32  ;;  %v1948_v28 = vadd.f32 %v8078_v20, %v1834_v39  ;;  %v8079_v32 = vld [vmem:[#allocation62_spill] sm:$0xff]  ;;  %v8082_v53 = vld [vmem:[#allocation65_spill] sm:$0xff]  ;;  %v8086_v58 = vld [vmem:[#allocation67_spill] sm:$0xff] }
 0x284   : >> { %8072 = vst [vmem:[#allocation32_spill] sm:$0xff] %v6879_v48  ;;  %8073 = vst [vmem:[#allocation33_spill] sm:$0xff] %v6881_v45  ;;  %v3322_v35 = vsel %vm2869_vm2, %v3319_v42, %v3321_v22  ;;  %v3320_v54 = vsel %vm2869_vm2, %v3317_v1, %v3319_v42  ;;  %v3323_v26 = vrot.slane %v3283_v61, 3  ;;  %v3472_v11 = vmul.f32 %v6615_v10, %v6884_v47  ;;  %v8085_v42 = vld [vmem:[#allocation66_spill] sm:$0xff]  ;;  %v8087_v8 = vld [vmem:[#allocation68_spill] sm:$0xff] }
 0x285   : >> { %3343 = vrot.lane.b32.xlu1 %v3318_v30, %s4475_s5  ;;  %3341 = vrot.lane.b32.xlu0 %v3316_v4, %s4475_s5  ;;  %v3473_v31 = vmul.f32 %v6622_v13, %v6884_v47  ;;  %v3471_v56 = vmul.f32 %v6629_v34, %v6884_v47  ;;  %v1947_v39 = vadd.f32 %v8079_v32, %v1833_v18  ;;  %v8088_v45 = vld [vmem:[#allocation69_spill] sm:$0xff] }
 0x286   : >> { %v1950_v30 = vadd.f32 %v8080_v40, %v1836_v41  ;;  %v1949_v4 = vadd.f32 %v8081_v36, %v1835_v7  ;;  %v1952_v57 = vadd.f32 %v8082_v53, %v1838_v44  ;;  %v1951_v61 = vadd.f32 %v8085_v42, %v1837_v21  ;;  %v8095_v36 = vld [vmem:[#allocation75_spill] sm:$0xff]  ;;  %v8096_v42 = vld [vmem:[#allocation76_spill] sm:$0xff] }
 0x287   : >> { %v6907_v55 = vpop.permute.xlu1 %2800  ;;  %v6909_v1 = vpop.permute.xlu0 %2798  ;;  %v2054_v46 = vadd.f32 %v8086_v58, %v1940_v3  ;;  %v2053_v20 = vadd.f32 %v8087_v8, %v1939_v23  ;;  %v2056_v48 = vadd.f32 %v8088_v45, %v1942_v43  ;;  %v2055_v18 = vadd.f32 %v8089_v49, %v1941_v2  ;;  %v8090_v43 = vld [vmem:[#allocation71_spill] sm:$0xff]  ;;  %v8091_v49 = vld [vmem:[#allocation72_spill] sm:$0xff]  ;;  %v8097_v8 = vld [vmem:[#allocation77_spill] sm:$0xff] }
 0x288   : >> { %8083 = vst [vmem:[#allocation34_spill] sm:$0xff] %v6907_v55  ;;  %8084 = vst [vmem:[#allocation35_spill] sm:$0xff] %v6909_v1  ;;  %v3474_v41 = vmul.f32 %v6669_v27, %v6884_v47  ;;  %v6922_v7 = vmul.f32 %v6674_v15, %v6884_v47  ;;  %v3324_v44 = vsel %vm2869_vm2, %v3321_v22, %v3323_v26  ;;  %v3500_v21 = vrot.slane %v3472_v11, 4 }
 0x289   : >> { %3347 = vrot.lane.b32.xlu1 %v3322_v35, %s4475_s5  ;;  %3345 = vrot.lane.b32.xlu0 %v3320_v54, %s4475_s5  ;;  %v3502_v3 = vrot.slane %v3473_v31, 4  ;;  %v3499_v23 = vrot.slane %v3471_v56, 4  ;;  %v2058_v45 = vadd.f32 %v8090_v43, %v1944_v24  ;;  %v2057_v2 = vadd.f32 %v8091_v49, %v1943_v62  ;;  %v8092_v35 = vld [vmem:[#allocation74_spill] sm:$0xff]  ;;  %v8099_v24 = vld [vmem:[#allocation79_spill] sm:$0xff]  ;;  %v8100_v49 = vld [vmem:[#allocation80_spill] sm:$0xff] }
 0x28a   : >> { %v2060_v32 = vadd.f32 %v8092_v35, %v1946_v16  ;;  %v2059_v53 = vadd.f32 %v8095_v36, %v1945_v9  ;;  %v2062_v58 = vadd.f32 %v8096_v42, %v1948_v28  ;;  %v2061_v22 = vadd.f32 %v8097_v8, %v1947_v39  ;;  %v8098_v31 = vld [vmem:[#allocation78_spill] sm:$0xff]  ;;  %v8101_v35 = vld [vmem:[#allocation81_spill] sm:$0xff]  ;;  %v8105_v42 = vld [vmem:[#allocation83_spill] sm:$0xff] }
 0x28b   : >> { %v6928_v54 = vpop.permute.xlu1 %2804  ;;  %v6930_v40 = vpop.permute.xlu0 %2802  ;;  %v6936_v11 = vstv %s6890_s8  ;;  %v2064_v56 = vadd.f32 %v8098_v31, %v1950_v30  ;;  %v6940_v43 = vadd.f32 %v8099_v24, %v1949_v4  ;;  %v3504_v62 = vrot.slane %v3474_v41, 4 }
 0x28c   : >> { %8093 = vst [vmem:[#allocation36_spill] sm:$0xff] %v6928_v54  ;;  %8094 = vst [vmem:[#allocation37_spill] sm:$0xff] %v6930_v40  ;;  %v3506_v16 = vrot.slane %v6922_v7, 4  ;;  %v3503_v9 = vsel %vm3412_vm3, %v3500_v21, %v3502_v3  ;;  %v3501_v28 = vsel %vm3412_vm3, %v3499_v23, %v3500_v21  ;;  %v3476_v39 = vmul.f32 %v6716_v29, %v6884_v47  ;;  %v8104_v23 = vld [vmem:[#allocation82_spill] sm:$0xff] }
 0x28d   : >> { %3351 = vrot.lane.b32.xlu1 %v3323_v26, %s4475_s5  ;;  %3349 = vrot.lane.b32.xlu0 %v3324_v44, %s4475_s5  ;;  %v3477_v30 = vmul.f32 %v6721_v14, %v6884_v47  ;;  %v6952_v4 = vadd.f32 %v8100_v49, %v1952_v57  ;;  %v6955_v26 = vadd.f32 %v8101_v35, %v1951_v61  ;;  %v8106_v57 = vld [vmem:[#allocation84_spill] sm:$0xff] }
 0x28e   : >> { %v2842_v7 = vmul.f32 %v6615_v10, %v6936_v11  ;;  %v2843_v21 = vmul.f32 %v6622_v13, %v6936_v11  ;;  %v6966_v36 = vadd.f32 %v8104_v23, %v2054_v46  ;;  %v6969_v8 = vadd.f32 %v8105_v42, %v2053_v20  ;;  %v8107_v42 = vld [vmem:[#allocation85_spill] sm:$0xff] }
 0x28f   : >> { %v6957_v44 = vpop.permute.xlu1 %2808  ;;  %v6959_v41 = vpop.permute.xlu0 %2806  ;;  %v6972_v31 = vadd.f32 %v8106_v57, %v2056_v48  ;;  %v2841_v61 = vmul.f32 %v6629_v34, %v6936_v11  ;;  %v3507_v24 = vsel %vm3412_vm3, %v3504_v62, %v3506_v16  ;;  %v3505_v49 = vsel %vm3412_vm3, %v3502_v3, %v3504_v62  ;;  %v8110_v62 = vld [vmem:[#allocation86_spill] sm:$0xff] }
 0x290   : >> { %8102 = vst [vmem:[#allocation38_spill] sm:$0xff] %v6957_v44  ;;  %8103 = vst [vmem:[#allocation39_spill] sm:$0xff] %v6959_v41  ;;  %v2844_v46 = vmul.f32 %v6669_v27, %v6936_v11  ;;  %v3508_v20 = vrot.slane %v3476_v39, 4  ;;  %v3510_v35 = vrot.slane %v3477_v30, 4  ;;  %v3478_v48 = vmul.f32 %v6760_v12, %v6884_v47  ;;  %v8111_v30 = vld [vmem:[#allocation87_spill] sm:$0xff] }
 0x291   : >> { %3528 = vrot.lane.b32.xlu1 %v3503_v9, %s4472_s23  ;;  %3526 = vrot.lane.b32.xlu0 %v3501_v28, %s4472_s23  ;;  %v3479_v23 = vmul.f32 %v6765_v50, %v6884_v47  ;;  %v6987_v57 = vadd.f32 %v8107_v42, %v2055_v18  ;;  %v2871_v9 = vrot.slane %v2842_v7, 3  ;;  %v2873_v28 = vrot.slane %v2843_v21, 3  ;;  %v8112_v7 = vld [vmem:[#allocation88_spill] sm:$0xff] }
 0x292   : >> { %v2845_v3 = vmul.f32 %v6674_v15, %v6936_v11  ;;  %v6997_v39 = vadd.f32 %v8110_v62, %v2058_v45  ;;  %v7000_v40 = vadd.f32 %v8111_v30, %v2057_v2  ;;  %v2870_v54 = vrot.slane %v2841_v61, 3 }
 0x293   : >> { %v6989_v41 = vpop.permute.xlu1 %2985  ;;  %v6991_v44 = vpop.permute.xlu0 %2983  ;;  %v2846_v18 = vmul.f32 %v6716_v29, %v6936_v11  ;;  %v7005_v21 = vadd.f32 %v8112_v7, %v2060_v32  ;;  %v2875_v42 = vrot.slane %v2844_v46, 3  ;;  %v3480_v1 = vmul.f32 %v6686_v63, %v6884_v47  ;;  %v8113_v32 = vld [vmem:[#allocation89_spill] sm:$0xff] }
 0x294   : >> { %8108 = vst [vmem:[#allocation40_spill] sm:$0xff] %v6989_v41  ;;  %8109 = vst [vmem:[#allocation41_spill] sm:$0xff] %v6991_v44  ;;  %v7013_v45 = vmul.f32 %v6806_v0, %v6884_v47  ;;  %v3511_v2 = vsel %vm3412_vm3, %v3508_v20, %v3510_v35  ;;  %v3509_v61 = vsel %vm3412_vm3, %v3506_v16, %v3508_v20  ;;  %v3512_v62 = vrot.slane %v3478_v48, 4  ;;  %v8117_v16 = vld [vmem:[#allocation90_spill] sm:$0xff]  ;;  %v8118_v48 = vld [vmem:[#allocation91_spill] sm:$0xff] }
 0x295   : >> { %3532 = vrot.lane.b32.xlu1 %v3507_v24, %s4472_s23  ;;  %3530 = vrot.lane.b32.xlu0 %v3505_v49, %s4472_s23  ;;  %v3514_v30 = vrot.slane %v3479_v23, 4  ;;  %v7020_v24 = vadd.f32 %v8113_v32, %v2059_v53  ;;  %v7023_v49 = vsel %vm2869_vm2, %v2871_v9, %v2873_v28  ;;  %v2877_v46 = vrot.slane %v2845_v3, 3  ;;  %v8120_v44 = vld [vmem:[#allocation92_spill] sm:$0xff] }
 0x296   : >> { %8114 = vst [vmem:[#allocation42_spill] sm:$0xff] %v7023_v49  ;;  %v7031_v17 = vmul.f32 %v6721_v14, %v6936_v11  ;;  %v7034_v20 = vadd.f32 %v8117_v16, %v2062_v58  ;;  %v7037_v23 = vadd.f32 %v8118_v48, %v2061_v22  ;;  %v7040_v53 = vsel %vm2869_vm2, %v2870_v54, %v2871_v9 }
 0x297   : >> { %v7025_v7 = vpop.permute.xlu1 %2989  ;;  %v7027_v55 = vpop.permute.xlu0 %2987  ;;  %8119 = vst [vmem:[#allocation130_spill] sm:$0xff] %v7040_v53  ;;  %v2879_v32 = vrot.slane %v2846_v18, 3  ;;  %v7043_v3 = vadd.f32 %v8120_v44, %v2064_v56  ;;  %v3518_v58 = vrot.slane %v7013_v45, 4  ;;  %v3515_v22 = vsel %vm3412_vm3, %v3512_v62, %v3514_v30  ;;  %v8122_v44 = vld [vmem:[#allocation93_spill] sm:$0xff] }
 0x298   : >> { %8115 = vst [vmem:[#allocation129_spill] sm:$0xff] %v7025_v7  ;;  %8116 = vst [vmem:[#allocation43_spill] sm:$0xff] %v7027_v55  ;;  %v7046_v7 = vsel %vm2869_vm2, %v2873_v28, %v2875_v42  ;;  %v3516_v55 = vrot.slane %v3480_v1, 4  ;;  %v3513_v16 = vsel %vm3412_vm3, %v3510_v35, %v3512_v62  ;;  %v3482_v54 = vmul.f32 %v6703_v60, %v6884_v47 }
 0x299   : >> { %8121 = vst [vmem:[#allocation44_spill] sm:$0xff] %v7046_v7  ;;  %3536 = vrot.lane.b32.xlu1 %v3511_v2, %s4472_s23  ;;  %3534 = vrot.lane.b32.xlu0 %v3509_v61, %s4472_s23  ;;  %v3483_v56 = vmul.f32 %v6838_v25, %v6884_v47  ;;  %v7059_v9 = vadd.f32 %v8122_v44, %v6940_v43  ;;  %v2881_v1 = vrot.slane %v7031_v17, 3  ;;  %v8126_v2 = vld [vmem:[#allocation94_spill] sm:$0xff] }
 0x29a   : >> { %v7062_v28 = vsel %vm2869_vm2, %v2875_v42, %v2877_v46  ;;  %v2848_v35 = vmul.f32 %v6760_v12, %v6936_v11  ;;  %v7073_v61 = vadd.f32 %v8126_v2, %v6952_v4  ;;  %v7076_v43 = vsel %vm2869_vm2, %v2877_v46, %v2879_v32 }
 0x29b   : >> { %8123 = vst [vmem:[#allocation136_spill] sm:$0xff] %v7062_v28  ;;  %v7065_v18 = vpop.permute.xlu1 %2993  ;;  %v7067_v45 = vpop.permute.xlu0 %2991  ;;  %8127 = vst [vmem:[#allocation46_spill] sm:$0xff] %v7076_v43  ;;  %v2849_v42 = vmul.f32 %v6765_v50, %v6936_v11  ;;  %v2850_v17 = vmul.f32 %v6686_v63, %v6936_v11  ;;  %v3519_v62 = vsel %vm3412_vm3, %v3516_v55, %v3518_v58  ;;  %v3520_v44 = vrot.slane %v3482_v54, 4 }
 0x29c   : >> { %8124 = vst [vmem:[#allocation133_spill] sm:$0xff] %v7065_v18  ;;  %8125 = vst [vmem:[#allocation45_spill] sm:$0xff] %v7067_v45  ;;  %v2851_v48 = vmul.f32 %v6806_v0, %v6936_v11  ;;  %v3484_v4 = vmul.f32 %v6748_v38, %v6884_v47  ;;  %v3517_v46 = vsel %vm3412_vm3, %v3514_v30, %v3516_v55  ;;  %v3522_v2 = vrot.slane %v3483_v56, 4  ;;  %v8128_v18 = vld [vmem:[#allocation95_spill] sm:$0xff]  ;;  %v8133_v30 = vld [vmem:[#allocation96_spill] sm:$0xff] }
 0x29d   : >> { %3540 = vrot.lane.b32.xlu1 %v3515_v22, %s4472_s23  ;;  %3538 = vrot.lane.b32.xlu0 %v3513_v16, %s4472_s23  ;;  %v7091_v45 = vstv %s7017_s12  ;;  %v7095_v43 = vadd.f32 %v8128_v18, %v6955_v26  ;;  %v7098_v22 = vsel %vm2869_vm2, %v2879_v32, %v2881_v1  ;;  %v2852_v47 = vmul.f32 %v6703_v60, %v6936_v11  ;;  %v8134_v26 = vld [vmem:[#allocation97_spill] sm:$0xff] }
 0x29e   : >> { %8129 = vst [vmem:[#allocation47_spill] sm:$0xff] %v7098_v22  ;;  %v7108_v55 = vmul.f32 %v6838_v25, %v6936_v11  ;;  %v2282_v54 = vadd.f32 %v8133_v30, %v6966_v36  ;;  %v2281_v56 = vadd.f32 %v8134_v26, %v6969_v8  ;;  %v2883_v18 = vrot.slane %v2848_v35, 3  ;;  %v8135_v35 = vld [vmem:[#allocation98_spill] sm:$0xff] }
 0x29f   : >> { %v7100_v16 = vpop.permute.xlu1 %2997  ;;  %v7102_v7 = vpop.permute.xlu0 %2995  ;;  %v2885_v32 = vrot.slane %v2849_v42, 3  ;;  %v3524_v22 = vrot.slane %v3484_v4, 4  ;;  %v3586_v28 = vmul.f32 %v6615_v10, %v7091_v45  ;;  %v3523_v41 = vsel %vm3412_vm3, %v3520_v44, %v3522_v2 }
 0x2a0   : >> { %8130 = vst [vmem:[#allocation48_spill] sm:$0xff] %v7100_v16  ;;  %8131 = vst [vmem:[#allocation49_spill] sm:$0xff] %v7102_v7  ;;  %v2887_v7 = vrot.slane %v2850_v17, 3  ;;  %v2889_v16 = vrot.slane %v2851_v48, 3  ;;  %v3521_v53 = vsel %vm3412_vm3, %v3518_v58, %v3520_v44  ;;  %v3587_v36 = vmul.f32 %v6622_v13, %v7091_v45  ;;  %v8136_v17 = vld [vmem:[#allocation99_spill] sm:$0xff] }
 0x2a1   : >> { %8132 = vst [vmem:[#allocation50_spill] sm:$0xff] %v7108_v55  ;;  %3544 = vrot.lane.b32.xlu1 %v3519_v62, %s4472_s23  ;;  %3542 = vrot.lane.b32.xlu0 %v3517_v46, %s4472_s23  ;;  %v3585_v8 = vmul.f32 %v6629_v34, %v7091_v45  ;;  %v2284_v42 = vadd.f32 %v8135_v35, %v6972_v31  ;;  %v2891_v46 = vrot.slane %v2852_v47, 3  ;;  %v7847_v30 = vrot.slane %v7108_v55, 3 }
 0x2a2   : >> { %v2283_v62 = vadd.f32 %v8136_v17, %v6987_v57  ;;  %v2369_v58 = vadd.f32 %v6594_v37, %v2282_v54  ;;  %v2368_v44 = vadd.f32 %v6637_v51, %v2281_v56  ;;  %v7136_v26 = vsel %vm2869_vm2, %v2883_v18, %v2885_v32 }
 0x2a3   : >> { %v7128_v48 = vpop.permute.xlu1 %3001  ;;  %v7130_v4 = vpop.permute.xlu0 %2999  ;;  %v7139_v49 = vsel %vm2869_vm2, %v2881_v1, %v2883_v18  ;;  %v7142_v31 = vsel %vm2869_vm2, %v2887_v7, %v2889_v16  ;;  %v7145_v57 = vsel %vm2869_vm2, %v2885_v32, %v2887_v7  ;;  %v3525_v37 = vsel %vm3412_vm3, %v3522_v2, %v3524_v22  ;;  %v8138_v18 = vld [vmem:[#allocation18_spill] sm:$0xff]  ;;  %v8139_v7 = vld [vmem:[#allocation15_spill] sm:$0xff] }
 0x2a4   : >> { %8137 = vst [vmem:[#allocation51_spill] sm:$0xff] %v7130_v4  ;;  %v3614_v47 = vrot.slane %v3586_v28, 4  ;;  %v3616_v51 = vrot.slane %v3587_v36, 4  ;;  %v3613_v54 = vrot.slane %v3585_v8, 4  ;;  %v3588_v56 = vmul.f32 %v6669_v27, %v7091_v45  ;;  %v8143_v36 = vld [vmem:[#allocation100_spill] sm:$0xff] }
 0x2a5   : >> { %3548 = vrot.lane.b32.xlu1 %v3523_v41, %s4472_s23  ;;  %3546 = vrot.lane.b32.xlu0 %v3521_v53, %s4472_s23  ;;  %v3589_v1 = vmul.f32 %v6674_v15, %v7091_v45  ;;  %v2371_v35 = vadd.f32 %v8138_v18, %v2284_v42  ;;  %v2370_v32 = vadd.f32 %v8139_v7, %v2283_v62  ;;  %v8144_v42 = vld [vmem:[#allocation101_spill] sm:$0xff]  ;;  %v8145_v62 = vld [vmem:[#allocation102_spill] sm:$0xff] }
 0x2a6   : >> { %v7159_v41 = vsel %vm2869_vm2, %v2891_v46, %v7847_v30  ;;  %v7167_v2 = vmul.f32 %v6748_v38, %v6936_v11  ;;  %v2286_v8 = vadd.f32 %v8143_v36, %v6997_v39  ;;  %v2285_v17 = vadd.f32 %v8144_v42, %v7000_v40  ;;  %v8147_v30 = vld [vmem:[#allocation103_spill] sm:$0xff]  ;;  %v8150_v36 = vld [vmem:[#allocation106_spill] sm:$0xff] }
 0x2a7   : >> { %8140 = vst [vmem:[#allocation52_spill] sm:$0xff] %v7159_v41  ;;  %v7161_v53 = vpop.permute.xlu1 %3005  ;;  %v7163_v28 = vpop.permute.xlu0 %3003  ;;  %v2288_v18 = vadd.f32 %v8145_v62, %v7005_v21  ;;  %v7176_v7 = vsel %vm2869_vm2, %v2889_v16, %v2891_v46  ;;  %v3590_v11 = vmul.f32 %v6716_v29, %v7091_v45  ;;  %v7186_v39 = vmul.f32 %v6721_v14, %v7091_v45  ;;  %v8151_v62 = vld [vmem:[#allocation107_spill] sm:$0xff] }
 0x2a8   : >> { %8141 = vst [vmem:[#allocation53_spill] sm:$0xff] %v7161_v53  ;;  %8142 = vst [vmem:[#allocation54_spill] sm:$0xff] %v7163_v28  ;;  %v2287_v53 = vadd.f32 %v8147_v30, %v7020_v24  ;;  %v3617_v40 = vsel %vm3412_vm3, %v3614_v47, %v3616_v51  ;;  %v3615_v21 = vsel %vm3412_vm3, %v3613_v54, %v3614_v47  ;;  %v3618_v16 = vrot.slane %v3588_v56, 4  ;;  %v8148_v24 = vld [vmem:[#allocation104_spill] sm:$0xff]  ;;  %v8155_v56 = vld [vmem:[#allocation109_spill] sm:$0xff] }
 0x2a9   : >> { %8146 = vst [vmem:[#allocation55_spill] sm:$0xff] %v7176_v7  ;;  %3552 = vrot.lane.b32.xlu1 %v3524_v22, %s4472_s23  ;;  %3550 = vrot.lane.b32.xlu0 %v3525_v37, %s4472_s23  ;;  %v3620_v46 = vrot.slane %v3589_v1, 4  ;;  %v2290_v30 = vadd.f32 %v8148_v24, %v7034_v20  ;;  %v8149_v22 = vld [vmem:[#allocation105_spill] sm:$0xff]  ;;  %v2292_v42 = vadd.f32 %v8150_v36, %v7043_v3  ;;  %v8154_v47 = vld [vmem:[#allocation108_spill] sm:$0xff]  ;;  %v8156_v20 = vld [vmem:[#allocation22_spill] sm:$0xff]  ;;  %s7209_s23 = sld [smem:[#allocation4 + %s3696_s13]] }
 0x2aa   : >> { %v2289_v37 = vadd.f32 %v8149_v22, %v7037_v23  ;;  %v2291_v28 = vadd.f32 %v8151_v62, %v7059_v9  ;;  %v2294_v54 = vadd.f32 %v8154_v47, %v7073_v61  ;;  %v2293_v1 = vadd.f32 %v8155_v56, %v7095_v43  ;;  %v8157_v41 = vld [vmem:[#allocation19_spill] sm:$0xff]  ;;  %v8158_v3 = vld [vmem:[#allocation24_spill] sm:$0xff]  ;;  %v8161_v56 = vld [vmem:[#allocation110_spill] sm:$0xff] }
 0x2ab   : >> { %v7199_v55 = vpop.permute.xlu1 %3009  ;;  %v7201_v7 = vpop.permute.xlu0 %3007  ;;  %v2373_v24 = vadd.f32 %v8156_v20, %v2286_v8  ;;  %v2372_v23 = vadd.f32 %v8157_v41, %v2285_v17  ;;  %v2375_v22 = vadd.f32 %v8158_v3, %v2288_v18  ;;  %v8159_v36 = vld [vmem:[#allocation23_spill] sm:$0xff]  ;;  %v3622_v62 = vrot.slane %v3590_v11, 4 }
 0x2ac   : >> { %8152 = vst [vmem:[#allocation56_spill] sm:$0xff] %v7199_v55  ;;  %8153 = vst [vmem:[#allocation57_spill] sm:$0xff] %v7201_v7  ;;  %v2374_v9 = vadd.f32 %v8159_v36, %v2287_v53  ;;  %v3624_v61 = vrot.slane %v7186_v39, 4  ;;  %v3621_v47 = vsel %vm3412_vm3, %v3618_v16, %v3620_v46  ;;  %v3619_v43 = vsel %vm3412_vm3, %v3616_v51, %v3618_v16  ;;  %v8162_v16 = vld [vmem:[#allocation111_spill] sm:$0xff] }
 0x2ad   : >> { %3642 = vrot.lane.b32.xlu1 %v3617_v40, %s4473_s26  ;;  %3640 = vrot.lane.b32.xlu0 %v3615_v21, %s4473_s26  ;;  %v3592_v41 = vmul.f32 %v6760_v12, %v7091_v45  ;;  %v3593_v8 = vmul.f32 %v6765_v50, %v7091_v45  ;;  %v2377_v17 = vadd.f32 %v6777_v6, %v2290_v30  ;;  %v8160_v40 = vld [vmem:[#allocation29_spill] sm:$0xff]  ;;  %v8163_v3 = vrot.slane %v6752_v19, 2  ;;  %v8164_v6 = vld [vmem:[#allocation112_spill] sm:$0xff] }
 0x2ae   : >> { %v2376_v53 = vadd.f32 %v6780_v52, %v2289_v37  ;;  %v2379_v18 = vadd.f32 %v6791_v5, %v2292_v42  ;;  %v2378_v11 = vadd.f32 %v8160_v40, %v2291_v28  ;;  %v2483_v51 = vadd.f32 %v8161_v56, %v2369_v58 }
 0x2af   : >> { %v7226_v21 = vpop.permute.xlu1 %3099  ;;  %v7228_v39 = vpop.permute.xlu0 %3097  ;;  %v2482_v20 = vadd.f32 %v8162_v16, %v2368_v44  ;;  %v2381_v36 = vadd.f32 %v8163_v3, %v2294_v54  ;;  %v2380_v7 = vadd.f32 %v6852_v59, %v2293_v1  ;;  %v2485_v30 = vadd.f32 %v8164_v6, %v2371_v35  ;;  %v8165_v59 = vld [vmem:[#allocation113_spill] sm:$0xff]  ;;  %v8166_v35 = vld [vmem:[#allocation114_spill] sm:$0xff]  ;;  %v8167_v54 = vld [vmem:[#allocation115_spill] sm:$0xff] }
 0x2b0   : >> { %v3625_v52 = vsel %vm3412_vm3, %v3622_v62, %v3624_v61  ;;  %v3623_v5 = vsel %vm3412_vm3, %v3620_v46, %v3622_v62  ;;  %v3626_v28 = vrot.slane %v3592_v41, 4  ;;  %v3628_v58 = vrot.slane %v3593_v8, 4  ;;  %v8168_v62 = vld [vmem:[#allocation116_spill] sm:$0xff]  ;;  %v8169_v8 = vld [vmem:[#allocation117_spill] sm:$0xff]  ;;  %v8171_v3 = vld [vmem:[#allocation119_spill] sm:$0xff] }
 0x2b1   : >> { %3646 = vrot.lane.b32.xlu1 %v3621_v47, %s4473_s26  ;;  %3644 = vrot.lane.b32.xlu0 %v3619_v43, %s4473_s26  ;;  %v3594_v44 = vmul.f32 %v6686_v63, %v7091_v45  ;;  %v3595_v19 = vmul.f32 %v6806_v0, %v7091_v45  ;;  %v2484_v37 = vadd.f32 %v8165_v59, %v2370_v32  ;;  %v7258_v16 = vstv %s7209_s23  ;;  %v8170_v32 = vld [vmem:[#allocation118_spill] sm:$0xff] }
 0x2b2   : >> { %v2487_v42 = vadd.f32 %v8166_v35, %v2373_v24  ;;  %v2486_v1 = vadd.f32 %v8167_v54, %v2372_v23  ;;  %v3596_v46 = vmul.f32 %v6703_v60, %v7091_v45  ;;  %v2489_v41 = vadd.f32 %v8168_v62, %v2375_v22  ;;  %v8172_v62 = vld [vmem:[#allocation120_spill] sm:$0xff] }
 0x2b3   : >> { %v7247_v47 = vpop.permute.xlu1 %3103  ;;  %v7249_v43 = vpop.permute.xlu0 %3101  ;;  %v2488_v40 = vadd.f32 %v8169_v8, %v2374_v9  ;;  %v3597_v56 = vmul.f32 %v6838_v25, %v7091_v45  ;;  %v2491_v24 = vadd.f32 %v8170_v32, %v2377_v17  ;;  %v7262_v23 = vadd.f32 %v8171_v3, %v2376_v53  ;;  %v8173_v32 = vld [vmem:[#allocation121_spill] sm:$0xff]  ;;  %v8175_v3 = vld [vmem:[#allocation123_spill] sm:$0xff] }
 0x2b4   : >> { %v7268_v6 = vmul.f32 %v6748_v38, %v7091_v45  ;;  %v3629_v22 = vsel %vm3412_vm3, %v3626_v28, %v3628_v58  ;;  %v3627_v9 = vsel %vm3412_vm3, %v3624_v61, %v3626_v28  ;;  %v3630_v59 = vrot.slane %v3594_v44, 4  ;;  %v8174_v28 = vld [vmem:[#allocation122_spill] sm:$0xff] }
 0x2b5   : >> { %3650 = vrot.lane.b32.xlu1 %v3625_v52, %s4473_s26  ;;  %3648 = vrot.lane.b32.xlu0 %v3623_v5, %s4473_s26  ;;  %v3632_v35 = vrot.slane %v3595_v19, 4  ;;  %v3634_v53 = vrot.slane %v3596_v46, 4  ;;  %v3700_v52 = vmul.f32 %v6615_v10, %v7258_v16  ;;  %v3701_v5 = vmul.f32 %v6622_v13, %v7258_v16 }
 0x2b6   : >> { %v3699_v45 = vmul.f32 %v6629_v34, %v7258_v16  ;;  %v2493_v8 = vadd.f32 %v8172_v62, %v2379_v18  ;;  %v7284_v61 = vadd.f32 %v8173_v32, %v2378_v11  ;;  %v7287_v44 = vadd.f32 %v8174_v28, %v2381_v36  ;;  %v8176_v18 = vld [vmem:[#allocation124_spill] sm:$0xff]  ;;  %v8177_v36 = vld [vmem:[#allocation125_spill] sm:$0xff] }
 0x2b7   : >> { %v7272_v54 = vpop.permute.xlu1 %3107  ;;  %v7274_v17 = vpop.permute.xlu0 %3105  ;;  %v3636_v19 = vrot.slane %v3597_v56, 4  ;;  %v7290_v46 = vadd.f32 %v8175_v3, %v2380_v7  ;;  %v3638_v10 = vrot.slane %v7268_v6, 4  ;;  %v3702_v13 = vmul.f32 %v6669_v27, %v7258_v16  ;;  %v8178_v3 = vld [vmem:[#allocation126_spill] sm:$0xff] }
 0x2b8   : >> { %v3703_v34 = vmul.f32 %v6674_v15, %v7258_v16  ;;  %v2597_v11 = vadd.f32 %v8176_v18, %v2483_v51  ;;  %v2596_v62 = vadd.f32 %v8177_v36, %v2482_v20  ;;  %v3633_v56 = vsel %vm3412_vm3, %v3630_v59, %v3632_v35  ;;  %v8181_v18 = vld [vmem:[#allocation132_spill] sm:$0xff] }
 0x2b9   : >> { %3654 = vrot.lane.b32.xlu1 %v3629_v22, %s4473_s26  ;;  %3652 = vrot.lane.b32.xlu0 %v3627_v9, %s4473_s26  ;;  %v3631_v7 = vsel %vm3412_vm3, %v3628_v58, %v3630_v59  ;;  %v3635_v6 = vsel %vm3412_vm3, %v3632_v35, %v3634_v53  ;;  %v3728_v9 = vrot.slane %v3700_v52, 4  ;;  %v3730_v28 = vrot.slane %v3701_v5, 4  ;;  %v8179_v58 = vld [vmem:[#allocation127_spill] sm:$0xff] }
 0x2ba   : >> { %v3727_v27 = vrot.slane %v3699_v45, 4  ;;  %v2599_v55 = vadd.f32 %v8178_v3, %v2485_v30  ;;  %v3637_v15 = vsel %vm3412_vm3, %v3634_v53, %v3636_v19  ;;  %v3704_v51 = vmul.f32 %v6716_v29, %v7258_v16  ;;  %v8180_v45 = vld [vmem:[#allocation131_spill] sm:$0xff] }
 0x2bb   : >> { %v7303_v32 = vpop.permute.xlu1 %3111  ;;  %v7305_v22 = vpop.permute.xlu0 %3109  ;;  %v3705_v20 = vmul.f32 %v6721_v14, %v7258_v16  ;;  %v2598_v59 = vadd.f32 %v8179_v58, %v2484_v37  ;;  %v3639_v35 = vsel %vm3412_vm3, %v3636_v19, %v3638_v10  ;;  %v3732_v52 = vrot.slane %v3702_v13, 4  ;;  %v8182_v37 = vld [vmem:[#allocation134_spill] sm:$0xff]  ;;  %v8185_v58 = vld [vmem:[#allocation128_spill] sm:$0xff] }
 0x2bc   : >> { %v3734_v5 = vrot.slane %v3703_v34, 4  ;;  %v2601_v30 = vadd.f32 %v8180_v45, %v2487_v42  ;;  %v2600_v53 = vadd.f32 %v8181_v18, %v2486_v1  ;;  %v3706_v29 = vmul.f32 %v6760_v12, %v7258_v16  ;;  %v8184_v1 = vld [vmem:[#allocation8_spill] sm:$0xff] }
 0x2bd   : >> { %3658 = vrot.lane.b32.xlu1 %v3633_v56, %s4473_s26  ;;  %3656 = vrot.lane.b32.xlu0 %v3631_v7, %s4473_s26  ;;  %v7324_v14 = vmul.f32 %v6765_v50, %v7258_v16  ;;  %v2603_v36 = vadd.f32 %v8182_v37, %v2489_v41  ;;  %v8183_v56 = vld [vmem:[#allocation135_spill] sm:$0xff]  ;;  %v3731_v13 = vsel %vm3412_vm3, %v3728_v9, %v3730_v28  ;;  %v3736_v45 = vrot.slane %v3704_v51, 4  ;;  %v8186_v50 = vld [vmem:[#allocation137_spill] sm:$0xff] }
 0x2be   : >> { %v2602_v3 = vadd.f32 %v8183_v56, %v2488_v40  ;;  %v3729_v42 = vsel %vm3412_vm3, %v3727_v27, %v3728_v9  ;;  %v2711_v34 = vadd.f32 %v8184_v1, %v2597_v11  ;;  %v2710_v12 = vadd.f32 %v8185_v58, %v2596_v62  ;;  %v8187_v37 = vld [vmem:[#allocation27_spill] sm:$0xff]  ;;  %v8188_v9 = vld [vmem:[#allocation28_spill] sm:$0xff]  ;;  %v8189_v51 = vld [vmem:[#allocation9_spill] sm:$0xff] }
 0x2bf   : >> { %v7328_v7 = vpop.permute.xlu1 %3115  ;;  %v7330_v19 = vpop.permute.xlu0 %3113  ;;  %v3738_v18 = vrot.slane %v3705_v20, 4  ;;  %v7337_v4 = vadd.f32 %v8186_v50, %v2491_v24  ;;  %v3735_v41 = vsel %vm3412_vm3, %v3732_v52, %v3734_v5  ;;  %v3733_v40 = vsel %vm3412_vm3, %v3730_v28, %v3732_v52  ;;  %v8190_v1 = vld [vmem:[#allocation10_spill] sm:$0xff] }
 0x2c0   : >> { %v2825_v56 = vadd.f32 %v8187_v37, %v2711_v34  ;;  %v2824_v27 = vadd.f32 %v8188_v9, %v2710_v12  ;;  %v3740_v11 = vrot.slane %v3706_v29, 4  ;;  %v3742_v62 = vrot.slane %v7324_v14, 4  ;;  %v8191_v52 = vld [vmem:[#allocation138_spill] sm:$0xff]  ;;  %v8192_v34 = vld [vmem:[#allocation139_spill] sm:$0xff]  ;;  %v8193_v12 = vld [vmem:[#allocation140_spill] sm:$0xff] }
 0x2c1   : >> { %3662 = vrot.lane.b32.xlu1 %v3637_v15, %s4473_s26  ;;  %3660 = vrot.lane.b32.xlu0 %v3635_v6, %s4473_s26  ;;  %v2713_v20 = vadd.f32 %v8189_v51, %v2599_v55  ;;  %v2712_v24 = vadd.f32 %v8190_v1, %v2598_v59  ;;  %v3708_v6 = vmul.f32 %v6686_v63, %v7258_v16  ;;  %v8196_v9 = vld [vmem:[#allocation130_spill] sm:$0xff] }
 0x2c2   : >> { %v7356_v28 = vmul.f32 %v6806_v0, %v7258_v16  ;;  %v2604_v29 = vadd.f32 %v8191_v52, %v7262_v23  ;;  %v7361_v14 = vadd.f32 %v8192_v34, %v2493_v8  ;;  %v7364_v55 = vsel %vm3412_vm3, %v3736_v45, %v3738_v18  ;;  %v8194_v0 = vld [vmem:[#allocation30_spill] sm:$0xff]  ;;  %v8200_v34 = vld [vmem:[#allocation12_spill] sm:$0xff] }
 0x2c3   : >> { %v7348_v58 = vpop.permute.xlu1 %3119  ;;  %v7350_v15 = vpop.permute.xlu0 %3117  ;;  %v7367_v59 = vsel %vm3412_vm3, %v3734_v5, %v3736_v45  ;;  %v7371_v50 = vadd.f32 %v8193_v12, %v7284_v61  ;;  %v2827_v63 = vadd.f32 %v6817_v33, %v2713_v20  ;;  %v2826_v37 = vadd.f32 %v8194_v0, %v2712_v24  ;;  %v8195_v23 = vld [vmem:[#allocation42_spill] sm:$0xff]  ;;  %v8197_v61 = vld [vmem:[#allocation7_spill] sm:$0xff]  ;;  %v8198_v20 = vld [vmem:[#allocation141_spill] sm:$0xff] }
 0x2c4   : >> { %v2912_v8 = vadd.f32 %v8195_v23, %v2825_v56  ;;  %v2911_v51 = vadd.f32 %v8196_v9, %v2824_v27  ;;  %v7380_v5 = vsel %vm3412_vm3, %v3740_v11, %v3742_v62  ;;  %v7383_v45 = vsel %vm3412_vm3, %v3738_v18, %v3740_v11  ;;  %v8199_v24 = vld [vmem:[#allocation11_spill] sm:$0xff]  ;;  %v8201_v11 = vld [vmem:[#allocation40_spill] sm:$0xff]  ;;  %v8202_v0 = vld [vmem:[#allocation41_spill] sm:$0xff] }
 0x2c5   : >> { %3666 = vrot.lane.b32.xlu1 %v3638_v10, %s4473_s26  ;;  %3664 = vrot.lane.b32.xlu0 %v3639_v35, %s4473_s26  ;;  %v7387_v33 = vadd.f32 %v8197_v61, %v7287_v44  ;;  %v7391_v10 = vadd.f32 %v8198_v20, %v7290_v46  ;;  %v3744_v56 = vrot.slane %v3708_v6, 4  ;;  %v3746_v27 = vrot.slane %v7356_v28, 4  ;;  %s3810_s26 = sadd.s32 24, %s5213_s18  ;;  %v8203_v23 = vld [vmem:[#allocation136_spill] sm:$0xff]  ;;  %v8205_v20 = vld [vmem:[#allocation31_spill] sm:$0xff] }
 0x2c6   : >> { %v2715_v52 = vadd.f32 %v8199_v24, %v2601_v30  ;;  %v2714_v18 = vadd.f32 %v8200_v34, %v2600_v53  ;;  %v3026_v12 = vadd.f32 %v8201_v11, %v2912_v8  ;;  %v3025_v44 = vadd.f32 %v8202_v0, %v2911_v51  ;;  %v8204_v46 = vld [vmem:[#allocation44_spill] sm:$0xff]  ;;  %v8206_v24 = vld [vmem:[#allocation73_spill] sm:$0xff]  ;;  %s7424_s2 = sld [smem:[#allocation4 + %s3810_s26]] }
 0x2c7   : >> { %v7393_v1 = vpop.permute.xlu1 %3123  ;;  %v7395_v35 = vpop.permute.xlu0 %3121  ;;  %v2914_v9 = vadd.f32 %v8203_v23, %v2827_v63  ;;  %v2913_v61 = vadd.f32 %v8204_v46, %v2826_v37  ;;  %v3710_v6 = vmul.f32 %v6703_v60, %v7258_v16  ;;  %v8207_v34 = vld [vmem:[#allocation13_spill] sm:$0xff]  ;;  %v8208_v63 = vld [vmem:[#allocation14_spill] sm:$0xff]  ;;  %v7422_v60 = vmul.f32 %v6838_v25, %v7258_v16 }
 0x2c8   : >> { %v2829_v30 = vadd.f32 %v8205_v20, %v2715_v52  ;;  %v2828_v53 = vadd.f32 %v8206_v24, %v2714_v18  ;;  %v3140_v8 = vadd.f32 %v7226_v21, %v3026_v12  ;;  %v3139_v51 = vadd.f32 %v7228_v39, %v3025_v44  ;;  %v8209_v21 = vld [vmem:[#allocation129_spill] sm:$0xff]  ;;  %v8210_v39 = vld [vmem:[#allocation43_spill] sm:$0xff]  ;;  %v8211_v18 = vld [vmem:[#allocation32_spill] sm:$0xff] }
 0x2c9   : >> { %3756 = vrot.lane.b32.xlu1 %v3731_v13, %s4474_s29  ;;  %3754 = vrot.lane.b32.xlu0 %v3729_v42, %s4474_s29  ;;  %v2717_v11 = vadd.f32 %v8207_v34, %v2603_v36  ;;  %v2716_v0 = vadd.f32 %v8208_v63, %v2602_v3  ;;  %v7418_v13 = vsel %vm3412_vm3, %v3744_v56, %v3746_v27  ;;  %v8212_v44 = vld [vmem:[#allocation33_spill] sm:$0xff]  ;;  %v8213_v20 = vld [vmem:[#allocation47_spill] sm:$0xff]  ;;  %v8214_v34 = vld [vmem:[#allocation46_spill] sm:$0xff] }
 0x2ca   : >> { %v3028_v42 = vadd.f32 %v8209_v21, %v2914_v9  ;;  %v3027_v52 = vadd.f32 %v8210_v39, %v2913_v61  ;;  %v3745_v25 = vsel %vm3412_vm3, %v3742_v62, %v3744_v56  ;;  %v2916_v24 = vadd.f32 %v8213_v20, %v2829_v30  ;;  %v8217_v21 = vld [vmem:[#allocation133_spill] sm:$0xff] }
 0x2cb   : >> { %v3214_v37 = vpop.permute.xlu1 %3213  ;;  %v3212_v23 = vpop.permute.xlu0 %3211  ;;  %v2831_v12 = vadd.f32 %v8211_v18, %v2717_v11  ;;  %v2830_v46 = vadd.f32 %v8212_v44, %v2716_v0  ;;  %v2915_v9 = vadd.f32 %v8214_v34, %v2828_v53  ;;  %v8216_v11 = vld [vmem:[#allocation17_spill] sm:$0xff]  ;;  %v8221_v18 = vld [vmem:[#allocation20_spill] sm:$0xff] }
 0x2cc   : >> { %v7428_v36 = vadd.f32 %v3214_v37, %v3140_v8  ;;  %v7430_v3 = vadd.f32 %v3212_v23, %v3139_v51  ;;  %v3142_v61 = vadd.f32 %v7247_v47, %v3028_v42  ;;  %v3141_v8 = vadd.f32 %v7249_v43, %v3027_v52  ;;  %v8215_v51 = vld [vmem:[#allocation16_spill] sm:$0xff]  ;;  %v8218_v56 = vld [vmem:[#allocation45_spill] sm:$0xff]  ;;  %v8220_v42 = vld [vmem:[#allocation35_spill] sm:$0xff] }
 0x2cd   : >> { %3760 = vrot.lane.b32.xlu1 %v3735_v41, %s4474_s29  ;;  %3758 = vrot.lane.b32.xlu0 %v3733_v40, %s4474_s29  ;;  %v2719_v63 = vadd.f32 %v8215_v51, %v7337_v4  ;;  %v2718_v37 = vadd.f32 %v8216_v11, %v2604_v29  ;;  %v3748_v41 = vrot.slane %v3710_v6, 4  ;;  %v3750_v40 = vrot.slane %v7422_v60, 4  ;;  %v8219_v6 = vld [vmem:[#allocation34_spill] sm:$0xff]  ;;  %v8224_v34 = vld [vmem:[#allocation49_spill] sm:$0xff] }
 0x2ce   : >> { %v3030_v62 = vadd.f32 %v8217_v21, %v2916_v24  ;;  %v3029_v30 = vadd.f32 %v8218_v56, %v2915_v9  ;;  %v2918_v47 = vadd.f32 %v7136_v26, %v2831_v12  ;;  %v2917_v4 = vadd.f32 %v7139_v49, %v2830_v46  ;;  %v8227_v21 = vld [vmem:[#allocation25_spill] sm:$0xff] }
 0x2cf   : >> { %v3218_v0 = vpop.permute.xlu1 %3217  ;;  %v3216_v23 = vpop.permute.xlu0 %3215  ;;  %v2895_v43 = vrot.slane %v7167_v2, 3  ;;  %v7460_v29 = vmul.f32 %v6748_v38, %v7258_v16  ;;  %v2833_v60 = vadd.f32 %v8219_v6, %v2719_v63  ;;  %v2832_v52 = vadd.f32 %v8220_v42, %v2718_v37  ;;  %v8223_v16 = vld [vmem:[#allocation48_spill] sm:$0xff]  ;;  %v8232_v42 = vld [vmem:[#allocation38_spill] sm:$0xff] }
 0x2d0   : >> { %v7447_v39 = vadd.f32 %v3218_v0, %v3142_v61  ;;  %v7449_v53 = vadd.f32 %v3216_v23, %v3141_v8  ;;  %v3144_v26 = vadd.f32 %v7272_v54, %v3030_v62  ;;  %v3143_v49 = vadd.f32 %v7274_v17, %v3029_v30  ;;  %v8225_v17 = vld [vmem:[#allocation36_spill] sm:$0xff]  ;;  %v8226_v8 = vld [vmem:[#allocation37_spill] sm:$0xff]  ;;  %v8228_v62 = vld [vmem:[#allocation26_spill] sm:$0xff] }
 0x2d1   : >> { %3764 = vrot.lane.b32.xlu1 %v7364_v55, %s4474_s29  ;;  %3762 = vrot.lane.b32.xlu0 %v7367_v59, %s4474_s29  ;;  %v2721_v12 = vadd.f32 %v8221_v18, %v7361_v14  ;;  %v8222_v55 = vld [vmem:[#allocation21_spill] sm:$0xff]  ;;  %v3751_v20 = vsel %vm3412_vm3, %v3748_v41, %v3750_v40  ;;  %v7472_v38 = vstv %s7424_s2  ;;  %v3032_v24 = vadd.f32 %v8223_v16, %v2918_v47 }
 0x2d2   : >> { %v2720_v44 = vadd.f32 %v8222_v55, %v7371_v50  ;;  %v3031_v9 = vadd.f32 %v8224_v34, %v2917_v4  ;;  %v3749_v51 = vsel %vm3412_vm3, %v3746_v27, %v3748_v41  ;;  %v3752_v63 = vrot.slane %v7460_v29, 4  ;;  %v7499_v27 = vld [vmem:[%s5218_s22 + $0x8] sm:$0xff]  ;;  %v7504_v41 = vld [vmem:[%s5218_s22 + $0x10] sm:$0xff]  ;;  %v8231_v29 = vld [vmem:[#allocation55_spill] sm:$0xff] }
 0x2d3   : >> { %v3222_v46 = vpop.permute.xlu1 %3221  ;;  %v3220_v59 = vpop.permute.xlu0 %3219  ;;  %v2835_v14 = vadd.f32 %v8225_v17, %v2721_v12  ;;  %v2920_v11 = vadd.f32 %v7142_v31, %v2833_v60  ;;  %v2919_v37 = vadd.f32 %v7145_v57, %v2832_v52  ;;  %v3146_v0 = vadd.f32 %v7303_v32, %v3032_v24  ;;  %v7520_v60 = vld [vmem:[%s5218_s22] sm:$0xff]  ;;  %v8234_v55 = vld [vmem:[#allocation50_spill] sm:$0xff]  ;;  %v8236_v24 = vld [vmem:[#allocation53_spill] sm:$0xff] }
 0x2d4   : >> { %v7476_v61 = vadd.f32 %v3222_v46, %v3144_v26  ;;  %v7478_v54 = vadd.f32 %v3220_v59, %v3143_v49  ;;  %v2834_v50 = vadd.f32 %v8226_v8, %v2720_v44  ;;  %v3145_v23 = vadd.f32 %v7305_v22, %v3031_v9  ;;  %v8229_v22 = vld [vmem:[#allocation51_spill] sm:$0xff]  ;;  %v8237_v9 = vld [vmem:[#allocation54_spill] sm:$0xff] }
 0x2d5   : >> { %3768 = vrot.lane.b32.xlu1 %v7380_v5, %s4474_s29  ;;  %3766 = vrot.lane.b32.xlu0 %v7383_v45, %s4474_s29  ;;  %v2723_v5 = vadd.f32 %v8227_v21, %v7387_v33  ;;  %v2722_v45 = vadd.f32 %v8228_v62, %v7391_v10  ;;  %v3814_v31 = vmul.f32 %v7499_v27, %v7472_v38  ;;  %v8230_v10 = vld [vmem:[#allocation52_spill] sm:$0xff]  ;;  %v8233_v26 = vld [vmem:[#allocation39_spill] sm:$0xff] }
 0x2d6   : >> { %v3815_v57 = vmul.f32 %v7504_v41, %v7472_v38  ;;  %v3034_v32 = vadd.f32 %v7128_v48, %v2920_v11  ;;  %v3033_v33 = vadd.f32 %v8229_v22, %v2919_v37  ;;  %v2922_v4 = vadd.f32 %v8230_v10, %v2835_v14  ;;  %v7548_v11 = vld [vmem:[%s5218_s22 + $0x20] sm:$0xff]  ;;  %v8238_v62 = vld [vmem:[#allocation56_spill] sm:$0xff] }
 0x2d7   : >> { %v3226_v28 = vpop.permute.xlu1 %3225  ;;  %v3224_v56 = vpop.permute.xlu0 %3223  ;;  %v2921_v6 = vadd.f32 %v8231_v29, %v2834_v50  ;;  %v3813_v48 = vmul.f32 %v7520_v60, %v7472_v38  ;;  %v2837_v52 = vadd.f32 %v8232_v42, %v2723_v5  ;;  %v2836_v49 = vadd.f32 %v8233_v26, %v2722_v45  ;;  %v7543_v50 = vld [vmem:[%s5218_s22 + $0x18] sm:$0xff] }
 0x2d8   : >> { %v7510_v30 = vadd.f32 %v3226_v28, %v3146_v0  ;;  %v7512_v47 = vadd.f32 %v3224_v56, %v3145_v23  ;;  %v3148_v18 = vadd.f32 %v7328_v7, %v3034_v32  ;;  %v3147_v12 = vadd.f32 %v7330_v19, %v3033_v33  ;;  %v8239_v28 = vld [vmem:[#allocation57_spill] sm:$0xff]  ;;  %v7569_v33 = vld [vmem:[%s5218_s22 + $0x28] sm:$0xff] }
 0x2d9   : >> { %3772 = vrot.lane.b32.xlu1 %v7418_v13, %s4474_s29  ;;  %3770 = vrot.lane.b32.xlu0 %v3745_v25, %s4474_s29  ;;  %v8235_v13 = vrot.slane %v8234_v55, 3  ;;  %v3753_v59 = vsel %vm3412_vm3, %v3750_v40, %v3752_v63  ;;  %v3842_v16 = vrot.slane %v3814_v31, 4  ;;  %v3036_v34 = vadd.f32 %v8236_v24, %v2922_v4 }
 0x2da   : >> { %v3035_v17 = vadd.f32 %v8237_v9, %v2921_v6  ;;  %v3844_v19 = vrot.slane %v3815_v57, 4  ;;  %v3841_v8 = vrot.slane %v3813_v48, 4  ;;  %v3816_v40 = vmul.f32 %v7543_v50, %v7472_v38 }
 0x2db   : >> { %v2896_v25 = vsel %vm2869_vm2, %v8235_v13, %v2895_v43  ;;  %v3230_v44 = vpop.permute.xlu1 %3229  ;;  %v3228_v46 = vpop.permute.xlu0 %3227  ;;  %v3817_v37 = vmul.f32 %v7548_v11, %v7472_v38  ;;  %v2924_v0 = vadd.f32 %v2895_v43, %v2837_v52  ;;  %v3818_v10 = vmul.f32 %v7569_v33, %v7472_v38 }
 0x2dc   : >> { %v7536_v14 = vadd.f32 %v3230_v44, %v3148_v18  ;;  %v7538_v7 = vadd.f32 %v3228_v46, %v3147_v12  ;;  %v2923_v23 = vadd.f32 %v2896_v25, %v2836_v49  ;;  %v3845_v2 = vsel %vm3412_vm3, %v3842_v16, %v3844_v19  ;;  %v7592_v12 = vld [vmem:[%s5218_s22 + $0x40] sm:$0xff] }
 0x2dd   : >> { %3776 = vrot.lane.b32.xlu1 %v3751_v20, %s4474_s29  ;;  %3774 = vrot.lane.b32.xlu0 %v3749_v51, %s4474_s29  ;;  %v3150_v20 = vadd.f32 %v7348_v58, %v3036_v34  ;;  %v3149_v51 = vadd.f32 %v7350_v15, %v3035_v17  ;;  %v3038_v45 = vadd.f32 %v8238_v62, %v2924_v0  ;;  %v3846_v15 = vrot.slane %v3816_v40, 4 }
 0x2de   : >> { %v3037_v56 = vadd.f32 %v8239_v28, %v2923_v23  ;;  %v3843_v58 = vsel %vm3412_vm3, %v3841_v8, %v3842_v16  ;;  %v3848_v43 = vrot.slane %v3817_v37, 4  ;;  %v3850_v49 = vrot.slane %v3818_v10, 4  ;;  %v7605_v16 = vld [vmem:[%s5218_s22 + $0x48] sm:$0xff] }
 0x2df   : >> { %v3234_v21 = vpop.permute.xlu1 %3233  ;;  %v3232_v5 = vpop.permute.xlu0 %3231  ;;  %v3152_v32 = vadd.f32 %v7393_v1, %v3038_v45  ;;  %v3847_v1 = vsel %vm3412_vm3, %v3844_v19, %v3846_v15  ;;  %v3821_v55 = vmul.f32 %v7592_v12, %v7472_v38  ;;  %v3822_v24 = vmul.f32 %v7605_v16, %v7472_v38 }
 0x2e0   : >> { %v7558_v31 = vadd.f32 %v3234_v21, %v3150_v20  ;;  %v7560_v57 = vadd.f32 %v3232_v5, %v3149_v51  ;;  %v3151_v22 = vadd.f32 %v7395_v35, %v3037_v56  ;;  %v7586_v35 = vld [vmem:[%s5218_s22 + $0x38] sm:$0xff]  ;;  %v3849_v26 = vsel %vm3412_vm3, %v3846_v15, %v3848_v43  ;;  %v7633_v5 = vld [vmem:[%s5218_s22 + $0x60] sm:$0xff] }
 0x2e1   : >> { %3780 = vrot.lane.b32.xlu1 %v3752_v63, %s4474_s29  ;;  %3778 = vrot.lane.b32.xlu0 %v3753_v59, %s4474_s29  ;;  %v7574_v63 = vld [vmem:[%s5218_s22 + $0x30] sm:$0xff]  ;;  %v3820_v52 = vmul.f32 %v7586_v35, %v7472_v38  ;;  %s3381_s29 = sadd.s32 20, %s5213_s18  ;;  %v3856_v9 = vrot.slane %v3821_v55, 4  ;;  %v3858_v23 = vrot.slane %v3822_v24, 4  ;;  %v7628_v21 = vld [vmem:[%s5218_s22 + $0x58] sm:$0xff] }
 0x2e2   : >> { %v3819_v4 = vmul.f32 %v7574_v63, %v7472_v38  ;;  %s3382_s18 = sld [smem:[#allocation4 + %s3381_s29]] }
 0x2e3   : >> { %v3238_v29 = vpop.permute.xlu1 %3237  ;;  %v3236_v6 = vpop.permute.xlu0 %3235  ;;  %v3854_v59 = vrot.slane %v3820_v52, 4 }
 0x2e4   : >> { %v7578_v48 = vadd.f32 %v3238_v29, %v3152_v32  ;;  %v7580_v42 = vadd.f32 %v3236_v6, %v3151_v22  ;;  %v3852_v18 = vrot.slane %v3819_v4, 4  ;;  %v7648_v32 = vld [vmem:[%s5218_s22 + $0x68] sm:$0x7f] }
 0x2e5   : >> { %3870 = vrot.lane.b32.xlu1 %v3845_v2, %s4475_s5  ;;  %3868 = vrot.lane.b32.xlu0 %v3843_v58, %s4475_s5  ;;  %v3857_v20 = vsel %vm3412_vm3, %v3854_v59, %v3856_v9  ;;  %v3859_v2 = vsel %vm3412_vm3, %v3856_v9, %v3858_v23  ;;  %v3826_v22 = vmul.f32 %v7648_v32, %v7472_v38 }
 0x2e6   : >> { %v3853_v34 = vsel %vm3412_vm3, %v3850_v49, %v3852_v18  ;;  %v3855_v0 = vsel %vm3412_vm3, %v3852_v18, %v3854_v59 }
 0x2e7   : >> { %v3328_v13 = vpop.permute.xlu1 %3327  ;;  %v3326_v25 = vpop.permute.xlu0 %3325  ;;  %v3866_v52 = vrot.slane %v3826_v22, 4 }
 0x2e8   : >> { %v7597_v44 = vadd.f32 %v3328_v13, %v7428_v36  ;;  %v7600_v46 = vadd.f32 %v3326_v25, %v7430_v3  ;;  %v3851_v36 = vsel %vm3412_vm3, %v3848_v43, %v3850_v49  ;;  %v7613_v3 = vld [vmem:[%s5218_s22 + $0x50] sm:$0xff]  ;;  %v7658_v29 = vstv %s3382_s18 }
 0x2e9   : >> { %3874 = vrot.lane.b32.xlu1 %v3849_v26, %s4475_s5  ;;  %3872 = vrot.lane.b32.xlu0 %v3847_v1, %s4475_s5  ;;  %v3823_v17 = vmul.f32 %v7613_v3, %v7472_v38  ;;  %v3384_v49 = vmul.f32 %v7520_v60, %v7658_v29 }
 0x2eb   : >> { %v3332_v19 = vpop.permute.xlu1 %3331  ;;  %v3330_v8 = vpop.permute.xlu0 %3329  ;;  %v3860_v51 = vrot.slane %v3823_v17, 4  ;;  %v3413_v24 = vrot.slane %v3384_v49, 4  ;;  %v3396_v49 = vmul.f32 %v7633_v5, %v7658_v29 }
 0x2ec   : >> { %v7618_v40 = vadd.f32 %v3332_v19, %v7447_v39  ;;  %v7621_v37 = vadd.f32 %v3330_v8, %v7449_v53  ;;  %v3824_v39 = vmul.f32 %v7628_v21, %v7472_v38  ;;  %v3825_v53 = vmul.f32 %v7633_v5, %v7472_v38 }
 0x2ed   : >> { %3878 = vrot.lane.b32.xlu1 %v3853_v34, %s4475_s5  ;;  %3876 = vrot.lane.b32.xlu0 %v3851_v36, %s4475_s5  ;;  %v3861_v58 = vsel %vm3412_vm3, %v3858_v23, %v3860_v51  ;;  %v3389_v8 = vmul.f32 %v7569_v33, %v7658_v29 }
 0x2ee   : >> { %v3862_v15 = vrot.slane %v3824_v39, 4  ;;  %v3864_v43 = vrot.slane %v3825_v53, 4 }
 0x2ef   : >> { %v3336_v62 = vpop.permute.xlu1 %3335  ;;  %v3334_v45 = vpop.permute.xlu0 %3333  ;;  %v3422_v33 = vrot.slane %v3389_v8, 4 }
 0x2f0   : >> { %v7638_v28 = vadd.f32 %v3336_v62, %v7476_v61  ;;  %v7641_v56 = vadd.f32 %v3334_v45, %v7478_v54  ;;  %v3865_v6 = vsel %vm3412_vm3, %v3862_v15, %v3864_v43  ;;  %v3863_v1 = vsel %vm3412_vm3, %v3860_v51, %v3862_v15 }
 0x2f1   : >> { %3882 = vrot.lane.b32.xlu1 %v3857_v20, %s4475_s5  ;;  %3880 = vrot.lane.b32.xlu0 %v3855_v0, %s4475_s5  ;;  %v3867_v13 = vsel %vm3412_vm3, %v3864_v43, %v3866_v52  ;;  %v3394_v15 = vmul.f32 %v7613_v3, %v7658_v29 }
 0x2f3   : >> { %v3340_v61 = vpop.permute.xlu1 %3339  ;;  %v3338_v10 = vpop.permute.xlu0 %3337 }
 0x2f4   : >> { %v7653_v54 = vadd.f32 %v3340_v61, %v7510_v30  ;;  %v7656_v4 = vadd.f32 %v3338_v10, %v7512_v47  ;;  %v3385_v30 = vmul.f32 %v7499_v27, %v7658_v29  ;;  %v3386_v47 = vmul.f32 %v7504_v41, %v7658_v29 }
 0x2f5   : >> { %3886 = vrot.lane.b32.xlu1 %v3861_v58, %s4475_s5  ;;  %3884 = vrot.lane.b32.xlu0 %v3859_v2, %s4475_s5  ;;  %v3387_v27 = vmul.f32 %v7543_v50, %v7658_v29  ;;  %v3388_v41 = vmul.f32 %v7548_v11, %v7658_v29  ;;  %v3393_v58 = vmul.f32 %v7605_v16, %v7658_v29 }
 0x2f6   : >> { %v3414_v59 = vrot.slane %v3385_v30, 4 }
 0x2f7   : >> { %v3344_v38 = vpop.permute.xlu1 %3343  ;;  %v3342_v26 = vpop.permute.xlu0 %3341  ;;  %v3418_v36 = vrot.slane %v3387_v27, 4  ;;  %v3420_v50 = vrot.slane %v3388_v41, 4 }
 0x2f8   : >> { %v7671_v18 = vadd.f32 %v3344_v38, %v7536_v14  ;;  %v7674_v55 = vadd.f32 %v3342_v26, %v7538_v7  ;;  %v3416_v14 = vrot.slane %v3386_v47, 4  ;;  %v3415_v19 = vsel %vm3412_vm3, %v3413_v24, %v3414_v59 }
 0x2f9   : >> { %3890 = vrot.lane.b32.xlu1 %v3865_v6, %s4475_s5  ;;  %3888 = vrot.lane.b32.xlu0 %v3863_v1, %s4475_s5  ;;  %v3454_v20 = vadd.f32 %v3415_v19, %v7600_v46  ;;  %v3421_v51 = vsel %vm3412_vm3, %v3418_v36, %v3420_v50  ;;  %v3432_v38 = vrot.slane %v3394_v15, 4  ;;  %v3395_v47 = vmul.f32 %v7628_v21, %v7658_v29 }
 0x2fa   : >> { %v3417_v11 = vsel %vm3412_vm3, %v3414_v59, %v3416_v14  ;;  %v3419_v39 = vsel %vm3412_vm3, %v3416_v14, %v3418_v36  ;;  %v3436_v24 = vrot.slane %v3396_v49, 4  ;;  %v3397_v21 = vmul.f32 %v7648_v32, %v7658_v29 }
 0x2fb   : >> { %v3348_v25 = vpop.permute.xlu1 %3347  ;;  %v3346_v60 = vpop.permute.xlu0 %3345  ;;  %v3455_v23 = vadd.f32 %v3417_v11, %v7597_v44  ;;  %v3457_v44 = vadd.f32 %v3421_v51, %v7618_v40  ;;  %v3456_v46 = vadd.f32 %v3419_v39, %v7621_v37  ;;  %v3434_v14 = vrot.slane %v3395_v47, 4 }
 0x2fc   : >> { %v7684_v7 = vadd.f32 %v3348_v25, %v7558_v31  ;;  %v7687_v34 = vadd.f32 %v3346_v60, %v7560_v57  ;;  %v3390_v31 = vmul.f32 %v7574_v63, %v7658_v29  ;;  %v3391_v63 = vmul.f32 %v7586_v35, %v7658_v29 }
 0x2fd   : >> { %3894 = vrot.lane.b32.xlu1 %v3866_v52, %s4475_s5  ;;  %3892 = vrot.lane.b32.xlu0 %v3867_v13, %s4475_s5  ;;  %v3423_v35 = vsel %vm3412_vm3, %v3420_v50, %v3422_v33  ;;  %v3430_v52 = vrot.slane %v3393_v58, 4  ;;  %v3435_v11 = vsel %vm3412_vm3, %v3432_v38, %v3434_v14  ;;  %v3438_v19 = vrot.slane %v3397_v21, 4  ;;  %s3924_s5 = sld [smem:[#allocation2]] (%p7765_p6) }
 0x2fe   : >> { %v3424_v45 = vrot.slane %v3390_v31, 4  ;;  %v3426_v10 = vrot.slane %v3391_v63, 4  ;;  %v3458_v37 = vadd.f32 %v3423_v35, %v7641_v56  ;;  %v3464_v32 = vadd.f32 %v3435_v11, %v7687_v34 }
 0x2ff   : >> { %v3352_v9 = vpop.permute.xlu1 %3351  ;;  %v3350_v17 = vpop.permute.xlu0 %3349  ;;  %v3433_v41 = vsel %vm3412_vm3, %v3430_v52, %v3432_v38 }
 0x300   : >> { %v7698_v57 = vadd.f32 %v3352_v9, %v7578_v48  ;;  %v7701_v0 = vadd.f32 %v3350_v17, %v7580_v42  ;;  %v3392_v48 = vmul.f32 %v7592_v12, %v7658_v29  ;;  %v3425_v61 = vsel %vm3412_vm3, %v3422_v33, %v3424_v45 }
 0x301   : >> { %v3459_v40 = vadd.f32 %v3425_v61, %v7638_v28  ;;  %v3427_v30 = vsel %vm3412_vm3, %v3424_v45, %v3426_v10  ;;  %v3463_v5 = vadd.f32 %v3433_v41, %v7671_v18  ;;  %v3439_v18 = vsel %vm3412_vm3, %v3436_v24, %v3438_v19 }
 0x302   : >> { %v3428_v12 = vrot.slane %v3392_v48, 4  ;;  %v3460_v56 = vadd.f32 %v3427_v30, %v7656_v4  ;;  %v3437_v4 = vsel %vm3412_vm3, %v3434_v14, %v3436_v24  ;;  %v3467_v39 = vadd.f32 %v3438_v19, %v7698_v57 }
 0x303   : >> { %v3529_v53 = vpop.permute.xlu1 %3528  ;;  %v3527_v62 = vpop.permute.xlu0 %3526 }
 0x304   : >> { %v3569_v42 = vadd.f32 %v3529_v53, %v3455_v23  ;;  %v3568_v2 = vadd.f32 %v3527_v62, %v3454_v20  ;;  %v3429_v3 = vsel %vm3412_vm3, %v3426_v10, %v3428_v12  ;;  %v3431_v59 = vsel %vm3412_vm3, %v3428_v12, %v3430_v52 }
 0x305   : >> { %v3461_v28 = vadd.f32 %v3429_v3, %v7653_v54  ;;  %v3462_v9 = vadd.f32 %v3431_v59, %v7674_v55  ;;  %v3465_v23 = vadd.f32 %v3437_v4, %v7684_v7  ;;  %v3466_v53 = vadd.f32 %v3439_v18, %v7701_v0 }
 0x307   : >> { %v3533_v43 = vpop.permute.xlu1 %3532  ;;  %v3531_v22 = vpop.permute.xlu0 %3530 }
 0x308   : >> { %v3571_v6 = vadd.f32 %v3533_v43, %v3457_v44  ;;  %v3570_v1 = vadd.f32 %v3531_v22, %v3456_v46 }
 0x30b   : >> { %v3537_v16 = vpop.permute.xlu1 %3536  ;;  %v3535_v26 = vpop.permute.xlu0 %3534 }
 0x30c   : >> { %v3573_v13 = vadd.f32 %v3537_v16, %v3459_v40  ;;  %v3572_v27 = vadd.f32 %v3535_v26, %v3458_v37 }
 0x30f   : >> { %v3541_v25 = vpop.permute.xlu1 %3540  ;;  %v3539_v60 = vpop.permute.xlu0 %3538 }
 0x310   : >> { %v3575_v36 = vadd.f32 %v3541_v25, %v3461_v28  ;;  %v3574_v50 = vadd.f32 %v3539_v60, %v3460_v56 }
 0x313   : >> { %v3545_v54 = vpop.permute.xlu1 %3544  ;;  %v3543_v17 = vpop.permute.xlu0 %3542 }
 0x314   : >> { %v7737_v8 = vadd.f32 %v3545_v54, %v3463_v5  ;;  %v7739_v31 = vadd.f32 %v3543_v17, %v3462_v9 }
 0x317   : >> { %v3549_v29 = vpop.permute.xlu1 %3548  ;;  %v3547_v20 = vpop.permute.xlu0 %3546 }
 0x318   : >> { %v7744_v55 = vadd.f32 %v3549_v29, %v3465_v23  ;;  %v7746_v51 = vadd.f32 %v3547_v20, %v3464_v32 }
 0x31b   : >> { %v3553_v62 = vpop.permute.xlu1 %3552  ;;  %v3551_v33 = vpop.permute.xlu0 %3550 }
 0x31c   : >> { %v7750_v45 = vadd.f32 %v3553_v62, %v3467_v39  ;;  %v7752_v63 = vadd.f32 %v3551_v33, %v3466_v53 }
 0x31f   : >> { %v3643_v7 = vpop.permute.xlu1 %3642  ;;  %v3641_v34 = vpop.permute.xlu0 %3640 }
 0x320   : >> { %v3683_v48 = vadd.f32 %v3643_v7, %v3569_v42  ;;  %v3682_v44 = vadd.f32 %v3641_v34, %v3568_v2 }
 0x323   : >> { %v3647_v46 = vpop.permute.xlu1 %3646  ;;  %v3645_v58 = vpop.permute.xlu0 %3644 }
 0x324   : >> { %v3685_v15 = vadd.f32 %v3647_v46, %v3571_v6  ;;  %v3684_v43 = vadd.f32 %v3645_v58, %v3570_v1 }
 0x327   : >> { %v3651_v22 = vpop.permute.xlu1 %3650  ;;  %v3649_v61 = vpop.permute.xlu0 %3648 }
 0x328   : >> { %v3687_v35 = vadd.f32 %v3651_v22, %v3573_v13  ;;  %v3686_v57 = vadd.f32 %v3649_v61, %v3572_v27 }
 0x32b   : >> { %v3655_v10 = vpop.permute.xlu1 %3654  ;;  %v3653_v0 = vpop.permute.xlu0 %3652 }
 0x32c   : >> { %v3689_v12 = vadd.f32 %v3655_v10, %v3575_v36  ;;  %v3688_v40 = vadd.f32 %v3653_v0, %v3574_v50 }
 0x32f   : >> { %v3659_v37 = vpop.permute.xlu1 %3658  ;;  %v3657_v52 = vpop.permute.xlu0 %3656 }
 0x330   : >> { %v3690_v34 = vadd.f32 %v3657_v52, %v7739_v31 }
 0x333   : >> { %v3663_v38 = vpop.permute.xlu1 %3662  ;;  %v3661_v16 = vpop.permute.xlu0 %3660 }
 0x334   : >> { %v3693_v22 = vadd.f32 %v3663_v38, %v7744_v55  ;;  %v3692_v61 = vadd.f32 %v3661_v16, %v7746_v51  ;;  %v3925_v51 = vstv (%p7765_p6), %s3924_s5 }
 0x337   : >> { %v3667_v26 = vpop.permute.xlu1 %3666  ;;  %v3665_v3 = vpop.permute.xlu0 %3664 }
 0x338   : >> { %v3694_v31 = vadd.f32 %v3665_v3, %v7752_v63 }
 0x33b   : >> { %v3757_v42 = vpop.permute.xlu1 %3756  ;;  %v3755_v2 = vpop.permute.xlu0 %3754 }
 0x33c   : >> { %v3797_v59 = vadd.f32 %v3757_v42, %v3683_v48  ;;  %v3796_v14 = vadd.f32 %v3755_v2, %v3682_v44 }
 0x33f   : >> { %v3761_v30 = vpop.permute.xlu1 %3760  ;;  %v3759_v47 = vpop.permute.xlu0 %3758 }
 0x340   : >> { %v3799_v9 = vadd.f32 %v3761_v30, %v3685_v15  ;;  %v3798_v54 = vadd.f32 %v3759_v47, %v3684_v43 }
 0x343   : >> { %v3765_v6 = vpop.permute.xlu1 %3764  ;;  %v3763_v1 = vpop.permute.xlu0 %3762 }
 0x344   : >> { %v3801_v23 = vadd.f32 %v3765_v6, %v3687_v35  ;;  %v3800_v32 = vadd.f32 %v3763_v1, %v3686_v57 }
 0x347   : >> { %v3769_v49 = vpop.permute.xlu1 %3768  ;;  %v3767_v28 = vpop.permute.xlu0 %3766 }
 0x348   : >> { %v3803_v53 = vadd.f32 %v3769_v49, %v3689_v12  ;;  %v3802_v62 = vadd.f32 %v3767_v28, %v3688_v40 }
 0x34b   : >> { %v3773_v13 = vpop.permute.xlu1 %3772  ;;  %v3771_v27 = vpop.permute.xlu0 %3770 }
 0x34c   : >> { %v3804_v58 = vadd.f32 %v3771_v27, %v3690_v34 }
 0x34f   : >> { %v3777_v56 = vpop.permute.xlu1 %3776  ;;  %v3775_v41 = vpop.permute.xlu0 %3774 }
 0x350   : >> { %v3807_v35 = vadd.f32 %v3777_v56, %v3693_v22  ;;  %v3806_v0 = vadd.f32 %v3775_v41, %v3692_v61 }
 0x353   : >> { %v3781_v25 = vpop.permute.xlu1 %3780  ;;  %v3779_v60 = vpop.permute.xlu0 %3778 }
 0x354   : >> { %v3808_v2 = vadd.f32 %v3779_v60, %v3694_v31 }
 0x357   : >> { %v3871_v24 = vpop.permute.xlu1 %3870  ;;  %v3869_v21 = vpop.permute.xlu0 %3868 }
 0x358   : >> { %v7754_v36 = vadd.f32 %v3871_v24, %v3797_v59   ;;  %v7756_v5 = vadd.f32 %v3869_v21, %v3796_v14  }
 0x35a   : >> { %v8240_v50 = vmov %v7754_v36  ;;  %v3691_v36 = vadd.f32 %v3659_v37, %v7737_v8  ;;  %v3695_v8 = vadd.f32 %v3667_v26, %v7750_v45  ;;  %v3926_v45 = vadd.f32 (%p7765_p6), %v3925_v51, %v7756_v5 }
 0x35b   : >> { %v3875_v17 = vpop.permute.xlu1 %3874  ;;  %v3873_v4 = vpop.permute.xlu0 %3872  ;;  %v3927_v63 = vadd.f32 (%p7765_p6), %v3925_v51, %v8240_v50 }
 0x35c   : >> { %v3913_v11 = vadd.f32 %v3875_v17, %v3799_v9   ;;  %v3912_v19 = vadd.f32 %v3873_v4, %v3798_v54   ;;  %v3805_v46 = vadd.f32 %v3773_v13, %v3691_v36  ;;  %v3809_v37 = vadd.f32 %v3781_v25, %v3695_v8 }
 0x35d   : >> { %v8254_v36 = vmov %v8240_v50  ;;  %v3940_v56 = vmax.f32 (%p7765_p6), %v3926_v45, 0.0  ;;  %v3941_v41 = vmax.f32 (%p7765_p6), %v3927_v63, 0.0 }
 0x35e   : >> { %v8252_v34 = vmov %v3913_v11  ;;  %v3928_v38 = vadd.f32 (%p7765_p6), %v3925_v51, %v3912_v19  ;;  %v3929_v16 = vadd.f32 (%p7765_p6), %v3925_v51, %v3913_v11 }
 0x35f   : >> { %v3879_v29 = vpop.permute.xlu1 %3878  ;;  %v3877_v20 = vpop.permute.xlu0 %3876  ;;  %3955 = vst.msk [vmem:[%s5134_s16] sm:$0xff] (%p7765_p6), %vm3954_vm4, %v3940_v56  ;;  %3956 = vst.msk [vmem:[%s5134_s16 + $0x8] sm:$0xff] (%p7765_p6), %vm3954_vm4, %v3941_v41 }
 0x360   : >> { %v3915_v18 = vadd.f32 %v3879_v29, %v3801_v23   ;;  %v3914_v39 = vadd.f32 %v3877_v20, %v3800_v32  }
 0x362   : >> { %v8250_v32 = vmov %v3915_v18  ;;  %v3930_v3 = vadd.f32 (%p7765_p6), %v3925_v51, %v3914_v39  ;;  %v3931_v1 = vadd.f32 (%p7765_p6), %v3925_v51, %v3915_v18 }
 0x363   : >> { %v3883_v33 = vpop.permute.xlu1 %3882  ;;  %v3881_v7 = vpop.permute.xlu0 %3880 }
 0x364   : >> { %v3917_v48 = vadd.f32 %v3883_v33, %v3803_v53   ;;  %v3916_v44 = vadd.f32 %v3881_v7, %v3802_v62   ;;  %v8251_v33 = vmov %v3914_v39 }
 0x366   : >> { %v8249_v31 = vmov %v3916_v44  ;;  %v3932_v49 = vadd.f32 (%p7765_p6), %v3925_v51, %v3916_v44  ;;  %v3933_v13 = vadd.f32 (%p7765_p6), %v3925_v51, %v3917_v48 }
 0x367   : >> { %v3887_v15 = vpop.permute.xlu1 %3886  ;;  %v3885_v43 = vpop.permute.xlu0 %3884 }
 0x368   : >> { %v3919_v57 = vadd.f32 %v3887_v15, %v3805_v46   ;;  %v3918_v10 = vadd.f32 %v3885_v43, %v3804_v58   ;;  %v3946_v60 = vmax.f32 (%p7765_p6), %v3932_v49, 0.0  ;;  %v3947_v59 = vmax.f32 (%p7765_p6), %v3933_v13, 0.0 }
 0x36a   : >> { %v8246_v28 = vmov %v3919_v57  ;;  %v8247_v29 = vmov %v3918_v10  ;;  %v3934_v14 = vadd.f32 (%p7765_p6), %v3925_v51, %v3918_v10  ;;  %3961 = vst.msk [vmem:[%s5134_s16 + $0x30] sm:$0xff] (%p7765_p6), %vm3954_vm4, %v3946_v60  ;;  %3962 = vst.msk [vmem:[%s5134_s16 + $0x38] sm:$0xff] (%p7765_p6), %vm3954_vm4, %v3947_v59 }
 0x36b   : >> { %v3891_v12 = vpop.permute.xlu1 %3890  ;;  %v3889_v40 = vpop.permute.xlu0 %3888  ;;  %v3943_v28 = vmax.f32 (%p7765_p6), %v3929_v16, 0.0 }
 0x36c   : >> { %v3921_v52 = vadd.f32 %v3891_v12, %v3807_v35   ;;  %v3920_v42 = vadd.f32 %v3889_v40, %v3806_v0   ;;  %v8253_v35 = vmov %v3912_v19  ;;  %1341 = sbr.rel (!%p7765_p6) target bundleno = 196 (0xc4), region = 118  ;;  %v3948_v54 = vmax.f32 (%p7765_p6), %v3934_v14, 0.0 }
 0x36d   : > { %3958 = vst.msk [vmem:[%s5134_s16 + $0x18] sm:$0xff] (%p7765_p6), %vm3954_vm4, %v3943_v28 }
 0x36e   : >> { %v8244_v26 = vmov %v3921_v52  ;;  %v8245_v27 = vmov %v3920_v42  ;;  %v3936_v21 = vadd.f32 (%p7765_p6), %v3925_v51, %v3920_v42  ;;  %v3937_v50 = vadd.f32 (%p7765_p6), %v3925_v51, %v3921_v52  ;;  %3963 = vst.msk [vmem:[%s5134_s16 + $0x40] sm:$0xff] (%p7765_p6), %vm3954_vm4, %v3948_v54 }
 0x36f   : >> { %v3895_v30 = vpop.permute.xlu1 %3894  ;;  %v3893_v47 = vpop.permute.xlu0 %3892  ;;  %v3942_v26 = vmax.f32 (%p7765_p6), %v3928_v38, 0.0  ;;  %v3944_v27 = vmax.f32 (%p7765_p6), %v3930_v3, 0.0 }
 0x370   : >> { %v3923_v6 = vadd.f32 %v3895_v30, %v3809_v37   ;;  %v3922_v55 = vadd.f32 %v3893_v47, %v3808_v2   ;;  %v8248_v30 = vmov %v3917_v48  ;;  %v8255_v37 = vmov %v7756_v5 }
 0x371   : > { %3957 = vst.msk [vmem:[%s5134_s16 + $0x10] sm:$0xff] (%p7765_p6), %vm3954_vm4, %v3942_v26  ;;  %3959 = vst.msk [vmem:[%s5134_s16 + $0x20] sm:$0xff] (%p7765_p6), %vm3954_vm4, %v3944_v27  ;;  %v3950_v4 = vmax.f32 (%p7765_p6), %v3936_v21, 0.0  ;;  %v3951_v11 = vmax.f32 (%p7765_p6), %v3937_v50, 0.0 }
 0x372   : >> { %v8242_v24 = vmov %v3923_v6  ;;  %v8243_v25 = vmov %v3922_v55  ;;  %v3938_v5 = vadd.f32 (%p7765_p6), %v3925_v51, %v3922_v55  ;;  %v3939_v9 = vadd.f32 (%p7765_p6), %v3925_v51, %v3923_v6 }
 0x373   : > { %v3945_v25 = vmax.f32 %v3931_v1, 0.0  ;;  %v3935_v24 = vadd.f32 %v3925_v51, %v3919_v57  ;;  %3965 = vst.msk [vmem:[%s5134_s16 + $0x50] sm:$0xff] %vm3954_vm4, %v3950_v4  ;;  %3966 = vst.msk [vmem:[%s5134_s16 + $0x58] sm:$0xff] %vm3954_vm4, %v3951_v11 }
 0x374   : > { %v3952_v19 = vmax.f32 %v3938_v5, 0.0  ;;  %v3953_v23 = vmax.f32 %v3939_v9, 0.0 }
 0x375   : > { %3960 = vst.msk [vmem:[%s5134_s16 + $0x28] sm:$0xff] %vm3954_vm4, %v3945_v25  ;;  %v3949_v17 = vmax.f32 %v3935_v24, 0.0 }
 0x376   : > { %3967 = vst.msk [vmem:[%s5134_s16 + $0x60] sm:$0xff] %vm3954_vm4, %v3952_v19 }
 0x377   : > { %3964 = vst.msk [vmem:[%s5134_s16 + $0x48] sm:$0xff] %vm3954_vm4, %v3949_v17 }
 0x378   : > { %3969 = vst.msk [vmem:[%s5134_s16 + $0x68] sm:$0x7] %vm3968_vm5, %v3953_v23 }
 0x379 PF: > { %p12_p7 = scmp.ge.s32.totalorder %s4518_s17, 4   ;;  %s8256_s14 = smov %s4405_s15 }
 0x37a   : > { %s8257_s15 = smov %s4528_s20  ;;  %s8258_s16 = smov %s4518_s17 }
 0x37b   :  { %14 = sbr.rel (!%p12_p7) target bundleno = 4 (0x4), region = 129 }
 0x382   :  { %3991 = vsyncpa [#allocation5], 1 }
 0x383   :  { %3993 = vsyncpa [#allocation5 + $0x1], 1 }

// kernel: berson_forward.5
= control target key start
LH: loop header
LB: loop body
LE: loop exit
PB: predicated region body
PF: predicated region fallthrough
CT: control target
= control target key end

     0   :  { %12 = vsyncpa [#allocation4], 0  ;;  %s3018_s24 = smov 0   ;;  %s3622_s0 = inlined_call_operand.vmem [shape: bf16[2,12288], index: 0, kind: input, shape index: {}]   ;;  %s3623_s1 = inlined_call_operand.vmem [shape: bf16[12288,128], index: 1, kind: input, shape index: {}]   ;;  %s3624_s2 = inlined_call_operand.vmem [shape: f32[1,128], index: 2, kind: input, shape index: {}]   ;;  %s3625_s3 = inlined_call_operand.vmem [shape: f32[128,512], index: 3, kind: input, shape index: {}]   ;;  %s3626_s4 = inlined_call_operand.vmem [shape: f32[1,512], index: 4, kind: input, shape index: {}]   ;;  %s3627_s5 = inlined_call_operand.vmem [shape: f32[512,22], index: 5, kind: input, shape index: {}]   ;;  %s3628_s6 = inlined_call_operand.vmem [shape: f32[1,22], index: 6, kind: input, shape index: {}]   ;;  %s3629_s7 = inlined_call_operand.hbm [shape: f32[2,22], index: 7, kind: output, shape index: {}]  }
   0x1 LB: > { %s3024_s25 = sadd.s32 4294967295, %s2972_s24   ;;  %p2274_p0 = scmp.ge.s32.totalorder %s2972_s24, 1  ;;  %s2972_s24 = sphi %s3018_s24, %s18_s24  }
   0x2   : > { %p244_p1 = scmp.lt.s32.totalorder %s2972_s24, 7 }
   0x4   : > { %p245_p2 = pnand %p2274_p0, %p244_p1 }
   0x5   : > { %s2275_s26 = sshll.u32 (!%p245_p2), %s3024_s25, 4  ;;  %s2276_s27 = sshll.u32 (!%p245_p2), %s3024_s25, 8 }
   0x6   : > { %248 = sbr.rel (%p245_p2) target bundleno = 851 (0x353), region = 48  ;;  %p276_p3 = scmp.lt.s32.totalorder (!%p245_p2), %s2275_s26, 95 }
   0x7   : > { %p281_p4 = scmp.lt.s32.totalorder (!%p245_p2), %s2276_s27, 1535  ;;  %p2278_p5 = scmp.ne.s32.totalorder (!%p245_p2), %s3024_s25, 0 }
   0xd   : > { %s3631_s26 = smov (!%p276_p3, %s2275_s26), 95  ;;  %s3633_s27 = smov (!%p281_p4, %s2276_s27), 1535 }
   0xe   : > { %s3033_s30 = scalar_lea.vmem %s3622_s0, %s3631_s26  ;;  %s2277_s8 = sshll.u32 %s3633_s27, 2  ;;  %v2974_v0 = vmov (!%p2278_p5), 0.0  }
   0xf   : > { %s3038_s11 = scalar_lea.vmem %s3623_s1, %s2277_s8  ;;  %290 = sbr.rel (%p2278_p5) target bundleno = 22 (0x16), region = 52  ;;  %291 = vst [vmem:[#allocation2] sm:$0x3] (!%p2278_p5), %v2974_v0 }
  0x16 PF: > { %v2806_v1 = vld [vmem:[%s3038_s11 + $0x40] sm:$0xff]   ;;  %v2810_v5 = vld [vmem:[%s3038_s11 + $0x48] sm:$0xff]   ;;  %v2814_v9 = vld [vmem:[%s3038_s11 + $0x50] sm:$0xff]   ;;  %v557_v29 = vlaneseq  ;;  %v2975_v37 = vmov 1966171168   ;;  %p2407_p6 = scmp.ne.s32.totalorder %s3024_s25, 5 }
  0x17   : > { %v2807_v2 = vld [vmem:[%s3038_s11 + $0xc0] sm:$0xff]   ;;  %2414 = vmatprep.subr.bf16.mxu0 %v2806_v1  ;;  %v2811_v6 = vld [vmem:[%s3038_s11 + $0xc8] sm:$0xff]   ;;  %v2815_v10 = vld [vmem:[%s3038_s11 + $0xd0] sm:$0xff]   ;;  %v555_v38 = vunpack.c.l.s4 %v2975_v37  ;;  %vm2214_vm0 = vcmask (!%p2407_p6), 173056  }
  0x18   : > { %v2808_v3 = vld [vmem:[%s3038_s11] sm:$0xff]   ;;  %2436 = vmatprep.subr.bf16.mxu1 %v2807_v2  ;;  %v2812_v7 = vld [vmem:[%s3038_s11 + $0x8] sm:$0xff]   ;;  %v2816_v11 = vld [vmem:[%s3038_s11 + $0x10] sm:$0xff]   ;;  %v3073_v34 = vshrl.u32 %v557_v29, 7 }
  0x19   : > { %v2809_v4 = vld [vmem:[%s3038_s11 + $0x80] sm:$0xff]   ;;  %2415 = vmatpush3.bf16.msra.mxu0 %v2808_v3  ;;  %v2813_v8 = vld [vmem:[%s3038_s11 + $0x88] sm:$0xff]   ;;  %v2817_v12 = vld [vmem:[%s3038_s11 + $0x90] sm:$0xff]   ;;  %v556_v41 = vunpack.c.0.s8 %v555_v38 }
  0x1a   : > { %2437 = vmatpush3.bf16.msra.mxu1 %v2809_v4  ;;  %2416 = vmatprep.subr.bf16.mxu0 %v2810_v5  ;;  %v2818_v13 = vld [vmem:[%s3038_s11 + $0x58] sm:$0xff]   ;;  %v2822_v17 = vld [vmem:[%s3038_s11 + $0x60] sm:$0xff]   ;;  %v2826_v21 = vld [vmem:[%s3038_s11 + $0x68] sm:$0xff]  }
  0x1b   : > { %2438 = vmatprep.subr.bf16.mxu1 %v2811_v6  ;;  %v2819_v14 = vld [vmem:[%s3038_s11 + $0xd8] sm:$0xff]   ;;  %v2823_v18 = vld [vmem:[%s3038_s11 + $0xe0] sm:$0xff]   ;;  %v2827_v22 = vld [vmem:[%s3038_s11 + $0xe8] sm:$0xff]   ;;  %v3079_v42 = vsub.s32 %v556_v41, %v3073_v34 }
  0x1c   : > { %v2820_v15 = vld [vmem:[%s3038_s11 + $0x18] sm:$0xff]   ;;  %v2824_v19 = vld [vmem:[%s3038_s11 + $0x20] sm:$0xff]   ;;  %v2828_v23 = vld [vmem:[%s3038_s11 + $0x28] sm:$0xff]  }
  0x1d   : > { %2417 = vmatpush3.bf16.msra.mxu0 %v2812_v7  ;;  %v2821_v16 = vld [vmem:[%s3038_s11 + $0x98] sm:$0xff]   ;;  %v2825_v20 = vld [vmem:[%s3038_s11 + $0xa0] sm:$0xff]   ;;  %v2829_v24 = vld [vmem:[%s3038_s11 + $0xa8] sm:$0xff]  }
  0x1e   : > { %2439 = vmatpush3.bf16.msra.mxu1 %v2813_v8  ;;  %2418 = vmatprep.subr.bf16.mxu0 %v2814_v9  ;;  %v2830_v25 = vld [vmem:[%s3038_s11 + $0x70] sm:$0xff]   ;;  %v2834_v30 = vld [vmem:[%s3038_s11 + $0x78] sm:$0xff]   ;;  %v293_v35 = vld [vmem:[%s3033_s30] sm:$0xff] }
  0x1f   : > { %2440 = vmatprep.subr.bf16.mxu1 %v2815_v10  ;;  %v2831_v26 = vld [vmem:[%s3038_s11 + $0xf0] sm:$0xff]   ;;  %v2835_v31 = vld [vmem:[%s3038_s11 + $0xf8] sm:$0xff]   ;;  %v2839_v36 = vld [vmem:[%s3038_s11 + $0x140] sm:$0xff]   ;;  %v553_v40 = vcombine.high %v293_v35, %v293_v35  ;;  %v560_v43 = vrot.slane %v293_v35, %v3079_v42 }
  0x20   : > { %v2832_v27 = vld [vmem:[%s3038_s11 + $0x30] sm:$0xff]   ;;  %v2836_v32 = vld [vmem:[%s3038_s11 + $0x38] sm:$0xff]   ;;  %v2840_v39 = vld [vmem:[%s3038_s11 + $0x1c0] sm:$0xff]  }
  0x21   : > { %2419 = vmatpush3.bf16.msra.mxu0 %v2816_v11  ;;  %v2833_v28 = vld [vmem:[%s3038_s11 + $0xb0] sm:$0xff]   ;;  %v2837_v33 = vld [vmem:[%s3038_s11 + $0xb8] sm:$0xff]   ;;  %v3083_v44 = vrot.slane %v553_v40, %v3079_v42  ;;  %v568_v45 = vcombine.high %v560_v43, %v560_v43  ;;  %v576_v46 = vrot.slane %v560_v43, %v3079_v42  ;;  %v2841_v49 = vld [vmem:[%s3038_s11 + $0x100] sm:$0xff]  }
  0x22   : > { %2441 = vmatpush3.bf16.msra.mxu1 %v2817_v12  ;;  %2420 = vmatprep.subr.bf16.mxu0 %v2818_v13  ;;  %v2843_v52 = vld [vmem:[%s3038_s11 + $0x148] sm:$0xff]   ;;  %v2842_v54 = vld [vmem:[%s3038_s11 + $0x180] sm:$0xff]   ;;  %v2847_v58 = vld [vmem:[%s3038_s11 + $0x150] sm:$0xff]  }
  0x23   : > { %2442 = vmatprep.subr.bf16.mxu1 %v2819_v14  ;;  %v569_v47 = vcombine.high %v3083_v44, %v3083_v44  ;;  %v590_v48 = vrot.slane %v568_v45, %v3079_v42  ;;  %v598_v51 = vcombine.high %v576_v46, %v576_v46  ;;  %v2844_v55 = vld [vmem:[%s3038_s11 + $0x1c8] sm:$0xff]   ;;  %v2848_v60 = vld [vmem:[%s3038_s11 + $0x1d0] sm:$0xff]   ;;  %v2851_v62 = vld [vmem:[%s3038_s11 + $0x158] sm:$0xff]  }
  0x24   : > { %v2845_v57 = vld [vmem:[%s3038_s11 + $0x108] sm:$0xff]   ;;  %v2849_v61 = vld [vmem:[%s3038_s11 + $0x110] sm:$0xff]   ;;  %v2852_v0 = vld [vmem:[%s3038_s11 + $0x1d8] sm:$0xff]  }
  0x25   : > { %2421 = vmatpush3.bf16.msra.mxu0 %v2820_v15  ;;  %v597_v50 = vrot.slane %v569_v47, %v3079_v42  ;;  %1467 = vmatprep.mubr.bf16.mxu0 %v590_v48  ;;  %v600_v53 = vcombine.high %v590_v48, %v590_v48  ;;  %v2846_v59 = vld [vmem:[%s3038_s11 + $0x188] sm:$0xff]   ;;  %v2850_v63 = vld [vmem:[%s3038_s11 + $0x190] sm:$0xff]   ;;  %v2853_v1 = vld [vmem:[%s3038_s11 + $0x118] sm:$0xff]  }
  0x26   : > { %2443 = vmatpush3.bf16.msra.mxu1 %v2821_v16  ;;  %2422 = vmatprep.subr.bf16.mxu0 %v2822_v17  ;;  %v2855_v2 = vld [vmem:[%s3038_s11 + $0x160] sm:$0xff]   ;;  %v2854_v3 = vld [vmem:[%s3038_s11 + $0x198] sm:$0xff]   ;;  %v2859_v6 = vld [vmem:[%s3038_s11 + $0x168] sm:$0xff]  }
  0x27   : > { %2444 = vmatprep.subr.bf16.mxu1 %v2823_v18  ;;  %v601_v56 = vcombine.high %v597_v50, %v597_v50  ;;  %1507 = vmatprep.mubr.bf16.mxu1 %v600_v53  ;;  %v2856_v4 = vld [vmem:[%s3038_s11 + $0x1e0] sm:$0xff]   ;;  %v2860_v8 = vld [vmem:[%s3038_s11 + $0x1e8] sm:$0xff]   ;;  %v2863_v10 = vld [vmem:[%s3038_s11 + $0x170] sm:$0xff]   ;;  %v583_v18 = vrot.slane %v3083_v44, %v3079_v42 }
  0x28   : > { %v2857_v5 = vld [vmem:[%s3038_s11 + $0x120] sm:$0xff]   ;;  %v2861_v9 = vld [vmem:[%s3038_s11 + $0x128] sm:$0xff]   ;;  %v2864_v12 = vld [vmem:[%s3038_s11 + $0x1f0] sm:$0xff]  }
  0x29   : > { %2423 = vmatpush3.bf16.msra.mxu0 %v2824_v19  ;;  %v2858_v7 = vld [vmem:[%s3038_s11 + $0x1a0] sm:$0xff]   ;;  %v2862_v11 = vld [vmem:[%s3038_s11 + $0x1a8] sm:$0xff]   ;;  %v2865_v13 = vld [vmem:[%s3038_s11 + $0x130] sm:$0xff]  }
  0x2a   : > { %2445 = vmatpush3.bf16.msra.mxu1 %v2825_v20  ;;  %2424 = vmatprep.subr.bf16.mxu0 %v2826_v21  ;;  %v2867_v14 = vld [vmem:[%s3038_s11 + $0x178] sm:$0xff]   ;;  %v2866_v15 = vld [vmem:[%s3038_s11 + $0x1b0] sm:$0xff]   ;;  %v2871_v19 = vld [vmem:[%s3038_s11 + $0x240] sm:$0xff]  }
  0x2b   : > { %2446 = vmatprep.subr.bf16.mxu1 %v2827_v22  ;;  %v2868_v16 = vld [vmem:[%s3038_s11 + $0x1f8] sm:$0xff]   ;;  %v2872_v21 = vld [vmem:[%s3038_s11 + $0x2c0] sm:$0xff]   ;;  %v2878_v29 = vld [vmem:[%s3038_s11 + $0x288] sm:$0xff]  }
  0x2c   : > { %v2869_v17 = vld [vmem:[%s3038_s11 + $0x138] sm:$0xff]   ;;  %v2873_v22 = vld [vmem:[%s3038_s11 + $0x200] sm:$0xff]   ;;  %v2891_v41 = vld [vmem:[%s3038_s11 + $0x268] sm:$0xff]  }
  0x2d   : > { %2425 = vmatpush3.bf16.msra.mxu0 %v2828_v23  ;;  %v2870_v20 = vld [vmem:[%s3038_s11 + $0x1b8] sm:$0xff]   ;;  %v599_v23 = vcombine.high %v583_v18, %v583_v18  ;;  %v2887_v37 = vld [vmem:[%s3038_s11 + $0x260] sm:$0xff]   ;;  %v2892_v44 = vld [vmem:[%s3038_s11 + $0x2e8] sm:$0xff]  }
  0x2e   : > { %2447 = vmatpush3.bf16.msra.mxu1 %v2829_v24  ;;  %2426 = vmatprep.subr.bf16.mxu0 %v2830_v25  ;;  %v2875_v24 = vld [vmem:[%s3038_s11 + $0x248] sm:$0xff]   ;;  %v2874_v25 = vld [vmem:[%s3038_s11 + $0x280] sm:$0xff]   ;;  %v2884_v35 = vld [vmem:[%s3038_s11 + $0x2d8] sm:$0xff]  }
  0x2f   : > { %2448 = vmatprep.subr.bf16.mxu1 %v2831_v26  ;;  %v2876_v26 = vld [vmem:[%s3038_s11 + $0x2c8] sm:$0xff]   ;;  %v2886_v38 = vld [vmem:[%s3038_s11 + $0x298] sm:$0xff]   ;;  %v2889_v40 = vld [vmem:[%s3038_s11 + $0x220] sm:$0xff]  }
  0x30   : > { %v2890_v43 = vld [vmem:[%s3038_s11 + $0x2a0] sm:$0xff]   ;;  %v2893_v45 = vld [vmem:[%s3038_s11 + $0x228] sm:$0xff]  }
  0x31   : > { %2427 = vmatpush3.bf16.msra.mxu0 %v2832_v27  ;;  %v2877_v27 = vld [vmem:[%s3038_s11 + $0x208] sm:$0xff]  }
  0x32   : > { %2449 = vmatpush3.bf16.msra.mxu1 %v2833_v28  ;;  %2428 = vmatprep.subr.bf16.mxu0 %v2834_v30  ;;  %v2879_v28 = vld [vmem:[%s3038_s11 + $0x250] sm:$0xff]   ;;  %v294_v47 = vld [vmem:[%s3033_s30 + $0x8] sm:$0xff] }
  0x33   : > { %2450 = vmatprep.subr.bf16.mxu1 %v2835_v31  ;;  %v2880_v30 = vld [vmem:[%s3038_s11 + $0x2d0] sm:$0xff]   ;;  %v2894_v48 = vld [vmem:[%s3038_s11 + $0x2a8] sm:$0xff]  }
  0x34   : > { %v2881_v31 = vld [vmem:[%s3038_s11 + $0x210] sm:$0xff]  }
  0x35   : > { %2429 = vmatpush3.bf16.msra.mxu0 %v2836_v32  ;;  %v2883_v32 = vld [vmem:[%s3038_s11 + $0x258] sm:$0xff]  }
  0x36   : > { %2451 = vmatpush3.bf16.msra.mxu1 %v2837_v33  ;;  %2458 = vmatprep.subr.bf16.mxu0 %v2839_v36  ;;  %v2882_v33 = vld [vmem:[%s3038_s11 + $0x290] sm:$0xff]   ;;  %v2885_v36 = vld [vmem:[%s3038_s11 + $0x218] sm:$0xff]  }
  0x37   : > { %2480 = vmatprep.subr.bf16.mxu1 %v2840_v39  ;;  %v2888_v39 = vld [vmem:[%s3038_s11 + $0x2e0] sm:$0xff]  }
  0x38   : > { %1468 = vmatmul.mubr.bf16.vlgmr.msra.gmra.mrb[0].mxu0 %v576_v46  ;;  %v2895_v46 = vld [vmem:[%s3038_s11 + $0x270] sm:$0xff]  }
  0x39   : > { %2459 = vmatpush3.bf16.msra.mxu0 %v2841_v49  ;;  %1508 = vmatmul.mubr.bf16.vlgmr.msra.gmra.mrb[0].mxu1 %v598_v51  ;;  %v609_v49 = vrot.slane %v294_v47, %v3079_v42  ;;  %v2896_v51 = vld [vmem:[%s3038_s11 + $0x2f0] sm:$0xff]  }
  0x3a   : > { %2460 = vmatprep.subr.bf16.mxu0 %v2843_v52  ;;  %2481 = vmatpush3.bf16.msra.mxu1 %v2842_v54  ;;  %v2897_v52 = vld [vmem:[%s3038_s11 + $0x230] sm:$0xff]  }
  0x3b   : > { %1547 = vmatprep.mubr.bf16.mxu0 %v597_v50  ;;  %2482 = vmatprep.subr.bf16.mxu1 %v2844_v55  ;;  %v602_v50 = vcombine.high %v294_v47, %v294_v47  ;;  %v617_v53 = vcombine.high %v609_v49, %v609_v49  ;;  %v2899_v55 = vld [vmem:[%s3038_s11 + $0x278] sm:$0xff]  }
  0x3c   : > { %1587 = vmatprep.mubr.bf16.mxu1 %v601_v56  ;;  %v2898_v56 = vld [vmem:[%s3038_s11 + $0x2b0] sm:$0xff]  }
  0x3d   : > { %2461 = vmatpush3.bf16.msra.mxu0 %v2845_v57  ;;  %v3152_v54 = vrot.slane %v602_v50, %v3079_v42  ;;  %v639_v57 = vrot.slane %v617_v53, %v3079_v42 }
  0x3e   : > { %2462 = vmatprep.subr.bf16.mxu0 %v2847_v58  ;;  %2483 = vmatpush3.bf16.msra.mxu1 %v2846_v59  ;;  %v2900_v59 = vld [vmem:[%s3038_s11 + $0x2f8] sm:$0xff]  }
  0x3f   : > { %2484 = vmatprep.subr.bf16.mxu1 %v2848_v60  ;;  %v618_v58 = vcombine.high %v3152_v54, %v3152_v54  ;;  %v2901_v60 = vld [vmem:[%s3038_s11 + $0x238] sm:$0xff]  }
  0x41   : > { %2463 = vmatpush3.bf16.msra.mxu0 %v2849_v61  ;;  %v649_v61 = vcombine.high %v639_v57, %v639_v57 }
  0x42   : > { %2464 = vmatprep.subr.bf16.mxu0 %v2851_v62  ;;  %2485 = vmatpush3.bf16.msra.mxu1 %v2850_v63  ;;  %v625_v62 = vrot.slane %v609_v49, %v3079_v42  ;;  %v2903_v63 = vld [vmem:[%s3038_s11 + $0x340] sm:$0xff]  }
  0x43   : > { %2486 = vmatprep.subr.bf16.mxu1 %v2852_v0  ;;  %v2902_v0 = vld [vmem:[%s3038_s11 + $0x2b8] sm:$0xff]  }
  0x45   : > { %2465 = vmatpush3.bf16.msra.mxu0 %v2853_v1  ;;  %v646_v1 = vrot.slane %v618_v58, %v3079_v42 }
  0x46   : > { %2466 = vmatprep.subr.bf16.mxu0 %v2855_v2  ;;  %2487 = vmatpush3.bf16.msra.mxu1 %v2854_v3  ;;  %v2904_v2 = vld [vmem:[%s3038_s11 + $0x3c0] sm:$0xff]  }
  0x47   : > { %2488 = vmatprep.subr.bf16.mxu1 %v2856_v4  ;;  %v2905_v3 = vld [vmem:[%s3038_s11 + $0x300] sm:$0xff]   ;;  %v647_v4 = vcombine.high %v625_v62, %v625_v62 }
  0x49   : > { %2467 = vmatpush3.bf16.msra.mxu0 %v2857_v5  ;;  %v2907_v5 = vld [vmem:[%s3038_s11 + $0x348] sm:$0xff]  }
  0x4a   : > { %2468 = vmatprep.subr.bf16.mxu0 %v2859_v6  ;;  %2489 = vmatpush3.bf16.msra.mxu1 %v2858_v7  ;;  %v2906_v6 = vld [vmem:[%s3038_s11 + $0x380] sm:$0xff]   ;;  %v650_v7 = vcombine.high %v646_v1, %v646_v1 }
  0x4b   : > { %2490 = vmatprep.subr.bf16.mxu1 %v2860_v8  ;;  %v2908_v8 = vld [vmem:[%s3038_s11 + $0x3c8] sm:$0xff]  }
  0x4d   : > { %2469 = vmatpush3.bf16.msra.mxu0 %v2861_v9  ;;  %v2909_v9 = vld [vmem:[%s3038_s11 + $0x308] sm:$0xff]  }
  0x4e   : > { %2470 = vmatprep.subr.bf16.mxu0 %v2863_v10  ;;  %2491 = vmatpush3.bf16.msra.mxu1 %v2862_v11  ;;  %v2911_v10 = vld [vmem:[%s3038_s11 + $0x350] sm:$0xff]   ;;  %v2910_v11 = vld [vmem:[%s3038_s11 + $0x388] sm:$0xff]  }
  0x4f   : > { %2492 = vmatprep.subr.bf16.mxu1 %v2864_v12  ;;  %v2912_v12 = vld [vmem:[%s3038_s11 + $0x3d0] sm:$0xff]  }
  0x51   : > { %2471 = vmatpush3.bf16.msra.mxu0 %v2865_v13  ;;  %v2913_v13 = vld [vmem:[%s3038_s11 + $0x310] sm:$0xff]  }
  0x52   : > { %2472 = vmatprep.subr.bf16.mxu0 %v2867_v14  ;;  %2493 = vmatpush3.bf16.msra.mxu1 %v2866_v15  ;;  %v2915_v14 = vld [vmem:[%s3038_s11 + $0x358] sm:$0xff]   ;;  %v2914_v15 = vld [vmem:[%s3038_s11 + $0x390] sm:$0xff]  }
  0x53   : > { %2494 = vmatprep.subr.bf16.mxu1 %v2868_v16  ;;  %v2916_v16 = vld [vmem:[%s3038_s11 + $0x3d8] sm:$0xff]  }
  0x55   : > { %2473 = vmatpush3.bf16.msra.mxu0 %v2869_v17  ;;  %v2917_v17 = vld [vmem:[%s3038_s11 + $0x318] sm:$0xff]  }
  0x56   : > { %2502 = vmatprep.subr.bf16.mxu0 %v2871_v19  ;;  %2495 = vmatpush3.bf16.msra.mxu1 %v2870_v20  ;;  %v2918_v19 = vld [vmem:[%s3038_s11 + $0x398] sm:$0xff]   ;;  %v2920_v20 = vld [vmem:[%s3038_s11 + $0x3e0] sm:$0xff]  }
  0x57   : > { %2524 = vmatprep.subr.bf16.mxu1 %v2872_v21  ;;  %v2921_v21 = vld [vmem:[%s3038_s11 + $0x320] sm:$0xff]  }
  0x58   : > { %1548 = vmatmul.mubr.bf16.vlgmr.msra.gmra.mrb[4].mxu0 %v583_v18  ;;  %v2919_v18 = vld [vmem:[%s3038_s11 + $0x360] sm:$0xff]  }
  0x59   : > { %2503 = vmatpush3.bf16.msra.mxu0 %v2873_v22  ;;  %1588 = vmatmul.mubr.bf16.vlgmr.msra.gmra.mrb[4].mxu1 %v599_v23  ;;  %v2923_v22 = vld [vmem:[%s3038_s11 + $0x368] sm:$0xff]   ;;  %v2922_v23 = vld [vmem:[%s3038_s11 + $0x3a0] sm:$0xff]  }
  0x5a   : > { %2504 = vmatprep.subr.bf16.mxu0 %v2875_v24  ;;  %2525 = vmatpush3.bf16.msra.mxu1 %v2874_v25  ;;  %v2924_v24 = vld [vmem:[%s3038_s11 + $0x3e8] sm:$0xff]  }
  0x5b   : > { %2526 = vmatprep.subr.bf16.mxu1 %v2876_v26  ;;  %1627 = vmatprep.mubr.bf16.mxu0 %v639_v57  ;;  %v2925_v25 = vld [vmem:[%s3038_s11 + $0x328] sm:$0xff]   ;;  %v2927_v26 = vld [vmem:[%s3038_s11 + $0x370] sm:$0xff]  }
  0x5c   : > { %1667 = vmatprep.mubr.bf16.mxu1 %v649_v61 }
  0x5d   : > { %2505 = vmatpush3.bf16.msra.mxu0 %v2877_v27  ;;  %v2926_v27 = vld [vmem:[%s3038_s11 + $0x3a8] sm:$0xff]  }
  0x5e   : > { %2506 = vmatprep.subr.bf16.mxu0 %v2879_v28  ;;  %2527 = vmatpush3.bf16.msra.mxu1 %v2878_v29  ;;  %v2928_v28 = vld [vmem:[%s3038_s11 + $0x3f0] sm:$0xff]  }
  0x5f   : > { %2528 = vmatprep.subr.bf16.mxu1 %v2880_v30  ;;  %v2929_v29 = vld [vmem:[%s3038_s11 + $0x330] sm:$0xff]   ;;  %v2931_v30 = vld [vmem:[%s3038_s11 + $0x378] sm:$0xff]  }
  0x61   : > { %2507 = vmatpush3.bf16.msra.mxu0 %v2881_v31  ;;  %v2930_v31 = vld [vmem:[%s3038_s11 + $0x3b0] sm:$0xff]  }
  0x62   : > { %2508 = vmatprep.subr.bf16.mxu0 %v2883_v32  ;;  %2529 = vmatpush3.bf16.msra.mxu1 %v2882_v33  ;;  %v2932_v32 = vld [vmem:[%s3038_s11 + $0x3f8] sm:$0xff]  }
  0x63   : > { %2530 = vmatprep.subr.bf16.mxu1 %v2884_v35  ;;  %v2933_v33 = vld [vmem:[%s3038_s11 + $0x338] sm:$0xff]   ;;  %v632_v35 = vrot.slane %v3152_v54, %v3079_v42 }
  0x65   : > { %2509 = vmatpush3.bf16.msra.mxu0 %v2885_v36  ;;  %v2934_v36 = vld [vmem:[%s3038_s11 + $0x3b8] sm:$0xff]  }
  0x66   : > { %2510 = vmatprep.subr.bf16.mxu0 %v2887_v37  ;;  %2531 = vmatpush3.bf16.msra.mxu1 %v2886_v38  ;;  %v648_v37 = vcombine.high %v632_v35, %v632_v35 }
  0x67   : > { %2532 = vmatprep.subr.bf16.mxu1 %v2888_v39 }
  0x69   : > { %2511 = vmatpush3.bf16.msra.mxu0 %v2889_v40 }
  0x6a   : > { %2512 = vmatprep.subr.bf16.mxu0 %v2891_v41  ;;  %2533 = vmatpush3.bf16.msra.mxu1 %v2890_v43 }
  0x6b   : > { %2534 = vmatprep.subr.bf16.mxu1 %v2892_v44 }
  0x6d   : > { %2513 = vmatpush3.bf16.msra.mxu0 %v2893_v45 }
  0x6e   : > { %2514 = vmatprep.subr.bf16.mxu0 %v2895_v46  ;;  %2535 = vmatpush3.bf16.msra.mxu1 %v2894_v48 }
  0x6f   : > { %2536 = vmatprep.subr.bf16.mxu1 %v2896_v51 }
  0x71   : > { %2515 = vmatpush3.bf16.msra.mxu0 %v2897_v52 }
  0x72   : > { %2516 = vmatprep.subr.bf16.mxu0 %v2899_v55  ;;  %2537 = vmatpush3.bf16.msra.mxu1 %v2898_v56 }
  0x73   : > { %2538 = vmatprep.subr.bf16.mxu1 %v2900_v59 }
  0x75   : > { %2517 = vmatpush3.bf16.msra.mxu0 %v2901_v60 }
  0x76   : > { %2546 = vmatprep.subr.bf16.mxu0 %v2903_v63  ;;  %2539 = vmatpush3.bf16.msra.mxu1 %v2902_v0 }
  0x77   : > { %2568 = vmatprep.subr.bf16.mxu1 %v2904_v2 }
  0x78   : > { %1628 = vmatmul.mubr.bf16.vlgmr.msra.gmra.mrb[8].mxu0 %v625_v62 }
  0x79   : > { %2547 = vmatpush3.bf16.msra.mxu0 %v2905_v3  ;;  %1707 = vmatprep.mubr.bf16.mxu0 %v646_v1 }
  0x7a   : > { %1668 = vmatmul.mubr.bf16.vlgmr.msra.gmra.mrb[8].mxu1 %v647_v4  ;;  %2548 = vmatprep.subr.bf16.mxu0 %v2907_v5 }
  0x7b   : > { %2569 = vmatpush3.bf16.msra.mxu1 %v2906_v6  ;;  %1747 = vmatprep.mubr.bf16.mxu1 %v650_v7 }
  0x7c   : > { %2570 = vmatprep.subr.bf16.mxu1 %v2908_v8 }
  0x7d   : > { %2549 = vmatpush3.bf16.msra.mxu0 %v2909_v9 }
  0x7e   : > { %2550 = vmatprep.subr.bf16.mxu0 %v2911_v10 }
  0x7f   : > { %2571 = vmatpush3.bf16.msra.mxu1 %v2910_v11 }
  0x80   : > { %2572 = vmatprep.subr.bf16.mxu1 %v2912_v12 }
  0x81   : > { %2551 = vmatpush3.bf16.msra.mxu0 %v2913_v13 }
  0x82   : > { %2552 = vmatprep.subr.bf16.mxu0 %v2915_v14 }
  0x83   : > { %2573 = vmatpush3.bf16.msra.mxu1 %v2914_v15 }
  0x84   : > { %2574 = vmatprep.subr.bf16.mxu1 %v2916_v16 }
  0x85   : > { %2553 = vmatpush3.bf16.msra.mxu0 %v2917_v17 }
  0x86   : > { %2554 = vmatprep.subr.bf16.mxu0 %v2919_v18 }
  0x87   : > { %2575 = vmatpush3.bf16.msra.mxu1 %v2918_v19  ;;  %v292_v19 = vld [vmem:[#allocation2] sm:$0x3] }
  0x88   : > { %2576 = vmatprep.subr.bf16.mxu1 %v2920_v20 }
  0x89   : > { %2555 = vmatpush3.bf16.msra.mxu0 %v2921_v21 }
  0x8a   : > { %2556 = vmatprep.subr.bf16.mxu0 %v2923_v22 }
  0x8b   : > { %2577 = vmatpush3.bf16.msra.mxu1 %v2922_v23  ;;  %v1772_v23 = vld [vmem:[%s3625_s3 + $0x8] sm:$0xff] (!%p2407_p6) }
  0x8c   : > { %2578 = vmatprep.subr.bf16.mxu1 %v2924_v24  ;;  %v1776_v24 = vld [vmem:[%s3625_s3 + $0x28] sm:$0xff] (!%p2407_p6) }
  0x8d   : > { %2557 = vmatpush3.bf16.msra.mxu0 %v2925_v25  ;;  %v1774_v25 = vld [vmem:[%s3625_s3 + $0x18] sm:$0xff] (!%p2407_p6) }
  0x8e   : > { %2558 = vmatprep.subr.bf16.mxu0 %v2927_v26  ;;  %v2660_v26 = vpack.c.bf16 (!%p2407_p6), %v1776_v24, %v1772_v23 }
  0x8f   : > { %2579 = vmatpush3.bf16.msra.mxu1 %v2926_v27  ;;  %v1778_v27 = vld [vmem:[%s3625_s3 + $0x38] sm:$0xff] (!%p2407_p6) }
  0x90   : > { %2580 = vmatprep.subr.bf16.mxu1 %v2928_v28  ;;  %v1771_v28 = vld [vmem:[%s3625_s3] sm:$0xff] (!%p2407_p6) }
  0x91   : > { %2559 = vmatpush3.bf16.msra.mxu0 %v2929_v29  ;;  %v1775_v29 = vld [vmem:[%s3625_s3 + $0x20] sm:$0xff] (!%p2407_p6) }
  0x92   : > { %2560 = vmatprep.subr.bf16.mxu0 %v2931_v30  ;;  %v2976_v30 = vmov (!%p2407_p6), 0.0  }
  0x93   : > { %2581 = vmatpush3.bf16.msra.mxu1 %v2930_v31  ;;  %v2692_v31 = vpack.c.bf16 (!%p2407_p6), %v1778_v27, %v1774_v25  ;;  %v1815_v27 = vld [vmem:[%s3625_s3 + $0x160] sm:$0xff] (!%p2407_p6) }
  0x94   : > { %2582 = vmatprep.subr.bf16.mxu1 %v2932_v32  ;;  %v2662_v32 = vpack.c.bf16 (!%p2407_p6), %v1775_v29, %v1771_v28  ;;  %v1813_v28 = vld [vmem:[%s3625_s3 + $0x150] sm:$0xff] (!%p2407_p6) }
  0x95   : > { %2561 = vmatpush3.bf16.msra.mxu0 %v2933_v33  ;;  %v1773_v33 = vld [vmem:[%s3625_s3 + $0x10] sm:$0xff] (!%p2407_p6) }
  0x96   : > { %2661 = vmatprep.subr.bf16.mxu0 (!%p2407_p6), %v2660_v26  ;;  %v1811_v26 = vld [vmem:[%s3625_s3 + $0x140] sm:$0xff] (!%p2407_p6) }
  0x97   : > { %2583 = vmatpush3.bf16.msra.mxu1 %v2934_v36  ;;  %v1780_v36 = vld [vmem:[%s3625_s3 + $0x48] sm:$0xff] (!%p2407_p6) }
  0x98   : > { %1708 = vmatmul.mubr.bf16.vlgmr.msra.gmra.mrb[12].mxu0 %v632_v35  ;;  %v1777_v35 = vld [vmem:[%s3625_s3 + $0x30] sm:$0xff] (!%p2407_p6)  ;;  %2693 = vmatprep.subr.bf16.mxu1 (!%p2407_p6), %v2692_v31  ;;  %v1820_v31 = vld [vmem:[%s3625_s3 + $0x188] sm:$0xff] (!%p2407_p6) }
  0x99   : > { %1921 = vmatprep.mubr.f32.mxu0 (!%p2407_p6), %v2976_v30  ;;  %2663 = vmatpush1.bf16.msra.mxu0 (!%p2407_p6), %v2662_v32  ;;  %v1824_v32 = vld [vmem:[%s3625_s3 + $0x1a8] sm:$0xff] (!%p2407_p6) }
  0x9a   : > { %1748 = vmatmul.mubr.bf16.vlgmr.msra.gmra.mrb[12].mxu1 %v648_v37  ;;  %v2694_v37 = vpack.c.bf16 (!%p2407_p6), %v1777_v35, %v1773_v33  ;;  %v1822_v33 = vld [vmem:[%s3625_s3 + $0x198] sm:$0xff] (!%p2407_p6) }
  0x9b   : > { %1992 = vmatprep.mubr.f32.mxu1 (!%p2407_p6), %v2976_v30  ;;  %v1817_v30 = vld [vmem:[%s3625_s3 + $0x170] sm:$0xff] (!%p2407_p6)  ;;  %v1826_v35 = vld [vmem:[%s3625_s3 + $0x1b8] sm:$0xff] (!%p2407_p6) }
  0x9c   : > { %2695 = vmatpush1.bf16.msra.mxu1 (!%p2407_p6), %v2694_v37  ;;  %v2714_v37 = vpack.c.bf16 (!%p2407_p6), %v1817_v30, %v1813_v28  ;;  %v2008_v28 = vld [vmem:[%s3627_s5 + $0x28] sm:$0xff] (!%p2407_p6) }
 0x10b   : > { %v2430_v38 = vpop.f32.mrb[0].mxu0 }
 0x10c   : > { %v2431_v39 = vpop.f32.mrb[1].mxu0  ;;  %v2452_v40 = vpop.f32.mrb[0].mxu1 }
 0x10d   : > { %v2432_v41 = vadd.f32 %v2431_v39, %v2430_v38  ;;  %v2433_v43 = vpop.f32.mrb[2].mxu0  ;;  %v2453_v44 = vpop.f32.mrb[1].mxu1  ;;  %v1784_v38 = vld [vmem:[%s3625_s3 + $0x68] sm:$0xff] (!%p2407_p6)  ;;  %v1782_v39 = vld [vmem:[%s3625_s3 + $0x58] sm:$0xff] (!%p2407_p6) }
 0x10e   : > { %v2434_v45 = vpop.f32.mrb[3].mxu0  ;;  %v2454_v46 = vadd.f32 %v2453_v44, %v2452_v40  ;;  %v2455_v47 = vpop.f32.mrb[2].mxu1  ;;  %v1786_v40 = vld [vmem:[%s3625_s3 + $0x78] sm:$0xff] (!%p2407_p6)  ;;  %v1779_v44 = vld [vmem:[%s3625_s3 + $0x40] sm:$0xff] (!%p2407_p6) }
 0x10f   : > { %v2456_v48 = vpop.f32.mrb[3].mxu1  ;;  %v2696_v43 = vpack.c.bf16 (!%p2407_p6), %v1786_v40, %v1782_v39  ;;  %v1783_v45 = vld [vmem:[%s3625_s3 + $0x60] sm:$0xff] (!%p2407_p6) }
 0x110   : > { %v1510_v49 = vadd.f32 %v2454_v46, %v2432_v41  ;;  %v2664_v41 = vpack.c.bf16 (!%p2407_p6), %v1784_v38, %v1780_v36  ;;  %v1781_v46 = vld [vmem:[%s3625_s3 + $0x50] sm:$0xff] (!%p2407_p6)  ;;  %v2666_v47 = vpack.c.bf16 (!%p2407_p6), %v1783_v45, %v1779_v44  ;;  %v2682_v36 = vpack.c.bf16 (!%p2407_p6), %v1815_v27, %v1811_v26  ;;  %v1819_v39 = vld [vmem:[%s3625_s3 + $0x180] sm:$0xff] (!%p2407_p6)  ;;  %v1828_v45 = vld [vmem:[%s3625_s3 + $0x1c8] sm:$0xff] (!%p2407_p6) }
 0x111   : > { %v1785_v48 = vld [vmem:[%s3625_s3 + $0x70] sm:$0xff] (!%p2407_p6)  ;;  %2697 = vmatprep.subr.bf16.mxu1 (!%p2407_p6), %v2696_v43  ;;  %v2684_v38 = vpack.c.bf16 (!%p2407_p6), %v1824_v32, %v1820_v31  ;;  %v1823_v40 = vld [vmem:[%s3625_s3 + $0x1a0] sm:$0xff] (!%p2407_p6)  ;;  %v2716_v43 = vpack.c.bf16 (!%p2407_p6), %v1826_v35, %v1822_v33  ;;  %v2040_v31 = vld [vmem:[%s3627_s5 + $0x128] sm:$0xff] (!%p2407_p6) }
 0x112   : > { %2665 = vmatprep.subr.bf16.mxu0 (!%p2407_p6), %v2664_v41  ;;  %v1821_v41 = vld [vmem:[%s3625_s3 + $0x190] sm:$0xff] (!%p2407_p6)  ;;  %v2007_v27 = vld [vmem:[%s3627_s5 + $0x20] sm:$0xff] (!%p2407_p6)  ;;  %v2026_v33 = vld [vmem:[%s3627_s5 + $0xb8] sm:$0xff] (!%p2407_p6) }
 0x113   : > { %2667 = vmatpush1.bf16.msra.mxu0 (!%p2407_p6), %v2666_v47  ;;  %v1825_v44 = vld [vmem:[%s3625_s3 + $0x1b0] sm:$0xff] (!%p2407_p6)  ;;  %v1830_v47 = vld [vmem:[%s3625_s3 + $0x1d8] sm:$0xff] (!%p2407_p6) }
 0x114   : > { %v2025_v32 = vld [vmem:[%s3627_s5 + $0xb0] sm:$0xff] (!%p2407_p6) }
 0x115   : > { %v2057_v35 = vld [vmem:[%s3627_s5 + $0x1b0] sm:$0xff] (!%p2407_p6) }
 0x12b   : > { %v2474_v42 = vpop.f32.mrb[4].mxu0 }
 0x12c   : > { %v2475_v50 = vpop.f32.mrb[5].mxu0  ;;  %v2496_v51 = vpop.f32.mrb[4].mxu1 }
 0x12d   : > { %v2476_v52 = vadd.f32 %v2475_v50, %v2474_v42  ;;  %v2477_v53 = vpop.f32.mrb[6].mxu0  ;;  %v2497_v54 = vpop.f32.mrb[5].mxu1  ;;  %v1792_v42 = vld [vmem:[%s3625_s3 + $0xa8] sm:$0xff] (!%p2407_p6)  ;;  %v2698_v50 = vpack.c.bf16 (!%p2407_p6), %v1785_v48, %v1781_v46  ;;  %v1834_v48 = vld [vmem:[%s3625_s3 + $0x1f8] sm:$0xff] (!%p2407_p6) }
 0x12e   : > { %v2478_v55 = vpop.f32.mrb[7].mxu0  ;;  %v2498_v57 = vadd.f32 %v2497_v54, %v2496_v51  ;;  %v2499_v58 = vpop.f32.mrb[6].mxu1  ;;  %v1794_v53 = vld [vmem:[%s3625_s3 + $0xb8] sm:$0xff] (!%p2407_p6)  ;;  %v1787_v54 = vld [vmem:[%s3625_s3 + $0x80] sm:$0xff] (!%p2407_p6)  ;;  %v1832_v46 = vld [vmem:[%s3625_s3 + $0x1e8] sm:$0xff] (!%p2407_p6) }
 0x12f   : > { %v1550_v56 = vadd.f32 %v2476_v52, %v1510_v49  ;;  %v2500_v59 = vpop.f32.mrb[7].mxu1  ;;  %v1788_v49 = vld [vmem:[%s3625_s3 + $0x88] sm:$0xff] (!%p2407_p6)  ;;  %v1790_v52 = vld [vmem:[%s3625_s3 + $0x98] sm:$0xff] (!%p2407_p6)  ;;  %v1793_v58 = vld [vmem:[%s3625_s3 + $0xb0] sm:$0xff] (!%p2407_p6)  ;;  %2699 = vmatpush1.bf16.msra.mxu1 (!%p2407_p6), %v2698_v50 }
 0x130   : > { %v2668_v51 = vpack.c.bf16 (!%p2407_p6), %v1792_v42, %v1788_v49  ;;  %v2700_v55 = vpack.c.bf16 (!%p2407_p6), %v1794_v53, %v1790_v52  ;;  %v2686_v49 = vpack.c.bf16 (!%p2407_p6), %v1823_v40, %v1819_v39  ;;  %v2408_v50 = vld [vmem:[%s3624_s2] ss:$0 sm:$0xff] (!%p2407_p6)  ;;  %v2688_v52 = vpack.c.bf16 (!%p2407_p6), %v1832_v46, %v1828_v45  ;;  %v2009_v40 = vld [vmem:[%s3627_s5 + $0x30] sm:$0xff] (!%p2407_p6)  ;;  %v2042_v45 = vld [vmem:[%s3627_s5 + $0x138] sm:$0xff] (!%p2407_p6) }
 0x131   : > { %v1590_v60 = vadd.f32 %v2498_v57, %v1550_v56  ;;  %v1791_v56 = vld [vmem:[%s3625_s3 + $0xa0] sm:$0xff] (!%p2407_p6)  ;;  %v1789_v57 = vld [vmem:[%s3625_s3 + $0x90] sm:$0xff] (!%p2407_p6)  ;;  %v2736_v39 = vpack.c.bf16 (!%p2407_p6), %v2026_v33, %v2025_v32  ;;  %v1847_v33 = vsub.s32 (!%p2407_p6), 2, %v3073_v34 }
 0x132   : > { %v2670_v59 = vpack.c.bf16 (!%p2407_p6), %v1791_v56, %v1787_v54  ;;  %2669 = vmatprep.subr.bf16.mxu0 (!%p2407_p6), %v2668_v51  ;;  %2701 = vmatprep.subr.bf16.mxu1 (!%p2407_p6), %v2700_v55  ;;  %v2718_v51 = vpack.c.bf16 (!%p2407_p6), %v1825_v44, %v1821_v41  ;;  %v1827_v53 = vld [vmem:[%s3625_s3 + $0x1c0] sm:$0xff] (!%p2407_p6)  ;;  %v1829_v55 = vld [vmem:[%s3625_s3 + $0x1d0] sm:$0xff] (!%p2407_p6)  ;;  %v2720_v56 = vpack.c.bf16 (!%p2407_p6), %v1834_v48, %v1830_v47  ;;  %v2010_v41 = vld [vmem:[%s3627_s5 + $0x38] sm:$0xff] (!%p2407_p6) }
 0x133   : > { %v1831_v54 = vld [vmem:[%s3625_s3 + $0x1e0] sm:$0xff] (!%p2407_p6)  ;;  %v2028_v47 = vld [vmem:[%s3627_s5 + $0xc8] sm:$0xff] (!%p2407_p6) }
 0x134   : > { %2671 = vmatpush1.bf16.msra.mxu0 (!%p2407_p6), %v2670_v59  ;;  %v2020_v59 = vld [vmem:[%s3627_s5 + $0x88] sm:$0xff] (!%p2407_p6)  ;;  %v2027_v46 = vld [vmem:[%s3627_s5 + $0xc0] sm:$0xff] (!%p2407_p6) }
 0x135   : > { %v2059_v48 = vld [vmem:[%s3627_s5 + $0x1c0] sm:$0xff] (!%p2407_p6) }
 0x136   : > { %v1835_v32 = vld [vmem:[%s3626_s4] sm:$0xf] (!%p2407_p6) }
 0x14b   : > { %v2518_v61 = vpop.f32.mrb[8].mxu0 }
 0x14c   : > { %v2519_v62 = vpop.f32.mrb[9].mxu0 }
 0x14d   : > { %v2540_v63 = vpop.f32.mrb[8].mxu1  ;;  %v2520_v0 = vadd.f32 %v2519_v62, %v2518_v61  ;;  %v2521_v1 = vpop.f32.mrb[10].mxu0  ;;  %v1800_v61 = vld [vmem:[%s3625_s3 + $0xe8] sm:$0xff] (!%p2407_p6)  ;;  %v1798_v62 = vld [vmem:[%s3625_s3 + $0xd8] sm:$0xff] (!%p2407_p6) }
 0x14e   : > { %v2541_v2 = vpop.f32.mrb[9].mxu1  ;;  %v2522_v3 = vpop.f32.mrb[11].mxu0  ;;  %v1802_v1 = vld [vmem:[%s3625_s3 + $0xf8] sm:$0xff] (!%p2407_p6) }
 0x14f   : > { %v1630_v4 = vadd.f32 %v2520_v0, %v1590_v60  ;;  %v2542_v5 = vadd.f32 %v2541_v2, %v2540_v63  ;;  %v2543_v6 = vpop.f32.mrb[10].mxu1  ;;  %v1796_v60 = vld [vmem:[%s3625_s3 + $0xc8] sm:$0xff] (!%p2407_p6)  ;;  %v2702_v63 = vpack.c.bf16 (!%p2407_p6), %v1793_v58, %v1789_v57  ;;  %v1795_v2 = vld [vmem:[%s3625_s3 + $0xc0] sm:$0xff] (!%p2407_p6)  ;;  %v1833_v57 = vld [vmem:[%s3625_s3 + $0x1f0] sm:$0xff] (!%p2407_p6) }
 0x150   : > { %v2544_v7 = vpop.f32.mrb[11].mxu1  ;;  %v2672_v0 = vpack.c.bf16 (!%p2407_p6), %v1800_v61, %v1796_v60  ;;  %v1799_v3 = vld [vmem:[%s3625_s3 + $0xe0] sm:$0xff] (!%p2407_p6)  ;;  %v1801_v6 = vld [vmem:[%s3625_s3 + $0xf0] sm:$0xff] (!%p2407_p6) }
 0x151   : > { %v1670_v8 = vadd.f32 %v2542_v5, %v1630_v4  ;;  %v2704_v4 = vpack.c.bf16 (!%p2407_p6), %v1802_v1, %v1798_v62  ;;  %v1797_v5 = vld [vmem:[%s3625_s3 + $0xd0] sm:$0xff] (!%p2407_p6)  ;;  %v1804_v7 = vld [vmem:[%s3625_s3 + $0x108] sm:$0xff] (!%p2407_p6)  ;;  %2703 = vmatpush1.bf16.msra.mxu1 (!%p2407_p6), %v2702_v63  ;;  %v2019_v58 = vld [vmem:[%s3627_s5 + $0x80] sm:$0xff] (!%p2407_p6)  ;;  %v2690_v63 = vpack.c.bf16 (!%p2407_p6), %v1831_v54, %v1827_v53 }
 0x152   : > { %2673 = vmatprep.subr.bf16.mxu0 (!%p2407_p6), %v2672_v0  ;;  %v2051_v61 = vld [vmem:[%s3627_s5 + $0x180] sm:$0xff] (!%p2407_p6)  ;;  %v2052_v62 = vld [vmem:[%s3627_s5 + $0x188] sm:$0xff] (!%p2407_p6)  ;;  %v2722_v0 = vpack.c.bf16 (!%p2407_p6), %v1833_v57, %v1829_v55  ;;  %v2724_v1 = vpack.c.bf16 (!%p2407_p6), %v2020_v59, %v2019_v58  ;;  %v2029_v57 = vld [vmem:[%s3627_s5 + $0xd0] sm:$0xff] (!%p2407_p6) }
 0x153   : > { %2705 = vmatprep.subr.bf16.mxu1 (!%p2407_p6), %v2704_v4  ;;  %v2035_v4 = vld [vmem:[%s3627_s5 + $0x100] sm:$0xff] (!%p2407_p6)  ;;  %v2012_v53 = vld [vmem:[%s3627_s5 + $0x48] sm:$0xff] (!%p2407_p6)  ;;  %v2030_v58 = vld [vmem:[%s3627_s5 + $0xd8] sm:$0xff] (!%p2407_p6) }
 0x154   : > { %v2043_v54 = vld [vmem:[%s3627_s5 + $0x140] sm:$0xff] (!%p2407_p6)  ;;  %v2061_v59 = vld [vmem:[%s3627_s5 + $0x1d0] sm:$0xff] (!%p2407_p6) }
 0x16b   : > { %v2562_v9 = vpop.f32.mrb[12].mxu0 }
 0x16c   : > { %v2563_v10 = vpop.f32.mrb[13].mxu0 }
 0x16d   : > { %v2584_v11 = vpop.f32.mrb[12].mxu1  ;;  %v2564_v12 = vadd.f32 %v2563_v10, %v2562_v9  ;;  %v2565_v13 = vpop.f32.mrb[14].mxu0  ;;  %v1806_v9 = vld [vmem:[%s3625_s3 + $0x118] sm:$0xff] (!%p2407_p6) }
 0x16e   : > { %v2585_v14 = vpop.f32.mrb[13].mxu1  ;;  %v2566_v15 = vpop.f32.mrb[15].mxu0  ;;  %v1810_v10 = vld [vmem:[%s3625_s3 + $0x138] sm:$0xff] (!%p2407_p6) }
 0x16f   : > { %v1710_v16 = vadd.f32 %v2564_v12, %v1670_v8  ;;  %v2586_v17 = vadd.f32 %v2585_v14, %v2584_v11  ;;  %v2587_v18 = vpop.f32.mrb[14].mxu1  ;;  %1760 = sbr.rel (%p2407_p6) target bundleno = 826 (0x33a), region = 56  ;;  %v1808_v8 = vld [vmem:[%s3625_s3 + $0x128] sm:$0xff] (!%p2407_p6)  ;;  %v2674_v11 = vpack.c.bf16 (!%p2407_p6), %v1799_v3, %v1795_v2  ;;  %v2706_v12 = vpack.c.bf16 (!%p2407_p6), %v1801_v6, %v1797_v5  ;;  %v1803_v14 = vld [vmem:[%s3625_s3 + $0x100] sm:$0xff] (!%p2407_p6) }
 0x170   : > { %v2588_v20 = vpop.f32.mrb[15].mxu1  ;;  %v2676_v13 = vpack.c.bf16 (!%p2407_p6), %v1808_v8, %v1804_v7  ;;  %v1807_v15 = vld [vmem:[%s3625_s3 + $0x120] sm:$0xff] (!%p2407_p6)  ;;  %v1809_v18 = vld [vmem:[%s3625_s3 + $0x130] sm:$0xff] (!%p2407_p6)  ;;  %v2004_v3 = vld [vmem:[%s3627_s5 + $0x8] sm:$0xff] (!%p2407_p6)  ;;  %v2756_v5 = vpack.c.bf16 (!%p2407_p6), %v2052_v62, %v2051_v61 }
 0x171   : > { %v1750_v21 = vadd.f32 %v2586_v17, %v1710_v16  ;;  %v1805_v16 = vld [vmem:[%s3625_s3 + $0x110] sm:$0xff] (!%p2407_p6)  ;;  %v2708_v17 = vpack.c.bf16 (!%p2407_p6), %v1810_v10, %v1806_v9  ;;  %v1816_v20 = vld [vmem:[%s3625_s3 + $0x168] sm:$0xff] (!%p2407_p6)  ;;  %2675 = vmatpush1.bf16.msra.mxu0 (!%p2407_p6), %v2674_v11  ;;  %v2678_v23 = vpack.c.bf16 (!%p2407_p6), %v1807_v15, %v1803_v14  ;;  %2707 = vmatpush1.bf16.msra.mxu1 (!%p2407_p6), %v2706_v12  ;;  %v2003_v2 = vld [vmem:[%s3627_s5] sm:$0xff] (!%p2407_p6) }
 0x172   : > { %2677 = vmatprep.subr.bf16.mxu0 (!%p2407_p6), %v2676_v13  ;;  %v2710_v24 = vpack.c.bf16 (!%p2407_p6), %v1809_v18, %v1805_v16  ;;  %v2036_v6 = vld [vmem:[%s3627_s5 + $0x108] sm:$0xff] (!%p2407_p6)  ;;  %v2021_v7 = vld [vmem:[%s3627_s5 + $0x90] sm:$0xff] (!%p2407_p6)  ;;  %v2022_v8 = vld [vmem:[%s3627_s5 + $0x98] sm:$0xff] (!%p2407_p6)  ;;  %v2726_v12 = vpack.c.bf16 (!%p2407_p6), %v2004_v3, %v2003_v2 }
 0x173   : > { %v1755_v22 = vadd.f32 %v1750_v21, %v292_v19  ;;  %v1812_v19 = vld [vmem:[%s3625_s3 + $0x148] sm:$0xff] (!%p2407_p6)  ;;  %v1814_v21 = vld [vmem:[%s3625_s3 + $0x158] sm:$0xff] (!%p2407_p6)  ;;  %2709 = vmatprep.subr.bf16.mxu1 (!%p2407_p6), %v2708_v17  ;;  %v2053_v10 = vld [vmem:[%s3627_s5 + $0x190] sm:$0xff] (!%p2407_p6)  ;;  %v2758_v13 = vpack.c.bf16 (!%p2407_p6), %v2036_v6, %v2035_v4  ;;  %v2728_v14 = vpack.c.bf16 (!%p2407_p6), %v2022_v8, %v2021_v7 }
 0x174   : > { %v2680_v25 = vpack.c.bf16 (!%p2407_p6), %v1816_v20, %v1812_v19  ;;  %v2054_v11 = vld [vmem:[%s3627_s5 + $0x198] sm:$0xff] (!%p2407_p6)  ;;  %v2005_v15 = vld [vmem:[%s3627_s5 + $0x10] sm:$0xff] (!%p2407_p6)  ;;  %v2023_v20 = vld [vmem:[%s3627_s5 + $0xa0] sm:$0xff] (!%p2407_p6) }
 0x175   : > { %1756 = vst [vmem:[#allocation2] sm:$0x3] %v1755_v22  ;;  %v1818_v22 = vld [vmem:[%s3625_s3 + $0x178] sm:$0xff] (!%p2407_p6)  ;;  %2679 = vmatpush1.bf16.msra.mxu0 (!%p2407_p6), %v2678_v23  ;;  %2711 = vmatpush1.bf16.msra.mxu1 (!%p2407_p6), %v2710_v24  ;;  %v2037_v17 = vld [vmem:[%s3627_s5 + $0x110] sm:$0xff] (!%p2407_p6)  ;;  %v2760_v18 = vpack.c.bf16 (!%p2407_p6), %v2054_v11, %v2053_v10  ;;  %v2056_v23 = vld [vmem:[%s3627_s5 + $0x1a8] sm:$0xff] (!%p2407_p6) }
 0x176   : > { %v2712_v29 = vpack.c.bf16 %v1818_v22, %v1814_v21  ;;  %2681 = vmatprep.subr.bf16.mxu0 %v2680_v25  ;;  %v2006_v16 = vld [vmem:[%s3627_s5 + $0x18] sm:$0xff]  ;;  %v2024_v21 = vld [vmem:[%s3627_s5 + $0xa8] sm:$0xff]  ;;  %v2055_v22 = vld [vmem:[%s3627_s5 + $0x1a0] sm:$0xff] }
 0x177   : > { %v2038_v19 = vld [vmem:[%s3627_s5 + $0x118] sm:$0xff]  ;;  %v2730_v24 = vpack.c.bf16 %v2006_v16, %v2005_v15  ;;  %v2732_v26 = vpack.c.bf16 %v2024_v21, %v2023_v20  ;;  %v2764_v30 = vpack.c.bf16 %v2056_v23, %v2055_v22  ;;  %v2045_v2 = vld [vmem:[%s3627_s5 + $0x150] sm:$0xff]  ;;  %v2032_v6 = vld [vmem:[%s3627_s5 + $0xe8] sm:$0xff] }
 0x178   : > { %2713 = vmatprep.subr.bf16.mxu1 %v2712_v29  ;;  %v2762_v25 = vpack.c.bf16 %v2038_v19, %v2037_v17  ;;  %v2039_v29 = vld [vmem:[%s3627_s5 + $0x120] sm:$0xff]  ;;  %v2046_v4 = vld [vmem:[%s3627_s5 + $0x158] sm:$0xff]  ;;  %v2064_v8 = vld [vmem:[%s3627_s5 + $0x1e8] sm:$0xff] }
 0x179   : > { %2683 = vmatpush1.bf16.msra.mxu0 %v2682_v36  ;;  %2715 = vmatpush1.bf16.msra.mxu1 %v2714_v37  ;;  %v2058_v36 = vld [vmem:[%s3627_s5 + $0x1b8] sm:$0xff]  ;;  %v2734_v37 = vpack.c.bf16 %v2008_v28, %v2007_v27  ;;  %v2063_v7 = vld [vmem:[%s3627_s5 + $0x1e0] sm:$0xff]  ;;  %v2778_v10 = vpack.c.bf16 %v2046_v4, %v2045_v2  ;;  %v2048_v17 = vld [vmem:[%s3627_s5 + $0x168] sm:$0xff] }
 0x17a   : > { %2685 = vmatprep.subr.bf16.mxu0 %v2684_v38  ;;  %2717 = vmatprep.subr.bf16.mxu1 %v2716_v43  ;;  %v2766_v38 = vpack.c.bf16 %v2040_v31, %v2039_v29  ;;  %v2041_v43 = vld [vmem:[%s3627_s5 + $0x130] sm:$0xff]  ;;  %v2768_v44 = vpack.c.bf16 %v2058_v36, %v2057_v35  ;;  %v2047_v15 = vld [vmem:[%s3627_s5 + $0x160] sm:$0xff]  ;;  %v2034_v20 = vld [vmem:[%s3627_s5 + $0xf8] sm:$0xff]  ;;  %v1839_v31 = vsub.s32 0, %v3073_v34  ;;  %v1843_v35 = vsub.s32 1, %v3073_v34 }
 0x17b   : > { %v2033_v19 = vld [vmem:[%s3627_s5 + $0xf0] sm:$0xff]  ;;  %v2066_v23 = vld [vmem:[%s3627_s5 + $0x1f8] sm:$0xff]  ;;  %v1851_v36 = vsub.s32 3, %v3073_v34 }
 0x17c   : > { %v1761_v42 = vld [vmem:[#allocation2] sm:$0x3]  ;;  %v2065_v21 = vld [vmem:[%s3627_s5 + $0x1f0] sm:$0xff]  ;;  %v2752_v22 = vpack.c.bf16 %v2034_v20, %v2033_v19  ;;  %v2050_v29 = vld [vmem:[%s3627_s5 + $0x178] sm:$0xff] }
 0x17d   : > { %v1769_v60 = vadd.f32 %v2408_v50, %v1761_v42  ;;  %2687 = vmatpush1.bf16.msra.mxu0 %v2686_v49  ;;  %2719 = vmatpush1.bf16.msra.mxu1 %v2718_v51  ;;  %v2060_v49 = vld [vmem:[%s3627_s5 + $0x1c8] sm:$0xff]  ;;  %v2738_v42 = vpack.c.bf16 %v2010_v41, %v2009_v40  ;;  %v2770_v50 = vpack.c.bf16 %v2042_v45, %v2041_v43  ;;  %v2049_v28 = vld [vmem:[%s3627_s5 + $0x170] sm:$0xff] }
 0x17e   : > { %2689 = vmatprep.subr.bf16.mxu0 %v2688_v52  ;;  %2721 = vmatprep.subr.bf16.mxu1 %v2720_v56  ;;  %v2740_v51 = vpack.c.bf16 %v2028_v47, %v2027_v46  ;;  %v2011_v52 = vld [vmem:[%s3627_s5 + $0x40] sm:$0xff]  ;;  %v2772_v55 = vpack.c.bf16 %v2060_v49, %v2059_v48  ;;  %v2044_v56 = vld [vmem:[%s3627_s5 + $0x148] sm:$0xff]  ;;  %v1852_v40 = vrot.slane %v1835_v32, %v1851_v36 }
 0x17f   : > { %v1770_v9 = vmax.f32 %v1769_v60, 0.0  ;;  %v2062_v60 = vld [vmem:[%s3627_s5 + $0x1d8] sm:$0xff]  ;;  %v2742_v61 = vpack.c.bf16 %v2012_v53, %v2011_v52  ;;  %v2774_v62 = vpack.c.bf16 %v2044_v56, %v2043_v54  ;;  %v2409_v54 = vld [vmem:[%s3628_s6] ss:$0 sm:$0xff] }
 0x180   : > { %v2776_v3 = vpack.c.bf16 %v2062_v60, %v2061_v59 }
 0x181   : > { %2691 = vmatpush1.bf16.msra.mxu0 %v2690_v63  ;;  %2723 = vmatpush1.bf16.msra.mxu1 %v2722_v0  ;;  %v2744_v63 = vpack.c.bf16 %v2030_v58, %v2029_v57  ;;  %v2013_v0 = vld [vmem:[%s3627_s5 + $0x50] sm:$0xff] }
 0x182   : > { %2725 = vmatprep.subr.bf16.mxu0 %v2724_v1  ;;  %2757 = vmatprep.subr.bf16.mxu1 %v2756_v5  ;;  %v2014_v1 = vld [vmem:[%s3627_s5 + $0x58] sm:$0xff]  ;;  %v2031_v5 = vld [vmem:[%s3627_s5 + $0xe0] sm:$0xff] }
 0x183   : > { %v2748_v11 = vpack.c.bf16 %v2032_v6, %v2031_v5 }
 0x184   : > { %1922 = vmatmul.mubr.f32.vlgmr.msra.gmra.mrb[0].mxu0 %v1770_v9  ;;  %1993 = vmatmul.mubr.f32.vlgmr.msra.gmra.mrb[0].mxu1 %v1770_v9  ;;  %v2746_v9 = vpack.c.bf16 %v2014_v1, %v2013_v0 }
 0x185   : > { %2727 = vmatpush3.bf16.msra.mxu0 %v2726_v12  ;;  %2759 = vmatpush3.bf16.msra.mxu1 %v2758_v13  ;;  %v2780_v12 = vpack.c.bf16 %v2064_v8, %v2063_v7  ;;  %v2015_v13 = vld [vmem:[%s3627_s5 + $0x60] sm:$0xff] }
 0x186   : > { %2729 = vmatprep.subr.bf16.mxu0 %v2728_v14  ;;  %2761 = vmatprep.subr.bf16.mxu1 %v2760_v18  ;;  %v2016_v14 = vld [vmem:[%s3627_s5 + $0x68] sm:$0xff]  ;;  %v2782_v18 = vpack.c.bf16 %v2048_v17, %v2047_v15 }
 0x187   : > { %v2750_v16 = vpack.c.bf16 %v2016_v14, %v2015_v13 }
 0x189   : > { %2731 = vmatpush3.bf16.msra.mxu0 %v2730_v24  ;;  %2763 = vmatpush3.bf16.msra.mxu1 %v2762_v25  ;;  %v2017_v24 = vld [vmem:[%s3627_s5 + $0x70] sm:$0xff]  ;;  %v2018_v25 = vld [vmem:[%s3627_s5 + $0x78] sm:$0xff] }
 0x18a   : > { %2733 = vmatprep.subr.bf16.mxu0 %v2732_v26  ;;  %2765 = vmatprep.subr.bf16.mxu1 %v2764_v30  ;;  %v2784_v26 = vpack.c.bf16 %v2066_v23, %v2065_v21  ;;  %v2754_v27 = vpack.c.bf16 %v2018_v25, %v2017_v24  ;;  %v2786_v30 = vpack.c.bf16 %v2050_v29, %v2049_v28 }
 0x18d   : > { %2735 = vmatpush3.bf16.msra.mxu0 %v2734_v37  ;;  %2767 = vmatpush3.bf16.msra.mxu1 %v2766_v38  ;;  %v1840_v37 = vrot.slane %v1835_v32, %v1839_v31  ;;  %v1848_v38 = vrot.slane %v1835_v32, %v1847_v33 }
 0x18e   : > { %2737 = vmatprep.subr.bf16.mxu0 %v2736_v39  ;;  %2769 = vmatprep.subr.bf16.mxu1 %v2768_v44  ;;  %v1844_v39 = vrot.slane %v1835_v32, %v1843_v35 }
 0x191   : > { %2739 = vmatpush3.bf16.msra.mxu0 %v2738_v42  ;;  %2771 = vmatpush3.bf16.msra.mxu1 %v2770_v50 }
 0x192   : > { %2741 = vmatprep.subr.bf16.mxu0 %v2740_v51  ;;  %2773 = vmatprep.subr.bf16.mxu1 %v2772_v55 }
 0x195   : > { %2743 = vmatpush3.bf16.msra.mxu0 %v2742_v61  ;;  %2775 = vmatpush3.bf16.msra.mxu1 %v2774_v62 }
 0x196   : > { %2745 = vmatprep.subr.bf16.mxu0 %v2744_v63  ;;  %2777 = vmatprep.subr.bf16.mxu1 %v2776_v3 }
 0x199   : > { %2747 = vmatpush3.bf16.msra.mxu0 %v2746_v9  ;;  %2779 = vmatpush3.bf16.msra.mxu1 %v2778_v10 }
 0x19a   : > { %2749 = vmatprep.subr.bf16.mxu0 %v2748_v11  ;;  %2781 = vmatprep.subr.bf16.mxu1 %v2780_v12 }
 0x19d   : > { %2751 = vmatpush3.bf16.msra.mxu0 %v2750_v16  ;;  %2783 = vmatpush3.bf16.msra.mxu1 %v2782_v18 }
 0x19e   : > { %2753 = vmatprep.subr.bf16.mxu0 %v2752_v22  ;;  %2785 = vmatprep.subr.bf16.mxu1 %v2784_v26 }
 0x1a1   : > { %2755 = vmatpush3.bf16.msra.mxu0 %v2754_v27  ;;  %2787 = vmatpush3.bf16.msra.mxu1 %v2786_v30 }
 0x257   : > { %v1923_v41 = vpop.f32.mrb[0].mxu0  ;;  %v1994_v44 = vpop.f32.mrb[0].mxu1 }
 0x258   : > { %v1924_v43 = vadd.f32 %v1923_v41, %v1840_v37  ;;  %v1925_v45 = vpop.f32.mrb[1].mxu0  ;;  %v1995_v46 = vadd.f32 %v1994_v44, %v1848_v38  ;;  %v1996_v48 = vpop.f32.mrb[1].mxu1 }
 0x259   : > { %v1926_v47 = vadd.f32 %v1925_v45, %v1844_v39  ;;  %v1997_v49 = vadd.f32 %v1996_v48, %v1852_v40 }
 0x25a   : > { %v2001_v42 = vmax.f32 %v1995_v46, 0.0  ;;  %v1999_v51 = vmax.f32 %v1924_v43, 0.0 }
 0x25b   : > { %v2000_v50 = vmax.f32 %v1926_v47, 0.0  ;;  %v2002_v52 = vmax.f32 %v1997_v49, 0.0 }
 0x25d   : > { %2138 = vmatprep.mubr.f32.mxu0 %v2000_v50  ;;  %2208 = vmatprep.mubr.f32.mxu1 %v2002_v52 }
 0x25e   : > { %2139 = vmatmul.mubr.f32.vlgmr.msra.gmra.mrb[2].mxu0 %v1999_v51  ;;  %2209 = vmatmul.mubr.f32.vlgmr.msra.gmra.mrb[2].mxu1 %v2001_v42 }
 0x331   : > { %v2622_v34 = vpop.f32.mrb[2].mxu0  ;;  %v2657_v53 = vpop.f32.mrb[2].mxu1 }
 0x332   : > { %v2623_v55 = vpop.f32.mrb[3].mxu0  ;;  %v2658_v57 = vpop.f32.mrb[3].mxu1 }
 0x333   : > { %v2624_v56 = vadd.f32 %v2623_v55, %v2622_v34  ;;  %v2659_v58 = vadd.f32 %v2658_v57, %v2657_v53 }
 0x335   : > { %v2141_v59 = vadd.f32 %v2624_v56, %v2409_v54 }
 0x337   : > { %v2211_v60 = vadd.f32 %v2659_v58, %v2141_v59 }
 0x339   : > { %2215 = vst.msk [vmem:[#allocation3] sm:$0x3] %vm2214_vm0, %v2211_v60 }
 0x33a PF: > { %p2792_p7 = scmp.eq.s32.totalorder %s3024_s25, 5  ;;  %s2977_s22 = smov [#allocation3]  }
 0x33b   : > { %s2223_s23 = sshll.u32 %s2977_s22, 4  ;;  %s2224_s23 = int_to_ptr.vmem [resolvable:$true] %s2223_s23 }
 0x33c   : > { %s2936_s26 = scalar_lea.vmem %s2224_s23, 32  ;;  %p2943_p11 = scmp.lt.s32.totalorder %s2224_s23, %s2224_s23 }
 0x33d   : > { %p2937_p8 = scmp.ne.s32.totalorder %s2224_s23, %s2936_s26  ;;  %p2944_p12 = scmp.lt.s32.totalorder %s2936_s26, %s2936_s26 }
 0x33f   : > { %p2938_p9 = pnand %p2937_p8, %p2792_p7  ;;  %p2945_p13 = por %p2944_p12, %p2943_p11 }
 0x341   : > { %p2939_p10 = pneg %p2938_p9 }
 0x343   : > { %p2946_p0 = pnand %p2945_p13, %p2939_p10 }
 0x345   : > { %2949 = shalt.err (!%p2946_p0)
}
 0x346   : > { %s2950_s29 = scalar_lea.hbm %s3629_s7, 32 }
 0x347   : > { %p2951_p1 = scmp.ne.s32.totalorder %s3629_s7, %s2950_s29  ;;  %p2956_p4 = scmp.lt.u32.totalorder %s2950_s29, %s3629_s7 }
 0x349   : > { %p2952_p2 = pnand %p2951_p1, %p2792_p7 }
 0x34b   : > { %p2953_p3 = pneg %p2952_p2 }
 0x34d   : > { %p2958_p5 = pnand %p2956_p4, %p2953_p3 }
 0x34f   : > { %2961 = shalt.err (!%p2958_p5)
}
 0x350   : > { %2789 = dma.vmem_to_hbm [thread:$0]  (%p2792_p7), %s2224_s23, 32, %s3629_s7, [#allocation4]  }
 0x351   : > { %2967 = dma.done.wait (%p2792_p7), [#allocation4], 32  }
 0x352   : > { %2969 = vsyncadd (%p2792_p7), [#allocation4], 4294967264 }
 0x353 PF: > { %s18_s24 = sadd.s32 1, %s2972_s24  }
 0x354   : > { %p15_p6 = scmp.ge.s32.totalorder %s18_s24, 8  }
 0x356   :  { %17 = sbr.rel (!%p15_p6) target bundleno = 1 (0x1), region = 86 }
 0x35d   :  { %2236 = vsyncpa [#allocation4], 1 }
 0x35e   :  { %2238 = vsyncpa [#allocation4 + $0x1], 1 }

</bundles_post_ra>
